<compile_context>
chip_gen: v6e
topology: v6e:2x2x1
jax: 0.10.0
libtpu: 0.0.40
codegen_flags: <defaults>
</compile_context>

<pallas_src>
import functools
import math

import numpy as np
import jax
import jax.numpy as jnp
from jax import lax
from jax.experimental import pallas as pl
from jax.experimental.pallas import tpu as pltpu

# ------------------------- small, module-consistent config -------------------------
EMBED_DIM = 32
ENC_DEPTHS = (2, 1)
ENC_HEADS = (2, 4)
DEC_DEPTHS = (1, 2)          # sums of enc/dec depths must match (assert in reference)
DEC_HEADS = (4, 2)
WINDOW = (2, 2, 2)
MLP_RATIO = 4.0
LN_EPS = 1e-5

# Matmul operand dtype. Keep f32 for exact parity with the PyTorch module; set to jnp.bfloat16
# on v6e/v7x for the native-bf16 MXU path (LN / softmax / residual math stays f32 regardless).
MXU_INPUT_DTYPE = jnp.float32


# ================================ in-kernel helpers ================================
def _mm(a, b):
    return jnp.dot(a.astype(MXU_INPUT_DTYPE), b.astype(MXU_INPUT_DTYPE),
                   preferred_element_type=jnp.float32)


def _ln_noaffine(x):
    mu = jnp.mean(x, axis=-1, keepdims=True)
    xc = x - mu
    var = jnp.mean(xc * xc, axis=-1, keepdims=True)
    return xc * lax.rsqrt(var + LN_EPS)


def _gelu(x):
    # TODO(synk): PyTorch nn.GELU() is the exact erf form; tanh approximation used here.
    return jax.nn.gelu(x)


def _silu(x):
    return x * jax.nn.sigmoid(x)


# ================================ Pallas kernels ================================
def _linear_kernel(x_ref, w_ref, b_ref, o_ref):
    """y = x @ w + b on one (TM, K) row tile."""
    x = x_ref[0].astype(jnp.float32)
    y = _mm(x, w_ref[...]) + b_ref[...].astype(jnp.float32)
    o_ref[0] = y.astype(o_ref.dtype)


def _ln_linear_kernel(x_ref, a_ref, b_ref, w_ref, wb_ref, o_ref):
    """out = (LN_noaffine(x) * a + b) @ w + wb.  a/b are per-batch or shared (1, D)."""
    x = x_ref[0].astype(jnp.float32)
    h = _ln_noaffine(x) * a_ref[0].astype(jnp.float32) + b_ref[0].astype(jnp.float32)
    y = _mm(h, w_ref[...]) + wb_ref[...].astype(jnp.float32)
    o_ref[0] = y.astype(o_ref.dtype)


def _swin_block_kernel(x_ref, mask_ref, sh1_ref, sc1_ref, sh2_ref, sc2_ref,
                       wqkv_ref, bqkv_ref, wproj_ref, bproj_ref,
                       w1_ref, b1_ref, w2_ref, b2_ref, o_ref, *, num_heads):
    """One whole Swin block for one batch item, entirely in VMEM.

    x:    (1, L, D)  tokens of this batch item (original raster order)
    mask: (L, L)     dense attention mask: 0 same-window/same-region, -100 same-window
                     cross-region (shift mask), -1e9 across windows.
    """
    x = x_ref[0].astype(jnp.float32)                              # (L, D)
    L, D = x.shape
    Dh = D // num_heads
    scale = Dh ** -0.5

    # ---- AdaLN1 + QKV projection ----
    h = _ln_noaffine(x) * (1.0 + sc1_ref[0].astype(jnp.float32)) + sh1_ref[0].astype(jnp.float32)
    qkv = _mm(h, wqkv_ref[...]) + bqkv_ref[...].astype(jnp.float32)     # (L, 3D)

    mask = mask_ref[...].astype(jnp.float32)                      # (L, L)

    # ---- dense block-diagonal windowed attention (per head, static unroll) ----
    head_outs = []
    for hd in range(num_heads):
        q = qkv[:, hd * Dh:(hd + 1) * Dh] * scale                 # (L, Dh)
        k = qkv[:, D + hd * Dh:D + (hd + 1) * Dh]                 # (L, Dh)
        v = qkv[:, 2 * D + hd * Dh:2 * D + (hd + 1) * Dh]         # (L, Dh)
        s = jnp.einsum("qd,kd->qk", q.astype(MXU_INPUT_DTYPE), k.astype(MXU_INPUT_DTYPE),
                       preferred_element_type=jnp.float32)        # (L, L), lane-dense
        s = s + mask
        s = s - jnp.max(s, axis=-1, keepdims=True)
        p = jnp.exp(s)
        p = p * pl.reciprocal(jnp.sum(p, axis=-1, keepdims=True), approx=True)
        head_outs.append(_mm(p, v))                               # (L, Dh)
    attn = jnp.concatenate(head_outs, axis=-1)                    # (L, D)

    # ---- output projection + residual ----
    attn = _mm(attn, wproj_ref[...]) + bproj_ref[...].astype(jnp.float32)
    x = x + attn

    # ---- AdaLN2 + MLP + residual (drop_path = identity in eval) ----
    h2 = _ln_noaffine(x) * (1.0 + sc2_ref[0].astype(jnp.float32)) + sh2_ref[0].astype(jnp.float32)
    h2 = _mm(h2, w1_ref[...]) + b1_ref[...].astype(jnp.float32)
    h2 = _gelu(h2)
    h2 = _mm(h2, w2_ref[...]) + b2_ref[...].astype(jnp.float32)
    o_ref[0] = (x + h2).astype(o_ref.dtype)


def _conditioning_kernel(e_ref, w1_ref, b1_ref, w2_ref, b2_ref, wm_ref, bm_ref, o_ref):
    """time_mlp (linear->silu->linear) + SiLU + concat-of-all-blocks modulation projection."""
    e = e_ref[...].astype(jnp.float32)
    h = _mm(e, w1_ref[...]) + b1_ref[...].astype(jnp.float32)
    h = _silu(h)
    c = _mm(h, w2_ref[...]) + b2_ref[...].astype(jnp.float32)
    c = _silu(c)                                                  # SiLU of adaLN_modulation
    m = _mm(c, wm_ref[...]) + bm_ref[...].astype(jnp.float32)
    o_ref[...] = m.astype(o_ref.dtype)


# ================================ kernel wrappers ================================
def _tile_rows(L, row_bytes):
    """Largest row tile dividing L whose (double-buffered) block stays well under scoped VMEM.

    Budget is conservative so the same tiling is safe on v7x's 64 MiB VMEM.
    """
    budget = 2 << 20                                              # ~2 MiB per buffered operand
    cap = max(8, budget // max(row_bytes, 1))
    if L <= cap:
        return L
    for t in (4096, 2048, 1024, 512, 256, 128, 64, 32, 16, 8):
        if t <= cap and L % t == 0:
            return t
    return L


def _norm_mod(v, D):
    """Normalize a modulation / affine vector to (groups, 1, D) for per-batch BlockSpec selection."""
    v = jnp.asarray(v)
    if v.ndim == 1:
        return v.reshape(1, 1, D)
    return v.reshape(v.shape[0], 1, D)


def pallas_linear3d(x, w, b=None):
    """y = x @ w + b on (B, L, D) tokens; w stored (in, out)."""
    B, L, D = x.shape
    N = w.shape[1]
    TM = _tile_rows(L, 4 * (D + N))
    b2 = (b if b is not None else jnp.zeros((N,), x.dtype)).reshape(1, N)
    return pl.pallas_call(
        _linear_kernel,
        out_shape=jax.ShapeDtypeStruct((B, L, N), x.dtype),
        grid=(B, L // TM),
        in_specs=[
            pl.BlockSpec((1, TM, D), lambda g, i: (g, i, 0)),
            pl.BlockSpec((D, N), lambda g, i: (0, 0)),
            pl.BlockSpec((1, N), lambda g, i: (0, 0)),
        ],
        out_specs=pl.BlockSpec((1, TM, N), lambda g, i: (g, i, 0)),
        compiler_params=pltpu.CompilerParams(dimension_semantics=("parallel", "parallel")),
    )(x, w, b2)


def pallas_ln_linear(x, a, b, w, wb=None):
    """(LN_noaffine(x) * a + b) @ w + wb.  a/b: per-batch (B, D) or shared (D,)."""
    B, L, D = x.shape
    N = w.shape[1]
    TM = _tile_rows(L, 4 * (D + N))
    a3 = _norm_mod(a, D)
    b3 = _norm_mod(b, D)
    wb2 = (wb if wb is not None else jnp.zeros((N,), x.dtype)).reshape(1, N)
    a_map = (lambda g, i: (g, 0, 0)) if a3.shape[0] == B else (lambda g, i: (0, 0, 0))
    b_map = (lambda g, i: (g, 0, 0)) if b3.shape[0] == B else (lambda g, i: (0, 0, 0))
    return pl.pallas_call(
        _ln_linear_kernel,
        out_shape=jax.ShapeDtypeStruct((B, L, N), x.dtype),
        grid=(B, L // TM),
        in_specs=[
            pl.BlockSpec((1, TM, D), lambda g, i: (g, i, 0)),
            pl.BlockSpec((1, 1, D), a_map),
            pl.BlockSpec((1, 1, D), b_map),
            pl.BlockSpec((D, N), lambda g, i: (0, 0)),
            pl.BlockSpec((1, N), lambda g, i: (0, 0)),
        ],
        out_specs=pl.BlockSpec((1, TM, N), lambda g, i: (g, i, 0)),
        compiler_params=pltpu.CompilerParams(dimension_semantics=("parallel", "parallel")),
    )(x, a3, b3, w, wb2)


def pallas_swin_block(x, mask, mods, p, num_heads):
    """One fused Swin block: AdaLN1+QKV+attn+proj+residual+AdaLN2+MLP+residual; grid over batch."""
    B, L, D = x.shape
    Hd = p["fc1"]["w"].shape[1]
    shift1, scale1, shift2, scale2 = (m.reshape(B, 1, D) for m in mods)
    bqkv = (p["qkv"]["b"] if p["qkv"]["b"] is not None else jnp.zeros((3 * D,), x.dtype)).reshape(1, 3 * D)
    bproj = (p["proj"]["b"] if p["proj"]["b"] is not None else jnp.zeros((D,), x.dtype)).reshape(1, D)
    b1 = (p["fc1"]["b"] if p["fc1"]["b"] is not None else jnp.zeros((Hd,), x.dtype)).reshape(1, Hd)
    b2 = (p["fc2"]["b"] if p["fc2"]["b"] is not None else jnp.zeros((D,), x.dtype)).reshape(1, D)
    return pl.pallas_call(
        functools.partial(_swin_block_kernel, num_heads=num_heads),
        out_shape=jax.ShapeDtypeStruct((B, L, D), x.dtype),
        grid=(B,),
        in_specs=[
            pl.BlockSpec((1, L, D), lambda g: (g, 0, 0)),     # x
            pl.BlockSpec((L, L), lambda g: (0, 0)),           # dense window mask
            pl.BlockSpec((1, 1, D), lambda g: (g, 0, 0)),     # shift1
            pl.BlockSpec((1, 1, D), lambda g: (g, 0, 0)),     # scale1
            pl.BlockSpec((1, 1, D), lambda g: (g, 0, 0)),     # shift2
            pl.BlockSpec((1, 1, D), lambda g: (g, 0, 0)),     # scale2
            pl.BlockSpec((D, 3 * D), lambda g: (0, 0)),       # Wqkv
            pl.BlockSpec((1, 3 * D), lambda g: (0, 0)),       # bqkv
            pl.BlockSpec((D, D), lambda g: (0, 0)),           # Wproj
            pl.BlockSpec((1, D), lambda g: (0, 0)),           # bproj
            pl.BlockSpec((D, Hd), lambda g: (0, 0)),          # W1
            pl.BlockSpec((1, Hd), lambda g: (0, 0)),          # b1
            pl.BlockSpec((Hd, D), lambda g: (0, 0)),          # W2
            pl.BlockSpec((1, D), lambda g: (0, 0)),           # b2
        ],
        out_specs=pl.BlockSpec((1, L, D), lambda g: (g, 0, 0)),
        compiler_params=pltpu.CompilerParams(dimension_semantics=("parallel",)),
    )(x, mask, shift1, scale1, shift2, scale2,
      p["qkv"]["w"], bqkv, p["proj"]["w"], bproj,
      p["fc1"]["w"], b1, p["fc2"]["w"], b2)


def pallas_conditioning(emb, tm1, tm2, mod_all):
    """One call for time_mlp + SiLU + all-block modulation projections."""
    B, Din = emb.shape
    H1 = tm1["w"].shape[1]
    H2 = tm2["w"].shape[1]
    TOT = mod_all["w"].shape[1]
    Bp = max(8, ((B + 7) // 8) * 8)                               # tiny one-time pad for MXU rows
    emb_p = jnp.pad(emb, ((0, Bp - B), (0, 0))) if Bp != B else emb
    args = [emb_p, tm1["w"], tm1["b"].reshape(1, H1), tm2["w"], tm2["b"].reshape(1, H2),
            mod_all["w"], mod_all["b"].reshape(1, TOT)]
    in_specs = [pl.BlockSpec(a.shape, lambda i: (0, 0)) for a in args]   # full-array blocks
    out = pl.pallas_call(
        _conditioning_kernel,
        out_shape=jax.ShapeDtypeStruct((Bp, TOT), emb.dtype),
        grid=(1,),
        in_specs=in_specs,
        out_specs=pl.BlockSpec((Bp, TOT), lambda i: (0, 0)),
        compiler_params=pltpu.CompilerParams(dimension_semantics=("arbitrary",)),
    )(*args)
    return out[:B]


# ================================ Swin-3D glue ================================
def get_window_size(x_size, window_size, shift_size):
    win, sh = list(window_size), list(shift_size)
    for i in range(3):
        if x_size[i] <= window_size[i]:
            win[i] = x_size[i]
            sh[i] = 0
    return tuple(win), tuple(sh)


def dense_window_mask(res, window_req, shifted):
    """Dense (L, L) additive mask in original token (C,H,W raster) order.

    Equivalent to roll + window_partition + per-window (shift) mask of the reference:
      0    -> same shifted-window AND same shift region
      -100 -> same shifted-window, different shift region (reference shift mask value)
      -1e9 -> different shifted-window (exp underflows to exactly 0 -> identical softmax)
    """
    C, H, W = res
    shift_req = tuple(w // 2 for w in window_req)
    win, shift = get_window_size(res, window_req, shift_req)
    if not shifted:
        shift = (0, 0, 0)
    # TODO(synk): pad-to-window (resolution not divisible by the clipped window) not supported here.
    assert C % win[0] == 0 and H % win[1] == 0 and W % win[2] == 0, \
        "fused dense-mask attention requires window-divisible resolutions"

    def pos_win_region(n, w_, s_):
        idx = np.arange(n)
        p = (idx - s_) % n                      # position in the shifted frame
        wid = p // w_
        reg = np.zeros(n, dtype=np.int64)
        if s_ > 0:
            reg_map = np.zeros(n, dtype=np.int64)
            reg_map[0:n - w_] = 0               # slice(0, -w)
            reg_map[n - w_:n - s_] = 1          # slice(-w, -s)
            reg_map[n - s_:n] = 2               # slice(-s, None)
            reg = reg_map[p]
        return wid, reg

    wc, rc = pos_win_region(C, win[0], shift[0])
    wh, rh = pos_win_region(H, win[1], shift[1])
    ww, rw = pos_win_region(W, win[2], shift[2])
    nWh, nWw = H // win[1], W // win[2]
    wid = (wc[:, None, None] * (nWh * nWw) + wh[None, :, None] * nWw + ww[None, None, :]).reshape(-1)
    reg = (rc[:, None, None] * 9 + rh[None, :, None] * 3 + rw[None, None, :]).reshape(-1)
    same_w = wid[:, None] == wid[None, :]
    same_r = reg[:, None] == reg[None, :]
    mask = np.where(same_w, np.where(same_r, 0.0, -100.0), -1e9).astype(np.float32)
    return jnp.asarray(mask)


def _run_blocks(p, x, mods_layer, res, window_size, num_heads):
    depth = len(p["blocks"])
    mask_plain = dense_window_mask(res, window_size, shifted=False)
    mask_shift = dense_window_mask(res, window_size, shifted=True) if depth > 1 else None
    for j in range(depth):
        mask = mask_plain if (j % 2 == 0 or mask_shift is None) else mask_shift
        x = pallas_swin_block(x, mask, mods_layer[j], p["blocks"][j], num_heads)
    return x


def patch_merging(p, x, res):
    B, L, D = x.shape
    C, H, W = res
    x = x.reshape(B, C, H, W, D)
    pad_h, pad_w = H % 2, W % 2
    if pad_h or pad_w:
        x = jnp.pad(x, ((0, 0), (0, 0), (0, pad_h), (0, pad_w), (0, 0)))
    x0 = x[:, :, 0::2, 0::2, :]
    x1 = x[:, :, 1::2, 0::2, :]
    x2 = x[:, :, 0::2, 1::2, :]
    x3 = x[:, :, 1::2, 1::2, :]
    x = jnp.concatenate([x0, x1, x2, x3], axis=-1).reshape(B, -1, 4 * D)
    # fused LayerNorm(affine) + reduction linear (4D -> 2D, no bias)
    return pallas_ln_linear(x, p["norm_g"], p["norm_b"], p["red"]["w"], None)


def patch_splitting(p, x, res, crop):
    B, L, D = x.shape
    C, H, W = res
    x = pallas_linear3d(x, p["lin1"]["w"], None)                  # D -> 2D, no bias
    x = x.reshape(B, C, H, W, 2, 2, D // 2)
    x = x.transpose(0, 1, 2, 4, 3, 5, 6).reshape(B, C, 2 * H, 2 * W, D // 2)
    pc, ph, pw = crop
    x = x[:, :C - pc if pc else C, :2 * H - ph if ph else 2 * H, :2 * W - pw if pw else 2 * W, :]
    x = x.reshape(B, -1, D // 2)
    # fused LayerNorm(affine) + lin2 (D/2 -> D/2, no bias)
    return pallas_ln_linear(x, p["norm_g"], p["norm_b"], p["lin2"]["w"], None)


def encoder_layer_forward(p, x, mods_layer, res, window_size, num_heads):
    x = _run_blocks(p, x, mods_layer, res, window_size, num_heads)
    if p["downsample"] is not None:
        return patch_merging(p["downsample"], x, res), x
    return x, x


def decoder_layer_forward(p, x, mods_layer, res, crop, window_size, num_heads):
    x = _run_blocks(p, x, mods_layer, res, window_size, num_heads)
    if p["upsample"] is not None:
        return patch_splitting(p["upsample"], x, res, crop), x
    return x, x


def get_encoder_specs(patch_shape, num_encoder_layers):
    all_res = [patch_shape]
    padded_outs = []
    for _ in range(1, num_encoder_layers):
        C, H, W = all_res[-1]
        pad_H, pad_W = H % 2, W % 2
        padded_outs.append((0, pad_H, pad_W))
        all_res.append((C, (H + pad_H) // 2, (W + pad_W) // 2))
    padded_outs.append((0, 0, 0))
    return all_res, padded_outs


def lead_time_expansion(lead_times, dim):
    half = dim // 2
    freqs = jnp.exp(-math.log(10000.0) * jnp.arange(half, dtype=jnp.float32) / half)
    args = lead_times[:, None] * freqs[None, :]
    return jnp.concatenate([jnp.sin(args), jnp.cos(args)], axis=-1)


def carve_mods(params, mods_flat):
    """Split the single (B, sum(4*dim)) conditioning slab into per-block (shift1, scale1, shift2, scale2)."""
    mods = []
    off = 0
    for lp in params["encoder_layers"] + params["decoder_layers"]:
        layer_mods = []
        for bp in lp["blocks"]:
            dim = bp["proj"]["w"].shape[0]
            ch = mods_flat[:, off:off + 4 * dim]
            off += 4 * dim
            layer_mods.append((ch[:, :dim], ch[:, dim:2 * dim],
                               ch[:, 2 * dim:3 * dim], ch[:, 3 * dim:]))
        mods.append(layer_mods)
    assert off == mods_flat.shape[1]
    return mods


def swin3d_forward(params, x, lead_time_hours, rollout_step, patch_shape):
    B, L, D = x.shape
    assert L == patch_shape[0] * patch_shape[1] * patch_shape[2]
    assert patch_shape[0] % WINDOW[0] == 0
    del rollout_step  # only used by LoRA (disabled)

    all_enc_res, padded_outs = get_encoder_specs(patch_shape, len(params["encoder_layers"]))

    lead_times = jnp.full((B,), lead_time_hours, jnp.float32)
    emb = lead_time_expansion(lead_times, EMBED_DIM).astype(x.dtype)
    mods_flat = pallas_conditioning(emb, params["time_mlp"][0], params["time_mlp"][1],
                                    params["mod_all"])            # (B, sum(4*dim))
    mods = carve_mods(params, mods_flat)

    n_enc = len(params["encoder_layers"])
    skips = []
    for i, lp in enumerate(params["encoder_layers"]):
        x, x_unscaled = encoder_layer_forward(lp, x, mods[i], all_enc_res[i], WINDOW, ENC_HEADS[i])
        skips.append(x_unscaled)

    num_dec = len(params["decoder_layers"])
    for i, lp in enumerate(params["decoder_layers"]):
        index = num_dec - i - 1
        x, _ = decoder_layer_forward(lp, x, mods[n_enc + i], all_enc_res[index],
                                     padded_outs[index - 1], WINDOW, DEC_HEADS[i])
        if 0 < i < num_dec - 1:
            x = x + skips[index - 1]
        elif i == num_dec - 1:
            x = jnp.concatenate([x, skips[0]], axis=-1)
    return pallas_linear3d(x, params["final_proj"]["w"], params["final_proj"]["b"])


# ================================ parameter init ================================
class KeyGen:
    def __init__(self, key):
        self.key = key

    def __call__(self):
        self.key, sub = jax.random.split(self.key)
        return sub


def linear_params(kg, in_dim, out_dim, bias=True, scale=0.02):
    # weights stored pre-transposed: (in, out)
    w = jax.random.normal(kg(), (in_dim, out_dim), jnp.float32) * scale
    b = jnp.zeros((out_dim,), jnp.float32) if bias else None
    return {"w": w, "b": b}


def block_params(kg, dim, mlp_ratio):
    hidden = int(dim * mlp_ratio)
    return {
        "qkv": linear_params(kg, dim, 3 * dim),
        "proj": linear_params(kg, dim, dim),
        "fc1": linear_params(kg, dim, hidden),
        "fc2": linear_params(kg, hidden, dim),
    }


def init_params(key):
    kg = KeyGen(key)
    params = {
        "time_mlp": [linear_params(kg, EMBED_DIM, EMBED_DIM),
                     linear_params(kg, EMBED_DIM, EMBED_DIM)]
    }
    mod_w_parts, mod_b_parts = [], []

    def make_blocks(dim, depth):
        blocks = []
        for _ in range(depth):
            blocks.append(block_params(kg, dim, MLP_RATIO))
            # per-block adaLN modulation: [shift1 | scale1 | shift2 | scale2] (4*dim outputs)
            m = linear_params(kg, EMBED_DIM, 4 * dim)
            mod_w_parts.append(m["w"])
            mod_b_parts.append(m["b"])
        return blocks

    enc = []
    for i in range(len(ENC_DEPTHS)):
        dim = EMBED_DIM * 2 ** i
        layer = {"blocks": make_blocks(dim, ENC_DEPTHS[i])}       # num_heads kept STATIC (module consts)
        if i < len(ENC_DEPTHS) - 1:
            layer["downsample"] = {"norm_g": jnp.ones((4 * dim,), jnp.float32),
                                   "norm_b": jnp.zeros((4 * dim,), jnp.float32),
                                   "red": linear_params(kg, 4 * dim, 2 * dim, bias=False)}
        else:
            layer["downsample"] = None
        enc.append(layer)
    params["encoder_layers"] = enc

    dec = []
    num_dec = len(DEC_DEPTHS)
    for i in range(num_dec):
        dim = EMBED_DIM * 2 ** (num_dec - i - 1)
        layer = {"blocks": make_blocks(dim, DEC_DEPTHS[i])}
        if i < num_dec - 1:
            layer["upsample"] = {"lin1": linear_params(kg, dim, 2 * dim, bias=False),
                                 "norm_g": jnp.ones((dim // 2,), jnp.float32),
                                 "norm_b": jnp.zeros((dim // 2,), jnp.float32),
                                 "lin2": linear_params(kg, dim // 2, dim // 2, bias=False)}
        else:
            layer["upsample"] = None
        dec.append(layer)
    params["decoder_layers"] = dec

    params["mod_all"] = {"w": jnp.concatenate(mod_w_parts, axis=1),
                         "b": jnp.concatenate(mod_b_parts, axis=0)}
    params["final_proj"] = linear_params(kg, 2 * EMBED_DIM, EMBED_DIM)
    return params


# ==================================== main ====================================
if __name__ == "__main__":
    key = jax.random.PRNGKey(0)
    pkey, xkey = jax.random.split(key)
    params = init_params(pkey)

    B = 2
    patch_shape = (2, 8, 8)                       # (C, H, W)
    L = patch_shape[0] * patch_shape[1] * patch_shape[2]
    x = jax.random.normal(xkey, (B, L, EMBED_DIM), jnp.float32)

    fwd = jax.jit(lambda p, xx: swin3d_forward(p, xx, lead_time_hours=6.0,
                                               rollout_step=0, patch_shape=patch_shape))
    out = jax.block_until_ready(fwd(params, x))
    assert out.shape == (B, L, EMBED_DIM), out.shape
    assert bool(jnp.all(jnp.isfinite(out)))
    print("KERNEL_OK")
</pallas_src>

<mosaic_0001>
module attributes {stable_mosaic.version = 11 : i64} {
  func.func @_conditioning_kernel(%arg0: i32, %arg1: memref<8x32xf32, #tpu.memory_space<vmem>>, %arg2: memref<32x32xf32, #tpu.memory_space<vmem>>, %arg3: memref<1x32xf32, #tpu.memory_space<vmem>>, %arg4: memref<32x32xf32, #tpu.memory_space<vmem>>, %arg5: memref<1x32xf32, #tpu.memory_space<vmem>>, %arg6: memref<32x1024xf32, #tpu.memory_space<vmem>>, %arg7: memref<1x1024xf32, #tpu.memory_space<vmem>>, %arg8: memref<8x1024xf32, #tpu.memory_space<vmem>>) attributes {dimension_semantics = [#tpu.dimension_semantics<arbitrary>], iteration_bounds = array<i64: 1>, scalar_prefetch = 0 : i64, scratch_operands = 0 : i64, tpu.core_type = #tpu.core_type<tc>, window_params = [{pipeline_mode = #tpu.pipeline_mode<synchronous>, transform_indices = @transform_0, window_bounds = array<i64: 8, 32>}, {pipeline_mode = #tpu.pipeline_mode<synchronous>, transform_indices = @transform_1, window_bounds = array<i64: 32, 32>}, {pipeline_mode = #tpu.pipeline_mode<synchronous>, transform_indices = @transform_2, window_bounds = array<i64: 1, 32>}, {pipeline_mode = #tpu.pipeline_mode<synchronous>, transform_indices = @transform_3, window_bounds = array<i64: 32, 32>}, {pipeline_mode = #tpu.pipeline_mode<synchronous>, transform_indices = @transform_4, window_bounds = array<i64: 1, 32>}, {pipeline_mode = #tpu.pipeline_mode<synchronous>, transform_indices = @transform_5, window_bounds = array<i64: 32, 1024>}, {pipeline_mode = #tpu.pipeline_mode<synchronous>, transform_indices = @transform_6, window_bounds = array<i64: 1, 1024>}, {pipeline_mode = #tpu.pipeline_mode<synchronous>, transform_indices = @transform_7, window_bounds = array<i64: 8, 1024>}]} {
    %c0 = arith.constant 0 : index
    %c0_0 = arith.constant 0 : index
    %0 = vector.load %arg1[%c0, %c0_0] : memref<8x32xf32, #tpu.memory_space<vmem>>, vector<8x32xf32>
    %c0_1 = arith.constant 0 : index
    %c0_2 = arith.constant 0 : index
    %1 = vector.load %arg2[%c0_1, %c0_2] : memref<32x32xf32, #tpu.memory_space<vmem>>, vector<32x32xf32>
    %cst = arith.constant dense<0.000000e+00> : vector<8x32xf32>
    %2 = tpu.matmul %0, %1, %cst {dimension_numbers = #tpu.dot_dimension_numbers<[1], [0], [0], [1], [0, 0, 1, 1], [], []>} : vector<8x32xf32>, vector<32x32xf32>, vector<8x32xf32> -> vector<8x32xf32>
    %c0_3 = arith.constant 0 : index
    %c0_4 = arith.constant 0 : index
    %3 = vector.load %arg3[%c0_3, %c0_4] : memref<1x32xf32, #tpu.memory_space<vmem>>, vector<1x32xf32>
    %4 = vector.broadcast %3 : vector<1x32xf32> to vector<8x32xf32>
    %5 = arith.addf %2, %4 : vector<8x32xf32>
    %6 = arith.negf %5 : vector<8x32xf32>
    %7 = math.exp %6 : vector<8x32xf32>
    %cst_5 = arith.constant 1.000000e+00 : f32
    %8 = vector.broadcast %cst_5 : f32 to vector<8x32xf32>
    %9 = arith.addf %8, %7 : vector<8x32xf32>
    %10 = arith.divf %8, %9 : vector<8x32xf32>
    %11 = arith.mulf %5, %10 : vector<8x32xf32>
    %c0_6 = arith.constant 0 : index
    %c0_7 = arith.constant 0 : index
    %12 = vector.load %arg4[%c0_6, %c0_7] : memref<32x32xf32, #tpu.memory_space<vmem>>, vector<32x32xf32>
    %cst_8 = arith.constant dense<0.000000e+00> : vector<8x32xf32>
    %13 = tpu.matmul %11, %12, %cst_8 {dimension_numbers = #tpu.dot_dimension_numbers<[1], [0], [0], [1], [0, 0, 1, 1], [], []>} : vector<8x32xf32>, vector<32x32xf32>, vector<8x32xf32> -> vector<8x32xf32>
    %c0_9 = arith.constant 0 : index
    %c0_10 = arith.constant 0 : index
    %14 = vector.load %arg5[%c0_9, %c0_10] : memref<1x32xf32, #tpu.memory_space<vmem>>, vector<1x32xf32>
    %15 = vector.broadcast %14 : vector<1x32xf32> to vector<8x32xf32>
    %16 = arith.addf %13, %15 : vector<8x32xf32>
    %17 = arith.negf %16 : vector<8x32xf32>
    %18 = math.exp %17 : vector<8x32xf32>
    %cst_11 = arith.constant 1.000000e+00 : f32
    %19 = vector.broadcast %cst_11 : f32 to vector<8x32xf32>
    %20 = arith.addf %19, %18 : vector<8x32xf32>
    %21 = arith.divf %19, %20 : vector<8x32xf32>
    %22 = arith.mulf %16, %21 : vector<8x32xf32>
    %c0_12 = arith.constant 0 : index
    %c0_13 = arith.constant 0 : index
    %23 = vector.load %arg6[%c0_12, %c0_13] : memref<32x1024xf32, #tpu.memory_space<vmem>>, vector<32x1024xf32>
    %cst_14 = arith.constant dense<0.000000e+00> : vector<8x1024xf32>
    %24 = tpu.matmul %22, %23, %cst_14 {dimension_numbers = #tpu.dot_dimension_numbers<[1], [0], [0], [1], [0, 0, 1, 1], [], []>} : vector<8x32xf32>, vector<32x1024xf32>, vector<8x1024xf32> -> vector<8x1024xf32>
    %c0_15 = arith.constant 0 : index
    %c0_16 = arith.constant 0 : index
    %25 = vector.load %arg7[%c0_15, %c0_16] : memref<1x1024xf32, #tpu.memory_space<vmem>>, vector<1x1024xf32>
    %26 = vector.broadcast %25 : vector<1x1024xf32> to vector<8x1024xf32>
    %27 = arith.addf %24, %26 : vector<8x1024xf32>
    %c0_17 = arith.constant 0 : index
    %c0_18 = arith.constant 0 : index
    %28 = vector.load %arg8[%c0_17, %c0_18] : memref<8x1024xf32, #tpu.memory_space<vmem>>, vector<8x1024xf32>
    tpu.vector_store %arg8[%c0_17, %c0_18], %27 {strides = array<i32>} : memref<8x1024xf32, #tpu.memory_space<vmem>>, vector<8x1024xf32>,
    return
  }
  func.func @transform_0(%arg0: i32) -> (i32, i32) {
    %c0_i32 = arith.constant 0 : i32
    %c0_i32_0 = arith.constant 0 : i32
    %c0_i32_1 = arith.constant 0 : i32
    return %c0_i32, %c0_i32_0 : i32, i32
  }
  func.func @transform_1(%arg0: i32) -> (i32, i32) {
    %c0_i32 = arith.constant 0 : i32
    %c0_i32_0 = arith.constant 0 : i32
    %c0_i32_1 = arith.constant 0 : i32
    return %c0_i32, %c0_i32_0 : i32, i32
  }
  func.func @transform_2(%arg0: i32) -> (i32, i32) {
    %c0_i32 = arith.constant 0 : i32
    %c0_i32_0 = arith.constant 0 : i32
    %c0_i32_1 = arith.constant 0 : i32
    return %c0_i32, %c0_i32_0 : i32, i32
  }
  func.func @transform_3(%arg0: i32) -> (i32, i32) {
    %c0_i32 = arith.constant 0 : i32
    %c0_i32_0 = arith.constant 0 : i32
    %c0_i32_1 = arith.constant 0 : i32
    return %c0_i32, %c0_i32_0 : i32, i32
  }
  func.func @transform_4(%arg0: i32) -> (i32, i32) {
    %c0_i32 = arith.constant 0 : i32
    %c0_i32_0 = arith.constant 0 : i32
    %c0_i32_1 = arith.constant 0 : i32
    return %c0_i32, %c0_i32_0 : i32, i32
  }
  func.func @transform_5(%arg0: i32) -> (i32, i32) {
    %c0_i32 = arith.constant 0 : i32
    %c0_i32_0 = arith.constant 0 : i32
    %c0_i32_1 = arith.constant 0 : i32
    return %c0_i32, %c0_i32_0 : i32, i32
  }
  func.func @transform_6(%arg0: i32) -> (i32, i32) {
    %c0_i32 = arith.constant 0 : i32
    %c0_i32_0 = arith.constant 0 : i32
    %c0_i32_1 = arith.constant 0 : i32
    return %c0_i32, %c0_i32_0 : i32, i32
  }
  func.func @transform_7(%arg0: i32) -> (i32, i32) {
    %c0_i32 = arith.constant 0 : i32
    %c0_i32_0 = arith.constant 0 : i32
    %c0_i32_1 = arith.constant 0 : i32
    return %c0_i32, %c0_i32_0 : i32, i32
  }
}

module attributes {stable_mosaic.version = 11 : i64} {
  func.func @_swin_block_kernel(%arg0: i32, %arg1: memref<1x128x32xf32, #tpu.memory_space<vmem>>, %arg2: memref<128x128xf32, #tpu.memory_space<vmem>>, %arg3: memref<1x1x32xf32, #tpu.memory_space<vmem>>, %arg4: memref<1x1x32xf32, #tpu.memory_space<vmem>>, %arg5: memref<1x1x32xf32, #tpu.memory_space<vmem>>, %arg6: memref<1x1x32xf32, #tpu.memory_space<vmem>>, %arg7: memref<32x96xf32, #tpu.memory_space<vmem>>, %arg8: memref<1x96xf32, #tpu.memory_space<vmem>>, %arg9: memref<32x32xf32, #tpu.memory_space<vmem>>, %arg10: memref<1x32xf32, #tpu.memory_space<vmem>>, %arg11: memref<32x128xf32, #tpu.memory_space<vmem>>, %arg12: memref<1x128xf32, #tpu.memory_space<vmem>>, %arg13: memref<128x32xf32, #tpu.memory_space<vmem>>, %arg14: memref<1x32xf32, #tpu.memory_space<vmem>>, %arg15: memref<1x128x32xf32, #tpu.memory_space<vmem>>) attributes {dimension_semantics = [#tpu.dimension_semantics<parallel>], iteration_bounds = array<i64: 2>, scalar_prefetch = 0 : i64, scratch_operands = 0 : i64, tpu.core_type = #tpu.core_type<tc>, window_params = [{transform_indices = @transform_0, window_bounds = array<i64: 1, 128, 32>}, {pipeline_mode = #tpu.pipeline_mode<synchronous>, transform_indices = @transform_1, window_bounds = array<i64: 128, 128>}, {transform_indices = @transform_2, window_bounds = array<i64: 1, 1, 32>}, {transform_indices = @transform_3, window_bounds = array<i64: 1, 1, 32>}, {transform_indices = @transform_4, window_bounds = array<i64: 1, 1, 32>}, {transform_indices = @transform_5, window_bounds = array<i64: 1, 1, 32>}, {pipeline_mode = #tpu.pipeline_mode<synchronous>, transform_indices = @transform_6, window_bounds = array<i64: 32, 96>}, {pipeline_mode = #tpu.pipeline_mode<synchronous>, transform_indices = @transform_7, window_bounds = array<i64: 1, 96>}, {pipeline_mode = #tpu.pipeline_mode<synchronous>, transform_indices = @transform_8, window_bounds = array<i64: 32, 32>}, {pipeline_mode = #tpu.pipeline_mode<synchronous>, transform_indices = @transform_9, window_bounds = array<i64: 1, 32>}, {pipeline_mode = #tpu.pipeline_mode<synchronous>, transform_indices = @transform_10, window_bounds = array<i64: 32, 128>}, {pipeline_mode = #tpu.pipeline_mode<synchronous>, transform_indices = @transform_11, window_bounds = array<i64: 1, 128>}, {pipeline_mode = #tpu.pipeline_mode<synchronous>, transform_indices = @transform_12, window_bounds = array<i64: 128, 32>}, {pipeline_mode = #tpu.pipeline_mode<synchronous>, transform_indices = @transform_13, window_bounds = array<i64: 1, 32>}, {transform_indices = @transform_14, window_bounds = array<i64: 1, 128, 32>}]} {
    %c0 = arith.constant 0 : index
    %c0_0 = arith.constant 0 : index
    %c0_1 = arith.constant 0 : index
    %0 = vector.load %arg1[%c0, %c0_0, %c0_1] : memref<1x128x32xf32, #tpu.memory_space<vmem>>, vector<1x128x32xf32>
    %1 = vector.shape_cast %0 : vector<1x128x32xf32> to vector<128x32xf32>
    %cst = arith.constant dense<0.000000e+00> : vector<128xf32>
    %2 = vector.multi_reduction <add>, %1, %cst [1] : vector<128x32xf32> to vector<128xf32>
    %3 = vector.shape_cast %2 : vector<128xf32> to vector<128x1xf32>
    %cst_2 = arith.constant 3.200000e+01 : f32
    %4 = vector.broadcast %cst_2 : f32 to vector<128x1xf32>
    %5 = arith.divf %3, %4 : vector<128x1xf32>
    %6 = vector.broadcast %5 : vector<128x1xf32> to vector<128x32xf32>
    %7 = arith.subf %1, %6 : vector<128x32xf32>
    %8 = arith.mulf %7, %7 : vector<128x32xf32>
    %cst_3 = arith.constant dense<0.000000e+00> : vector<128xf32>
    %9 = vector.multi_reduction <add>, %8, %cst_3 [1] : vector<128x32xf32> to vector<128xf32>
    %10 = vector.shape_cast %9 : vector<128xf32> to vector<128x1xf32>
    %cst_4 = arith.constant 3.200000e+01 : f32
    %11 = vector.broadcast %cst_4 : f32 to vector<128x1xf32>
    %12 = arith.divf %10, %11 : vector<128x1xf32>
    %cst_5 = arith.constant 9.99999974E-6 : f32
    %13 = vector.broadcast %cst_5 : f32 to vector<128x1xf32>
    %14 = arith.addf %12, %13 : vector<128x1xf32>
    %15 = math.rsqrt %14 : vector<128x1xf32>
    %16 = vector.broadcast %15 : vector<128x1xf32> to vector<128x32xf32>
    %17 = arith.mulf %7, %16 : vector<128x32xf32>
    %c0_6 = arith.constant 0 : index
    %c0_7 = arith.constant 0 : index
    %c0_8 = arith.constant 0 : index
    %18 = vector.load %arg4[%c0_6, %c0_7, %c0_8] : memref<1x1x32xf32, #tpu.memory_space<vmem>>, vector<1x1x32xf32>
    %19 = vector.shape_cast %18 : vector<1x1x32xf32> to vector<1x32xf32>
    %cst_9 = arith.constant 1.000000e+00 : f32
    %20 = vector.broadcast %cst_9 : f32 to vector<1x32xf32>
    %21 = arith.addf %20, %19 : vector<1x32xf32>
    %22 = vector.broadcast %21 : vector<1x32xf32> to vector<128x32xf32>
    %23 = arith.mulf %17, %22 : vector<128x32xf32>
    %c0_10 = arith.constant 0 : index
    %c0_11 = arith.constant 0 : index
    %c0_12 = arith.constant 0 : index
    %24 = vector.load %arg3[%c0_10, %c0_11, %c0_12] : memref<1x1x32xf32, #tpu.memory_space<vmem>>, vector<1x1x32xf32>
    %25 = vector.shape_cast %24 : vector<1x1x32xf32> to vector<1x32xf32>
    %26 = vector.broadcast %25 : vector<1x32xf32> to vector<128x32xf32>
    %27 = arith.addf %23, %26 : vector<128x32xf32>
    %c0_13 = arith.constant 0 : index
    %c0_14 = arith.constant 0 : index
    %28 = vector.load %arg7[%c0_13, %c0_14] : memref<32x96xf32, #tpu.memory_space<vmem>>, vector<32x96xf32>
    %cst_15 = arith.constant dense<0.000000e+00> : vector<128x96xf32>
    %29 = tpu.matmul %27, %28, %cst_15 {dimension_numbers = #tpu.dot_dimension_numbers<[1], [0], [0], [1], [0, 0, 1, 1], [], []>} : vector<128x32xf32>, vector<32x96xf32>, vector<128x96xf32> -> vector<128x96xf32>
    %c0_16 = arith.constant 0 : index
    %c0_17 = arith.constant 0 : index
    %30 = vector.load %arg8[%c0_16, %c0_17] : memref<1x96xf32, #tpu.memory_space<vmem>>, vector<1x96xf32>
    %31 = vector.broadcast %30 : vector<1x96xf32> to vector<128x96xf32>
    %32 = arith.addf %29, %31 : vector<128x96xf32>
    %c0_18 = arith.constant 0 : index
    %c0_19 = arith.constant 0 : index
    %33 = vector.load %arg2[%c0_18, %c0_19] : memref<128x128xf32, #tpu.memory_space<vmem>>, vector<128x128xf32>
    %34 = vector.extract_strided_slice %32 {offsets = [0, 0], sizes = [128, 16], strides = [1, 1]} : vector<128x96xf32> to vector<128x16xf32>
    %cst_20 = arith.constant 2.500000e-01 : f32
    %35 = vector.broadcast %cst_20 : f32 to vector<128x16xf32>
    %36 = arith.mulf %34, %35 : vector<128x16xf32>
    %37 = vector.extract_strided_slice %32 {offsets = [0, 32], sizes = [128, 16], strides = [1, 1]} : vector<128x96xf32> to vector<128x16xf32>
    %38 = vector.extract_strided_slice %32 {offsets = [0, 64], sizes = [128, 16], strides = [1, 1]} : vector<128x96xf32> to vector<128x16xf32>
    "tpu.trace_start"() <{level = 10 : i32, message = "qd,kd->qk"}> : () -> ()
    %cst_21 = arith.constant dense<0.000000e+00> : vector<128x128xf32>
    %39 = tpu.matmul %36, %37, %cst_21 {dimension_numbers = #tpu.dot_dimension_numbers<[1], [1], [0], [0], [0, 0, 1, 0], [], []>} : vector<128x16xf32>, vector<128x16xf32>, vector<128x128xf32> -> vector<128x128xf32>
    "tpu.trace_stop"() : () -> ()
    %40 = arith.addf %39, %33 : vector<128x128xf32>
    %cst_22 = arith.constant dense<0xFF800000> : vector<128xf32>
    %41 = vector.multi_reduction <maximumf>, %40, %cst_22 [1] : vector<128x128xf32> to vector<128xf32>
    %42 = vector.shape_cast %41 : vector<128xf32> to vector<128x1xf32>
    %43 = vector.broadcast %42 : vector<128x1xf32> to vector<128x128xf32>
    %44 = arith.subf %40, %43 : vector<128x128xf32>
    %45 = math.exp %44 : vector<128x128xf32>
    %cst_23 = arith.constant dense<0.000000e+00> : vector<128xf32>
    %46 = vector.multi_reduction <add>, %45, %cst_23 [1] : vector<128x128xf32> to vector<128xf32>
    %47 = vector.shape_cast %46 : vector<128xf32> to vector<128x1xf32>
    %48 = tpu.reciprocal %47 {approx = true} : vector<128x1xf32> -> vector<128x1xf32>
    %49 = vector.broadcast %48 : vector<128x1xf32> to vector<128x128xf32>
    %50 = arith.mulf %45, %49 : vector<128x128xf32>
    %cst_24 = arith.constant dense<0.000000e+00> : vector<128x16xf32>
    %51 = tpu.matmul %50, %38, %cst_24 {dimension_numbers = #tpu.dot_dimension_numbers<[1], [0], [0], [1], [0, 0, 1, 1], [], []>} : vector<128x128xf32>, vector<128x16xf32>, vector<128x16xf32> -> vector<128x16xf32>
    %52 = vector.extract_strided_slice %32 {offsets = [0, 16], sizes = [128, 16], strides = [1, 1]} : vector<128x96xf32> to vector<128x16xf32>
    %cst_25 = arith.constant 2.500000e-01 : f32
    %53 = vector.broadcast %cst_25 : f32 to vector<128x16xf32>
    %54 = arith.mulf %52, %53 : vector<128x16xf32>
    %55 = vector.extract_strided_slice %32 {offsets = [0, 48], sizes = [128, 16], strides = [1, 1]} : vector<128x96xf32> to vector<128x16xf32>
    %56 = vector.extract_strided_slice %32 {offsets = [0, 80], sizes = [128, 16], strides = [1, 1]} : vector<128x96xf32> to vector<128x16xf32>
    "tpu.trace_start"() <{level = 10 : i32, message = "qd,kd->qk"}> : () -> ()
    %cst_26 = arith.constant dense<0.000000e+00> : vector<128x128xf32>
    %57 = tpu.matmul %54, %55, %cst_26 {dimension_numbers = #tpu.dot_dimension_numbers<[1], [1], [0], [0], [0, 0, 1, 0], [], []>} : vector<128x16xf32>, vector<128x16xf32>, vector<128x128xf32> -> vector<128x128xf32>
    "tpu.trace_stop"() : () -> ()
    %58 = arith.addf %57, %33 : vector<128x128xf32>
    %cst_27 = arith.constant dense<0xFF800000> : vector<128xf32>
    %59 = vector.multi_reduction <maximumf>, %58, %cst_27 [1] : vector<128x128xf32> to vector<128xf32>
    %60 = vector.shape_cast %59 : vector<128xf32> to vector<128x1xf32>
    %61 = vector.broadcast %60 : vector<128x1xf32> to vector<128x128xf32>
    %62 = arith.subf %58, %61 : vector<128x128xf32>
    %63 = math.exp %62 : vector<128x128xf32>
    %cst_28 = arith.constant dense<0.000000e+00> : vector<128xf32>
    %64 = vector.multi_reduction <add>, %63, %cst_28 [1] : vector<128x128xf32> to vector<128xf32>
    %65 = vector.shape_cast %64 : vector<128xf32> to vector<128x1xf32>
    %66 = tpu.reciprocal %65 {approx = true} : vector<128x1xf32> -> vector<128x1xf32>
    %67 = vector.broadcast %66 : vector<128x1xf32> to vector<128x128xf32>
    %68 = arith.mulf %63, %67 : vector<128x128xf32>
    %cst_29 = arith.constant dense<0.000000e+00> : vector<128x16xf32>
    %69 = tpu.matmul %68, %56, %cst_29 {dimension_numbers = #tpu.dot_dimension_numbers<[1], [0], [0], [1], [0, 0, 1, 1], [], []>} : vector<128x128xf32>, vector<128x16xf32>, vector<128x16xf32> -> vector<128x16xf32>
    %70 = tpu.concatenate %51, %69 in 1 : vector<128x16xf32>, vector<128x16xf32> -> vector<128x32xf32>
    %c0_30 = arith.constant 0 : index
    %c0_31 = arith.constant 0 : index
    %71 = vector.load %arg9[%c0_30, %c0_31] : memref<32x32xf32, #tpu.memory_space<vmem>>, vector<32x32xf32>
    %cst_32 = arith.constant dense<0.000000e+00> : vector<128x32xf32>
    %72 = tpu.matmul %70, %71, %cst_32 {dimension_numbers = #tpu.dot_dimension_numbers<[1], [0], [0], [1], [0, 0, 1, 1], [], []>} : vector<128x32xf32>, vector<32x32xf32>, vector<128x32xf32> -> vector<128x32xf32>
    %c0_33 = arith.constant 0 : index
    %c0_34 = arith.constant 0 : index
    %73 = vector.load %arg10[%c0_33, %c0_34] : memref<1x32xf32, #tpu.memory_space<vmem>>, vector<1x32xf32>
    %74 = vector.broadcast %73 : vector<1x32xf32> to vector<128x32xf32>
    %75 = arith.addf %72, %74 : vector<128x32xf32>
    %76 = arith.addf %1, %75 : vector<128x32xf32>
    %cst_35 = arith.constant dense<0.000000e+00> : vector<128xf32>
    %77 = vector.multi_reduction <add>, %76, %cst_35 [1] : vector<128x32xf32> to vector<128xf32>
    %78 = vector.shape_cast %77 : vector<128xf32> to vector<128x1xf32>
    %cst_36 = arith.constant 3.200000e+01 : f32
    %79 = vector.broadcast %cst_36 : f32 to vector<128x1xf32>
    %80 = arith.divf %78, %79 : vector<128x1xf32>
    %81 = vector.broadcast %80 : vector<128x1xf32> to vector<128x32xf32>
    %82 = arith.subf %76, %81 : vector<128x32xf32>
    %83 = arith.mulf %82, %82 : vector<128x32xf32>
    %cst_37 = arith.constant dense<0.000000e+00> : vector<128xf32>
    %84 = vector.multi_reduction <add>, %83, %cst_37 [1] : vector<128x32xf32> to vector<128xf32>
    %85 = vector.shape_cast %84 : vector<128xf32> to vector<128x1xf32>
    %cst_38 = arith.constant 3.200000e+01 : f32
    %86 = vector.broadcast %cst_38 : f32 to vector<128x1xf32>
    %87 = arith.divf %85, %86 : vector<128x1xf32>
    %cst_39 = arith.constant 9.99999974E-6 : f32
    %88 = vector.broadcast %cst_39 : f32 to vector<128x1xf32>
    %89 = arith.addf %87, %88 : vector<128x1xf32>
    %90 = math.rsqrt %89 : vector<128x1xf32>
    %91 = vector.broadcast %90 : vector<128x1xf32> to vector<128x32xf32>
    %92 = arith.mulf %82, %91 : vector<128x32xf32>
    %c0_40 = arith.constant 0 : index
    %c0_41 = arith.constant 0 : index
    %c0_42 = arith.constant 0 : index
    %93 = vector.load %arg6[%c0_40, %c0_41, %c0_42] : memref<1x1x32xf32, #tpu.memory_space<vmem>>, vector<1x1x32xf32>
    %94 = vector.shape_cast %93 : vector<1x1x32xf32> to vector<1x32xf32>
    %cst_43 = arith.constant 1.000000e+00 : f32
    %95 = vector.broadcast %cst_43 : f32 to vector<1x32xf32>
    %96 = arith.addf %95, %94 : vector<1x32xf32>
    %97 = vector.broadcast %96 : vector<1x32xf32> to vector<128x32xf32>
    %98 = arith.mulf %92, %97 : vector<128x32xf32>
    %c0_44 = arith.constant 0 : index
    %c0_45 = arith.constant 0 : index
    %c0_46 = arith.constant 0 : index
    %99 = vector.load %arg5[%c0_44, %c0_45, %c0_46] : memref<1x1x32xf32, #tpu.memory_space<vmem>>, vector<1x1x32xf32>
    %100 = vector.shape_cast %99 : vector<1x1x32xf32> to vector<1x32xf32>
    %101 = vector.broadcast %100 : vector<1x32xf32> to vector<128x32xf32>
    %102 = arith.addf %98, %101 : vector<128x32xf32>
    %c0_47 = arith.constant 0 : index
    %c0_48 = arith.constant 0 : index
    %103 = vector.load %arg11[%c0_47, %c0_48] : memref<32x128xf32, #tpu.memory_space<vmem>>, vector<32x128xf32>
    %cst_49 = arith.constant dense<0.000000e+00> : vector<128x128xf32>
    %104 = tpu.matmul %102, %103, %cst_49 {dimension_numbers = #tpu.dot_dimension_numbers<[1], [0], [0], [1], [0, 0, 1, 1], [], []>} : vector<128x32xf32>, vector<32x128xf32>, vector<128x128xf32> -> vector<128x128xf32>
    %c0_50 = arith.constant 0 : index
    %c0_51 = arith.constant 0 : index
    %105 = vector.load %arg12[%c0_50, %c0_51] : memref<1x128xf32, #tpu.memory_space<vmem>>, vector<1x128xf32>
    %106 = vector.broadcast %105 : vector<1x128xf32> to vector<128x128xf32>
    %107 = arith.addf %104, %106 : vector<128x128xf32>
    %108 = arith.mulf %107, %107 : vector<128x128xf32>
    %109 = arith.mulf %107, %108 : vector<128x128xf32>
    %cst_52 = arith.constant 4.471500e-02 : f32
    %110 = vector.broadcast %cst_52 : f32 to vector<128x128xf32>
    %111 = arith.mulf %110, %109 : vector<128x128xf32>
    %112 = arith.addf %107, %111 : vector<128x128xf32>
    %cst_53 = arith.constant 0.797884583 : f32
    %113 = vector.broadcast %cst_53 : f32 to vector<128x128xf32>
    %114 = arith.mulf %113, %112 : vector<128x128xf32>
    %115 = math.tanh %114 : vector<128x128xf32>
    %cst_54 = arith.constant 1.000000e+00 : f32
    %116 = vector.broadcast %cst_54 : f32 to vector<128x128xf32>
    %117 = arith.addf %116, %115 : vector<128x128xf32>
    %cst_55 = arith.constant 5.000000e-01 : f32
    %118 = vector.broadcast %cst_55 : f32 to vector<128x128xf32>
    %119 = arith.mulf %118, %117 : vector<128x128xf32>
    %120 = arith.mulf %107, %119 : vector<128x128xf32>
    %c0_56 = arith.constant 0 : index
    %c0_57 = arith.constant 0 : index
    %121 = vector.load %arg13[%c0_56, %c0_57] : memref<128x32xf32, #tpu.memory_space<vmem>>, vector<128x32xf32>
    %cst_58 = arith.constant dense<0.000000e+00> : vector<128x32xf32>
    %122 = tpu.matmul %120, %121, %cst_58 {dimension_numbers = #tpu.dot_dimension_numbers<[1], [0], [0], [1], [0, 0, 1, 1], [], []>} : vector<128x128xf32>, vector<128x32xf32>, vector<128x32xf32> -> vector<128x32xf32>
    %c0_59 = arith.constant 0 : index
    %c0_60 = arith.constant 0 : index
    %123 = vector.load %arg14[%c0_59, %c0_60] : memref<1x32xf32, #tpu.memory_space<vmem>>, vector<1x32xf32>
    %124 = vector.broadcast %123 : vector<1x32xf32> to vector<128x32xf32>
    %125 = arith.addf %122, %124 : vector<128x32xf32>
    %126 = arith.addf %76, %125 : vector<128x32xf32>
    %c0_61 = arith.constant 0 : index
    %c0_62 = arith.constant 0 : index
    %c0_63 = arith.constant 0 : index
    %127 = vector.load %arg15[%c0_61, %c0_62, %c0_63] : memref<1x128x32xf32, #tpu.memory_space<vmem>>, vector<1x128x32xf32>
    %128 = vector.shape_cast %127 : vector<1x128x32xf32> to vector<128x32xf32>
    %129 = vector.shape_cast %126 : vector<128x32xf32> to vector<1x128x32xf32>
    tpu.vector_store %arg15[%c0_61, %c0_62, %c0_63], %129 {strides = array<i32>} : memref<1x128x32xf32, #tpu.memory_space<vmem>>, vector<1x128x32xf32>,
    return
  }
  func.func @transform_0(%arg0: i32) -> (i32, i32, i32) {
    %c0_i32 = arith.constant 0 : i32
    %c0_i32_0 = arith.constant 0 : i32
    %c0_i32_1 = arith.constant 0 : i32
    return %arg0, %c0_i32, %c0_i32_0 : i32, i32, i32
  }
  func.func @transform_1(%arg0: i32) -> (i32, i32) {
    %c0_i32 = arith.constant 0 : i32
    %c0_i32_0 = arith.constant 0 : i32
    %c0_i32_1 = arith.constant 0 : i32
    return %c0_i32, %c0_i32_0 : i32, i32
  }
  func.func @transform_2(%arg0: i32) -> (i32, i32, i32) {
    %c0_i32 = arith.constant 0 : i32
    %c0_i32_0 = arith.constant 0 : i32
    %c0_i32_1 = arith.constant 0 : i32
    return %arg0, %c0_i32, %c0_i32_0 : i32, i32, i32
  }
  func.func @transform_3(%arg0: i32) -> (i32, i32, i32) {
    %c0_i32 = arith.constant 0 : i32
    %c0_i32_0 = arith.constant 0 : i32
    %c0_i32_1 = arith.constant 0 : i32
    return %arg0, %c0_i32, %c0_i32_0 : i32, i32, i32
  }
  func.func @transform_4(%arg0: i32) -> (i32, i32, i32) {
    %c0_i32 = arith.constant 0 : i32
    %c0_i32_0 = arith.constant 0 : i32
    %c0_i32_1 = arith.constant 0 : i32
    return %arg0, %c0_i32, %c0_i32_0 : i32, i32, i32
  }
  func.func @transform_5(%arg0: i32) -> (i32, i32, i32) {
    %c0_i32 = arith.constant 0 : i32
    %c0_i32_0 = arith.constant 0 : i32
    %c0_i32_1 = arith.constant 0 : i32
    return %arg0, %c0_i32, %c0_i32_0 : i32, i32, i32
  }
  func.func @transform_6(%arg0: i32) -> (i32, i32) {
    %c0_i32 = arith.constant 0 : i32
    %c0_i32_0 = arith.constant 0 : i32
    %c0_i32_1 = arith.constant 0 : i32
    return %c0_i32, %c0_i32_0 : i32, i32
  }
  func.func @transform_7(%arg0: i32) -> (i32, i32) {
    %c0_i32 = arith.constant 0 : i32
    %c0_i32_0 = arith.constant 0 : i32
    %c0_i32_1 = arith.constant 0 : i32
    return %c0_i32, %c0_i32_0 : i32, i32
  }
  func.func @transform_8(%arg0: i32) -> (i32, i32) {
    %c0_i32 = arith.constant 0 : i32
    %c0_i32_0 = arith.constant 0 : i32
    %c0_i32_1 = arith.constant 0 : i32
    return %c0_i32, %c0_i32_0 : i32, i32
  }
  func.func @transform_9(%arg0: i32) -> (i32, i32) {
    %c0_i32 = arith.constant 0 : i32
    %c0_i32_0 = arith.constant 0 : i32
    %c0_i32_1 = arith.constant 0 : i32
    return %c0_i32, %c0_i32_0 : i32, i32
  }
  func.func @transform_10(%arg0: i32) -> (i32, i32) {
    %c0_i32 = arith.constant 0 : i32
    %c0_i32_0 = arith.constant 0 : i32
    %c0_i32_1 = arith.constant 0 : i32
    return %c0_i32, %c0_i32_0 : i32, i32
  }
  func.func @transform_11(%arg0: i32) -> (i32, i32) {
    %c0_i32 = arith.constant 0 : i32
    %c0_i32_0 = arith.constant 0 : i32
    %c0_i32_1 = arith.constant 0 : i32
    return %c0_i32, %c0_i32_0 : i32, i32
  }
  func.func @transform_12(%arg0: i32) -> (i32, i32) {
    %c0_i32 = arith.constant 0 : i32
    %c0_i32_0 = arith.constant 0 : i32
    %c0_i32_1 = arith.constant 0 : i32
    return %c0_i32, %c0_i32_0 : i32, i32
  }
  func.func @transform_13(%arg0: i32) -> (i32, i32) {
    %c0_i32 = arith.constant 0 : i32
    %c0_i32_0 = arith.constant 0 : i32
    %c0_i32_1 = arith.constant 0 : i32
    return %c0_i32, %c0_i32_0 : i32, i32
  }
  func.func @transform_14(%arg0: i32) -> (i32, i32, i32) {
    %c0_i32 = arith.constant 0 : i32
    %c0_i32_0 = arith.constant 0 : i32
    %c0_i32_1 = arith.constant 0 : i32
    return %arg0, %c0_i32, %c0_i32_0 : i32, i32, i32
  }
}

module attributes {stable_mosaic.version = 11 : i64} {
  func.func @_ln_linear_kernel(%arg0: i32, %arg1: i32, %arg2: memref<1x32x128xf32, #tpu.memory_space<vmem>>, %arg3: memref<1x1x128xf32, #tpu.memory_space<vmem>>, %arg4: memref<1x1x128xf32, #tpu.memory_space<vmem>>, %arg5: memref<128x64xf32, #tpu.memory_space<vmem>>, %arg6: memref<1x64xf32, #tpu.memory_space<vmem>>, %arg7: memref<1x32x64xf32, #tpu.memory_space<vmem>>) attributes {dimension_semantics = [#tpu.dimension_semantics<parallel>, #tpu.dimension_semantics<parallel>], iteration_bounds = array<i64: 2, 1>, scalar_prefetch = 0 : i64, scratch_operands = 0 : i64, tpu.core_type = #tpu.core_type<tc>, window_params = [{transform_indices = @transform_0, window_bounds = array<i64: 1, 32, 128>}, {pipeline_mode = #tpu.pipeline_mode<synchronous>, transform_indices = @transform_1, window_bounds = array<i64: 1, 1, 128>}, {pipeline_mode = #tpu.pipeline_mode<synchronous>, transform_indices = @transform_2, window_bounds = array<i64: 1, 1, 128>}, {pipeline_mode = #tpu.pipeline_mode<synchronous>, transform_indices = @transform_3, window_bounds = array<i64: 128, 64>}, {pipeline_mode = #tpu.pipeline_mode<synchronous>, transform_indices = @transform_4, window_bounds = array<i64: 1, 64>}, {transform_indices = @transform_5, window_bounds = array<i64: 1, 32, 64>}]} {
    %c0 = arith.constant 0 : index
    %c0_0 = arith.constant 0 : index
    %c0_1 = arith.constant 0 : index
    %0 = vector.load %arg2[%c0, %c0_0, %c0_1] : memref<1x32x128xf32, #tpu.memory_space<vmem>>, vector<1x32x128xf32>
    %1 = vector.shape_cast %0 : vector<1x32x128xf32> to vector<32x128xf32>
    %cst = arith.constant dense<0.000000e+00> : vector<32xf32>
    %2 = vector.multi_reduction <add>, %1, %cst [1] : vector<32x128xf32> to vector<32xf32>
    %3 = vector.shape_cast %2 : vector<32xf32> to vector<32x1xf32>
    %cst_2 = arith.constant 1.280000e+02 : f32
    %4 = vector.broadcast %cst_2 : f32 to vector<32x1xf32>
    %5 = arith.divf %3, %4 : vector<32x1xf32>
    %6 = vector.broadcast %5 : vector<32x1xf32> to vector<32x128xf32>
    %7 = arith.subf %1, %6 : vector<32x128xf32>
    %8 = arith.mulf %7, %7 : vector<32x128xf32>
    %cst_3 = arith.constant dense<0.000000e+00> : vector<32xf32>
    %9 = vector.multi_reduction <add>, %8, %cst_3 [1] : vector<32x128xf32> to vector<32xf32>
    %10 = vector.shape_cast %9 : vector<32xf32> to vector<32x1xf32>
    %cst_4 = arith.constant 1.280000e+02 : f32
    %11 = vector.broadcast %cst_4 : f32 to vector<32x1xf32>
    %12 = arith.divf %10, %11 : vector<32x1xf32>
    %cst_5 = arith.constant 9.99999974E-6 : f32
    %13 = vector.broadcast %cst_5 : f32 to vector<32x1xf32>
    %14 = arith.addf %12, %13 : vector<32x1xf32>
    %15 = math.rsqrt %14 : vector<32x1xf32>
    %16 = vector.broadcast %15 : vector<32x1xf32> to vector<32x128xf32>
    %17 = arith.mulf %7, %16 : vector<32x128xf32>
    %c0_6 = arith.constant 0 : index
    %c0_7 = arith.constant 0 : index
    %c0_8 = arith.constant 0 : index
    %18 = vector.load %arg3[%c0_6, %c0_7, %c0_8] : memref<1x1x128xf32, #tpu.memory_space<vmem>>, vector<1x1x128xf32>
    %19 = vector.shape_cast %18 : vector<1x1x128xf32> to vector<1x128xf32>
    %20 = vector.broadcast %19 : vector<1x128xf32> to vector<32x128xf32>
    %21 = arith.mulf %17, %20 : vector<32x128xf32>
    %c0_9 = arith.constant 0 : index
    %c0_10 = arith.constant 0 : index
    %c0_11 = arith.constant 0 : index
    %22 = vector.load %arg4[%c0_9, %c0_10, %c0_11] : memref<1x1x128xf32, #tpu.memory_space<vmem>>, vector<1x1x128xf32>
    %23 = vector.shape_cast %22 : vector<1x1x128xf32> to vector<1x128xf32>
    %24 = vector.broadcast %23 : vector<1x128xf32> to vector<32x128xf32>
    %25 = arith.addf %21, %24 : vector<32x128xf32>
    %c0_12 = arith.constant 0 : index
    %c0_13 = arith.constant 0 : index
    %26 = vector.load %arg5[%c0_12, %c0_13] : memref<128x64xf32, #tpu.memory_space<vmem>>, vector<128x64xf32>
    %cst_14 = arith.constant dense<0.000000e+00> : vector<32x64xf32>
    %27 = tpu.matmul %25, %26, %cst_14 {dimension_numbers = #tpu.dot_dimension_numbers<[1], [0], [0], [1], [0, 0, 1, 1], [], []>} : vector<32x128xf32>, vector<128x64xf32>, vector<32x64xf32> -> vector<32x64xf32>
    %c0_15 = arith.constant 0 : index
    %c0_16 = arith.constant 0 : index
    %28 = vector.load %arg6[%c0_15, %c0_16] : memref<1x64xf32, #tpu.memory_space<vmem>>, vector<1x64xf32>
    %29 = vector.broadcast %28 : vector<1x64xf32> to vector<32x64xf32>
    %30 = arith.addf %27, %29 : vector<32x64xf32>
    %c0_17 = arith.constant 0 : index
    %c0_18 = arith.constant 0 : index
    %c0_19 = arith.constant 0 : index
    %31 = vector.load %arg7[%c0_17, %c0_18, %c0_19] : memref<1x32x64xf32, #tpu.memory_space<vmem>>, vector<1x32x64xf32>
    %32 = vector.shape_cast %31 : vector<1x32x64xf32> to vector<32x64xf32>
    %33 = vector.shape_cast %30 : vector<32x64xf32> to vector<1x32x64xf32>
    tpu.vector_store %arg7[%c0_17, %c0_18, %c0_19], %33 {strides = array<i32>} : memref<1x32x64xf32, #tpu.memory_space<vmem>>, vector<1x32x64xf32>,
    return
  }
  func.func @transform_0(%arg0: i32, %arg1: i32) -> (i32, i32, i32) {
    %c0_i32 = arith.constant 0 : i32
    %c0_i32_0 = arith.constant 0 : i32
    return %arg0, %arg1, %c0_i32 : i32, i32, i32
  }
  func.func @transform_1(%arg0: i32, %arg1: i32) -> (i32, i32, i32) {
    %c0_i32 = arith.constant 0 : i32
    %c0_i32_0 = arith.constant 0 : i32
    %c0_i32_1 = arith.constant 0 : i32
    %c0_i32_2 = arith.constant 0 : i32
    return %c0_i32, %c0_i32_0, %c0_i32_1 : i32, i32, i32
  }
  func.func @transform_2(%arg0: i32, %arg1: i32) -> (i32, i32, i32) {
    %c0_i32 = arith.constant 0 : i32
    %c0_i32_0 = arith.constant 0 : i32
    %c0_i32_1 = arith.constant 0 : i32
    %c0_i32_2 = arith.constant 0 : i32
    return %c0_i32, %c0_i32_0, %c0_i32_1 : i32, i32, i32
  }
  func.func @transform_3(%arg0: i32, %arg1: i32) -> (i32, i32) {
    %c0_i32 = arith.constant 0 : i32
    %c0_i32_0 = arith.constant 0 : i32
    %c0_i32_1 = arith.constant 0 : i32
    return %c0_i32, %c0_i32_0 : i32, i32
  }
  func.func @transform_4(%arg0: i32, %arg1: i32) -> (i32, i32) {
    %c0_i32 = arith.constant 0 : i32
    %c0_i32_0 = arith.constant 0 : i32
    %c0_i32_1 = arith.constant 0 : i32
    return %c0_i32, %c0_i32_0 : i32, i32
  }
  func.func @transform_5(%arg0: i32, %arg1: i32) -> (i32, i32, i32) {
    %c0_i32 = arith.constant 0 : i32
    %c0_i32_0 = arith.constant 0 : i32
    return %arg0, %arg1, %c0_i32 : i32, i32, i32
  }
}

module attributes {stable_mosaic.version = 11 : i64} {
  func.func @_swin_block_kernel(%arg0: i32, %arg1: memref<1x32x64xf32, #tpu.memory_space<vmem>>, %arg2: memref<32x32xf32, #tpu.memory_space<vmem>>, %arg3: memref<1x1x64xf32, #tpu.memory_space<vmem>>, %arg4: memref<1x1x64xf32, #tpu.memory_space<vmem>>, %arg5: memref<1x1x64xf32, #tpu.memory_space<vmem>>, %arg6: memref<1x1x64xf32, #tpu.memory_space<vmem>>, %arg7: memref<64x192xf32, #tpu.memory_space<vmem>>, %arg8: memref<1x192xf32, #tpu.memory_space<vmem>>, %arg9: memref<64x64xf32, #tpu.memory_space<vmem>>, %arg10: memref<1x64xf32, #tpu.memory_space<vmem>>, %arg11: memref<64x256xf32, #tpu.memory_space<vmem>>, %arg12: memref<1x256xf32, #tpu.memory_space<vmem>>, %arg13: memref<256x64xf32, #tpu.memory_space<vmem>>, %arg14: memref<1x64xf32, #tpu.memory_space<vmem>>, %arg15: memref<1x32x64xf32, #tpu.memory_space<vmem>>) attributes {dimension_semantics = [#tpu.dimension_semantics<parallel>], iteration_bounds = array<i64: 2>, scalar_prefetch = 0 : i64, scratch_operands = 0 : i64, tpu.core_type = #tpu.core_type<tc>, window_params = [{transform_indices = @transform_0, window_bounds = array<i64: 1, 32, 64>}, {pipeline_mode = #tpu.pipeline_mode<synchronous>, transform_indices = @transform_1, window_bounds = array<i64: 32, 32>}, {transform_indices = @transform_2, window_bounds = array<i64: 1, 1, 64>}, {transform_indices = @transform_3, window_bounds = array<i64: 1, 1, 64>}, {transform_indices = @transform_4, window_bounds = array<i64: 1, 1, 64>}, {transform_indices = @transform_5, window_bounds = array<i64: 1, 1, 64>}, {pipeline_mode = #tpu.pipeline_mode<synchronous>, transform_indices = @transform_6, window_bounds = array<i64: 64, 192>}, {pipeline_mode = #tpu.pipeline_mode<synchronous>, transform_indices = @transform_7, window_bounds = array<i64: 1, 192>}, {pipeline_mode = #tpu.pipeline_mode<synchronous>, transform_indices = @transform_8, window_bounds = array<i64: 64, 64>}, {pipeline_mode = #tpu.pipeline_mode<synchronous>, transform_indices = @transform_9, window_bounds = array<i64: 1, 64>}, {pipeline_mode = #tpu.pipeline_mode<synchronous>, transform_indices = @transform_10, window_bounds = array<i64: 64, 256>}, {pipeline_mode = #tpu.pipeline_mode<synchronous>, transform_indices = @transform_11, window_bounds = array<i64: 1, 256>}, {pipeline_mode = #tpu.pipeline_mode<synchronous>, transform_indices = @transform_12, window_bounds = array<i64: 256, 64>}, {pipeline_mode = #tpu.pipeline_mode<synchronous>, transform_indices = @transform_13, window_bounds = array<i64: 1, 64>}, {transform_indices = @transform_14, window_bounds = array<i64: 1, 32, 64>}]} {
    %c0 = arith.constant 0 : index
    %c0_0 = arith.constant 0 : index
    %c0_1 = arith.constant 0 : index
    %0 = vector.load %arg1[%c0, %c0_0, %c0_1] : memref<1x32x64xf32, #tpu.memory_space<vmem>>, vector<1x32x64xf32>
    %1 = vector.shape_cast %0 : vector<1x32x64xf32> to vector<32x64xf32>
    %cst = arith.constant dense<0.000000e+00> : vector<32xf32>
    %2 = vector.multi_reduction <add>, %1, %cst [1] : vector<32x64xf32> to vector<32xf32>
    %3 = vector.shape_cast %2 : vector<32xf32> to vector<32x1xf32>
    %cst_2 = arith.constant 6.400000e+01 : f32
    %4 = vector.broadcast %cst_2 : f32 to vector<32x1xf32>
    %5 = arith.divf %3, %4 : vector<32x1xf32>
    %6 = vector.broadcast %5 : vector<32x1xf32> to vector<32x64xf32>
    %7 = arith.subf %1, %6 : vector<32x64xf32>
    %8 = arith.mulf %7, %7 : vector<32x64xf32>
    %cst_3 = arith.constant dense<0.000000e+00> : vector<32xf32>
    %9 = vector.multi_reduction <add>, %8, %cst_3 [1] : vector<32x64xf32> to vector<32xf32>
    %10 = vector.shape_cast %9 : vector<32xf32> to vector<32x1xf32>
    %cst_4 = arith.constant 6.400000e+01 : f32
    %11 = vector.broadcast %cst_4 : f32 to vector<32x1xf32>
    %12 = arith.divf %10, %11 : vector<32x1xf32>
    %cst_5 = arith.constant 9.99999974E-6 : f32
    %13 = vector.broadcast %cst_5 : f32 to vector<32x1xf32>
    %14 = arith.addf %12, %13 : vector<32x1xf32>
    %15 = math.rsqrt %14 : vector<32x1xf32>
    %16 = vector.broadcast %15 : vector<32x1xf32> to vector<32x64xf32>
    %17 = arith.mulf %7, %16 : vector<32x64xf32>
    %c0_6 = arith.constant 0 : index
    %c0_7 = arith.constant 0 : index
    %c0_8 = arith.constant 0 : index
    %18 = vector.load %arg4[%c0_6, %c0_7, %c0_8] : memref<1x1x64xf32, #tpu.memory_space<vmem>>, vector<1x1x64xf32>
    %19 = vector.shape_cast %18 : vector<1x1x64xf32> to vector<1x64xf32>
    %cst_9 = arith.constant 1.000000e+00 : f32
    %20 = vector.broadcast %cst_9 : f32 to vector<1x64xf32>
    %21 = arith.addf %20, %19 : vector<1x64xf32>
    %22 = vector.broadcast %21 : vector<1x64xf32> to vector<32x64xf32>
    %23 = arith.mulf %17, %22 : vector<32x64xf32>
    %c0_10 = arith.constant 0 : index
    %c0_11 = arith.constant 0 : index
    %c0_12 = arith.constant 0 : index
    %24 = vector.load %arg3[%c0_10, %c0_11, %c0_12] : memref<1x1x64xf32, #tpu.memory_space<vmem>>, vector<1x1x64xf32>
    %25 = vector.shape_cast %24 : vector<1x1x64xf32> to vector<1x64xf32>
    %26 = vector.broadcast %25 : vector<1x64xf32> to vector<32x64xf32>
    %27 = arith.addf %23, %26 : vector<32x64xf32>
    %c0_13 = arith.constant 0 : index
    %c0_14 = arith.constant 0 : index
    %28 = vector.load %arg7[%c0_13, %c0_14] : memref<64x192xf32, #tpu.memory_space<vmem>>, vector<64x192xf32>
    %cst_15 = arith.constant dense<0.000000e+00> : vector<32x192xf32>
    %29 = tpu.matmul %27, %28, %cst_15 {dimension_numbers = #tpu.dot_dimension_numbers<[1], [0], [0], [1], [0, 0, 1, 1], [], []>} : vector<32x64xf32>, vector<64x192xf32>, vector<32x192xf32> -> vector<32x192xf32>
    %c0_16 = arith.constant 0 : index
    %c0_17 = arith.constant 0 : index
    %30 = vector.load %arg8[%c0_16, %c0_17] : memref<1x192xf32, #tpu.memory_space<vmem>>, vector<1x192xf32>
    %31 = vector.broadcast %30 : vector<1x192xf32> to vector<32x192xf32>
    %32 = arith.addf %29, %31 : vector<32x192xf32>
    %c0_18 = arith.constant 0 : index
    %c0_19 = arith.constant 0 : index
    %33 = vector.load %arg2[%c0_18, %c0_19] : memref<32x32xf32, #tpu.memory_space<vmem>>, vector<32x32xf32>
    %34 = vector.extract_strided_slice %32 {offsets = [0, 0], sizes = [32, 16], strides = [1, 1]} : vector<32x192xf32> to vector<32x16xf32>
    %cst_20 = arith.constant 2.500000e-01 : f32
    %35 = vector.broadcast %cst_20 : f32 to vector<32x16xf32>
    %36 = arith.mulf %34, %35 : vector<32x16xf32>
    %37 = vector.extract_strided_slice %32 {offsets = [0, 64], sizes = [32, 16], strides = [1, 1]} : vector<32x192xf32> to vector<32x16xf32>
    %38 = vector.extract_strided_slice %32 {offsets = [0, 128], sizes = [32, 16], strides = [1, 1]} : vector<32x192xf32> to vector<32x16xf32>
    "tpu.trace_start"() <{level = 10 : i32, message = "qd,kd->qk"}> : () -> ()
    %cst_21 = arith.constant dense<0.000000e+00> : vector<32x32xf32>
    %39 = tpu.matmul %36, %37, %cst_21 {dimension_numbers = #tpu.dot_dimension_numbers<[1], [1], [0], [0], [0, 0, 1, 0], [], []>} : vector<32x16xf32>, vector<32x16xf32>, vector<32x32xf32> -> vector<32x32xf32>
    "tpu.trace_stop"() : () -> ()
    %40 = arith.addf %39, %33 : vector<32x32xf32>
    %cst_22 = arith.constant dense<0xFF800000> : vector<32xf32>
    %41 = vector.multi_reduction <maximumf>, %40, %cst_22 [1] : vector<32x32xf32> to vector<32xf32>
    %42 = vector.shape_cast %41 : vector<32xf32> to vector<32x1xf32>
    %43 = vector.broadcast %42 : vector<32x1xf32> to vector<32x32xf32>
    %44 = arith.subf %40, %43 : vector<32x32xf32>
    %45 = math.exp %44 : vector<32x32xf32>
    %cst_23 = arith.constant dense<0.000000e+00> : vector<32xf32>
    %46 = vector.multi_reduction <add>, %45, %cst_23 [1] : vector<32x32xf32> to vector<32xf32>
    %47 = vector.shape_cast %46 : vector<32xf32> to vector<32x1xf32>
    %48 = tpu.reciprocal %47 {approx = true} : vector<32x1xf32> -> vector<32x1xf32>
    %49 = vector.broadcast %48 : vector<32x1xf32> to vector<32x32xf32>
    %50 = arith.mulf %45, %49 : vector<32x32xf32>
    %cst_24 = arith.constant dense<0.000000e+00> : vector<32x16xf32>
    %51 = tpu.matmul %50, %38, %cst_24 {dimension_numbers = #tpu.dot_dimension_numbers<[1], [0], [0], [1], [0, 0, 1, 1], [], []>} : vector<32x32xf32>, vector<32x16xf32>, vector<32x16xf32> -> vector<32x16xf32>
    %52 = vector.extract_strided_slice %32 {offsets = [0, 16], sizes = [32, 16], strides = [1, 1]} : vector<32x192xf32> to vector<32x16xf32>
    %cst_25 = arith.constant 2.500000e-01 : f32
    %53 = vector.broadcast %cst_25 : f32 to vector<32x16xf32>
    %54 = arith.mulf %52, %53 : vector<32x16xf32>
    %55 = vector.extract_strided_slice %32 {offsets = [0, 80], sizes = [32, 16], strides = [1, 1]} : vector<32x192xf32> to vector<32x16xf32>
    %56 = vector.extract_strided_slice %32 {offsets = [0, 144], sizes = [32, 16], strides = [1, 1]} : vector<32x192xf32> to vector<32x16xf32>
    "tpu.trace_start"() <{level = 10 : i32, message = "qd,kd->qk"}> : () -> ()
    %cst_26 = arith.constant dense<0.000000e+00> : vector<32x32xf32>
    %57 = tpu.matmul %54, %55, %cst_26 {dimension_numbers = #tpu.dot_dimension_numbers<[1], [1], [0], [0], [0, 0, 1, 0], [], []>} : vector<32x16xf32>, vector<32x16xf32>, vector<32x32xf32> -> vector<32x32xf32>
    "tpu.trace_stop"() : () -> ()
    %58 = arith.addf %57, %33 : vector<32x32xf32>
    %cst_27 = arith.constant dense<0xFF800000> : vector<32xf32>
    %59 = vector.multi_reduction <maximumf>, %58, %cst_27 [1] : vector<32x32xf32> to vector<32xf32>
    %60 = vector.shape_cast %59 : vector<32xf32> to vector<32x1xf32>
    %61 = vector.broadcast %60 : vector<32x1xf32> to vector<32x32xf32>
    %62 = arith.subf %58, %61 : vector<32x32xf32>
    %63 = math.exp %62 : vector<32x32xf32>
    %cst_28 = arith.constant dense<0.000000e+00> : vector<32xf32>
    %64 = vector.multi_reduction <add>, %63, %cst_28 [1] : vector<32x32xf32> to vector<32xf32>
    %65 = vector.shape_cast %64 : vector<32xf32> to vector<32x1xf32>
    %66 = tpu.reciprocal %65 {approx = true} : vector<32x1xf32> -> vector<32x1xf32>
    %67 = vector.broadcast %66 : vector<32x1xf32> to vector<32x32xf32>
    %68 = arith.mulf %63, %67 : vector<32x32xf32>
    %cst_29 = arith.constant dense<0.000000e+00> : vector<32x16xf32>
    %69 = tpu.matmul %68, %56, %cst_29 {dimension_numbers = #tpu.dot_dimension_numbers<[1], [0], [0], [1], [0, 0, 1, 1], [], []>} : vector<32x32xf32>, vector<32x16xf32>, vector<32x16xf32> -> vector<32x16xf32>
    %70 = vector.extract_strided_slice %32 {offsets = [0, 32], sizes = [32, 16], strides = [1, 1]} : vector<32x192xf32> to vector<32x16xf32>
    %cst_30 = arith.constant 2.500000e-01 : f32
    %71 = vector.broadcast %cst_30 : f32 to vector<32x16xf32>
    %72 = arith.mulf %70, %71 : vector<32x16xf32>
    %73 = vector.extract_strided_slice %32 {offsets = [0, 96], sizes = [32, 16], strides = [1, 1]} : vector<32x192xf32> to vector<32x16xf32>
    %74 = vector.extract_strided_slice %32 {offsets = [0, 160], sizes = [32, 16], strides = [1, 1]} : vector<32x192xf32> to vector<32x16xf32>
    "tpu.trace_start"() <{level = 10 : i32, message = "qd,kd->qk"}> : () -> ()
    %cst_31 = arith.constant dense<0.000000e+00> : vector<32x32xf32>
    %75 = tpu.matmul %72, %73, %cst_31 {dimension_numbers = #tpu.dot_dimension_numbers<[1], [1], [0], [0], [0, 0, 1, 0], [], []>} : vector<32x16xf32>, vector<32x16xf32>, vector<32x32xf32> -> vector<32x32xf32>
    "tpu.trace_stop"() : () -> ()
    %76 = arith.addf %75, %33 : vector<32x32xf32>
    %cst_32 = arith.constant dense<0xFF800000> : vector<32xf32>
    %77 = vector.multi_reduction <maximumf>, %76, %cst_32 [1] : vector<32x32xf32> to vector<32xf32>
    %78 = vector.shape_cast %77 : vector<32xf32> to vector<32x1xf32>
    %79 = vector.broadcast %78 : vector<32x1xf32> to vector<32x32xf32>
    %80 = arith.subf %76, %79 : vector<32x32xf32>
    %81 = math.exp %80 : vector<32x32xf32>
    %cst_33 = arith.constant dense<0.000000e+00> : vector<32xf32>
    %82 = vector.multi_reduction <add>, %81, %cst_33 [1] : vector<32x32xf32> to vector<32xf32>
    %83 = vector.shape_cast %82 : vector<32xf32> to vector<32x1xf32>
    %84 = tpu.reciprocal %83 {approx = true} : vector<32x1xf32> -> vector<32x1xf32>
    %85 = vector.broadcast %84 : vector<32x1xf32> to vector<32x32xf32>
    %86 = arith.mulf %81, %85 : vector<32x32xf32>
    %cst_34 = arith.constant dense<0.000000e+00> : vector<32x16xf32>
    %87 = tpu.matmul %86, %74, %cst_34 {dimension_numbers = #tpu.dot_dimension_numbers<[1], [0], [0], [1], [0, 0, 1, 1], [], []>} : vector<32x32xf32>, vector<32x16xf32>, vector<32x16xf32> -> vector<32x16xf32>
    %88 = vector.extract_strided_slice %32 {offsets = [0, 48], sizes = [32, 16], strides = [1, 1]} : vector<32x192xf32> to vector<32x16xf32>
    %cst_35 = arith.constant 2.500000e-01 : f32
    %89 = vector.broadcast %cst_35 : f32 to vector<32x16xf32>
    %90 = arith.mulf %88, %89 : vector<32x16xf32>
    %91 = vector.extract_strided_slice %32 {offsets = [0, 112], sizes = [32, 16], strides = [1, 1]} : vector<32x192xf32> to vector<32x16xf32>
    %92 = vector.extract_strided_slice %32 {offsets = [0, 176], sizes = [32, 16], strides = [1, 1]} : vector<32x192xf32> to vector<32x16xf32>
    "tpu.trace_start"() <{level = 10 : i32, message = "qd,kd->qk"}> : () -> ()
    %cst_36 = arith.constant dense<0.000000e+00> : vector<32x32xf32>
    %93 = tpu.matmul %90, %91, %cst_36 {dimension_numbers = #tpu.dot_dimension_numbers<[1], [1], [0], [0], [0, 0, 1, 0], [], []>} : vector<32x16xf32>, vector<32x16xf32>, vector<32x32xf32> -> vector<32x32xf32>
    "tpu.trace_stop"() : () -> ()
    %94 = arith.addf %93, %33 : vector<32x32xf32>
    %cst_37 = arith.constant dense<0xFF800000> : vector<32xf32>
    %95 = vector.multi_reduction <maximumf>, %94, %cst_37 [1] : vector<32x32xf32> to vector<32xf32>
    %96 = vector.shape_cast %95 : vector<32xf32> to vector<32x1xf32>
    %97 = vector.broadcast %96 : vector<32x1xf32> to vector<32x32xf32>
    %98 = arith.subf %94, %97 : vector<32x32xf32>
    %99 = math.exp %98 : vector<32x32xf32>
    %cst_38 = arith.constant dense<0.000000e+00> : vector<32xf32>
    %100 = vector.multi_reduction <add>, %99, %cst_38 [1] : vector<32x32xf32> to vector<32xf32>
    %101 = vector.shape_cast %100 : vector<32xf32> to vector<32x1xf32>
    %102 = tpu.reciprocal %101 {approx = true} : vector<32x1xf32> -> vector<32x1xf32>
    %103 = vector.broadcast %102 : vector<32x1xf32> to vector<32x32xf32>
    %104 = arith.mulf %99, %103 : vector<32x32xf32>
    %cst_39 = arith.constant dense<0.000000e+00> : vector<32x16xf32>
    %105 = tpu.matmul %104, %92, %cst_39 {dimension_numbers = #tpu.dot_dimension_numbers<[1], [0], [0], [1], [0, 0, 1, 1], [], []>} : vector<32x32xf32>, vector<32x16xf32>, vector<32x16xf32> -> vector<32x16xf32>
    %106 = tpu.concatenate %51, %69, %87, %105 in 1 : vector<32x16xf32>, vector<32x16xf32>, vector<32x16xf32>, vector<32x16xf32> -> vector<32x64xf32>
    %c0_40 = arith.constant 0 : index
    %c0_41 = arith.constant 0 : index
    %107 = vector.load %arg9[%c0_40, %c0_41] : memref<64x64xf32, #tpu.memory_space<vmem>>, vector<64x64xf32>
    %cst_42 = arith.constant dense<0.000000e+00> : vector<32x64xf32>
    %108 = tpu.matmul %106, %107, %cst_42 {dimension_numbers = #tpu.dot_dimension_numbers<[1], [0], [0], [1], [0, 0, 1, 1], [], []>} : vector<32x64xf32>, vector<64x64xf32>, vector<32x64xf32> -> vector<32x64xf32>
    %c0_43 = arith.constant 0 : index
    %c0_44 = arith.constant 0 : index
    %109 = vector.load %arg10[%c0_43, %c0_44] : memref<1x64xf32, #tpu.memory_space<vmem>>, vector<1x64xf32>
    %110 = vector.broadcast %109 : vector<1x64xf32> to vector<32x64xf32>
    %111 = arith.addf %108, %110 : vector<32x64xf32>
    %112 = arith.addf %1, %111 : vector<32x64xf32>
    %cst_45 = arith.constant dense<0.000000e+00> : vector<32xf32>
    %113 = vector.multi_reduction <add>, %112, %cst_45 [1] : vector<32x64xf32> to vector<32xf32>
    %114 = vector.shape_cast %113 : vector<32xf32> to vector<32x1xf32>
    %cst_46 = arith.constant 6.400000e+01 : f32
    %115 = vector.broadcast %cst_46 : f32 to vector<32x1xf32>
    %116 = arith.divf %114, %115 : vector<32x1xf32>
    %117 = vector.broadcast %116 : vector<32x1xf32> to vector<32x64xf32>
    %118 = arith.subf %112, %117 : vector<32x64xf32>
    %119 = arith.mulf %118, %118 : vector<32x64xf32>
    %cst_47 = arith.constant dense<0.000000e+00> : vector<32xf32>
    %120 = vector.multi_reduction <add>, %119, %cst_47 [1] : vector<32x64xf32> to vector<32xf32>
    %121 = vector.shape_cast %120 : vector<32xf32> to vector<32x1xf32>
    %cst_48 = arith.constant 6.400000e+01 : f32
    %122 = vector.broadcast %cst_48 : f32 to vector<32x1xf32>
    %123 = arith.divf %121, %122 : vector<32x1xf32>
    %cst_49 = arith.constant 9.99999974E-6 : f32
    %124 = vector.broadcast %cst_49 : f32 to vector<32x1xf32>
    %125 = arith.addf %123, %124 : vector<32x1xf32>
    %126 = math.rsqrt %125 : vector<32x1xf32>
    %127 = vector.broadcast %126 : vector<32x1xf32> to vector<32x64xf32>
    %128 = arith.mulf %118, %127 : vector<32x64xf32>
    %c0_50 = arith.constant 0 : index
    %c0_51 = arith.constant 0 : index
    %c0_52 = arith.constant 0 : index
    %129 = vector.load %arg6[%c0_50, %c0_51, %c0_52] : memref<1x1x64xf32, #tpu.memory_space<vmem>>, vector<1x1x64xf32>
    %130 = vector.shape_cast %129 : vector<1x1x64xf32> to vector<1x64xf32>
    %cst_53 = arith.constant 1.000000e+00 : f32
    %131 = vector.broadcast %cst_53 : f32 to vector<1x64xf32>
    %132 = arith.addf %131, %130 : vector<1x64xf32>
    %133 = vector.broadcast %132 : vector<1x64xf32> to vector<32x64xf32>
    %134 = arith.mulf %128, %133 : vector<32x64xf32>
    %c0_54 = arith.constant 0 : index
    %c0_55 = arith.constant 0 : index
    %c0_56 = arith.constant 0 : index
    %135 = vector.load %arg5[%c0_54, %c0_55, %c0_56] : memref<1x1x64xf32, #tpu.memory_space<vmem>>, vector<1x1x64xf32>
    %136 = vector.shape_cast %135 : vector<1x1x64xf32> to vector<1x64xf32>
    %137 = vector.broadcast %136 : vector<1x64xf32> to vector<32x64xf32>
    %138 = arith.addf %134, %137 : vector<32x64xf32>
    %c0_57 = arith.constant 0 : index
    %c0_58 = arith.constant 0 : index
    %139 = vector.load %arg11[%c0_57, %c0_58] : memref<64x256xf32, #tpu.memory_space<vmem>>, vector<64x256xf32>
    %cst_59 = arith.constant dense<0.000000e+00> : vector<32x256xf32>
    %140 = tpu.matmul %138, %139, %cst_59 {dimension_numbers = #tpu.dot_dimension_numbers<[1], [0], [0], [1], [0, 0, 1, 1], [], []>} : vector<32x64xf32>, vector<64x256xf32>, vector<32x256xf32> -> vector<32x256xf32>
    %c0_60 = arith.constant 0 : index
    %c0_61 = arith.constant 0 : index
    %141 = vector.load %arg12[%c0_60, %c0_61] : memref<1x256xf32, #tpu.memory_space<vmem>>, vector<1x256xf32>
    %142 = vector.broadcast %141 : vector<1x256xf32> to vector<32x256xf32>
    %143 = arith.addf %140, %142 : vector<32x256xf32>
    %144 = arith.mulf %143, %143 : vector<32x256xf32>
    %145 = arith.mulf %143, %144 : vector<32x256xf32>
    %cst_62 = arith.constant 4.471500e-02 : f32
    %146 = vector.broadcast %cst_62 : f32 to vector<32x256xf32>
    %147 = arith.mulf %146, %145 : vector<32x256xf32>
    %148 = arith.addf %143, %147 : vector<32x256xf32>
    %cst_63 = arith.constant 0.797884583 : f32
    %149 = vector.broadcast %cst_63 : f32 to vector<32x256xf32>
    %150 = arith.mulf %149, %148 : vector<32x256xf32>
    %151 = math.tanh %150 : vector<32x256xf32>
    %cst_64 = arith.constant 1.000000e+00 : f32
    %152 = vector.broadcast %cst_64 : f32 to vector<32x256xf32>
    %153 = arith.addf %152, %151 : vector<32x256xf32>
    %cst_65 = arith.constant 5.000000e-01 : f32
    %154 = vector.broadcast %cst_65 : f32 to vector<32x256xf32>
    %155 = arith.mulf %154, %153 : vector<32x256xf32>
    %156 = arith.mulf %143, %155 : vector<32x256xf32>
    %c0_66 = arith.constant 0 : index
    %c0_67 = arith.constant 0 : index
    %157 = vector.load %arg13[%c0_66, %c0_67] : memref<256x64xf32, #tpu.memory_space<vmem>>, vector<256x64xf32>
    %cst_68 = arith.constant dense<0.000000e+00> : vector<32x64xf32>
    %158 = tpu.matmul %156, %157, %cst_68 {dimension_numbers = #tpu.dot_dimension_numbers<[1], [0], [0], [1], [0, 0, 1, 1], [], []>} : vector<32x256xf32>, vector<256x64xf32>, vector<32x64xf32> -> vector<32x64xf32>
    %c0_69 = arith.constant 0 : index
    %c0_70 = arith.constant 0 : index
    %159 = vector.load %arg14[%c0_69, %c0_70] : memref<1x64xf32, #tpu.memory_space<vmem>>, vector<1x64xf32>
    %160 = vector.broadcast %159 : vector<1x64xf32> to vector<32x64xf32>
    %161 = arith.addf %158, %160 : vector<32x64xf32>
    %162 = arith.addf %112, %161 : vector<32x64xf32>
    %c0_71 = arith.constant 0 : index
    %c0_72 = arith.constant 0 : index
    %c0_73 = arith.constant 0 : index
    %163 = vector.load %arg15[%c0_71, %c0_72, %c0_73] : memref<1x32x64xf32, #tpu.memory_space<vmem>>, vector<1x32x64xf32>
    %164 = vector.shape_cast %163 : vector<1x32x64xf32> to vector<32x64xf32>
    %165 = vector.shape_cast %162 : vector<32x64xf32> to vector<1x32x64xf32>
    tpu.vector_store %arg15[%c0_71, %c0_72, %c0_73], %165 {strides = array<i32>} : memref<1x32x64xf32, #tpu.memory_space<vmem>>, vector<1x32x64xf32>,
    return
  }
  func.func @transform_0(%arg0: i32) -> (i32, i32, i32) {
    %c0_i32 = arith.constant 0 : i32
    %c0_i32_0 = arith.constant 0 : i32
    %c0_i32_1 = arith.constant 0 : i32
    return %arg0, %c0_i32, %c0_i32_0 : i32, i32, i32
  }
  func.func @transform_1(%arg0: i32) -> (i32, i32) {
    %c0_i32 = arith.constant 0 : i32
    %c0_i32_0 = arith.constant 0 : i32
    %c0_i32_1 = arith.constant 0 : i32
    return %c0_i32, %c0_i32_0 : i32, i32
  }
  func.func @transform_2(%arg0: i32) -> (i32, i32, i32) {
    %c0_i32 = arith.constant 0 : i32
    %c0_i32_0 = arith.constant 0 : i32
    %c0_i32_1 = arith.constant 0 : i32
    return %arg0, %c0_i32, %c0_i32_0 : i32, i32, i32
  }
  func.func @transform_3(%arg0: i32) -> (i32, i32, i32) {
    %c0_i32 = arith.constant 0 : i32
    %c0_i32_0 = arith.constant 0 : i32
    %c0_i32_1 = arith.constant 0 : i32
    return %arg0, %c0_i32, %c0_i32_0 : i32, i32, i32
  }
  func.func @transform_4(%arg0: i32) -> (i32, i32, i32) {
    %c0_i32 = arith.constant 0 : i32
    %c0_i32_0 = arith.constant 0 : i32
    %c0_i32_1 = arith.constant 0 : i32
    return %arg0, %c0_i32, %c0_i32_0 : i32, i32, i32
  }
  func.func @transform_5(%arg0: i32) -> (i32, i32, i32) {
    %c0_i32 = arith.constant 0 : i32
    %c0_i32_0 = arith.constant 0 : i32
    %c0_i32_1 = arith.constant 0 : i32
    return %arg0, %c0_i32, %c0_i32_0 : i32, i32, i32
  }
  func.func @transform_6(%arg0: i32) -> (i32, i32) {
    %c0_i32 = arith.constant 0 : i32
    %c0_i32_0 = arith.constant 0 : i32
    %c0_i32_1 = arith.constant 0 : i32
    return %c0_i32, %c0_i32_0 : i32, i32
  }
  func.func @transform_7(%arg0: i32) -> (i32, i32) {
    %c0_i32 = arith.constant 0 : i32
    %c0_i32_0 = arith.constant 0 : i32
    %c0_i32_1 = arith.constant 0 : i32
    return %c0_i32, %c0_i32_0 : i32, i32
  }
  func.func @transform_8(%arg0: i32) -> (i32, i32) {
    %c0_i32 = arith.constant 0 : i32
    %c0_i32_0 = arith.constant 0 : i32
    %c0_i32_1 = arith.constant 0 : i32
    return %c0_i32, %c0_i32_0 : i32, i32
  }
  func.func @transform_9(%arg0: i32) -> (i32, i32) {
    %c0_i32 = arith.constant 0 : i32
    %c0_i32_0 = arith.constant 0 : i32
    %c0_i32_1 = arith.constant 0 : i32
    return %c0_i32, %c0_i32_0 : i32, i32
  }
  func.func @transform_10(%arg0: i32) -> (i32, i32) {
    %c0_i32 = arith.constant 0 : i32
    %c0_i32_0 = arith.constant 0 : i32
    %c0_i32_1 = arith.constant 0 : i32
    return %c0_i32, %c0_i32_0 : i32, i32
  }
  func.func @transform_11(%arg0: i32) -> (i32, i32) {
    %c0_i32 = arith.constant 0 : i32
    %c0_i32_0 = arith.constant 0 : i32
    %c0_i32_1 = arith.constant 0 : i32
    return %c0_i32, %c0_i32_0 : i32, i32
  }
  func.func @transform_12(%arg0: i32) -> (i32, i32) {
    %c0_i32 = arith.constant 0 : i32
    %c0_i32_0 = arith.constant 0 : i32
    %c0_i32_1 = arith.constant 0 : i32
    return %c0_i32, %c0_i32_0 : i32, i32
  }
  func.func @transform_13(%arg0: i32) -> (i32, i32) {
    %c0_i32 = arith.constant 0 : i32
    %c0_i32_0 = arith.constant 0 : i32
    %c0_i32_1 = arith.constant 0 : i32
    return %c0_i32, %c0_i32_0 : i32, i32
  }
  func.func @transform_14(%arg0: i32) -> (i32, i32, i32) {
    %c0_i32 = arith.constant 0 : i32
    %c0_i32_0 = arith.constant 0 : i32
    %c0_i32_1 = arith.constant 0 : i32
    return %arg0, %c0_i32, %c0_i32_0 : i32, i32, i32
  }
}

module attributes {stable_mosaic.version = 11 : i64} {
  func.func @_linear_kernel(%arg0: i32, %arg1: i32, %arg2: memref<1x32x64xf32, #tpu.memory_space<vmem>>, %arg3: memref<64x128xf32, #tpu.memory_space<vmem>>, %arg4: memref<1x128xf32, #tpu.memory_space<vmem>>, %arg5: memref<1x32x128xf32, #tpu.memory_space<vmem>>) attributes {dimension_semantics = [#tpu.dimension_semantics<parallel>, #tpu.dimension_semantics<parallel>], iteration_bounds = array<i64: 2, 1>, scalar_prefetch = 0 : i64, scratch_operands = 0 : i64, tpu.core_type = #tpu.core_type<tc>, window_params = [{transform_indices = @transform_0, window_bounds = array<i64: 1, 32, 64>}, {pipeline_mode = #tpu.pipeline_mode<synchronous>, transform_indices = @transform_1, window_bounds = array<i64: 64, 128>}, {pipeline_mode = #tpu.pipeline_mode<synchronous>, transform_indices = @transform_2, window_bounds = array<i64: 1, 128>}, {transform_indices = @transform_3, window_bounds = array<i64: 1, 32, 128>}]} {
    %c0 = arith.constant 0 : index
    %c0_0 = arith.constant 0 : index
    %c0_1 = arith.constant 0 : index
    %0 = vector.load %arg2[%c0, %c0_0, %c0_1] : memref<1x32x64xf32, #tpu.memory_space<vmem>>, vector<1x32x64xf32>
    %1 = vector.shape_cast %0 : vector<1x32x64xf32> to vector<32x64xf32>
    %c0_2 = arith.constant 0 : index
    %c0_3 = arith.constant 0 : index
    %2 = vector.load %arg3[%c0_2, %c0_3] : memref<64x128xf32, #tpu.memory_space<vmem>>, vector<64x128xf32>
    %cst = arith.constant dense<0.000000e+00> : vector<32x128xf32>
    %3 = tpu.matmul %1, %2, %cst {dimension_numbers = #tpu.dot_dimension_numbers<[1], [0], [0], [1], [0, 0, 1, 1], [], []>} : vector<32x64xf32>, vector<64x128xf32>, vector<32x128xf32> -> vector<32x128xf32>
    %c0_4 = arith.constant 0 : index
    %c0_5 = arith.constant 0 : index
    %4 = vector.load %arg4[%c0_4, %c0_5] : memref<1x128xf32, #tpu.memory_space<vmem>>, vector<1x128xf32>
    %5 = vector.broadcast %4 : vector<1x128xf32> to vector<32x128xf32>
    %6 = arith.addf %3, %5 : vector<32x128xf32>
    %c0_6 = arith.constant 0 : index
    %c0_7 = arith.constant 0 : index
    %c0_8 = arith.constant 0 : index
    %7 = vector.load %arg5[%c0_6, %c0_7, %c0_8] : memref<1x32x128xf32, #tpu.memory_space<vmem>>, vector<1x32x128xf32>
    %8 = vector.shape_cast %7 : vector<1x32x128xf32> to vector<32x128xf32>
    %9 = vector.shape_cast %6 : vector<32x128xf32> to vector<1x32x128xf32>
    tpu.vector_store %arg5[%c0_6, %c0_7, %c0_8], %9 {strides = array<i32>} : memref<1x32x128xf32, #tpu.memory_space<vmem>>, vector<1x32x128xf32>,
    return
  }
  func.func @transform_0(%arg0: i32, %arg1: i32) -> (i32, i32, i32) {
    %c0_i32 = arith.constant 0 : i32
    %c0_i32_0 = arith.constant 0 : i32
    return %arg0, %arg1, %c0_i32 : i32, i32, i32
  }
  func.func @transform_1(%arg0: i32, %arg1: i32) -> (i32, i32) {
    %c0_i32 = arith.constant 0 : i32
    %c0_i32_0 = arith.constant 0 : i32
    %c0_i32_1 = arith.constant 0 : i32
    return %c0_i32, %c0_i32_0 : i32, i32
  }
  func.func @transform_2(%arg0: i32, %arg1: i32) -> (i32, i32) {
    %c0_i32 = arith.constant 0 : i32
    %c0_i32_0 = arith.constant 0 : i32
    %c0_i32_1 = arith.constant 0 : i32
    return %c0_i32, %c0_i32_0 : i32, i32
  }
  func.func @transform_3(%arg0: i32, %arg1: i32) -> (i32, i32, i32) {
    %c0_i32 = arith.constant 0 : i32
    %c0_i32_0 = arith.constant 0 : i32
    return %arg0, %arg1, %c0_i32 : i32, i32, i32
  }
}

module attributes {stable_mosaic.version = 11 : i64} {
  func.func @_ln_linear_kernel(%arg0: i32, %arg1: i32, %arg2: memref<1x128x32xf32, #tpu.memory_space<vmem>>, %arg3: memref<1x1x32xf32, #tpu.memory_space<vmem>>, %arg4: memref<1x1x32xf32, #tpu.memory_space<vmem>>, %arg5: memref<32x32xf32, #tpu.memory_space<vmem>>, %arg6: memref<1x32xf32, #tpu.memory_space<vmem>>, %arg7: memref<1x128x32xf32, #tpu.memory_space<vmem>>) attributes {dimension_semantics = [#tpu.dimension_semantics<parallel>, #tpu.dimension_semantics<parallel>], iteration_bounds = array<i64: 2, 1>, scalar_prefetch = 0 : i64, scratch_operands = 0 : i64, tpu.core_type = #tpu.core_type<tc>, window_params = [{transform_indices = @transform_0, window_bounds = array<i64: 1, 128, 32>}, {pipeline_mode = #tpu.pipeline_mode<synchronous>, transform_indices = @transform_1, window_bounds = array<i64: 1, 1, 32>}, {pipeline_mode = #tpu.pipeline_mode<synchronous>, transform_indices = @transform_2, window_bounds = array<i64: 1, 1, 32>}, {pipeline_mode = #tpu.pipeline_mode<synchronous>, transform_indices = @transform_3, window_bounds = array<i64: 32, 32>}, {pipeline_mode = #tpu.pipeline_mode<synchronous>, transform_indices = @transform_4, window_bounds = array<i64: 1, 32>}, {transform_indices = @transform_5, window_bounds = array<i64: 1, 128, 32>}]} {
    %c0 = arith.constant 0 : index
    %c0_0 = arith.constant 0 : index
    %c0_1 = arith.constant 0 : index
    %0 = vector.load %arg2[%c0, %c0_0, %c0_1] : memref<1x128x32xf32, #tpu.memory_space<vmem>>, vector<1x128x32xf32>
    %1 = vector.shape_cast %0 : vector<1x128x32xf32> to vector<128x32xf32>
    %cst = arith.constant dense<0.000000e+00> : vector<128xf32>
    %2 = vector.multi_reduction <add>, %1, %cst [1] : vector<128x32xf32> to vector<128xf32>
    %3 = vector.shape_cast %2 : vector<128xf32> to vector<128x1xf32>
    %cst_2 = arith.constant 3.200000e+01 : f32
    %4 = vector.broadcast %cst_2 : f32 to vector<128x1xf32>
    %5 = arith.divf %3, %4 : vector<128x1xf32>
    %6 = vector.broadcast %5 : vector<128x1xf32> to vector<128x32xf32>
    %7 = arith.subf %1, %6 : vector<128x32xf32>
    %8 = arith.mulf %7, %7 : vector<128x32xf32>
    %cst_3 = arith.constant dense<0.000000e+00> : vector<128xf32>
    %9 = vector.multi_reduction <add>, %8, %cst_3 [1] : vector<128x32xf32> to vector<128xf32>
    %10 = vector.shape_cast %9 : vector<128xf32> to vector<128x1xf32>
    %cst_4 = arith.constant 3.200000e+01 : f32
    %11 = vector.broadcast %cst_4 : f32 to vector<128x1xf32>
    %12 = arith.divf %10, %11 : vector<128x1xf32>
    %cst_5 = arith.constant 9.99999974E-6 : f32
    %13 = vector.broadcast %cst_5 : f32 to vector<128x1xf32>
    %14 = arith.addf %12, %13 : vector<128x1xf32>
    %15 = math.rsqrt %14 : vector<128x1xf32>
    %16 = vector.broadcast %15 : vector<128x1xf32> to vector<128x32xf32>
    %17 = arith.mulf %7, %16 : vector<128x32xf32>
    %c0_6 = arith.constant 0 : index
    %c0_7 = arith.constant 0 : index
    %c0_8 = arith.constant 0 : index
    %18 = vector.load %arg3[%c0_6, %c0_7, %c0_8] : memref<1x1x32xf32, #tpu.memory_space<vmem>>, vector<1x1x32xf32>
    %19 = vector.shape_cast %18 : vector<1x1x32xf32> to vector<1x32xf32>
    %20 = vector.broadcast %19 : vector<1x32xf32> to vector<128x32xf32>
    %21 = arith.mulf %17, %20 : vector<128x32xf32>
    %c0_9 = arith.constant 0 : index
    %c0_10 = arith.constant 0 : index
    %c0_11 = arith.constant 0 : index
    %22 = vector.load %arg4[%c0_9, %c0_10, %c0_11] : memref<1x1x32xf32, #tpu.memory_space<vmem>>, vector<1x1x32xf32>
    %23 = vector.shape_cast %22 : vector<1x1x32xf32> to vector<1x32xf32>
    %24 = vector.broadcast %23 : vector<1x32xf32> to vector<128x32xf32>
    %25 = arith.addf %21, %24 : vector<128x32xf32>
    %c0_12 = arith.constant 0 : index
    %c0_13 = arith.constant 0 : index
    %26 = vector.load %arg5[%c0_12, %c0_13] : memref<32x32xf32, #tpu.memory_space<vmem>>, vector<32x32xf32>
    %cst_14 = arith.constant dense<0.000000e+00> : vector<128x32xf32>
    %27 = tpu.matmul %25, %26, %cst_14 {dimension_numbers = #tpu.dot_dimension_numbers<[1], [0], [0], [1], [0, 0, 1, 1], [], []>} : vector<128x32xf32>, vector<32x32xf32>, vector<128x32xf32> -> vector<128x32xf32>
    %c0_15 = arith.constant 0 : index
    %c0_16 = arith.constant 0 : index
    %28 = vector.load %arg6[%c0_15, %c0_16] : memref<1x32xf32, #tpu.memory_space<vmem>>, vector<1x32xf32>
    %29 = vector.broadcast %28 : vector<1x32xf32> to vector<128x32xf32>
    %30 = arith.addf %27, %29 : vector<128x32xf32>
    %c0_17 = arith.constant 0 : index
    %c0_18 = arith.constant 0 : index
    %c0_19 = arith.constant 0 : index
    %31 = vector.load %arg7[%c0_17, %c0_18, %c0_19] : memref<1x128x32xf32, #tpu.memory_space<vmem>>, vector<1x128x32xf32>
    %32 = vector.shape_cast %31 : vector<1x128x32xf32> to vector<128x32xf32>
    %33 = vector.shape_cast %30 : vector<128x32xf32> to vector<1x128x32xf32>
    tpu.vector_store %arg7[%c0_17, %c0_18, %c0_19], %33 {strides = array<i32>} : memref<1x128x32xf32, #tpu.memory_space<vmem>>, vector<1x128x32xf32>,
    return
  }
  func.func @transform_0(%arg0: i32, %arg1: i32) -> (i32, i32, i32) {
    %c0_i32 = arith.constant 0 : i32
    %c0_i32_0 = arith.constant 0 : i32
    return %arg0, %arg1, %c0_i32 : i32, i32, i32
  }
  func.func @transform_1(%arg0: i32, %arg1: i32) -> (i32, i32, i32) {
    %c0_i32 = arith.constant 0 : i32
    %c0_i32_0 = arith.constant 0 : i32
    %c0_i32_1 = arith.constant 0 : i32
    %c0_i32_2 = arith.constant 0 : i32
    return %c0_i32, %c0_i32_0, %c0_i32_1 : i32, i32, i32
  }
  func.func @transform_2(%arg0: i32, %arg1: i32) -> (i32, i32, i32) {
    %c0_i32 = arith.constant 0 : i32
    %c0_i32_0 = arith.constant 0 : i32
    %c0_i32_1 = arith.constant 0 : i32
    %c0_i32_2 = arith.constant 0 : i32
    return %c0_i32, %c0_i32_0, %c0_i32_1 : i32, i32, i32
  }
  func.func @transform_3(%arg0: i32, %arg1: i32) -> (i32, i32) {
    %c0_i32 = arith.constant 0 : i32
    %c0_i32_0 = arith.constant 0 : i32
    %c0_i32_1 = arith.constant 0 : i32
    return %c0_i32, %c0_i32_0 : i32, i32
  }
  func.func @transform_4(%arg0: i32, %arg1: i32) -> (i32, i32) {
    %c0_i32 = arith.constant 0 : i32
    %c0_i32_0 = arith.constant 0 : i32
    %c0_i32_1 = arith.constant 0 : i32
    return %c0_i32, %c0_i32_0 : i32, i32
  }
  func.func @transform_5(%arg0: i32, %arg1: i32) -> (i32, i32, i32) {
    %c0_i32 = arith.constant 0 : i32
    %c0_i32_0 = arith.constant 0 : i32
    return %arg0, %arg1, %c0_i32 : i32, i32, i32
  }
}

module attributes {stable_mosaic.version = 11 : i64} {
  func.func @_linear_kernel(%arg0: i32, %arg1: i32, %arg2: memref<1x128x64xf32, #tpu.memory_space<vmem>>, %arg3: memref<64x32xf32, #tpu.memory_space<vmem>>, %arg4: memref<1x32xf32, #tpu.memory_space<vmem>>, %arg5: memref<1x128x32xf32, #tpu.memory_space<vmem>>) attributes {dimension_semantics = [#tpu.dimension_semantics<parallel>, #tpu.dimension_semantics<parallel>], iteration_bounds = array<i64: 2, 1>, scalar_prefetch = 0 : i64, scratch_operands = 0 : i64, tpu.core_type = #tpu.core_type<tc>, window_params = [{transform_indices = @transform_0, window_bounds = array<i64: 1, 128, 64>}, {pipeline_mode = #tpu.pipeline_mode<synchronous>, transform_indices = @transform_1, window_bounds = array<i64: 64, 32>}, {pipeline_mode = #tpu.pipeline_mode<synchronous>, transform_indices = @transform_2, window_bounds = array<i64: 1, 32>}, {transform_indices = @transform_3, window_bounds = array<i64: 1, 128, 32>}]} {
    %c0 = arith.constant 0 : index
    %c0_0 = arith.constant 0 : index
    %c0_1 = arith.constant 0 : index
    %0 = vector.load %arg2[%c0, %c0_0, %c0_1] : memref<1x128x64xf32, #tpu.memory_space<vmem>>, vector<1x128x64xf32>
    %1 = vector.shape_cast %0 : vector<1x128x64xf32> to vector<128x64xf32>
    %c0_2 = arith.constant 0 : index
    %c0_3 = arith.constant 0 : index
    %2 = vector.load %arg3[%c0_2, %c0_3] : memref<64x32xf32, #tpu.memory_space<vmem>>, vector<64x32xf32>
    %cst = arith.constant dense<0.000000e+00> : vector<128x32xf32>
    %3 = tpu.matmul %1, %2, %cst {dimension_numbers = #tpu.dot_dimension_numbers<[1], [0], [0], [1], [0, 0, 1, 1], [], []>} : vector<128x64xf32>, vector<64x32xf32>, vector<128x32xf32> -> vector<128x32xf32>
    %c0_4 = arith.constant 0 : index
    %c0_5 = arith.constant 0 : index
    %4 = vector.load %arg4[%c0_4, %c0_5] : memref<1x32xf32, #tpu.memory_space<vmem>>, vector<1x32xf32>
    %5 = vector.broadcast %4 : vector<1x32xf32> to vector<128x32xf32>
    %6 = arith.addf %3, %5 : vector<128x32xf32>
    %c0_6 = arith.constant 0 : index
    %c0_7 = arith.constant 0 : index
    %c0_8 = arith.constant 0 : index
    %7 = vector.load %arg5[%c0_6, %c0_7, %c0_8] : memref<1x128x32xf32, #tpu.memory_space<vmem>>, vector<1x128x32xf32>
    %8 = vector.shape_cast %7 : vector<1x128x32xf32> to vector<128x32xf32>
    %9 = vector.shape_cast %6 : vector<128x32xf32> to vector<1x128x32xf32>
    tpu.vector_store %arg5[%c0_6, %c0_7, %c0_8], %9 {strides = array<i32>} : memref<1x128x32xf32, #tpu.memory_space<vmem>>, vector<1x128x32xf32>,
    return
  }
  func.func @transform_0(%arg0: i32, %arg1: i32) -> (i32, i32, i32) {
    %c0_i32 = arith.constant 0 : i32
    %c0_i32_0 = arith.constant 0 : i32
    return %arg0, %arg1, %c0_i32 : i32, i32, i32
  }
  func.func @transform_1(%arg0: i32, %arg1: i32) -> (i32, i32) {
    %c0_i32 = arith.constant 0 : i32
    %c0_i32_0 = arith.constant 0 : i32
    %c0_i32_1 = arith.constant 0 : i32
    return %c0_i32, %c0_i32_0 : i32, i32
  }
  func.func @transform_2(%arg0: i32, %arg1: i32) -> (i32, i32) {
    %c0_i32 = arith.constant 0 : i32
    %c0_i32_0 = arith.constant 0 : i32
    %c0_i32_1 = arith.constant 0 : i32
    return %c0_i32, %c0_i32_0 : i32, i32
  }
  func.func @transform_3(%arg0: i32, %arg1: i32) -> (i32, i32, i32) {
    %c0_i32 = arith.constant 0 : i32
    %c0_i32_0 = arith.constant 0 : i32
    return %arg0, %arg1, %c0_i32 : i32, i32, i32
  }
}

</mosaic_0001>

<bundles_post_ra>
// kernel: _lambda_.11
= control target key start
LH: loop header
LB: loop body
LE: loop exit
PB: predicated region body
PF: predicated region fallthrough
CT: control target
= control target key end

     0   :  { %12 = vsyncpa [#allocation3], 0  ;;  %s675_s24 = smov [#allocation2]   ;;  %s803_s0 = inlined_call_operand.vmem [shape: f32[8,32], index: 0, kind: input, shape index: {}]   ;;  %s804_s1 = inlined_call_operand.vmem [shape: f32[32,32], index: 1, kind: input, shape index: {}]   ;;  %s805_s2 = inlined_call_operand.vmem [shape: f32[1,32], index: 2, kind: input, shape index: {}]   ;;  %s806_s3 = inlined_call_operand.vmem [shape: f32[32,32], index: 3, kind: input, shape index: {}]   ;;  %s807_s4 = inlined_call_operand.vmem [shape: f32[1,32], index: 4, kind: input, shape index: {}]   ;;  %s808_s5 = inlined_call_operand.hbm [shape: f32[32,1024], index: 5, kind: input, shape index: {}]   ;;  %s809_s6 = inlined_call_operand.vmem [shape: f32[1,1024], index: 6, kind: input, shape index: {}]   ;;  %s810_s7 = inlined_call_operand.vmem [shape: f32[8,1024], index: 7, kind: output, shape index: {}]  }
   0x1   :  { %s28_s25 = sshll.u32 %s675_s24, 4  ;;  %s29_s25 = int_to_ptr.vmem [resolvable:$true] %s28_s25 }
   0x2   :  { %s661_s26 = scalar_lea.vmem %s29_s25, 4096  ;;  %p666_p1 = scmp.lt.s32.totalorder %s29_s25, %s29_s25 }
   0x3   :  { %p662_p0 = scmp.ne.s32.totalorder %s29_s25, %s661_s26  ;;  %p667_p2 = scmp.lt.s32.totalorder %s661_s26, %s661_s26 }
   0x5   :  { %p668_p3 = por %p667_p2, %p666_p1 }
   0x7   :  { %p669_p4 = pnand %p668_p3, %p662_p0 }
   0x9   :  { %672 = shalt.err (!%p669_p4)
}
   0xa   :  { %s676_s27 = smov 1024   ;;  %s677_s28 = smov 64  }
   0xb   :  { %34 = dma.hbm_to_vmem [thread:$0]  %s808_s5, 4096, %s29_s25, [#allocation3], %s676_s27, %s676_s27, %s677_s28  }
   0xc   :  { %673 = dma.done.wait [#allocation3], 4096  }
   0xd   :  { %674 = vsyncadd [#allocation3], 4294963200  ;;  %v678_v0 = vmov 0.0   ;;  %vm679_vm0 = vmmov 0   ;;  %v44_v1 = vld [vmem:[%s804_s1 + $0x18] sm:$0xff]  ;;  %v43_v2 = vld [vmem:[%s804_s1 + $0x10] sm:$0xff]  ;;  %v258_v60 = vlaneseq }
   0xe   :  { %618 = vmatprep.subr.mxu0 %v678_v0  ;;  %626 = vmatprep.mubr.msk.f32.mxu0 %vm679_vm0, %v678_v0  ;;  %v42_v3 = vld [vmem:[%s804_s1 + $0x8] sm:$0xff]  ;;  %v41_v4 = vld [vmem:[%s804_s1] sm:$0xff]  ;;  %vm52_vm1 = vcmask 261120   ;;  %v136_v6 = vld [vmem:[%s806_s3 + $0x18] sm:$0xff] }
   0xf   :  { %629 = vmatprep.subr.mxu1 %v678_v0  ;;  %637 = vmatprep.mubr.msk.f32.mxu1 %vm679_vm0, %v678_v0  ;;  %v40_v5 = vld [vmem:[%s803_s0] sm:$0xff]  ;;  %v135_v7 = vld [vmem:[%s806_s3 + $0x10] sm:$0xff]  ;;  %v134_v8 = vld [vmem:[%s806_s3 + $0x8] sm:$0xff]  ;;  %v259_v61 = vshrl.u32 %v258_v60, 7 }
  0x10   :  { %619 = vmatpush3.msra.mxu0 %v44_v1  ;;  %630 = vmatpush3.msra.mxu1 %v136_v6  ;;  %v133_v9 = vld [vmem:[%s806_s3] sm:$0xff]  ;;  %v249_v19 = vld [vmem:[#allocation2 + $0xc8] sm:$0xff]  ;;  %v251_v20 = vld [vmem:[#allocation2 + $0xd8] sm:$0xff] }
  0x11   :  { %620 = vmatprep.subr.mxu0 %v678_v0  ;;  %631 = vmatprep.subr.mxu1 %v678_v0  ;;  %v598_v10 = vld [vmem:[%s805_s2] ss:$0 sm:$0xff]  ;;  %v250_v22 = vld [vmem:[#allocation2 + $0xd0] sm:$0xff]  ;;  %v241_v23 = vld [vmem:[#allocation2 + $0x88] sm:$0xff]  ;;  %v260_v62 = vsub.s32 0, %v259_v61  ;;  %v268_v63 = vsub.s32 2, %v259_v61 }
  0x12   :  { %621 = vmatpush3.msra.mxu0 %v43_v2  ;;  %632 = vmatpush3.msra.mxu1 %v135_v7  ;;  %v248_v21 = vld [vmem:[#allocation2 + $0xc0] sm:$0xff]  ;;  %v243_v24 = vld [vmem:[#allocation2 + $0x98] sm:$0xff]  ;;  %v242_v26 = vld [vmem:[#allocation2 + $0x90] sm:$0xff]  ;;  %v264_v2 = vsub.s32 1, %v259_v61 }
  0x13   :  { %622 = vmatprep.subr.mxu0 %v678_v0  ;;  %633 = vmatprep.subr.mxu1 %v678_v0  ;;  %v240_v25 = vld [vmem:[#allocation2 + $0x80] sm:$0xff]  ;;  %v233_v27 = vld [vmem:[#allocation2 + $0x48] sm:$0xff]  ;;  %v235_v28 = vld [vmem:[#allocation2 + $0x58] sm:$0xff] }
  0x14   :  { %623 = vmatpush3.msra.mxu0 %v42_v3  ;;  %634 = vmatpush3.msra.mxu1 %v134_v8  ;;  %v232_v29 = vld [vmem:[#allocation2 + $0x40] sm:$0xff]  ;;  %v234_v30 = vld [vmem:[#allocation2 + $0x50] sm:$0xff]  ;;  %v225_v31 = vld [vmem:[#allocation2 + $0x8] sm:$0xff]  ;;  %v272_v3 = vsub.s32 3, %v259_v61 }
  0x15   :  { %624 = vmatprep.subr.mxu0 %v678_v0  ;;  %635 = vmatprep.subr.mxu1 %v678_v0  ;;  %v227_v32 = vld [vmem:[#allocation2 + $0x18] sm:$0xff]  ;;  %v224_v33 = vld [vmem:[#allocation2] sm:$0xff]  ;;  %v226_v34 = vld [vmem:[#allocation2 + $0x10] sm:$0xff] }
  0x16   :  { %625 = vmatpush3.msra.mxu0 %v41_v4  ;;  %636 = vmatpush3.msra.mxu1 %v133_v9  ;;  %v253_v35 = vld [vmem:[#allocation2 + $0xe8] sm:$0xff]  ;;  %v255_v36 = vld [vmem:[#allocation2 + $0xf8] sm:$0xff]  ;;  %v601_v37 = vld [vmem:[%s807_s4] ss:$0 sm:$0xff] }
  0x17   :  { %627 = vmatmul.mubr.msk.f32.vlgmr.msra.gmra.mxu0 %vm52_vm1, %v40_v5  ;;  %325 = vmatprep.subr.mxu0 %v249_v19  ;;  %v252_v46 = vld [vmem:[#allocation2 + $0xe0] sm:$0xff]  ;;  %v254_v47 = vld [vmem:[#allocation2 + $0xf0] sm:$0xff]  ;;  %v245_v48 = vld [vmem:[#allocation2 + $0xa8] sm:$0xff] }
  0x18   :  { %365 = vmatprep.mubr.f32.mxu0 %v678_v0  ;;  %396 = vmatprep.subr.mxu1 %v251_v20  ;;  %v247_v49 = vld [vmem:[#allocation2 + $0xb8] sm:$0xff]  ;;  %v244_v50 = vld [vmem:[#allocation2 + $0xa0] sm:$0xff]  ;;  %v246_v51 = vld [vmem:[#allocation2 + $0xb0] sm:$0xff] }
  0x19   :  { %326 = vmatpush1.msra.mxu0 %v248_v21  ;;  %v237_v52 = vld [vmem:[#allocation2 + $0x68] sm:$0xff]  ;;  %v239_v53 = vld [vmem:[#allocation2 + $0x78] sm:$0xff]  ;;  %v236_v54 = vld [vmem:[#allocation2 + $0x60] sm:$0xff] }
  0x1a   :  { %327 = vmatprep.subr.mxu0 %v241_v23  ;;  %v238_v55 = vld [vmem:[#allocation2 + $0x70] sm:$0xff]  ;;  %v229_v56 = vld [vmem:[#allocation2 + $0x28] sm:$0xff]  ;;  %v231_v57 = vld [vmem:[#allocation2 + $0x38] sm:$0xff] }
  0x1b   :  { %328 = vmatpush1.msra.mxu0 %v240_v25  ;;  %v228_v58 = vld [vmem:[#allocation2 + $0x20] sm:$0xff]  ;;  %v230_v59 = vld [vmem:[#allocation2 + $0x30] sm:$0xff] }
  0x1c   :  { %329 = vmatprep.subr.mxu0 %v233_v27  ;;  %v256_v1 = vld [vmem:[%s809_s6] sm:$0xff] }
  0x1d   :  { %330 = vmatpush1.msra.mxu0 %v232_v29  ;;  %v261_v4 = vrot.slane %v256_v1, %v260_v62  ;;  %v269_v5 = vrot.slane %v256_v1, %v268_v63  ;;  %v265_v6 = vrot.slane %v256_v1, %v264_v2  ;;  %v273_v7 = vrot.slane %v256_v1, %v272_v3 }
  0x1e   :  { %331 = vmatprep.subr.mxu0 %v225_v31 }
  0x1f   :  { %332 = vmatpush1.msra.mxu0 %v224_v33 }
  0x20   :  { %467 = vmatprep.subr.mxu0 %v253_v35 }
  0xd7   :  { %v122_v11 = vpop.f32.mrf.mxu0 }
  0xd8   :  { %v123_v12 = vadd.f32 %v598_v10, %v122_v11 }
  0xd9   :  { %v628_v13 = vpop.f32.mrf.mxu0 }
  0xda   :  { %v600_v14 = vmul.f32 -1.442695, %v123_v12  ;;  %v276_v13 = vsub.s32 4, %v259_v61 }
  0xdc   :  { %645 = vpow2.f32 %v600_v14  ;;  %v284_v14 = vsub.s32 6, %v259_v61  ;;  %v277_v19 = vrot.slane %v256_v1, %v276_v13 }
  0xde   :  { %v285_v20 = vrot.slane %v256_v1, %v284_v14 }
  0xe9   :  { %v646_v15 = vpop.eup %645 }
  0xea   :  { %v129_v16 = vadd.f32 1.0, %v646_v15 }
  0xec   :  { %647 = vrcp.f32 %v129_v16 }
  0xf9   :  { %v648_v17 = vpop.eup %647 }
  0xfa   :  { %v132_v18 = vmul.f32 %v648_v17, %v123_v12  ;;  %v280_v17 = vsub.s32 5, %v259_v61 }
  0xfc   :  { %638 = vmatmul.mubr.msk.f32.vlgmr.msra.gmra.mxu1 %vm52_vm1, %v132_v18  ;;  %v288_v18 = vsub.s32 7, %v259_v61  ;;  %v281_v21 = vrot.slane %v256_v1, %v280_v17 }
  0xfd   :  { %436 = vmatprep.mubr.f32.mxu1 %v678_v0  ;;  %397 = vmatpush1.msra.mxu1 %v250_v22 }
  0xfe   :  { %398 = vmatprep.subr.mxu1 %v243_v24  ;;  %v289_v22 = vrot.slane %v256_v1, %v288_v18 }
  0xff   :  { %399 = vmatpush1.msra.mxu1 %v242_v26 }
 0x100   :  { %400 = vmatprep.subr.mxu1 %v235_v28 }
 0x101   :  { %401 = vmatpush1.msra.mxu1 %v234_v30 }
 0x102   :  { %402 = vmatprep.subr.mxu1 %v227_v32 }
 0x103   :  { %403 = vmatpush1.msra.mxu1 %v226_v34 }
 0x104   :  { %538 = vmatprep.subr.mxu1 %v255_v36 }
 0x1bc   :  { %v213_v38 = vpop.f32.mrf.mxu1 }
 0x1bd   :  { %v214_v39 = vadd.f32 %v601_v37, %v213_v38 }
 0x1be   :  { %v639_v40 = vpop.f32.mrf.mxu1 }
 0x1bf   :  { %v603_v41 = vmul.f32 -1.442695, %v214_v39 }
 0x1c1   :  { %649 = vpow2.f32 %v603_v41 }
 0x1ce   :  { %v650_v42 = vpop.eup %649 }
 0x1cf   :  { %v220_v43 = vadd.f32 1.0, %v650_v42 }
 0x1d1   :  { %651 = vrcp.f32 %v220_v43 }
 0x1de   :  { %v652_v44 = vpop.eup %651 }
 0x1df   :  { %v223_v45 = vmul.f32 %v652_v44, %v214_v39 }
 0x1e1   :  { %604 = vmatmul.mubr.msk.f32.vlgmr.msra.gmra.mxu0 %vm52_vm1, %v223_v45  ;;  %605 = vmatmul.mubr.msk.f32.vlgmr.msra.gmra.mxu1 %vm52_vm1, %v223_v45 }
 0x1e2   :  { %468 = vmatpush1.msra.mxu0 %v252_v46  ;;  %539 = vmatpush1.msra.mxu1 %v254_v47 }
 0x1e3   :  { %469 = vmatprep.subr.mxu0 %v245_v48  ;;  %540 = vmatprep.subr.mxu1 %v247_v49 }
 0x1e4   :  { %470 = vmatpush1.msra.mxu0 %v244_v50  ;;  %541 = vmatpush1.msra.mxu1 %v246_v51 }
 0x1e5   :  { %471 = vmatprep.subr.mxu0 %v237_v52  ;;  %542 = vmatprep.subr.mxu1 %v239_v53 }
 0x1e6   :  { %472 = vmatpush1.msra.mxu0 %v236_v54  ;;  %543 = vmatpush1.msra.mxu1 %v238_v55 }
 0x1e7   :  { %473 = vmatprep.subr.mxu0 %v229_v56  ;;  %544 = vmatprep.subr.mxu1 %v231_v57 }
 0x1e8   :  { %474 = vmatpush1.msra.mxu0 %v228_v58  ;;  %507 = vmatprep.mubr.f32.mxu0 %v678_v0 }
 0x1e9   :  { %545 = vmatpush1.msra.mxu1 %v230_v59  ;;  %578 = vmatprep.mubr.f32.mxu1 %v678_v0 }
 0x1ea   :  { %606 = vmatmul.mubr.msk.f32.vlgmr.msra.gmra.mxu0 %vm52_vm1, %v223_v45  ;;  %607 = vmatmul.mubr.msk.f32.vlgmr.msra.gmra.mxu1 %vm52_vm1, %v223_v45 }
 0x2a1   :  { %v367_v8 = vpop.f32.mrf.mxu0  ;;  %v438_v0 = vpop.f32.mrf.mxu1 }
 0x2a2   :  { %v368_v9 = vadd.f32 %v367_v8, %v261_v4  ;;  %v439_v10 = vadd.f32 %v438_v0, %v269_v5 }
 0x2a3   :  { %v369_v11 = vpop.f32.mrf.mxu0  ;;  %v440_v12 = vpop.f32.mrf.mxu1 }
 0x2a4   :  { %585 = vst [vmem:[%s810_s7] sm:$0xff] %v368_v9  ;;  %587 = vst [vmem:[%s810_s7 + $0x10] sm:$0xff] %v439_v10  ;;  %v370_v15 = vadd.f32 %v369_v11, %v265_v6  ;;  %v441_v16 = vadd.f32 %v440_v12, %v273_v7 }
 0x2a6   :  { %586 = vst [vmem:[%s810_s7 + $0x8] sm:$0xff] %v370_v15  ;;  %588 = vst [vmem:[%s810_s7 + $0x18] sm:$0xff] %v441_v16 }
 0x2aa   :  { %v509_v23 = vpop.f32.mrf.mxu0  ;;  %v580_v24 = vpop.f32.mrf.mxu1 }
 0x2ab   :  { %v510_v25 = vadd.f32 %v509_v23, %v277_v19  ;;  %v581_v26 = vadd.f32 %v580_v24, %v285_v20 }
 0x2ac   :  { %v511_v27 = vpop.f32.mrf.mxu0  ;;  %v582_v28 = vpop.f32.mrf.mxu1 }
 0x2ad   :  { %589 = vst [vmem:[%s810_s7 + $0x20] sm:$0xff] %v510_v25  ;;  %591 = vst [vmem:[%s810_s7 + $0x30] sm:$0xff] %v581_v26  ;;  %v512_v29 = vadd.f32 %v511_v27, %v281_v21  ;;  %v583_v30 = vadd.f32 %v582_v28, %v289_v22 }
 0x2af   :  { %590 = vst [vmem:[%s810_s7 + $0x28] sm:$0xff] %v512_v29  ;;  %592 = vst [vmem:[%s810_s7 + $0x38] sm:$0xff] %v583_v30 }
 0x2b0   :  { %597 = vsyncpa [#allocation3], 1 }

// kernel: _lambda_.14
= control target key start
LH: loop header
LB: loop body
LE: loop exit
PB: predicated region body
PF: predicated region fallthrough
CT: control target
= control target key end

     0   :  { %s727_s18 = smov 0   ;;  %s729_s19 = smov 0   ;;  %s844_s0 = inlined_call_operand.vmem [shape: f32[2,32,128], index: 0, kind: input, shape index: {}]   ;;  %s845_s1 = inlined_call_operand.vmem [shape: f32[1,1,128], index: 1, kind: input, shape index: {}]   ;;  %s846_s2 = inlined_call_operand.vmem [shape: f32[1,1,128], index: 2, kind: input, shape index: {}]   ;;  %s847_s3 = inlined_call_operand.vmem [shape: f32[128,64], index: 3, kind: input, shape index: {}]   ;;  %s848_s4 = inlined_call_operand.vmem [shape: f32[1,64], index: 4, kind: input, shape index: {}]   ;;  %s849_s5 = inlined_call_operand.vmem [shape: f32[2,32,64], index: 5, kind: output, shape index: {}]  }
   0x1   :  { %s731_s20 = smov 0  }
   0x2 LB: > { %s27_s21 = sadd.s32 1, %s691_s19  ;;  %p539_p0 = scmp.ge.s32.totalorder %s695_s20, 1  ;;  %s695_s20 = sphi %s731_s20, %s15_s20   ;;  %s691_s19 = sphi %s729_s19, %s851_s19   ;;  %s687_s18 = sphi %s727_s18, %s850_s18  }
   0x3   : > { %p29_p1 = scmp.ge.s32.totalorder %s27_s21, 2  ;;  %p208_p2 = scmp.lt.s32.totalorder %s695_s20, 3 }
   0x5   : > { %s853_s21 = smov (%p29_p1, %s27_s21), 0  ;;  %p209_p3 = pnand %p539_p0, %p208_p2 }
   0x6   : > { %p245_p4 = scmp.lt.s32.totalorder (!%p209_p3), %s687_s18, 1 }
   0x7   : > { %212 = sbr.rel (%p209_p3) target bundleno = 528 (0x210), region = 40 }
   0xc   : > { %s855_s18 = smov (!%p245_p4, %s687_s18), 1  ;;  %v350_v4 = vld [vmem:[%s847_s3 + $0x78] sm:$0xff]  ;;  %v349_v5 = vld [vmem:[%s847_s3 + $0x70] sm:$0xff]  ;;  %v348_v22 = vld [vmem:[%s847_s3 + $0x68] sm:$0xff]  ;;  %vm443_vm0 = vcmask 523264  }
   0xd   : > { %s549_s22 = sshll.u32 %s855_s18, 5  ;;  %571 = vmatprep.subr.mxu0 %v350_v4  ;;  %609 = vmatprep.subr.mxu1 %v350_v4  ;;  %v347_v23 = vld [vmem:[%s847_s3 + $0x60] sm:$0xff]  ;;  %v346_v24 = vld [vmem:[%s847_s3 + $0x58] sm:$0xff]  ;;  %v345_v25 = vld [vmem:[%s847_s3 + $0x50] sm:$0xff] }
   0xe   : > { %s252_s25 = scalar_lea.vmem %s844_s0, %s549_s22  ;;  %572 = vmatpush3.msra.mxu0 %v350_v4  ;;  %625 = vmatpush3.msra.mxu1 %v350_v4  ;;  %v344_v26 = vld [vmem:[%s847_s3 + $0x48] sm:$0xff]  ;;  %v343_v27 = vld [vmem:[%s847_s3 + $0x40] sm:$0xff]  ;;  %v342_v28 = vld [vmem:[%s847_s3 + $0x38] sm:$0xff]  ;;  %s262_s26 = scalar_lea.vmem %s849_s5, %s549_s22 }
   0xf   : > { %v264_v0 = vld [vmem:[%s252_s25] sm:$0xff]  ;;  %v265_v1 = vld [vmem:[%s252_s25 + $0x8] sm:$0xff]  ;;  %v266_v2 = vld [vmem:[%s252_s25 + $0x10] sm:$0xff]  ;;  %573 = vmatprep.subr.mxu0 %v349_v5  ;;  %610 = vmatprep.subr.mxu1 %v349_v5 }
  0x10   : > { %268 = vadd.xlane.f32.xlu0 %v264_v0  ;;  %270 = vadd.xlane.f32.xlu1 %v265_v1  ;;  %v267_v3 = vld [vmem:[%s252_s25 + $0x18] sm:$0xff]  ;;  %v341_v29 = vld [vmem:[%s847_s3 + $0x30] sm:$0xff]  ;;  %v340_v30 = vld [vmem:[%s847_s3 + $0x28] sm:$0xff] }
  0x11   : > { %574 = vmatpush3.msra.mxu0 %v349_v5  ;;  %626 = vmatpush3.msra.mxu1 %v349_v5  ;;  %v339_v31 = vld [vmem:[%s847_s3 + $0x20] sm:$0xff]  ;;  %v338_v32 = vld [vmem:[%s847_s3 + $0x18] sm:$0xff]  ;;  %v337_v33 = vld [vmem:[%s847_s3 + $0x10] sm:$0xff] }
  0x12   : > { %575 = vmatprep.subr.mxu0 %v348_v22  ;;  %611 = vmatprep.subr.mxu1 %v348_v22  ;;  %v336_v34 = vld [vmem:[%s847_s3 + $0x8] sm:$0xff]  ;;  %v335_v35 = vld [vmem:[%s847_s3] sm:$0xff] }
  0x13   : > { %576 = vmatpush3.msra.mxu0 %v348_v22  ;;  %627 = vmatpush3.msra.mxu1 %v348_v22  ;;  %v544_v49 = vld [vmem:[%s845_s1] ss:$0 sm:$0xff] }
  0x14   : > { %272 = vadd.xlane.f32.xlu0 %v266_v2  ;;  %274 = vadd.xlane.f32.xlu1 %v267_v3  ;;  %v545_v51 = vld [vmem:[%s846_s2] ss:$0 sm:$0xff] }
  0x15   : > { %577 = vmatprep.subr.mxu0 %v347_v23  ;;  %612 = vmatprep.subr.mxu1 %v347_v23 }
  0x16   : > { %578 = vmatpush3.msra.mxu0 %v347_v23  ;;  %628 = vmatpush3.msra.mxu1 %v347_v23 }
  0x17   : > { %579 = vmatprep.subr.mxu0 %v346_v24  ;;  %613 = vmatprep.subr.mxu1 %v346_v24 }
  0x18   : > { %580 = vmatpush3.msra.mxu0 %v346_v24  ;;  %629 = vmatpush3.msra.mxu1 %v346_v24 }
  0x19   : > { %581 = vmatprep.subr.mxu0 %v345_v25  ;;  %614 = vmatprep.subr.mxu1 %v345_v25 }
  0x1a   : > { %582 = vmatpush3.msra.mxu0 %v345_v25  ;;  %630 = vmatpush3.msra.mxu1 %v345_v25 }
  0x1b   : > { %583 = vmatprep.subr.mxu0 %v344_v26  ;;  %615 = vmatprep.subr.mxu1 %v344_v26 }
  0x1c   : > { %584 = vmatpush3.msra.mxu0 %v344_v26  ;;  %631 = vmatpush3.msra.mxu1 %v344_v26 }
  0x1d   : > { %585 = vmatprep.subr.mxu0 %v343_v27  ;;  %616 = vmatprep.subr.mxu1 %v343_v27 }
  0x1e   : > { %586 = vmatpush3.msra.mxu0 %v343_v27  ;;  %632 = vmatpush3.msra.mxu1 %v343_v27 }
  0x1f   : > { %587 = vmatprep.subr.mxu0 %v342_v28  ;;  %617 = vmatprep.subr.mxu1 %v342_v28 }
  0x20   : > { %588 = vmatpush3.msra.mxu0 %v342_v28  ;;  %633 = vmatpush3.msra.mxu1 %v342_v28 }
  0x21   : > { %589 = vmatprep.subr.mxu0 %v341_v29  ;;  %618 = vmatprep.subr.mxu1 %v341_v29 }
  0x22   : > { %590 = vmatpush3.msra.mxu0 %v341_v29  ;;  %634 = vmatpush3.msra.mxu1 %v341_v29 }
  0x23   : > { %591 = vmatprep.subr.mxu0 %v340_v30  ;;  %619 = vmatprep.subr.mxu1 %v340_v30 }
  0x24   : > { %592 = vmatpush3.msra.mxu0 %v340_v30  ;;  %635 = vmatpush3.msra.mxu1 %v340_v30 }
  0x25   : > { %593 = vmatprep.subr.mxu0 %v339_v31  ;;  %620 = vmatprep.subr.mxu1 %v339_v31 }
  0x26   : > { %594 = vmatpush3.msra.mxu0 %v339_v31  ;;  %636 = vmatpush3.msra.mxu1 %v339_v31 }
  0x27   : > { %595 = vmatprep.subr.mxu0 %v338_v32  ;;  %621 = vmatprep.subr.mxu1 %v338_v32 }
  0x28   : > { %596 = vmatpush3.msra.mxu0 %v338_v32  ;;  %637 = vmatpush3.msra.mxu1 %v338_v32 }
  0x29   : > { %597 = vmatprep.subr.mxu0 %v337_v33  ;;  %622 = vmatprep.subr.mxu1 %v337_v33 }
  0x2a   : > { %598 = vmatpush3.msra.mxu0 %v337_v33  ;;  %638 = vmatpush3.msra.mxu1 %v337_v33 }
  0x2b   : > { %599 = vmatprep.subr.mxu0 %v336_v34  ;;  %623 = vmatprep.subr.mxu1 %v336_v34 }
  0x2c   : > { %600 = vmatpush3.msra.mxu0 %v336_v34  ;;  %639 = vmatpush3.msra.mxu1 %v336_v34 }
  0x2d   : > { %601 = vmatprep.subr.mxu0 %v335_v35  ;;  %624 = vmatprep.subr.mxu1 %v335_v35 }
  0x2e   : > { %602 = vmatpush3.msra.mxu0 %v335_v35  ;;  %640 = vmatpush3.msra.mxu1 %v335_v35 }
  0x99   : > { %v269_v6 = vpop.xlane.xlu0 %268  ;;  %v271_v7 = vpop.xlane.xlu1 %270 }
  0x9a   : > { %v277_v8 = vmul.f32 0.0078125, %v269_v6  ;;  %v278_v9 = vmul.f32 0.0078125, %v271_v7 }
  0x9c   : > { %v759_v10 = vsub.f32 %v264_v0, %v277_v8  ;;  %v761_v11 = vsub.f32 %v265_v1, %v278_v9 }
  0x9d   : > { %v273_v12 = vpop.xlane.xlu0 %272  ;;  %v275_v13 = vpop.xlane.xlu1 %274 }
  0x9e   : > { %v279_v14 = vmul.f32 0.0078125, %v273_v12  ;;  %v285_v15 = vmul.f32 %v759_v10, %v759_v10  ;;  %v280_v16 = vmul.f32 0.0078125, %v275_v13  ;;  %v286_v19 = vmul.f32 %v761_v11, %v761_v11 }
  0xa0   : > { %v765_v17 = vsub.f32 %v266_v2, %v279_v14  ;;  %289 = vadd.xlane.f32.xlu0 %v285_v15  ;;  %v767_v18 = vsub.f32 %v267_v3, %v280_v16  ;;  %v546_v2 = vld [vmem:[%s848_s4] ss:$0 sm:$0xff] }
  0xa2   : > { %v287_v20 = vmul.f32 %v765_v17, %v765_v17  ;;  %v288_v21 = vmul.f32 %v767_v18, %v767_v18 }
  0xa4   : > { %291 = vadd.xlane.f32.xlu0 %v286_v19  ;;  %293 = vadd.xlane.f32.xlu1 %v287_v20 }
  0xa8   : > { %295 = vadd.xlane.f32.xlu1 %v288_v21 }
 0x129   : > { %v290_v36 = vpop.xlane.xlu0 %289 }
 0x12a   : > { %v297_v37 = vmul.f32 0.0078125, %v290_v36 }
 0x12c   : > { %v301_v38 = vadd.f32 1e-05, %v297_v37 }
 0x12d   : > { %v294_v39 = vpop.xlane.xlu1 %293  ;;  %v292_v40 = vpop.xlane.xlu0 %291 }
 0x12e   : > { %665 = vrsqrt.f32 %v301_v38  ;;  %v299_v41 = vmul.f32 0.0078125, %v294_v39  ;;  %v298_v42 = vmul.f32 0.0078125, %v292_v40 }
 0x130   : > { %v303_v43 = vadd.f32 1e-05, %v299_v41  ;;  %v302_v44 = vadd.f32 1e-05, %v298_v42 }
 0x131   : > { %v296_v45 = vpop.xlane.xlu1 %295 }
 0x132   : > { %667 = vrsqrt.f32 %v303_v43  ;;  %v300_v46 = vmul.f32 0.0078125, %v296_v45 }
 0x133   : > { %669 = vrsqrt.f32 %v302_v44 }
 0x134   : > { %v304_v47 = vadd.f32 1e-05, %v300_v46 }
 0x136   : > { %671 = vrsqrt.f32 %v304_v47 }
 0x13b   : > { %v666_v48 = vpop.eup %665 }
 0x13c   : > { %v309_v50 = vmul.f32 %v666_v48, %v759_v10 }
 0x13e   : > { %v320_v52 = vmul.f32 %v544_v49, %v309_v50 }
 0x13f   : > { %v668_v53 = vpop.eup %667 }
 0x140   : > { %v670_v54 = vpop.eup %669  ;;  %v331_v55 = vadd.f32 %v545_v51, %v320_v52  ;;  %v311_v56 = vmul.f32 %v668_v53, %v765_v17 }
 0x141   : > { %v310_v57 = vmul.f32 %v670_v54, %v761_v11 }
 0x142   : > { %603 = vmatprep.mubr.f32.mxu0 %v331_v55  ;;  %v322_v58 = vmul.f32 %v544_v49, %v311_v56 }
 0x143   : > { %v672_v59 = vpop.eup %671  ;;  %v321_v60 = vmul.f32 %v544_v49, %v310_v57 }
 0x144   : > { %v333_v61 = vadd.f32 %v545_v51, %v322_v58  ;;  %v312_v62 = vmul.f32 %v672_v59, %v767_v18 }
 0x145   : > { %v332_v63 = vadd.f32 %v545_v51, %v321_v60 }
 0x146   : > { %606 = vmatprep.mubr.f32.mxu1 %v333_v61  ;;  %v323_v0 = vmul.f32 %v544_v49, %v312_v62 }
 0x147   : > { %604 = vmatmul.mubr.f32.vlgmr.msra.gmra.mxu0 %v332_v63 }
 0x148   : > { %v334_v1 = vadd.f32 %v545_v51, %v323_v0 }
 0x14a   : > { %607 = vmatmul.mubr.f32.vlgmr.msra.gmra.mxu1 %v334_v1 }
 0x207   : > { %v605_v3 = vpop.f32.mrf.mxu0 }
 0x208   : > { %v430_v4 = vadd.f32 %v605_v3, %v546_v2 }
 0x209   : > { %v424_v5 = vpop.f32.mrf.mxu0 }
 0x20a   : > { %445 = vst.msk [vmem:[%s262_s26 + $0x8] sm:$0xff] %vm443_vm0, %v430_v4  ;;  %v425_v6 = vadd.f32 %v546_v2, %v424_v5  ;;  %v608_v7 = vpop.f32.mrf.mxu1 }
 0x20b   : > { %v440_v8 = vadd.f32 %v608_v7, %v546_v2 }
 0x20c   : > { %444 = vst.msk [vmem:[%s262_s26] sm:$0xff] %vm443_vm0, %v425_v6  ;;  %v434_v9 = vpop.f32.mrf.mxu1 }
 0x20d   : > { %447 = vst.msk [vmem:[%s262_s26 + $0x18] sm:$0xff] %vm443_vm0, %v440_v8  ;;  %v435_v10 = vadd.f32 %v546_v2, %v434_v9 }
 0x20f   : > { %446 = vst.msk [vmem:[%s262_s26 + $0x10] sm:$0xff] %vm443_vm0, %v435_v10 }
 0x210 PF: > { %s15_s20 = sadd.s32 1, %s695_s20   ;;  %s850_s18 = smov %s691_s19 }
 0x211   : > { %p12_p5 = scmp.ge.s32.totalorder %s15_s20, 4   ;;  %s851_s19 = smov %s853_s21 }
 0x213   :  { %14 = sbr.rel (!%p12_p5) target bundleno = 2 (0x2), region = 70 }

// kernel: _lambda_.17
= control target key start
LH: loop header
LB: loop body
LE: loop exit
PB: predicated region body
PF: predicated region fallthrough
CT: control target
= control target key end

     0   :  { %s554_s12 = smov 0   ;;  %s556_s13 = smov 0   ;;  %s621_s0 = inlined_call_operand.vmem [shape: f32[2,32,64], index: 0, kind: input, shape index: {}]   ;;  %s622_s1 = inlined_call_operand.vmem [shape: f32[64,128], index: 1, kind: input, shape index: {}]   ;;  %s623_s2 = inlined_call_operand.vmem [shape: f32[1,128], index: 2, kind: input, shape index: {}]   ;;  %s624_s3 = inlined_call_operand.vmem [shape: f32[2,32,128], index: 3, kind: output, shape index: {}]  }
   0x1   :  { %s558_s14 = smov 0  }
   0x2 LB: > { %s25_s15 = sadd.s32 1, %s528_s13  ;;  %p422_p0 = scmp.ge.s32.totalorder %s532_s14, 1  ;;  %s532_s14 = sphi %s558_s14, %s13_s14   ;;  %s528_s13 = sphi %s556_s13, %s626_s13   ;;  %s524_s12 = sphi %s554_s12, %s625_s12  }
   0x3   : > { %p27_p1 = scmp.ge.s32.totalorder %s25_s15, 2  ;;  %p158_p2 = scmp.lt.s32.totalorder %s532_s14, 3 }
   0x5   : > { %s628_s15 = smov (%p27_p1, %s25_s15), 0  ;;  %p159_p3 = pnand %p422_p0, %p158_p2 }
   0x6   : > { %p191_p4 = scmp.lt.s32.totalorder (!%p159_p3), %s524_s12, 1 }
   0x7   : > { %162 = sbr.rel (%p159_p3) target bundleno = 228 (0xe4), region = 32 }
   0xc   : > { %v221_v0 = vld [vmem:[%s622_s1 + $0x38] sm:$0xff]  ;;  %v220_v1 = vld [vmem:[%s622_s1 + $0x30] sm:$0xff]  ;;  %v219_v2 = vld [vmem:[%s622_s1 + $0x28] sm:$0xff]  ;;  %s630_s12 = smov (!%p191_p4, %s524_s12), 1  ;;  %vm229_vm0 = vcmask 523264  }
   0xd   : > { %448 = vmatprep.subr.mxu0 %v221_v0  ;;  %470 = vmatprep.subr.mxu1 %v221_v0  ;;  %v218_v3 = vld [vmem:[%s622_s1 + $0x20] sm:$0xff]  ;;  %v217_v4 = vld [vmem:[%s622_s1 + $0x18] sm:$0xff]  ;;  %v216_v5 = vld [vmem:[%s622_s1 + $0x10] sm:$0xff]  ;;  %s434_s28 = sshll.u32 %s630_s12, 5 }
   0xe   : > { %449 = vmatpush3.msra.mxu0 %v221_v0  ;;  %478 = vmatpush3.msra.mxu1 %v221_v0  ;;  %v215_v6 = vld [vmem:[%s622_s1 + $0x8] sm:$0xff]  ;;  %s198_s6 = scalar_lea.vmem %s621_s0, %s434_s28  ;;  %v214_v7 = vld [vmem:[%s622_s1] sm:$0xff]  ;;  %s208_s17 = scalar_lea.vmem %s624_s3, %s434_s28 }
   0xf   : > { %450 = vmatprep.subr.mxu0 %v220_v1  ;;  %471 = vmatprep.subr.mxu1 %v220_v1  ;;  %v210_v8 = vld [vmem:[%s198_s6] sm:$0xff]  ;;  %v212_v9 = vld [vmem:[%s198_s6 + $0x10] sm:$0xff]  ;;  %v211_v10 = vld [vmem:[%s198_s6 + $0x8] sm:$0xff] }
  0x10   : > { %451 = vmatpush3.msra.mxu0 %v220_v1  ;;  %479 = vmatpush3.msra.mxu1 %v220_v1  ;;  %v213_v11 = vld [vmem:[%s198_s6 + $0x18] sm:$0xff]  ;;  %v427_v12 = vld [vmem:[%s623_s2] ss:$0 sm:$0xff] }
  0x11   : > { %452 = vmatprep.subr.mxu0 %v219_v2  ;;  %472 = vmatprep.subr.mxu1 %v219_v2 }
  0x12   : > { %453 = vmatpush3.msra.mxu0 %v219_v2  ;;  %480 = vmatpush3.msra.mxu1 %v219_v2 }
  0x13   : > { %454 = vmatprep.subr.mxu0 %v218_v3  ;;  %473 = vmatprep.subr.mxu1 %v218_v3 }
  0x14   : > { %455 = vmatpush3.msra.mxu0 %v218_v3  ;;  %481 = vmatpush3.msra.mxu1 %v218_v3 }
  0x15   : > { %456 = vmatprep.subr.mxu0 %v217_v4  ;;  %474 = vmatprep.subr.mxu1 %v217_v4 }
  0x16   : > { %457 = vmatpush3.msra.mxu0 %v217_v4  ;;  %482 = vmatpush3.msra.mxu1 %v217_v4 }
  0x17   : > { %458 = vmatprep.subr.mxu0 %v216_v5  ;;  %475 = vmatprep.subr.mxu1 %v216_v5 }
  0x18   : > { %459 = vmatpush3.msra.mxu0 %v216_v5  ;;  %483 = vmatpush3.msra.mxu1 %v216_v5 }
  0x19   : > { %460 = vmatprep.subr.mxu0 %v215_v6  ;;  %476 = vmatprep.subr.mxu1 %v215_v6 }
  0x1a   : > { %461 = vmatpush3.msra.mxu0 %v215_v6  ;;  %484 = vmatpush3.msra.mxu1 %v215_v6 }
  0x1b   : > { %462 = vmatprep.subr.mxu0 %v214_v7  ;;  %477 = vmatprep.subr.mxu1 %v214_v7 }
  0x1c   : > { %463 = vmatpush3.msra.mxu0 %v214_v7  ;;  %485 = vmatpush3.msra.mxu1 %v214_v7 }
  0x1d   : > { %464 = vmatprep.mubr.msk.f32.mxu0 %vm229_vm0, %v210_v8  ;;  %467 = vmatprep.mubr.msk.f32.mxu1 %vm229_vm0, %v212_v9 }
  0x1e   : > { %465 = vmatmul.mubr.msk.f32.vlgmr.msra.gmra.mxu0 %vm229_vm0, %v211_v10  ;;  %468 = vmatmul.mubr.msk.f32.vlgmr.msra.gmra.mxu1 %vm229_vm0, %v213_v11 }
  0xde   : > { %v466_v13 = vpop.f32.mrf.mxu0  ;;  %v469_v14 = vpop.f32.mrf.mxu1 }
  0xdf   : > { %v314_v15 = vadd.f32 %v466_v13, %v427_v12  ;;  %v324_v16 = vadd.f32 %v469_v14, %v427_v12 }
  0xe0   : > { %v308_v17 = vpop.f32.mrf.mxu0  ;;  %v318_v18 = vpop.f32.mrf.mxu1 }
  0xe1   : > { %328 = vst [vmem:[%s208_s17 + $0x8] sm:$0xff] %v314_v15  ;;  %330 = vst [vmem:[%s208_s17 + $0x18] sm:$0xff] %v324_v16  ;;  %v309_v19 = vadd.f32 %v427_v12, %v308_v17  ;;  %v319_v20 = vadd.f32 %v427_v12, %v318_v18 }
  0xe3   : > { %327 = vst [vmem:[%s208_s17] sm:$0xff] %v309_v19  ;;  %329 = vst [vmem:[%s208_s17 + $0x10] sm:$0xff] %v319_v20 }
  0xe4 PF: > { %s13_s14 = sadd.s32 1, %s532_s14   ;;  %s625_s12 = smov %s528_s13 }
  0xe5   : > { %p10_p5 = scmp.ge.s32.totalorder %s13_s14, 4   ;;  %s626_s13 = smov %s628_s15 }
  0xe7   :  { %12 = sbr.rel (!%p10_p5) target bundleno = 2 (0x2), region = 62 }

// kernel: _lambda_.12
= control target key start
LH: loop header
LB: loop body
LE: loop exit
PB: predicated region body
PF: predicated region fallthrough
CT: control target
= control target key end

     0   :  { %s4550_s29 = smov 0   ;;  %s6163_s0 = inlined_call_operand.vmem [shape: f32[2,128,32], index: 0, kind: input, shape index: {}]   ;;  %s6164_s1 = inlined_call_operand.vmem [shape: f32[128,128], index: 1, kind: input, shape index: {}]   ;;  %s6165_s2 = inlined_call_operand.vmem [shape: f32[2,1,32], index: 2, kind: input, shape index: {}]   ;;  %s6166_s3 = inlined_call_operand.vmem [shape: f32[2,1,32], index: 3, kind: input, shape index: {}]   ;;  %s6167_s4 = inlined_call_operand.vmem [shape: f32[2,1,32], index: 4, kind: input, shape index: {}]   ;;  %s6168_s5 = inlined_call_operand.vmem [shape: f32[2,1,32], index: 5, kind: input, shape index: {}]   ;;  %s6169_s6 = inlined_call_operand.vmem [shape: f32[32,96], index: 6, kind: input, shape index: {}]   ;;  %s6170_s7 = inlined_call_operand.vmem [shape: f32[1,96], index: 7, kind: input, shape index: {}]   ;;  %s6171_s8 = inlined_call_operand.vmem [shape: f32[32,32], index: 8, kind: input, shape index: {}]   ;;  %s6172_s9 = inlined_call_operand.vmem [shape: f32[1,32], index: 9, kind: input, shape index: {}]   ;;  %s6173_s10 = inlined_call_operand.vmem [shape: f32[32,128], index: 10, kind: input, shape index: {}]   ;;  %s6174_s11 = inlined_call_operand.vmem [shape: f32[1,128], index: 11, kind: input, shape index: {}]   ;;  %s6175_s12 = inlined_call_operand.vmem [shape: f32[128,32], index: 12, kind: input, shape index: {}]   ;;  %s6176_s13 = inlined_call_operand.vmem [shape: f32[1,32], index: 13, kind: input, shape index: {}]   ;;  %s6177_s14 = inlined_call_operand.vmem [shape: f32[2,128,32], index: 14, kind: output, shape index: {}]  }
   0x1 LB: > { %s3448_s30 = sadd.s32 4294967295, %s4467_s29   ;;  %p3452_p0 = scmp.ge.s32.totalorder %s4467_s29, 1  ;;  %s4467_s29 = sphi %s4550_s29, %s24_s29  }
   0x2   : > { %p444_p1 = scmp.lt.s32.totalorder %s4467_s29, 3 }
   0x4   : > { %p445_p2 = pnand %p3452_p0, %p444_p1 }
   0x6   : > { %448 = sbr.rel (%p445_p2) target bundleno = 3134 (0xc3e), region = 76 }
   0xb   : > { %p502_p3 = scmp.lt.s32.totalorder %s3448_s30, 1  ;;  %vm540_vm0 = vcmask 261120   ;;  %vm1081_vm1 = vcmask 130048   ;;  %s4469_s23 = smov 96  }
   0xc   : > { %s4470_s24 = smov 64   ;;  %s4471_s25 = smov 80  }
   0xd   : > { %s6244_s30 = smov (!%p502_p3, %s3448_s30), 1  ;;  %s4474_s22 = smov 16  }
   0xe   : > { %s3577_s15 = sshll.u32 %s6244_s30, 7  ;;  %s512_s16 = scalar_lea.vmem %s6166_s3, %s6244_s30 }
   0xf   : > { %s4566_s18 = scalar_lea.vmem %s6163_s0, %s3577_s15  ;;  %s509_s20 = scalar_lea.vmem %s6165_s2, %s6244_s30 }
  0x10   : > { %v524_v0 = vld [vmem:[%s4566_s18] sm:$0xff]  ;;  %v526_v1 = vld [vmem:[%s4566_s18 + $0x10] sm:$0xff]  ;;  %v525_v4 = vld [vmem:[%s4566_s18 + $0x8] sm:$0xff] }
  0x11   : > { %v541_v2 = vsel %vm540_vm0, %v524_v0, 0.0  ;;  %v547_v3 = vsel %vm540_vm0, %v526_v1, 0.0  ;;  %v527_v5 = vld [vmem:[%s4566_s18 + $0x18] sm:$0xff]  ;;  %v544_v6 = vsel %vm540_vm0, %v525_v4, 0.0  ;;  %v528_v8 = vld [vmem:[%s4566_s18 + $0x20] sm:$0xff]  ;;  %v529_v9 = vld [vmem:[%s4566_s18 + $0x28] sm:$0xff] }
  0x12   : > { %542 = vadd.xlane.f32.xlu0 %v541_v2  ;;  %548 = vadd.xlane.f32.xlu1 %v547_v3  ;;  %v550_v7 = vsel %vm540_vm0, %v527_v5, 0.0  ;;  %v553_v10 = vsel %vm540_vm0, %v528_v8, 0.0  ;;  %v556_v11 = vsel %vm540_vm0, %v529_v9, 0.0  ;;  %v4581_v12 = vld [vmem:[%s4566_s18 + $0x30] sm:$0xff]  ;;  %v4584_v13 = vld [vmem:[%s4566_s18 + $0x38] sm:$0xff]  ;;  %v4591_v16 = vld [vmem:[%s4566_s18 + $0x40] sm:$0xff] }
  0x13   : > { %v559_v14 = vsel %vm540_vm0, %v4581_v12, 0.0  ;;  %v562_v15 = vsel %vm540_vm0, %v4584_v13, 0.0  ;;  %v4594_v17 = vld [vmem:[%s4566_s18 + $0x48] sm:$0xff]  ;;  %v565_v18 = vsel %vm540_vm0, %v4591_v16, 0.0  ;;  %v4601_v20 = vld [vmem:[%s4566_s18 + $0x50] sm:$0xff]  ;;  %v4604_v21 = vld [vmem:[%s4566_s18 + $0x58] sm:$0xff] }
  0x14   : > { %v568_v19 = vsel %vm540_vm0, %v4594_v17, 0.0  ;;  %v571_v22 = vsel %vm540_vm0, %v4601_v20, 0.0  ;;  %v574_v23 = vsel %vm540_vm0, %v4604_v21, 0.0  ;;  %v4611_v24 = vld [vmem:[%s4566_s18 + $0x60] sm:$0xff]  ;;  %v4614_v25 = vld [vmem:[%s4566_s18 + $0x68] sm:$0xff]  ;;  %v4621_v28 = vld [vmem:[%s4566_s18 + $0x70] sm:$0xff] }
  0x15   : > { %v577_v26 = vsel %vm540_vm0, %v4611_v24, 0.0  ;;  %v580_v27 = vsel %vm540_vm0, %v4614_v25, 0.0  ;;  %v4624_v29 = vld [vmem:[%s4566_s18 + $0x78] sm:$0xff]  ;;  %v583_v30 = vsel %vm540_vm0, %v4621_v28, 0.0 }
  0x16   : > { %545 = vadd.xlane.f32.xlu0 %v544_v6  ;;  %551 = vadd.xlane.f32.xlu1 %v550_v7  ;;  %v586_v31 = vsel %vm540_vm0, %v4624_v29, 0.0 }
  0x1a   : > { %554 = vadd.xlane.f32.xlu0 %v553_v10  ;;  %557 = vadd.xlane.f32.xlu1 %v556_v11 }
  0x1e   : > { %560 = vadd.xlane.f32.xlu0 %v559_v14  ;;  %563 = vadd.xlane.f32.xlu1 %v562_v15 }
  0x22   : > { %566 = vadd.xlane.f32.xlu0 %v565_v18  ;;  %569 = vadd.xlane.f32.xlu1 %v568_v19 }
  0x26   : > { %572 = vadd.xlane.f32.xlu0 %v571_v22  ;;  %575 = vadd.xlane.f32.xlu1 %v574_v23 }
  0x2a   : > { %578 = vadd.xlane.f32.xlu0 %v577_v26  ;;  %581 = vadd.xlane.f32.xlu1 %v580_v27 }
  0x2e   : > { %584 = vadd.xlane.f32.xlu0 %v583_v30  ;;  %587 = vadd.xlane.f32.xlu1 %v586_v31 }
  0x9b   : > { %v543_v32 = vpop.xlane.xlu0 %542  ;;  %v549_v33 = vpop.xlane.xlu1 %548 }
  0x9c   : > { %v590_v34 = vmul.f32 0.03125, %v543_v32  ;;  %v592_v35 = vmul.f32 0.03125, %v549_v33 }
  0x9e   : > { %v4630_v36 = vsub.f32 %v524_v0, %v590_v34  ;;  %v4632_v37 = vsub.f32 %v526_v1, %v592_v35 }
  0x9f   : > { %v546_v38 = vpop.xlane.xlu0 %545  ;;  %v552_v39 = vpop.xlane.xlu1 %551 }
  0xa0   : > { %v591_v40 = vmul.f32 0.03125, %v546_v38  ;;  %v593_v41 = vmul.f32 0.03125, %v552_v39  ;;  %v622_v42 = vmul.f32 %v4630_v36, %v4630_v36  ;;  %v624_v43 = vmul.f32 %v4632_v37, %v4632_v37 }
  0xa2   : > { %v4638_v44 = vsub.f32 %v525_v4, %v591_v40  ;;  %v4640_v45 = vsub.f32 %v527_v5, %v593_v41  ;;  %v638_v46 = vsel %vm540_vm0, %v622_v42, 0.0  ;;  %v644_v49 = vsel %vm540_vm0, %v624_v43, 0.0 }
  0xa3   : > { %639 = vadd.xlane.f32.xlu0 %v638_v46  ;;  %v555_v47 = vpop.xlane.xlu0 %554  ;;  %v558_v48 = vpop.xlane.xlu1 %557 }
  0xa4   : > { %v594_v50 = vmul.f32 0.03125, %v555_v47  ;;  %v595_v51 = vmul.f32 0.03125, %v558_v48  ;;  %v623_v52 = vmul.f32 %v4638_v44, %v4638_v44  ;;  %v625_v53 = vmul.f32 %v4640_v45, %v4640_v45 }
  0xa6   : > { %v4648_v54 = vsub.f32 %v528_v8, %v594_v50  ;;  %v4650_v55 = vsub.f32 %v529_v9, %v595_v51  ;;  %v641_v56 = vsel %vm540_vm0, %v623_v52, 0.0  ;;  %v647_v59 = vsel %vm540_vm0, %v625_v53, 0.0  ;;  %v799_v53 = vld [vmem:[%s6169_s6 + $0x10] sm:$0xff] }
  0xa7   : > { %645 = vadd.xlane.f32.xlu0 %v644_v49  ;;  %642 = vadd.xlane.f32.xlu1 %v641_v56  ;;  %v561_v57 = vpop.xlane.xlu0 %560  ;;  %v564_v58 = vpop.xlane.xlu1 %563  ;;  %v798_v56 = vld [vmem:[%s6169_s6 + $0x8] sm:$0xff] }
  0xa8   : > { %v596_v60 = vmul.f32 0.03125, %v561_v57  ;;  %v597_v61 = vmul.f32 0.03125, %v564_v58  ;;  %v626_v62 = vmul.f32 %v4648_v54, %v4648_v54  ;;  %v627_v63 = vmul.f32 %v4650_v55, %v4650_v55  ;;  %v797_v57 = vld [vmem:[%s6169_s6] sm:$0xff] }
  0xaa   : > { %v4659_v0 = vsub.f32 %v4581_v12, %v596_v60  ;;  %v4662_v1 = vsub.f32 %v4584_v13, %v597_v61  ;;  %v650_v2 = vsel %vm540_vm0, %v626_v62, 0.0  ;;  %v653_v5 = vsel %vm540_vm0, %v627_v63, 0.0 }
  0xab   : > { %648 = vadd.xlane.f32.xlu1 %v647_v59  ;;  %651 = vadd.xlane.f32.xlu0 %v650_v2  ;;  %v567_v3 = vpop.xlane.xlu0 %566  ;;  %v570_v4 = vpop.xlane.xlu1 %569  ;;  %v753_v61 = vlaneseq }
  0xac   : > { %v598_v6 = vmul.f32 0.03125, %v567_v3  ;;  %v599_v7 = vmul.f32 0.03125, %v570_v4  ;;  %v628_v8 = vmul.f32 %v4659_v0, %v4659_v0  ;;  %v629_v9 = vmul.f32 %v4662_v1, %v4662_v1 }
  0xae   : > { %v4671_v10 = vsub.f32 %v4591_v16, %v598_v6  ;;  %v4674_v11 = vsub.f32 %v4594_v17, %v599_v7  ;;  %v656_v12 = vsel %vm540_vm0, %v628_v8, 0.0  ;;  %v659_v15 = vsel %vm540_vm0, %v629_v9, 0.0 }
  0xaf   : > { %654 = vadd.xlane.f32.xlu1 %v653_v5  ;;  %657 = vadd.xlane.f32.xlu0 %v656_v12  ;;  %v573_v13 = vpop.xlane.xlu0 %572  ;;  %v576_v14 = vpop.xlane.xlu1 %575  ;;  %v4736_v6 = vshrl.u32 %v753_v61, 7 }
  0xb0   : > { %v600_v18 = vmul.f32 0.03125, %v573_v13  ;;  %v601_v19 = vmul.f32 0.03125, %v576_v14  ;;  %v630_v22 = vmul.f32 %v4671_v10, %v4671_v10  ;;  %v631_v16 = vmul.f32 %v4674_v11, %v4674_v11  ;;  %v750_v13 = vld [vmem:[%s512_s16] sm:$0x1] }
  0xb1   : > { %6200 = vst [vmem:[#allocation2_spill] sm:$0xff] %v4736_v6 }
  0xb2   : > { %v4683_v23 = vsub.f32 %v4601_v20, %v600_v18  ;;  %v4686_v17 = vsub.f32 %v4604_v21, %v601_v19  ;;  %v662_v26 = vsel %vm540_vm0, %v630_v22, 0.0  ;;  %v665_v31 = vsel %vm540_vm0, %v631_v16, 0.0 }
  0xb3   : > { %660 = vadd.xlane.f32.xlu1 %v659_v15  ;;  %663 = vadd.xlane.f32.xlu0 %v662_v26  ;;  %v579_v27 = vpop.xlane.xlu0 %578  ;;  %v582_v30 = vpop.xlane.xlu1 %581  ;;  %v6178_v18 = vsub.s32 0, %v4736_v6  ;;  %v751_v16 = vadd.f32 1.0, %v750_v13  ;;  %v5147_v6 = vld [vmem:[%s6164_s1 + $0x78] sm:$0xff] }
  0xb4   : > { %v602_v32 = vmul.f32 0.03125, %v579_v27  ;;  %v603_v33 = vmul.f32 0.03125, %v582_v30  ;;  %v632_v34 = vmul.f32 %v4683_v23, %v4683_v23  ;;  %v633_v20 = vmul.f32 %v4686_v17, %v4686_v17  ;;  %6217 = vst [vmem:[#allocation19_spill] sm:$0xff] %v5147_v6 }
  0xb6   : > { %v4695_v35 = vsub.f32 %v4611_v24, %v602_v32  ;;  %v4698_v21 = vsub.f32 %v4614_v25, %v603_v33  ;;  %v668_v38 = vsel %vm540_vm0, %v632_v34, 0.0  ;;  %v671_v41 = vsel %vm540_vm0, %v633_v20, 0.0 }
  0xb7   : > { %666 = vadd.xlane.f32.xlu1 %v665_v31  ;;  %669 = vadd.xlane.f32.xlu0 %v668_v38  ;;  %v585_v39 = vpop.xlane.xlu0 %584  ;;  %v588_v40 = vpop.xlane.xlu1 %587  ;;  %v4741_v34 = vrot.slane %v751_v16, %v6178_v18 }
  0xb8   : > { %v604_v42 = vmul.f32 0.03125, %v585_v39  ;;  %v605_v43 = vmul.f32 0.03125, %v588_v40  ;;  %v634_v46 = vmul.f32 %v4695_v35, %v4695_v35  ;;  %v635_v24 = vmul.f32 %v4698_v21, %v4698_v21 }
  0xba   : > { %v4707_v47 = vsub.f32 %v4621_v28, %v604_v42  ;;  %v4710_v25 = vsub.f32 %v4624_v29, %v605_v43  ;;  %v674_v48 = vsel %vm540_vm0, %v634_v46, 0.0  ;;  %v677_v49 = vsel %vm540_vm0, %v635_v24, 0.0  ;;  %v800_v29 = vld [vmem:[%s6169_s6 + $0x18] sm:$0xff]  ;;  %v4748_v24 = vld [vmem:[%s509_s20] ss:$0 sm:$0xff] }
  0xbb   : > { %672 = vadd.xlane.f32.xlu1 %v671_v41  ;;  %675 = vadd.xlane.f32.xlu0 %v674_v48 }
  0xbc   : > { %v636_v50 = vmul.f32 %v4707_v47, %v4707_v47  ;;  %v637_v51 = vmul.f32 %v4710_v25, %v4710_v25  ;;  %3799 = vmatprep.subr.mxu0 %v800_v29 }
  0xbd   : > { %3800 = vmatpush3.msra.mxu0 %v800_v29 }
  0xbe   : > { %v680_v52 = vsel %vm540_vm0, %v636_v50, 0.0  ;;  %v683_v28 = vsel %vm540_vm0, %v637_v51, 0.0  ;;  %3801 = vmatprep.subr.mxu0 %v799_v53 }
  0xbf   : > { %678 = vadd.xlane.f32.xlu1 %v677_v49  ;;  %681 = vadd.xlane.f32.xlu0 %v680_v52 }
  0xc0   : > { %3802 = vmatpush3.msra.mxu0 %v799_v53 }
  0xc1   : > { %3803 = vmatprep.subr.mxu0 %v798_v56 }
  0xc2   : > { %3804 = vmatpush3.msra.mxu0 %v798_v56 }
  0xc3   : > { %684 = vadd.xlane.f32.xlu1 %v683_v28  ;;  %3805 = vmatprep.subr.mxu0 %v797_v57 }
  0xc4   : > { %3806 = vmatpush3.msra.mxu0 %v797_v57 }
 0x12c   : > { %v640_v58 = vpop.xlane.xlu0 %639 }
 0x12d   : > { %v686_v59 = vmul.f32 0.03125, %v640_v58 }
 0x12f   : > { %v702_v60 = vadd.f32 1e-05, %v686_v59 }
 0x130   : > { %v643_v62 = vpop.xlane.xlu1 %642  ;;  %v646_v63 = vpop.xlane.xlu0 %645 }
 0x131   : > { %4221 = vrsqrt.f32 %v702_v60  ;;  %v687_v2 = vmul.f32 0.03125, %v643_v62  ;;  %v688_v3 = vmul.f32 0.03125, %v646_v63 }
 0x133   : > { %v703_v4 = vadd.f32 1e-05, %v687_v2  ;;  %v704_v5 = vadd.f32 1e-05, %v688_v3 }
 0x134   : > { %v649_v7 = vpop.xlane.xlu1 %648  ;;  %v652_v8 = vpop.xlane.xlu0 %651 }
 0x135   : > { %4223 = vrsqrt.f32 %v703_v4  ;;  %v689_v9 = vmul.f32 0.03125, %v649_v7  ;;  %v690_v12 = vmul.f32 0.03125, %v652_v8 }
 0x136   : > { %4225 = vrsqrt.f32 %v704_v5 }
 0x137   : > { %v705_v14 = vadd.f32 1e-05, %v689_v9  ;;  %v706_v15 = vadd.f32 1e-05, %v690_v12 }
 0x138   : > { %v655_v19 = vpop.xlane.xlu1 %654  ;;  %v658_v22 = vpop.xlane.xlu0 %657 }
 0x139   : > { %4227 = vrsqrt.f32 %v705_v14  ;;  %v691_v26 = vmul.f32 0.03125, %v655_v19  ;;  %v692_v27 = vmul.f32 0.03125, %v658_v22 }
 0x13a   : > { %4229 = vrsqrt.f32 %v706_v15 }
 0x13b   : > { %v707_v30 = vadd.f32 1e-05, %v691_v26  ;;  %v708_v31 = vadd.f32 1e-05, %v692_v27 }
 0x13c   : > { %v661_v32 = vpop.xlane.xlu1 %660  ;;  %v664_v33 = vpop.xlane.xlu0 %663 }
 0x13d   : > { %4231 = vrsqrt.f32 %v707_v30  ;;  %v693_v20 = vmul.f32 0.03125, %v661_v32  ;;  %v694_v38 = vmul.f32 0.03125, %v664_v33 }
 0x13e   : > { %v4222_v39 = vpop.eup %4221  ;;  %4233 = vrsqrt.f32 %v708_v31 }
 0x13f   : > { %v709_v40 = vadd.f32 1e-05, %v693_v20  ;;  %v710_v41 = vadd.f32 1e-05, %v694_v38  ;;  %v734_v42 = vmul.f32 %v4222_v39, %v4630_v36 }
 0x140   : > { %v667_v43 = vpop.xlane.xlu1 %666  ;;  %v670_v46 = vpop.xlane.xlu0 %669 }
 0x141   : > { %4235 = vrsqrt.f32 %v709_v40  ;;  %v695_v48 = vmul.f32 0.03125, %v667_v43  ;;  %v696_v49 = vmul.f32 0.03125, %v670_v46  ;;  %v758_v50 = vmul.f32 %v4741_v34, %v734_v42 }
 0x142   : > { %v4224_v51 = vpop.eup %4223  ;;  %4237 = vrsqrt.f32 %v710_v41 }
 0x143   : > { %v4226_v52 = vpop.eup %4225  ;;  %v711_v28 = vadd.f32 1e-05, %v695_v48  ;;  %v712_v29 = vadd.f32 1e-05, %v696_v49  ;;  %v781_v53 = vadd.f32 %v4748_v24, %v758_v50  ;;  %v735_v56 = vmul.f32 %v4224_v51, %v4638_v44 }
 0x144   : > { %v673_v57 = vpop.xlane.xlu1 %672  ;;  %v676_v36 = vpop.xlane.xlu0 %675  ;;  %v736_v58 = vmul.f32 %v4226_v52, %v4632_v37 }
 0x145   : > { %4239 = vrsqrt.f32 %v711_v28  ;;  %v697_v59 = vmul.f32 0.03125, %v673_v57  ;;  %v698_v60 = vmul.f32 0.03125, %v676_v36  ;;  %3807 = vmatprep.mubr.msk.f32.mxu0 %vm540_vm0, %v781_v53  ;;  %v759_v61 = vmul.f32 %v4741_v34, %v735_v56 }
 0x146   : > { %v4228_v62 = vpop.eup %4227  ;;  %4241 = vrsqrt.f32 %v712_v29  ;;  %v760_v63 = vmul.f32 %v4741_v34, %v736_v58 }
 0x147   : > { %v4230_v2 = vpop.eup %4229  ;;  %v713_v3 = vadd.f32 1e-05, %v697_v59  ;;  %v714_v4 = vadd.f32 1e-05, %v698_v60  ;;  %v782_v44 = vadd.f32 %v4748_v24, %v759_v61  ;;  %v737_v5 = vmul.f32 %v4228_v62, %v4640_v45 }
 0x148   : > { %v679_v7 = vpop.xlane.xlu1 %678  ;;  %v682_v37 = vpop.xlane.xlu0 %681  ;;  %v783_v8 = vadd.f32 %v4748_v24, %v760_v63  ;;  %v738_v9 = vmul.f32 %v4230_v2, %v4648_v54 }
 0x149   : > { %4243 = vrsqrt.f32 %v713_v3  ;;  %v699_v12 = vmul.f32 0.03125, %v679_v7  ;;  %v700_v13 = vmul.f32 0.03125, %v682_v37  ;;  %3808 = vmatmul.mubr.msk.f32.vlgmr.msra.gmra.mxu0 %vm540_vm0, %v782_v44  ;;  %v761_v14 = vmul.f32 %v4741_v34, %v737_v5  ;;  %v3458_v37 = vld [vmem:[%s6170_s7] ss:$0 sm:$0xff] }
 0x14a   : > { %v4232_v15 = vpop.eup %4231  ;;  %4245 = vrsqrt.f32 %v714_v4  ;;  %3810 = vmatprep.mubr.msk.f32.mxu0 %vm540_vm0, %v783_v8  ;;  %v762_v19 = vmul.f32 %v4741_v34, %v738_v9 }
 0x14b   : > { %v4234_v45 = vpop.eup %4233  ;;  %v715_v22 = vadd.f32 1e-05, %v699_v12  ;;  %v716_v16 = vadd.f32 1e-05, %v700_v13  ;;  %v784_v26 = vadd.f32 %v4748_v24, %v761_v14  ;;  %v739_v54 = vmul.f32 %v4232_v15, %v4650_v55 }
 0x14c   : > { %v685_v27 = vpop.xlane.xlu1 %684  ;;  %v785_v30 = vadd.f32 %v4748_v24, %v762_v19  ;;  %v740_v31 = vmul.f32 %v4234_v45, %v4659_v0 }
 0x14d   : > { %4247 = vrsqrt.f32 %v715_v22  ;;  %v701_v32 = vmul.f32 0.03125, %v685_v27  ;;  %3811 = vmatmul.mubr.msk.f32.gmra.mxu0 %vm540_vm0, %v784_v26  ;;  %v763_v33 = vmul.f32 %v4741_v34, %v739_v54 }
 0x14e   : > { %v4236_v20 = vpop.eup %4235  ;;  %4249 = vrsqrt.f32 %v716_v16  ;;  %3813 = vmatprep.mubr.msk.f32.mxu0 %vm540_vm0, %v785_v30  ;;  %v764_v38 = vmul.f32 %v4741_v34, %v740_v31 }
 0x14f   : > { %v4238_v39 = vpop.eup %4237  ;;  %v717_v40 = vadd.f32 1e-05, %v701_v32  ;;  %v786_v55 = vadd.f32 %v4748_v24, %v763_v33  ;;  %v741_v41 = vmul.f32 %v4236_v20, %v4662_v1 }
 0x150   : > { %v787_v0 = vadd.f32 %v4748_v24, %v764_v38  ;;  %v742_v42 = vmul.f32 %v4238_v39, %v4671_v10 }
 0x151   : > { %4251 = vrsqrt.f32 %v717_v40  ;;  %3814 = vmatmul.mubr.msk.f32.gmra.mxu0 %vm540_vm0, %v786_v55  ;;  %v765_v43 = vmul.f32 %v4741_v34, %v741_v41 }
 0x152   : > { %v4240_v46 = vpop.eup %4239  ;;  %3816 = vmatprep.mubr.msk.f32.mxu0 %vm540_vm0, %v787_v0  ;;  %v766_v48 = vmul.f32 %v4741_v34, %v742_v42 }
 0x153   : > { %v4242_v49 = vpop.eup %4241  ;;  %v788_v50 = vadd.f32 %v4748_v24, %v765_v43  ;;  %v743_v51 = vmul.f32 %v4240_v46, %v4674_v11 }
 0x154   : > { %v789_v1 = vadd.f32 %v4748_v24, %v766_v48  ;;  %v744_v52 = vmul.f32 %v4242_v49, %v4683_v23 }
 0x155   : > { %3817 = vmatmul.mubr.msk.f32.gmra.mxu0 %vm540_vm0, %v788_v50  ;;  %v767_v10 = vmul.f32 %v4741_v34, %v743_v51 }
 0x156   : > { %v4244_v28 = vpop.eup %4243  ;;  %3819 = vmatprep.mubr.msk.f32.mxu0 %vm540_vm0, %v789_v1  ;;  %v768_v29 = vmul.f32 %v4741_v34, %v744_v52 }
 0x157   : > { %v4246_v53 = vpop.eup %4245  ;;  %v790_v56 = vadd.f32 %v4748_v24, %v767_v10  ;;  %v745_v57 = vmul.f32 %v4244_v28, %v4686_v17 }
 0x158   : > { %v791_v11 = vadd.f32 %v4748_v24, %v768_v29  ;;  %v746_v36 = vmul.f32 %v4246_v53, %v4695_v35 }
 0x159   : > { %3820 = vmatmul.mubr.msk.f32.gmra.mxu0 %vm540_vm0, %v790_v56  ;;  %v769_v23 = vmul.f32 %v4741_v34, %v745_v57 }
 0x15a   : > { %v4248_v58 = vpop.eup %4247  ;;  %3822 = vmatprep.mubr.msk.f32.mxu0 %vm540_vm0, %v791_v11  ;;  %v770_v59 = vmul.f32 %v4741_v34, %v746_v36 }
 0x15b   : > { %v4250_v60 = vpop.eup %4249  ;;  %v792_v61 = vadd.f32 %v4748_v24, %v769_v23  ;;  %v747_v62 = vmul.f32 %v4248_v58, %v4698_v21 }
 0x15c   : > { %v793_v17 = vadd.f32 %v4748_v24, %v770_v59  ;;  %v748_v63 = vmul.f32 %v4250_v60, %v4707_v47 }
 0x15d   : > { %3823 = vmatmul.mubr.msk.f32.gmra.mxu0 %vm540_vm0, %v792_v61  ;;  %v771_v35 = vmul.f32 %v4741_v34, %v747_v62 }
 0x15e   : > { %v4252_v2 = vpop.eup %4251  ;;  %3825 = vmatprep.mubr.msk.f32.mxu0 %vm540_vm0, %v793_v17  ;;  %v772_v3 = vmul.f32 %v4741_v34, %v748_v63 }
 0x15f   : > { %v794_v4 = vadd.f32 %v4748_v24, %v771_v35  ;;  %v749_v44 = vmul.f32 %v4252_v2, %v4710_v25 }
 0x160   : > { %v795_v5 = vadd.f32 %v4748_v24, %v772_v3 }
 0x161   : > { %3826 = vmatmul.mubr.msk.f32.gmra.mxu0 %vm540_vm0, %v794_v4  ;;  %v773_v21 = vmul.f32 %v4741_v34, %v749_v44 }
 0x162   : > { %3828 = vmatprep.mubr.msk.f32.mxu0 %vm540_vm0, %v795_v5 }
 0x163   : > { %v796_v47 = vadd.f32 %v4748_v24, %v773_v21 }
 0x165   : > { %3829 = vmatmul.mubr.msk.f32.gmra.mxu0 %vm540_vm0, %v796_v47 }
 0x209   : > { %v3809_v7 = vpop.f32.mrf.mxu0 }
 0x20a   : > { %v4869_v46 = vadd.f32 %v3809_v7, %v3458_v37 }
 0x20b   : > { %v922_v8 = vpop.f32.mrf.mxu0 }
 0x20c   : > { %v4816_v9 = vadd.f32 %v3458_v37, %v922_v8  ;;  %v4946_v44 = vmul.f32 0.25, %v4869_v46 }
 0x20d   : > { %v3812_v25 = vpop.f32.mrf.mxu0 }
 0x20e   : > { %v4819_v12 = vmul.f32 0.25, %v4816_v9  ;;  %v4861_v42 = vadd.f32 %v3812_v25, %v3458_v37 }
 0x20f   : > { %v932_v34 = vpop.f32.mrf.mxu0 }
 0x210   : > { %3863 = vmatprep.mubr.msk.f32.mxu1 %vm1081_vm1, %v4819_v12  ;;  %v4879_v49 = vadd.f32 %v3458_v37, %v932_v34  ;;  %v4958_v47 = vmul.f32 0.25, %v4861_v42 }
 0x211   : > { %v3815_v24 = vpop.f32.mrf.mxu0 }
 0x212   : > { %v4853_v41 = vadd.f32 %v3815_v24, %v3458_v37  ;;  %v4949_v5 = vmul.f32 0.25, %v4879_v49 }
 0x213   : > { %v942_v13 = vpop.f32.mrf.mxu0 }
 0x214   : > { %6201 = vst [vmem:[#allocation3_spill] sm:$0xff] %v4853_v41  ;;  %v4873_v48 = vadd.f32 %v3458_v37, %v942_v13  ;;  %v4970_v25 = vmul.f32 0.25, %v4853_v41 }
 0x215   : > { %v3818_v14 = vpop.f32.mrf.mxu0 }
 0x216   : > { %v4845_v40 = vadd.f32 %v3818_v14, %v3458_v37  ;;  %6202 = vst [vmem:[#allocation4_spill] sm:$0xff] %v4873_v48 }
 0x217   : > { %v952_v15 = vpop.f32.mrf.mxu0 }
 0x218   : > { %v4865_v43 = vadd.f32 %v3458_v37, %v952_v15  ;;  %v4980_v14 = vmul.f32 0.25, %v4845_v40 }
 0x219   : > { %v3821_v19 = vpop.f32.mrf.mxu0 }
 0x21a   : > { %v4837_v38 = vadd.f32 %v3821_v19, %v3458_v37  ;;  %v4973_v34 = vmul.f32 0.25, %v4865_v43 }
 0x21b   : > { %v962_v45 = vpop.f32.mrf.mxu0 }
 0x21c   : > { %v4857_v0 = vadd.f32 %v3458_v37, %v962_v45  ;;  %v4990_v19 = vmul.f32 0.25, %v4837_v38 }
 0x21d   : > { %v3824_v22 = vpop.f32.mrf.mxu0 }
 0x21e   : > { %v4829_v33 = vadd.f32 %v3824_v22, %v3458_v37  ;;  %v4983_v15 = vmul.f32 0.25, %v4857_v0 }
 0x21f   : > { %v972_v16 = vpop.f32.mrf.mxu0 }
 0x220   : > { %v4849_v55 = vadd.f32 %v3458_v37, %v972_v16  ;;  %v5000_v16 = vmul.f32 0.25, %v4829_v33 }
 0x221   : > { %v3827_v26 = vpop.f32.mrf.mxu0 }
 0x222   : > { %v4833_v20 = vadd.f32 %v3827_v26, %v3458_v37  ;;  %v4993_v22 = vmul.f32 0.25, %v4849_v55 }
 0x223   : > { %v982_v54 = vpop.f32.mrf.mxu0 }
 0x224   : > { %v4841_v39 = vadd.f32 %v3458_v37, %v982_v54 }
 0x225   : > { %v3830_v27 = vpop.f32.mrf.mxu0 }
 0x226   : > { %v4823_v30 = vadd.f32 %v3830_v27, %v3458_v37  ;;  %v5003_v26 = vmul.f32 0.25, %v4841_v39  ;;  %v5010_v27 = vmul.f32 0.25, %v4833_v20 }
 0x227   : > { %v992_v31 = vpop.f32.mrf.mxu0 }
 0x228   : > { %v4825_v32 = vadd.f32 %v3458_v37, %v992_v31  ;;  %1079 = vrot.lane.b32.xlu0 %v4823_v30, %s4469_s23  ;;  %v4961_v37 = vmul.f32 0.25, %v4873_v48 }
 0x22a   : > { %1077 = vrot.lane.b32.xlu1 %v4825_v32, %s4469_s23  ;;  %v5013_v31 = vmul.f32 0.25, %v4825_v32 }
 0x22c   : > { %1071 = vrot.lane.b32.xlu0 %v4829_v33, %s4469_s23 }
 0x22e   : > { %1075 = vrot.lane.b32.xlu1 %v4833_v20, %s4469_s23 }
 0x230   : > { %1067 = vrot.lane.b32.xlu0 %v4837_v38, %s4469_s23 }
 0x232   : > { %1073 = vrot.lane.b32.xlu1 %v4841_v39, %s4469_s23 }
 0x234   : > { %1063 = vrot.lane.b32.xlu0 %v4845_v40, %s4469_s23 }
 0x236   : > { %1069 = vrot.lane.b32.xlu1 %v4849_v55, %s4469_s23 }
 0x238   : > { %1059 = vrot.lane.b32.xlu0 %v4853_v41, %s4469_s23 }
 0x23a   : > { %1065 = vrot.lane.b32.xlu1 %v4857_v0, %s4469_s23 }
 0x23c   : > { %1055 = vrot.lane.b32.xlu0 %v4861_v42, %s4469_s23 }
 0x23e   : > { %1061 = vrot.lane.b32.xlu1 %v4865_v43, %s4469_s23 }
 0x240   : > { %1051 = vrot.lane.b32.xlu0 %v4869_v46, %s4469_s23 }
 0x242   : > { %1057 = vrot.lane.b32.xlu1 %v4873_v48, %s4469_s23 }
 0x244   : > { %1481 = vrot.lane.b32.xlu0 %v4823_v30, %s4470_s24 }
 0x246   : > { %1053 = vrot.lane.b32.xlu1 %v4879_v49, %s4469_s23 }
 0x248   : > { %1477 = vrot.lane.b32.xlu0 %v4833_v20, %s4470_s24 }
 0x24a   : > { %1049 = vrot.lane.b32.xlu1 %v4816_v9, %s4469_s23 }
 0x24c   : > { %1473 = vrot.lane.b32.xlu0 %v4829_v33, %s4470_s24 }
 0x24e   : > { %1475 = vrot.lane.b32.xlu1 %v4841_v39, %s4470_s24 }
 0x250   : > { %1465 = vrot.lane.b32.xlu0 %v4845_v40, %s4470_s24 }
 0x252   : > { %1471 = vrot.lane.b32.xlu1 %v4849_v55, %s4470_s24 }
 0x254   : > { %1461 = vrot.lane.b32.xlu0 %v4853_v41, %s4470_s24 }
 0x256   : > { %1469 = vrot.lane.b32.xlu1 %v4837_v38, %s4470_s24 }
 0x258   : > { %1457 = vrot.lane.b32.xlu0 %v4861_v42, %s4470_s24 }
 0x25a   : > { %1467 = vrot.lane.b32.xlu1 %v4857_v0, %s4470_s24 }
 0x25c   : > { %1453 = vrot.lane.b32.xlu0 %v4869_v46, %s4470_s24 }
 0x25e   : > { %1463 = vrot.lane.b32.xlu1 %v4865_v43, %s4470_s24 }
 0x260   : > { %1706 = vrot.lane.b32.xlu0 %v4823_v30, %s4471_s25 }
 0x262   : > { %1459 = vrot.lane.b32.xlu1 %v4873_v48, %s4470_s24 }
 0x264   : > { %1702 = vrot.lane.b32.xlu0 %v4833_v20, %s4471_s25 }
 0x266   : > { %1455 = vrot.lane.b32.xlu1 %v4879_v49, %s4470_s24 }
 0x268   : > { %1698 = vrot.lane.b32.xlu0 %v4829_v33, %s4471_s25 }
 0x26a   : > { %1451 = vrot.lane.b32.xlu1 %v4816_v9, %s4470_s24 }
 0x26e   : > { %1700 = vrot.lane.b32.xlu1 %v4841_v39, %s4471_s25 }
 0x272   : > { %1479 = vrot.lane.b32.xlu1 %v4825_v32, %s4470_s24  ;;  %s4472_s24 = smov 112  }
 0x276   : > { %1704 = vrot.lane.b32.xlu1 %v4825_v32, %s4471_s25 }
 0x29a   : > { %v1080_v50 = vpop.permute.xlu0 %1079 }
 0x29b   : > { %3831 = vmatprep.subr.msk.mxu1 %vm1081_vm1, %v1080_v50 }
 0x29c   : > { %3832 = vmatpush3.xpose.msk.msra.mxu1 %vm1081_vm1, %v1080_v50  ;;  %v1078_v51 = vpop.permute.xlu1 %1077  ;;  %v5020_v50 = vmul.f32 0.25, %v4823_v30 }
 0x29d   : > { %3833 = vmatprep.subr.msk.mxu1 %vm1081_vm1, %v1078_v51 }
 0x29e   : > { %v1072_v1 = vpop.permute.xlu0 %1071 }
 0x2a0   : > { %3834 = vmatpush3.xpose.msk.msra.mxu1 %vm1081_vm1, %v1078_v51  ;;  %v1076_v52 = vpop.permute.xlu1 %1075 }
 0x2a1   : > { %3835 = vmatprep.subr.msk.mxu1 %vm1081_vm1, %v1076_v52 }
 0x2a2   : > { %v1068_v10 = vpop.permute.xlu0 %1067 }
 0x2a4   : > { %3836 = vmatpush3.xpose.msk.msra.mxu1 %vm1081_vm1, %v1076_v52  ;;  %v1074_v28 = vpop.permute.xlu1 %1073 }
 0x2a5   : > { %3837 = vmatprep.subr.msk.mxu1 %vm1081_vm1, %v1074_v28 }
 0x2a6   : > { %v1064_v29 = vpop.permute.xlu0 %1063 }
 0x2a8   : > { %3838 = vmatpush3.xpose.msk.msra.mxu1 %vm1081_vm1, %v1074_v28  ;;  %v1070_v53 = vpop.permute.xlu1 %1069 }
 0x2a9   : > { %3839 = vmatprep.subr.msk.mxu1 %vm1081_vm1, %v1072_v1 }
 0x2aa   : > { %v1060_v56 = vpop.permute.xlu0 %1059 }
 0x2ac   : > { %3840 = vmatpush3.xpose.msk.msra.mxu1 %vm1081_vm1, %v1072_v1  ;;  %v1066_v57 = vpop.permute.xlu1 %1065 }
 0x2ad   : > { %3841 = vmatprep.subr.msk.mxu1 %vm1081_vm1, %v1070_v53 }
 0x2ae   : > { %v1056_v11 = vpop.permute.xlu0 %1055 }
 0x2b0   : > { %3842 = vmatpush3.xpose.msk.msra.mxu1 %vm1081_vm1, %v1070_v53  ;;  %v1062_v36 = vpop.permute.xlu1 %1061 }
 0x2b1   : > { %3843 = vmatprep.subr.msk.mxu1 %vm1081_vm1, %v1068_v10 }
 0x2b2   : > { %v1052_v23 = vpop.permute.xlu0 %1051 }
 0x2b4   : > { %3844 = vmatpush3.xpose.msk.msra.mxu1 %vm1081_vm1, %v1068_v10  ;;  %v1058_v58 = vpop.permute.xlu1 %1057  ;;  %v5035_v10 = vld [vmem:[%s6164_s1 + $0x8] sm:$0xff] }
 0x2b5   : > { %3845 = vmatprep.subr.msk.mxu1 %vm1081_vm1, %v1066_v57  ;;  %6204 = vst [vmem:[#allocation6_spill] sm:$0xff] %v5035_v10 }
 0x2b6   : > { %v1482_v59 = vpop.permute.xlu0 %1481 }
 0x2b7   : > { %3887 = vmatprep.subr.mxu0 %v1482_v59 }
 0x2b8   : > { %3846 = vmatpush3.xpose.msk.msra.mxu1 %vm1081_vm1, %v1066_v57  ;;  %3888 = vmatpush3.msra.mxu0 %v1482_v59  ;;  %v1054_v60 = vpop.permute.xlu1 %1053 }
 0x2b9   : > { %3847 = vmatprep.subr.msk.mxu1 %vm1081_vm1, %v1064_v29 }
 0x2ba   : > { %v1478_v7 = vpop.permute.xlu0 %1477 }
 0x2bc   : > { %3848 = vmatpush3.xpose.msk.msra.mxu1 %vm1081_vm1, %v1064_v29  ;;  %v1050_v61 = vpop.permute.xlu1 %1049  ;;  %v5040_v29 = vld [vmem:[%s6164_s1] sm:$0xff] }
 0x2bd   : > { %3849 = vmatprep.subr.msk.mxu1 %vm1081_vm1, %v1062_v36  ;;  %6205 = vst [vmem:[#allocation7_spill] sm:$0xff] %v5040_v29 }
 0x2be   : > { %v1474_v24 = vpop.permute.xlu0 %1473 }
 0x2c0   : > { %3850 = vmatpush3.xpose.msk.msra.mxu1 %vm1081_vm1, %v1062_v36  ;;  %v1476_v62 = vpop.permute.xlu1 %1475 }
 0x2c1   : > { %3851 = vmatprep.subr.msk.mxu1 %vm1081_vm1, %v1060_v56 }
 0x2c2   : > { %v1466_v45 = vpop.permute.xlu0 %1465 }
 0x2c4   : > { %3852 = vmatpush3.xpose.msk.msra.mxu1 %vm1081_vm1, %v1060_v56  ;;  %v1472_v17 = vpop.permute.xlu1 %1471 }
 0x2c5   : > { %3853 = vmatprep.subr.msk.mxu1 %vm1081_vm1, %v1058_v58 }
 0x2c6   : > { %v1462_v54 = vpop.permute.xlu0 %1461 }
 0x2c8   : > { %3854 = vmatpush3.xpose.msk.msra.mxu1 %vm1081_vm1, %v1058_v58  ;;  %v1470_v63 = vpop.permute.xlu1 %1469  ;;  %v5058_v58 = vld [vmem:[%s6164_s1 + $0x28] sm:$0xff] }
 0x2c9   : > { %3855 = vmatprep.subr.msk.mxu1 %vm1081_vm1, %v1056_v11  ;;  %6207 = vst [vmem:[#allocation9_spill] sm:$0xff] %v5058_v58 }
 0x2ca   : > { %v1458_v51 = vpop.permute.xlu0 %1457 }
 0x2cc   : > { %3856 = vmatpush3.xpose.msk.msra.mxu1 %vm1081_vm1, %v1056_v11  ;;  %v1468_v35 = vpop.permute.xlu1 %1467  ;;  %v5052_v11 = vld [vmem:[%s6164_s1 + $0x18] sm:$0xff] }
 0x2cd   : > { %3857 = vmatprep.subr.msk.mxu1 %vm1081_vm1, %v1054_v60  ;;  %6206 = vst [vmem:[#allocation8_spill] sm:$0xff] %v5052_v11 }
 0x2ce   : > { %v1454_v1 = vpop.permute.xlu0 %1453 }
 0x2d0   : > { %3858 = vmatpush3.xpose.msk.msra.mxu1 %vm1081_vm1, %v1054_v60  ;;  %v1464_v2 = vpop.permute.xlu1 %1463  ;;  %v5066_v60 = vld [vmem:[%s6164_s1 + $0x10] sm:$0xff] }
 0x2d1   : > { %3859 = vmatprep.subr.msk.mxu1 %vm1081_vm1, %v1052_v23  ;;  %6208 = vst [vmem:[#allocation10_spill] sm:$0xff] %v5066_v60 }
 0x2d2   : > { %v5027_v52 = vpop.permute.xlu0 %1706 }
 0x2d4   : > { %3860 = vmatpush3.xpose.msk.msra.mxu1 %vm1081_vm1, %v1052_v23  ;;  %v1460_v3 = vpop.permute.xlu1 %1459 }
 0x2d5   : > { %3861 = vmatprep.subr.msk.mxu1 %vm1081_vm1, %v1050_v61 }
 0x2d8   : > { %3862 = vmatpush3.xpose.msk.msra.mxu1 %vm1081_vm1, %v1050_v61  ;;  %v4943_v4 = vpop.permute.xlu1 %1455 }
 0x2db   : > { %3864 = vmatmul.mubr.msk.f32.vlgmr.msra.gmra.mxu1 %vm1081_vm1, %v4946_v44 }
 0x2dc   : > { %3866 = vmatprep.mubr.msk.f32.mxu1 %vm1081_vm1, %v4949_v5  ;;  %v4955_v21 = vpop.permute.xlu1 %1451 }
 0x2df   : > { %3867 = vmatmul.mubr.msk.f32.gmra.mxu1 %vm1081_vm1, %v4958_v47 }
 0x2e0   : > { %3869 = vmatprep.mubr.msk.f32.mxu1 %vm1081_vm1, %v4961_v37  ;;  %v4967_v8 = vpop.permute.xlu1 %1700 }
 0x2e1   : > { %6203 = vst [vmem:[#allocation5_spill] sm:$0xff] %v4967_v8 }
 0x2e3   : > { %3870 = vmatmul.mubr.msk.f32.gmra.mxu1 %vm1081_vm1, %v4970_v25 }
 0x2e4   : > { %3872 = vmatprep.mubr.msk.f32.mxu1 %vm1081_vm1, %v4973_v34  ;;  %v1480_v13 = vpop.permute.xlu1 %1479 }
 0x2e5   : > { %3889 = vmatprep.subr.mxu0 %v1480_v13 }
 0x2e6   : > { %3890 = vmatpush3.msra.mxu0 %v1480_v13  ;;  %v5102_v13 = vld [vmem:[%s6164_s1 + $0x30] sm:$0xff] }
 0x2e7   : > { %3873 = vmatmul.mubr.msk.f32.gmra.mxu1 %vm1081_vm1, %v4980_v14  ;;  %3891 = vmatprep.subr.mxu0 %v1478_v7  ;;  %6212 = vst [vmem:[#allocation14_spill] sm:$0xff] %v5102_v13 }
 0x2e8   : > { %3875 = vmatprep.mubr.msk.f32.mxu1 %vm1081_vm1, %v4983_v15  ;;  %3892 = vmatpush3.msra.mxu0 %v1478_v7  ;;  %v5093_v7 = vld [vmem:[%s6164_s1 + $0x48] sm:$0xff] }
 0x2e9   : > { %3893 = vmatprep.subr.mxu0 %v1476_v62  ;;  %6211 = vst [vmem:[#allocation13_spill] sm:$0xff] %v5093_v7 }
 0x2ea   : > { %3894 = vmatpush3.msra.mxu0 %v1476_v62 }
 0x2eb   : > { %3876 = vmatmul.mubr.msk.f32.gmra.mxu1 %vm1081_vm1, %v4990_v19  ;;  %3895 = vmatprep.subr.mxu0 %v1474_v24 }
 0x2ec   : > { %3878 = vmatprep.mubr.msk.f32.mxu1 %vm1081_vm1, %v4993_v22  ;;  %3896 = vmatpush3.msra.mxu0 %v1474_v24 }
 0x2ed   : > { %3897 = vmatprep.subr.mxu0 %v1472_v17 }
 0x2ee   : > { %3898 = vmatpush3.msra.mxu0 %v1472_v17 }
 0x2ef   : > { %3879 = vmatmul.mubr.msk.f32.gmra.mxu1 %vm1081_vm1, %v5000_v16  ;;  %3899 = vmatprep.subr.mxu0 %v1470_v63 }
 0x2f0   : > { %3881 = vmatprep.mubr.msk.f32.mxu1 %vm1081_vm1, %v5003_v26  ;;  %3900 = vmatpush3.msra.mxu0 %v1470_v63  ;;  %v5075_v63 = vld [vmem:[%s6164_s1 + $0x38] sm:$0xff] }
 0x2f1   : > { %3901 = vmatprep.subr.mxu0 %v1468_v35  ;;  %6209 = vst [vmem:[#allocation11_spill] sm:$0xff] %v5075_v63 }
 0x2f2   : > { %3902 = vmatpush3.msra.mxu0 %v1468_v35 }
 0x2f3   : > { %3882 = vmatmul.mubr.msk.f32.gmra.mxu1 %vm1081_vm1, %v5010_v27  ;;  %3903 = vmatprep.subr.mxu0 %v1466_v45 }
 0x2f4   : > { %3884 = vmatprep.mubr.msk.f32.mxu1 %vm1081_vm1, %v5013_v31  ;;  %3904 = vmatpush3.msra.mxu0 %v1466_v45 }
 0x2f5   : > { %3905 = vmatprep.subr.mxu0 %v1464_v2 }
 0x2f6   : > { %3906 = vmatpush3.msra.mxu0 %v1464_v2  ;;  %v5084_v2 = vld [vmem:[%s6164_s1 + $0x20] sm:$0xff] }
 0x2f7   : > { %3885 = vmatmul.mubr.msk.f32.gmra.mxu1 %vm1081_vm1, %v5020_v50  ;;  %3907 = vmatprep.subr.mxu0 %v1462_v54  ;;  %6210 = vst [vmem:[#allocation12_spill] sm:$0xff] %v5084_v2 }
 0x2f8   : > { %3908 = vmatpush3.msra.mxu0 %v1462_v54 }
 0x2f9   : > { %3909 = vmatprep.subr.mxu0 %v1460_v3 }
 0x2fa   : > { %3910 = vmatpush3.msra.mxu0 %v1460_v3 }
 0x2fb   : > { %3911 = vmatprep.subr.mxu0 %v1458_v51 }
 0x2fc   : > { %3912 = vmatpush3.msra.mxu0 %v1458_v51 }
 0x2fd   : > { %3913 = vmatprep.subr.mxu0 %v4943_v4 }
 0x2fe   : > { %3914 = vmatpush3.msra.mxu0 %v4943_v4 }
 0x2ff   : > { %3915 = vmatprep.subr.mxu0 %v1454_v1 }
 0x300   : > { %3916 = vmatpush3.msra.mxu0 %v1454_v1  ;;  %v5111_v1 = vld [vmem:[%s6164_s1 + $0x58] sm:$0xff] }
 0x301   : > { %3917 = vmatprep.subr.mxu0 %v4955_v21  ;;  %6213 = vst [vmem:[#allocation15_spill] sm:$0xff] %v5111_v1 }
 0x302   : > { %3918 = vmatpush3.msra.mxu0 %v4955_v21 }
 0x303   : > { %3943 = vmatprep.subr.msk.mxu0 %vm1081_vm1, %v5027_v52 }
 0x39b   : > { %v3865_v28 = vpop.f32.mrf.mxu1 }
 0x39c   : > { %v5043_v53 = vadd.f32 %v3865_v28, %v5035_v10 }
 0x39d   : > { %v1228_v56 = vpop.f32.mrf.mxu1 }
 0x39e   : > { %v5046_v57 = vadd.f32 %v1228_v56, %v5040_v29  ;;  %1309 = vmax.xlane.f32.xlu1 %v5043_v53  ;;  %v5120_v56 = vld [vmem:[%s6164_s1 + $0x40] sm:$0xff] }
 0x39f   : > { %v3868_v36 = vpop.f32.mrf.mxu1  ;;  %6214 = vst [vmem:[#allocation16_spill] sm:$0xff] %v5120_v56 }
 0x3a0   : > { %1307 = vmax.xlane.f32.xlu0 %v5046_v57  ;;  %v5061_v59 = vadd.f32 %v3868_v36, %v5052_v11 }
 0x3a1   : > { %v1238_v23 = vpop.f32.mrf.mxu1 }
 0x3a2   : > { %v5078_v35 = vadd.f32 %v1238_v23, %v5066_v60 }
 0x3a3   : > { %v3871_v61 = vpop.f32.mrf.mxu1 }
 0x3a4   : > { %v5069_v62 = vadd.f32 %v3871_v61, %v5058_v58  ;;  %1313 = vmax.xlane.f32.xlu0 %v5061_v59 }
 0x3a5   : > { %v1248_v17 = vpop.f32.mrf.mxu1 }
 0x3a6   : > { %1317 = vmax.xlane.f32.xlu1 %v5069_v62  ;;  %v5096_v24 = vadd.f32 %v1248_v17, %v5084_v2  ;;  %v5129_v17 = vld [vmem:[%s6164_s1 + $0x68] sm:$0xff] }
 0x3a7   : > { %v3874_v3 = vpop.f32.mrf.mxu1  ;;  %6215 = vst [vmem:[#allocation17_spill] sm:$0xff] %v5129_v17 }
 0x3a8   : > { %v5087_v4 = vadd.f32 %v3874_v3, %v5075_v63  ;;  %1311 = vmax.xlane.f32.xlu0 %v5078_v35 }
 0x3a9   : > { %v1258_v21 = vpop.f32.mrf.mxu1 }
 0x3aa   : > { %1321 = vmax.xlane.f32.xlu1 %v5087_v4  ;;  %v5114_v28 = vadd.f32 %v1258_v21, %v5102_v13  ;;  %v5138_v21 = vld [vmem:[%s6164_s1 + $0x50] sm:$0xff] }
 0x3ab   : > { %v3877_v45 = vpop.f32.mrf.mxu1  ;;  %6216 = vst [vmem:[#allocation18_spill] sm:$0xff] %v5138_v21 }
 0x3ac   : > { %v5105_v54 = vadd.f32 %v3877_v45, %v5093_v7  ;;  %1315 = vmax.xlane.f32.xlu0 %v5096_v24 }
 0x3ad   : > { %v1268_v51 = vpop.f32.mrf.mxu1 }
 0x3ae   : > { %1325 = vmax.xlane.f32.xlu1 %v5105_v54  ;;  %v5132_v3 = vadd.f32 %v1268_v51, %v5120_v56 }
 0x3af   : > { %v3880_v36 = vpop.f32.mrf.mxu1 }
 0x3b0   : > { %v5123_v23 = vadd.f32 %v3880_v36, %v5111_v1  ;;  %1319 = vmax.xlane.f32.xlu0 %v5114_v28  ;;  %v5156_v1 = vld [vmem:[%s6164_s1 + $0x60] sm:$0xff] }
 0x3b1   : > { %v1278_v61 = vpop.f32.mrf.mxu1  ;;  %6218 = vst [vmem:[#allocation20_spill] sm:$0xff] %v5156_v1 }
 0x3b2   : > { %1329 = vmax.xlane.f32.xlu1 %v5123_v23  ;;  %v5150_v51 = vadd.f32 %v1278_v61, %v5138_v21  ;;  %v5169_v21 = vld [vmem:[%s6164_s1 + $0x70] sm:$0xff] }
 0x3b3   : > { %v3883_v45 = vpop.f32.mrf.mxu1  ;;  %6219 = vst [vmem:[#allocation21_spill] sm:$0xff] %v5169_v21 }
 0x3b4   : > { %v5141_v36 = vadd.f32 %v3883_v45, %v5129_v17  ;;  %1323 = vmax.xlane.f32.xlu0 %v5132_v3 }
 0x3b5   : > { %v1288_v18 = vpop.f32.mrf.mxu1 }
 0x3b6   : > { %1333 = vmax.xlane.f32.xlu1 %v5141_v36  ;;  %v5163_v56 = vadd.f32 %v1288_v18, %v5156_v1  ;;  %v5188_v18 = vpop.permute.xlu0 %1702 }
 0x3b7   : > { %v3886_v45 = vpop.f32.mrf.mxu1 }
 0x3b8   : > { %v5159_v17 = vadd.f32 %v3886_v45, %v5147_v6  ;;  %1327 = vmax.xlane.f32.xlu0 %v5150_v51  ;;  %v5190_v45 = vpop.permute.xlu1 %1704 }
 0x3b9   : > { %v1298_v61 = vpop.f32.mrf.mxu1 }
 0x3ba   : > { %1337 = vmax.xlane.f32.xlu1 %v5159_v17  ;;  %v5173_v7 = vadd.f32 %v1298_v61, %v5169_v21  ;;  %v5192_v61 = vpop.permute.xlu0 %1698 }
 0x3bb   : > { %6220 = vst [vmem:[#allocation22_spill] sm:$0xff] %v5192_v61 }
 0x3bc   : > { %1331 = vmax.xlane.f32.xlu0 %v5163_v56 }
 0x3c0   : > { %1335 = vmax.xlane.f32.xlu0 %v5173_v7 }
 0x3cb   : > { %1694 = vrot.lane.b32.xlu1 %v4837_v38, %s4471_s25 }
 0x3cf   : > { %1690 = vrot.lane.b32.xlu1 %v4845_v40, %s4471_s25 }
 0x3d3   : > { %1688 = vrot.lane.b32.xlu1 %v4865_v43, %s4471_s25 }
 0x3d6   : > { %1696 = vrot.lane.b32.xlu0 %v4849_v55, %s4471_s25 }
 0x3d7   : > { %1686 = vrot.lane.b32.xlu1 %v4853_v41, %s4471_s25 }
 0x3db   : > { %1684 = vrot.lane.b32.xlu1 %v4873_v48, %s4471_s25 }
 0x427   : > { %v1310_v21 = vpop.xlane.xlu1 %1309 }
 0x428   : > { %v1340_v6 = vsub.f32 %v5043_v53, %v1310_v21 }
 0x429   : > { %v1308_v1 = vpop.xlane.xlu0 %1307 }
 0x42a   : > { %v1357_v13 = vmul.f32 1.442695, %v1340_v6  ;;  %v1339_v63 = vsub.f32 %v5046_v57, %v1308_v1 }
 0x42c   : > { %4253 = vpow2.f32 %v1357_v13  ;;  %v1355_v2 = vmul.f32 1.442695, %v1339_v63 }
 0x42d   : > { %v1314_v58 = vpop.xlane.xlu0 %1313 }
 0x42e   : > { %4255 = vpow2.f32 %v1355_v2  ;;  %v1342_v41 = vsub.f32 %v5061_v59, %v1314_v58 }
 0x42f   : > { %v1318_v48 = vpop.xlane.xlu1 %1317 }
 0x430   : > { %v1361_v60 = vmul.f32 1.442695, %v1342_v41  ;;  %v1344_v11 = vsub.f32 %v5069_v62, %v1318_v48 }
 0x431   : > { %v1312_v29 = vpop.xlane.xlu0 %1311 }
 0x432   : > { %4257 = vpow2.f32 %v1361_v60  ;;  %v1365_v10 = vmul.f32 1.442695, %v1344_v11 }
 0x433   : > { %v1322_v61 = vpop.xlane.xlu1 %1321 }
 0x434   : > { %4259 = vpow2.f32 %v1365_v10  ;;  %v1346_v6 = vsub.f32 %v5087_v4, %v1322_v61 }
 0x435   : > { %v1316_v8 = vpop.xlane.xlu0 %1315 }
 0x436   : > { %v1343_v53 = vsub.f32 %v5096_v24, %v1316_v8  ;;  %v1369_v58 = vmul.f32 1.442695, %v1346_v6 }
 0x437   : > { %v1326_v57 = vpop.xlane.xlu1 %1325 }
 0x438   : > { %v1363_v63 = vmul.f32 1.442695, %v1343_v53  ;;  %v1348_v41 = vsub.f32 %v5105_v54, %v1326_v57  ;;  %v1341_v57 = vsub.f32 %v5078_v35, %v1312_v29 }
 0x439   : > { %v5200_v13 = vpop.eup %4253  ;;  %v1320_v2 = vpop.xlane.xlu0 %1319 }
 0x43a   : > { %4261 = vpow2.f32 %v1363_v63  ;;  %1389 = vadd.xlane.f32.xlu0 %v5200_v13  ;;  %v1373_v11 = vmul.f32 1.442695, %v1348_v41  ;;  %v1359_v41 = vmul.f32 1.442695, %v1341_v57 }
 0x43b   : > { %v5204_v48 = vpop.eup %4255  ;;  %4263 = vpow2.f32 %v1369_v58  ;;  %v1330_v63 = vpop.xlane.xlu1 %1329 }
 0x43c   : > { %1387 = vadd.xlane.f32.xlu1 %v5204_v48  ;;  %4265 = vpow2.f32 %v1373_v11 }
 0x43d   : > { %v1324_v10 = vpop.xlane.xlu0 %1323 }
 0x43e   : > { %v1347_v8 = vsub.f32 %v5132_v3, %v1324_v10  ;;  %v1345_v10 = vsub.f32 %v5114_v28, %v1320_v2 }
 0x43f   : > { %v5208_v59 = vpop.eup %4257  ;;  %v1334_v11 = vpop.xlane.xlu1 %1333 }
 0x440   : > { %1393 = vadd.xlane.f32.xlu1 %v5208_v59  ;;  %v1371_v62 = vmul.f32 1.442695, %v1347_v8  ;;  %v1367_v8 = vmul.f32 1.442695, %v1345_v10 }
 0x441   : > { %v1328_v60 = vpop.xlane.xlu0 %1327  ;;  %v5212_v24 = vpop.eup %4259 }
 0x442   : > { %v1349_v4 = vsub.f32 %v5150_v51, %v1328_v60  ;;  %4267 = vpow2.f32 %v1371_v62  ;;  %v1350_v60 = vsub.f32 %v5123_v23, %v1330_v63 }
 0x444   : > { %1397 = vadd.xlane.f32.xlu1 %v5212_v24  ;;  %v1375_v1 = vmul.f32 1.442695, %v1349_v4  ;;  %v1377_v62 = vmul.f32 1.442695, %v1350_v60  ;;  %v1352_v4 = vsub.f32 %v5141_v36, %v1334_v11 }
 0x445   : > { %v1332_v54 = vpop.xlane.xlu0 %1331 }
 0x446   : > { %v1351_v21 = vsub.f32 %v5163_v56, %v1332_v54  ;;  %4269 = vpow2.f32 %v1375_v1  ;;  %v1338_v54 = vpop.xlane.xlu1 %1337  ;;  %v1381_v29 = vmul.f32 1.442695, %v1352_v4 }
 0x447   : > { %v5216_v61 = vpop.eup %4261  ;;  %v1354_v35 = vsub.f32 %v5159_v17, %v1338_v54 }
 0x448   : > { %1395 = vadd.xlane.f32.xlu1 %v5216_v61  ;;  %v1379_v3 = vmul.f32 1.442695, %v1351_v21  ;;  %v5219_v6 = vpop.eup %4263 }
 0x449   : > { %v5222_v51 = vpop.eup %4265  ;;  %v1385_v1 = vmul.f32 1.442695, %v1354_v35  ;;  %v1336_v21 = vpop.xlane.xlu0 %1335 }
 0x44a   : > { %4271 = vpow2.f32 %v1379_v3  ;;  %v1353_v3 = vsub.f32 %v5173_v7, %v1336_v21 }
 0x44b   : > { %4273 = vpow2.f32 %v1359_v41 }
 0x44c   : > { %1401 = vadd.xlane.f32.xlu1 %v5219_v6  ;;  %4275 = vpow2.f32 %v1367_v8  ;;  %v1383_v57 = vmul.f32 1.442695, %v1353_v3 }
 0x44d   : > { %4277 = vpow2.f32 %v1377_v62 }
 0x44e   : > { %4279 = vpow2.f32 %v1381_v29 }
 0x44f   : > { %v5227_v53 = vpop.eup %4267  ;;  %4281 = vpow2.f32 %v1385_v1 }
 0x450   : > { %1405 = vadd.xlane.f32.xlu1 %v5222_v51  ;;  %1692 = vrot.lane.b32.xlu0 %v4857_v0, %s4471_s25  ;;  %4283 = vpow2.f32 %v1383_v57 }
 0x453   : > { %v5230_v56 = vpop.eup %4269 }
 0x454   : > { %1403 = vadd.xlane.f32.xlu1 %v5227_v53 }
 0x457   : > { %v5234_v58 = vpop.eup %4271 }
 0x458   : > { %1407 = vadd.xlane.f32.xlu1 %v5230_v56  ;;  %v5243_v28 = vpop.eup %4273 }
 0x459   : > { %v5248_v23 = vpop.eup %4275 }
 0x45a   : > { %v5253_v17 = vpop.eup %4277 }
 0x45b   : > { %v5258_v36 = vpop.eup %4279 }
 0x45c   : > { %1411 = vadd.xlane.f32.xlu1 %v5234_v58  ;;  %v5263_v2 = vpop.eup %4281 }
 0x46d   : > { %1680 = vrot.lane.b32.xlu1 %v4879_v49, %s4471_s25 }
 0x46f   : > { %1391 = vadd.xlane.f32.xlu0 %v5243_v28 }
 0x471   : > { %1678 = vrot.lane.b32.xlu1 %v4869_v46, %s4471_s25 }
 0x473   : > { %1399 = vadd.xlane.f32.xlu0 %v5248_v23 }
 0x475   : > { %1676 = vrot.lane.b32.xlu1 %v4816_v9, %s4471_s25 }
 0x477   : > { %1409 = vadd.xlane.f32.xlu0 %v5253_v17 }
 0x479   : > { %1644 = vrot.lane.b32.xlu1 %v4819_v12, %s4472_s24  ;;  %v5273_v12 = vpop.eup %4283 }
 0x47b   : > { %1413 = vadd.xlane.f32.xlu0 %v5258_v36 }
 0x47d   : > { %1646 = vrot.lane.b32.xlu1 %v4946_v44, %s4472_s24  ;;  %v1695_v44 = vpop.permute.xlu1 %1694 }
 0x47f   : > { %1417 = vadd.xlane.f32.xlu0 %v5263_v2 }
 0x495   : > { %1682 = vrot.lane.b32.xlu0 %v4861_v42, %s4471_s25  ;;  %s4473_s25 = smov 48  }
 0x499   : > { %1650 = vrot.lane.b32.xlu0 %v4958_v47, %s4472_s24  ;;  %v1691_v47 = vpop.permute.xlu1 %1690 }
 0x49d   : > { %1654 = vrot.lane.b32.xlu0 %v4970_v25, %s4472_s24  ;;  %v1689_v25 = vpop.permute.xlu1 %1688 }
 0x4a1   : > { %1658 = vrot.lane.b32.xlu0 %v4980_v14, %s4472_s24  ;;  %1415 = vadd.xlane.f32.xlu1 %v5273_v12  ;;  %v1687_v14 = vpop.permute.xlu1 %1686 }
 0x4a5   : > { %1662 = vrot.lane.b32.xlu0 %v4990_v19, %s4472_s24  ;;  %v5300_v19 = vpop.permute.xlu1 %1684 }
 0x4a9   : > { %1666 = vrot.lane.b32.xlu0 %v5000_v16, %s4472_s24 }
 0x4ad   : > { %1670 = vrot.lane.b32.xlu0 %v5010_v27, %s4472_s24 }
 0x4b1   : > { %1674 = vrot.lane.b32.xlu0 %v5020_v50, %s4472_s24 }
 0x4b2   : > { %1648 = vrot.lane.b32.xlu1 %v4949_v5, %s4472_s24  ;;  %v1697_v5 = vpop.permute.xlu0 %1696 }
 0x4b5   : > { %2091 = vrot.lane.b32.xlu0 %v4823_v30, %s4473_s25 }
 0x4b6   : > { %1652 = vrot.lane.b32.xlu1 %v4961_v37, %s4472_s24 }
 0x4b9   : > { %2087 = vrot.lane.b32.xlu0 %v4833_v20, %s4473_s25 }
 0x4ba   : > { %1656 = vrot.lane.b32.xlu1 %v4973_v34, %s4472_s24 }
 0x4bd   : > { %2083 = vrot.lane.b32.xlu0 %v4829_v33, %s4473_s25 }
 0x4be   : > { %1660 = vrot.lane.b32.xlu1 %v4983_v15, %s4472_s24 }
 0x4c1   : > { %2079 = vrot.lane.b32.xlu0 %v4837_v38, %s4473_s25 }
 0x4c2   : > { %1664 = vrot.lane.b32.xlu1 %v4993_v22, %s4472_s24 }
 0x4c3   : > { %v1390_v30 = vpop.xlane.xlu0 %1389 }
 0x4c4   : > { %4285 = vrcp.f32 %v1390_v30 }
 0x4c5   : > { %v1388_v20 = vpop.xlane.xlu1 %1387  ;;  %2075 = vrot.lane.b32.xlu0 %v4845_v40, %s4473_s25  ;;  %v6221_v40 = vld [vmem:[#allocation5_spill] sm:$0xff] }
 0x4c6   : > { %4287 = vrcp.f32 %v1388_v20  ;;  %1668 = vrot.lane.b32.xlu1 %v5003_v26, %s4472_s24 }
 0x4c7   : > { %v1693_v15 = vpop.permute.xlu0 %1692 }
 0x4ca   : > { %1672 = vrot.lane.b32.xlu1 %v5013_v31, %s4472_s24 }
 0x4ce   : > { %2089 = vrot.lane.b32.xlu1 %v4825_v32, %s4473_s25  ;;  %v1394_v32 = vpop.xlane.xlu1 %1393 }
 0x4cf   : > { %4289 = vrcp.f32 %v1394_v32 }
 0x4d1   : > { %v4286_v33 = vpop.eup %4285 }
 0x4d2   : > { %2085 = vrot.lane.b32.xlu1 %v4841_v39, %s4473_s25  ;;  %v1436_v34 = vmul.f32 %v4286_v33, %v5200_v13  ;;  %v1398_v39 = vpop.xlane.xlu1 %1397 }
 0x4d3   : > { %v4288_v38 = vpop.eup %4287 }
 0x4d4   : > { %v1435_v37 = vmul.f32 %v4288_v38, %v5204_v48 }
 0x4d6   : > { %3919 = vmatprep.mubr.f32.mxu0 %v1435_v37  ;;  %2081 = vrot.lane.b32.xlu1 %v4849_v55, %s4473_s25  ;;  %v6222_v55 = vld [vmem:[#allocation22_spill] sm:$0xff] }
 0x4d7   : > { %3920 = vmatmul.mubr.f32.vlgmr.msra.gmra.mxu0 %v1436_v34 }
 0x4d8   : > { %3944 = vmatpush3.xpose.msk.msra.mxu0 %vm1081_vm1, %v5027_v52 }
 0x4d9   : > { %3945 = vmatprep.subr.msk.mxu0 %vm1081_vm1, %v5190_v45 }
 0x4da   : > { %2077 = vrot.lane.b32.xlu1 %v4857_v0, %s4473_s25  ;;  %v1396_v0 = vpop.xlane.xlu1 %1395 }
 0x4db   : > { %4291 = vrcp.f32 %v1396_v0 }
 0x4dc   : > { %3946 = vmatpush3.xpose.msk.msra.mxu0 %vm1081_vm1, %v5190_v45  ;;  %v4290_v52 = vpop.eup %4289 }
 0x4dd   : > { %3947 = vmatprep.subr.msk.mxu0 %vm1081_vm1, %v5188_v18  ;;  %v1438_v41 = vmul.f32 %v4290_v52, %v5208_v59 }
 0x4de   : > { %2073 = vrot.lane.b32.xlu1 %v4865_v43, %s4473_s25  ;;  %v1402_v43 = vpop.xlane.xlu1 %1401 }
 0x4e0   : > { %3948 = vmatpush3.xpose.msk.msra.mxu0 %vm1081_vm1, %v5188_v18 }
 0x4e1   : > { %3949 = vmatprep.subr.msk.mxu0 %vm1081_vm1, %v6221_v40 }
 0x4e2   : > { %v1406_v22 = vpop.xlane.xlu1 %1405 }
 0x4e4   : > { %3950 = vmatpush3.xpose.msk.msra.mxu0 %vm1081_vm1, %v6221_v40 }
 0x4e5   : > { %3951 = vmatprep.subr.msk.mxu0 %vm1081_vm1, %v6222_v55 }
 0x4e6   : > { %v1404_v26 = vpop.xlane.xlu1 %1403 }
 0x4e8   : > { %3952 = vmatpush3.xpose.msk.msra.mxu0 %vm1081_vm1, %v6222_v55  ;;  %v4292_v18 = vpop.eup %4291 }
 0x4e9   : > { %3953 = vmatprep.subr.msk.mxu0 %vm1081_vm1, %v1697_v5  ;;  %v1439_v11 = vmul.f32 %v4292_v18, %v5216_v61 }
 0x4ea   : > { %v1408_v31 = vpop.xlane.xlu1 %1407 }
 0x4ec   : > { %3954 = vmatpush3.xpose.msk.msra.mxu0 %vm1081_vm1, %v1697_v5 }
 0x4ed   : > { %3955 = vmatprep.subr.msk.mxu0 %vm1081_vm1, %v1695_v44 }
 0x4ee   : > { %v1412_v45 = vpop.xlane.xlu1 %1411 }
 0x4f0   : > { %3956 = vmatpush3.xpose.msk.msra.mxu0 %vm1081_vm1, %v1695_v44 }
 0x4f1   : > { %3957 = vmatprep.subr.msk.mxu0 %vm1081_vm1, %v1693_v15 }
 0x4f2   : > { %v1681_v60 = vpop.permute.xlu1 %1680 }
 0x4f4   : > { %3958 = vmatpush3.xpose.msk.msra.mxu0 %vm1081_vm1, %v1693_v15 }
 0x4f5   : > { %3959 = vmatprep.subr.msk.mxu0 %vm1081_vm1, %v1691_v47 }
 0x4f8   : > { %3960 = vmatpush3.xpose.msk.msra.mxu0 %vm1081_vm1, %v1691_v47  ;;  %v1392_v16 = vpop.xlane.xlu0 %1391 }
 0x4f9   : > { %3961 = vmatprep.subr.msk.mxu0 %vm1081_vm1, %v1689_v25  ;;  %4293 = vrcp.f32 %v1392_v16 }
 0x4fa   : > { %4295 = vrcp.f32 %v1398_v39 }
 0x4fc   : > { %3962 = vmatpush3.xpose.msk.msra.mxu0 %vm1081_vm1, %v1689_v25  ;;  %v1400_v27 = vpop.xlane.xlu0 %1399 }
 0x4fd   : > { %3963 = vmatprep.subr.msk.mxu0 %vm1081_vm1, %v1687_v14  ;;  %4297 = vrcp.f32 %v1400_v27 }
 0x4fe   : > { %4299 = vrcp.f32 %v1402_v43 }
 0x4ff   : > { %4301 = vrcp.f32 %v1404_v26 }
 0x500   : > { %3964 = vmatpush3.xpose.msk.msra.mxu0 %vm1081_vm1, %v1687_v14  ;;  %v1410_v50 = vpop.xlane.xlu0 %1409  ;;  %4303 = vrcp.f32 %v1406_v22 }
 0x501   : > { %3965 = vmatprep.subr.msk.mxu0 %vm1081_vm1, %v5300_v19  ;;  %4305 = vrcp.f32 %v1408_v31 }
 0x502   : > { %4307 = vrcp.f32 %v1410_v50 }
 0x503   : > { %4309 = vrcp.f32 %v1412_v45 }
 0x504   : > { %3966 = vmatpush3.xpose.msk.msra.mxu0 %vm1081_vm1, %v5300_v19  ;;  %v1414_v7 = vpop.xlane.xlu0 %1413 }
 0x505   : > { %4311 = vrcp.f32 %v1414_v7 }
 0x506   : > { %v4294_v13 = vpop.eup %4293 }
 0x507   : > { %v1437_v48 = vmul.f32 %v4294_v13, %v5243_v28  ;;  %v4296_v10 = vpop.eup %4295  ;;  %v1679_v28 = vpop.permute.xlu1 %1678 }
 0x508   : > { %v1418_v63 = vpop.xlane.xlu0 %1417  ;;  %v1440_v4 = vmul.f32 %v4296_v10, %v5212_v24 }
 0x509   : > { %3922 = vmatprep.mubr.f32.mxu0 %v1437_v48  ;;  %4313 = vrcp.f32 %v1418_v63 }
 0x50a   : > { %v4298_v8 = vpop.eup %4297  ;;  %3923 = vmatmul.mubr.f32.gmra.mxu0 %v1438_v41 }
 0x50b   : > { %3925 = vmatprep.mubr.f32.mxu0 %v1439_v11  ;;  %v4300_v54 = vpop.eup %4299  ;;  %v1441_v29 = vmul.f32 %v4298_v8, %v5248_v23 }
 0x50c   : > { %v1683_v62 = vpop.permute.xlu0 %1682  ;;  %v4302_v35 = vpop.eup %4301  ;;  %v1442_v61 = vmul.f32 %v4300_v54, %v5219_v6 }
 0x50d   : > { %3967 = vmatprep.subr.msk.mxu0 %vm1081_vm1, %v1683_v62  ;;  %v4304_v1 = vpop.eup %4303  ;;  %v1443_v21 = vmul.f32 %v4302_v35, %v5227_v53  ;;  %v1677_v6 = vpop.permute.xlu1 %1676 }
 0x50e   : > { %3926 = vmatmul.mubr.f32.gmra.mxu0 %v1440_v4  ;;  %v4306_v24 = vpop.eup %4305  ;;  %v1444_v3 = vmul.f32 %v4304_v1, %v5222_v51  ;;  %v6223_v1 = vld [vmem:[#allocation6_spill] sm:$0xff] }
 0x50f   : > { %3968 = vmatpush3.xpose.msk.msra.mxu0 %vm1081_vm1, %v1683_v62  ;;  %3928 = vmatprep.mubr.f32.mxu0 %v1441_v29  ;;  %v4308_v57 = vpop.eup %4307  ;;  %v1445_v44 = vmul.f32 %v4306_v24, %v5230_v56  ;;  %v6224_v24 = vld [vmem:[#allocation7_spill] sm:$0xff] }
 0x510   : > { %3969 = vmatprep.subr.msk.mxu0 %vm1081_vm1, %v1681_v60  ;;  %v1651_v59 = vpop.permute.xlu0 %1650  ;;  %v4310_v47 = vpop.eup %4309  ;;  %v1446_v25 = vmul.f32 %v4308_v57, %v5253_v17 }
 0x511   : > { %v1447_v5 = vmul.f32 %v4310_v47, %v5234_v58  ;;  %v1645_v19 = vpop.permute.xlu1 %1644 }
 0x512   : > { %3929 = vmatmul.mubr.f32.gmra.mxu0 %v1442_v61  ;;  %v4312_v14 = vpop.eup %4311 }
 0x513   : > { %3970 = vmatpush3.xpose.msk.msra.mxu0 %vm1081_vm1, %v1681_v60  ;;  %3931 = vmatprep.mubr.f32.mxu0 %v1443_v21  ;;  %v1448_v56 = vmul.f32 %v4312_v14, %v5258_v36 }
 0x514   : > { %3971 = vmatprep.subr.msk.mxu0 %vm1081_vm1, %v1679_v28  ;;  %v1655_v23 = vpop.permute.xlu0 %1654 }
 0x515   : > { %v1647_v33 = vpop.permute.xlu1 %1646 }
 0x516   : > { %3932 = vmatmul.mubr.f32.gmra.mxu0 %v1444_v3  ;;  %v4314_v39 = vpop.eup %4313 }
 0x517   : > { %3972 = vmatpush3.xpose.msk.msra.mxu0 %vm1081_vm1, %v1679_v28  ;;  %3934 = vmatprep.mubr.f32.mxu0 %v1445_v44  ;;  %v1450_v0 = vmul.f32 %v4314_v39, %v5263_v2  ;;  %v6225_v44 = vld [vmem:[#allocation8_spill] sm:$0xff] }
 0x518   : > { %3973 = vmatprep.subr.msk.mxu0 %vm1081_vm1, %v1677_v6  ;;  %v1659_v53 = vpop.permute.xlu0 %1658 }
 0x51a   : > { %3935 = vmatmul.mubr.f32.gmra.mxu0 %v1446_v25 }
 0x51b   : > { %3974 = vmatpush3.xpose.msk.msra.mxu0 %vm1081_vm1, %v1677_v6  ;;  %3937 = vmatprep.mubr.f32.mxu0 %v1447_v5  ;;  %v6226_v6 = vld [vmem:[#allocation10_spill] sm:$0xff]  ;;  %v6227_v5 = vld [vmem:[#allocation9_spill] sm:$0xff] }
 0x51c   : > { %v1663_v51 = vpop.permute.xlu0 %1662 }
 0x51e   : > { %3938 = vmatmul.mubr.f32.gmra.mxu0 %v1448_v56  ;;  %v6228_v56 = vld [vmem:[#allocation12_spill] sm:$0xff] }
 0x520   : > { %v1667_v30 = vpop.permute.xlu0 %1666 }
 0x524   : > { %v5378_v20 = vpop.permute.xlu0 %1670 }
 0x528   : > { %v5380_v38 = vpop.permute.xlu0 %1674 }
 0x52a   : > { %v1416_v17 = vpop.xlane.xlu1 %1415 }
 0x52b   : > { %4315 = vrcp.f32 %v1416_v17  ;;  %v6230_v17 = vld [vmem:[#allocation14_spill] sm:$0xff] }
 0x52c   : > { %v2092_v37 = vpop.permute.xlu0 %2091 }
 0x52d   : > { %3999 = vmatprep.subr.mxu0 %v2092_v37  ;;  %4175 = vmatprep.subr.mxu1 %v2092_v37 }
 0x52e   : > { %v1649_v58 = vpop.permute.xlu1 %1648  ;;  %4191 = vmatpush3.msra.mxu1 %v2092_v37 }
 0x530   : > { %v2088_v2 = vpop.permute.xlu0 %2087 }
 0x532   : > { %v1653_v34 = vpop.permute.xlu1 %1652 }
 0x534   : > { %v2084_v26 = vpop.permute.xlu0 %2083 }
 0x536   : > { %v1657_v32 = vpop.permute.xlu1 %1656 }
 0x538   : > { %v4316_v36 = vpop.eup %4315  ;;  %v2080_v31 = vpop.permute.xlu0 %2079 }
 0x539   : > { %v1449_v40 = vmul.f32 %v4316_v36, %v5273_v12  ;;  %v6232_v36 = vld [vmem:[#allocation16_spill] sm:$0xff] }
 0x53a   : > { %v1661_v55 = vpop.permute.xlu1 %1660 }
 0x53b   : > { %3940 = vmatprep.mubr.f32.mxu0 %v1449_v40 }
 0x53c   : > { %3941 = vmatmul.mubr.f32.gmra.mxu0 %v1450_v0  ;;  %v2076_v52 = vpop.permute.xlu0 %2075  ;;  %v6233_v0 = vld [vmem:[#allocation15_spill] sm:$0xff] }
 0x53d   : > { %3975 = vmatprep.mubr.msk.f32.mxu0 %vm1081_vm1, %v1645_v19 }
 0x53e   : > { %v1665_v43 = vpop.permute.xlu1 %1664 }
 0x540   : > { %3976 = vmatmul.mubr.msk.f32.vlgmr.msra.gmra.mxu0 %vm1081_vm1, %v1647_v33  ;;  %v6229_v33 = vld [vmem:[#allocation11_spill] sm:$0xff] }
 0x541   : > { %4000 = vmatpush3.msra.mxu0 %v2092_v37  ;;  %3978 = vmatprep.mubr.msk.f32.mxu0 %vm1081_vm1, %v1649_v58 }
 0x542   : > { %v1669_v15 = vpop.permute.xlu1 %1668 }
 0x544   : > { %3979 = vmatmul.mubr.msk.f32.gmra.mxu0 %vm1081_vm1, %v1651_v59 }
 0x545   : > { %3981 = vmatprep.mubr.msk.f32.mxu0 %vm1081_vm1, %v1653_v34  ;;  %v6231_v34 = vld [vmem:[#allocation13_spill] sm:$0xff] }
 0x546   : > { %v1673_v22 = vpop.permute.xlu1 %1672 }
 0x548   : > { %3982 = vmatmul.mubr.msk.f32.gmra.mxu0 %vm1081_vm1, %v1655_v23 }
 0x549   : > { %3984 = vmatprep.mubr.msk.f32.mxu0 %vm1081_vm1, %v1657_v32 }
 0x54a   : > { %v2090_v12 = vpop.permute.xlu1 %2089 }
 0x54b   : > { %4001 = vmatprep.subr.mxu0 %v2090_v12  ;;  %4176 = vmatprep.subr.mxu1 %v2090_v12 }
 0x54c   : > { %3985 = vmatmul.mubr.msk.f32.gmra.mxu0 %vm1081_vm1, %v1659_v53  ;;  %4192 = vmatpush3.msra.mxu1 %v2090_v12 }
 0x54d   : > { %4002 = vmatpush3.msra.mxu0 %v2090_v12  ;;  %3987 = vmatprep.mubr.msk.f32.mxu0 %vm1081_vm1, %v1661_v55 }
 0x54e   : > { %4003 = vmatprep.subr.mxu0 %v2088_v2  ;;  %4177 = vmatprep.subr.mxu1 %v2088_v2  ;;  %v2086_v16 = vpop.permute.xlu1 %2085 }
 0x54f   : > { %4004 = vmatpush3.msra.mxu0 %v2088_v2  ;;  %4193 = vmatpush3.msra.mxu1 %v2088_v2 }
 0x550   : > { %4005 = vmatprep.subr.mxu0 %v2086_v16  ;;  %4178 = vmatprep.subr.mxu1 %v2086_v16 }
 0x551   : > { %3988 = vmatmul.mubr.msk.f32.gmra.mxu0 %vm1081_vm1, %v1663_v51  ;;  %4194 = vmatpush3.msra.mxu1 %v2086_v16 }
 0x552   : > { %4006 = vmatpush3.msra.mxu0 %v2086_v16  ;;  %3990 = vmatprep.mubr.msk.f32.mxu0 %vm1081_vm1, %v1665_v43  ;;  %v2082_v27 = vpop.permute.xlu1 %2081  ;;  %v6235_v16 = vld [vmem:[#allocation17_spill] sm:$0xff] }
 0x553   : > { %4007 = vmatprep.subr.mxu0 %v2084_v26  ;;  %4179 = vmatprep.subr.mxu1 %v2084_v26 }
 0x554   : > { %4008 = vmatpush3.msra.mxu0 %v2084_v26  ;;  %4195 = vmatpush3.msra.mxu1 %v2084_v26 }
 0x555   : > { %4009 = vmatprep.subr.mxu0 %v2082_v27  ;;  %4180 = vmatprep.subr.mxu1 %v2082_v27 }
 0x556   : > { %3991 = vmatmul.mubr.msk.f32.gmra.mxu0 %vm1081_vm1, %v1667_v30  ;;  %4196 = vmatpush3.msra.mxu1 %v2082_v27  ;;  %v2078_v50 = vpop.permute.xlu1 %2077 }
 0x557   : > { %4010 = vmatpush3.msra.mxu0 %v2082_v27  ;;  %3993 = vmatprep.mubr.msk.f32.mxu0 %vm1081_vm1, %v1669_v15 }
 0x558   : > { %4011 = vmatprep.subr.mxu0 %v2080_v31  ;;  %4181 = vmatprep.subr.mxu1 %v2080_v31 }
 0x559   : > { %4012 = vmatpush3.msra.mxu0 %v2080_v31  ;;  %4197 = vmatpush3.msra.mxu1 %v2080_v31  ;;  %v6236_v31 = vld [vmem:[#allocation20_spill] sm:$0xff] }
 0x55a   : > { %4013 = vmatprep.subr.mxu0 %v2078_v50  ;;  %4182 = vmatprep.subr.mxu1 %v2078_v50  ;;  %v2074_v7 = vpop.permute.xlu1 %2073 }
 0x55b   : > { %3994 = vmatmul.mubr.msk.f32.gmra.mxu0 %vm1081_vm1, %v5378_v20  ;;  %4198 = vmatpush3.msra.mxu1 %v2078_v50 }
 0x55c   : > { %4014 = vmatpush3.msra.mxu0 %v2078_v50  ;;  %3996 = vmatprep.mubr.msk.f32.mxu0 %vm1081_vm1, %v1673_v22  ;;  %v6234_v22 = vld [vmem:[#allocation18_spill] sm:$0xff] }
 0x55d   : > { %4015 = vmatprep.subr.mxu0 %v2076_v52  ;;  %4183 = vmatprep.subr.mxu1 %v2076_v52 }
 0x55e   : > { %4016 = vmatpush3.msra.mxu0 %v2076_v52  ;;  %4199 = vmatpush3.msra.mxu1 %v2076_v52 }
 0x55f   : > { %4017 = vmatprep.subr.mxu0 %v2074_v7  ;;  %4184 = vmatprep.subr.mxu1 %v2074_v7 }
 0x560   : > { %3997 = vmatmul.mubr.msk.f32.gmra.mxu0 %vm1081_vm1, %v5380_v38  ;;  %4200 = vmatpush3.msra.mxu1 %v2074_v7 }
 0x561   : > { %4018 = vmatpush3.msra.mxu0 %v2074_v7  ;;  %v6237_v7 = vld [vmem:[#allocation19_spill] sm:$0xff] }
 0x597   : > { %v5402_v18 = vpop.f32.mrf.mxu0 }
 0x599   : > { %v5404_v45 = vpop.f32.mrf.mxu0 }
 0x5ca   : > { %v5406_v13 = vpop.f32.mrf.mxu0 }
 0x5cc   : > { %v5408_v48 = vpop.f32.mrf.mxu0 }
 0x5ce   : > { %v5410_v63 = vpop.f32.mrf.mxu0 }
 0x5d0   : > { %v5412_v41 = vpop.f32.mrf.mxu0 }
 0x5d2   : > { %v5414_v10 = vpop.f32.mrf.mxu0 }
 0x5d4   : > { %v5416_v11 = vpop.f32.mrf.mxu0 }
 0x5d6   : > { %v5418_v8 = vpop.f32.mrf.mxu0 }
 0x5d8   : > { %v5420_v60 = vpop.f32.mrf.mxu0 }
 0x5da   : > { %v5422_v62 = vpop.f32.mrf.mxu0 }
 0x5dc   : > { %v5424_v4 = vpop.f32.mrf.mxu0 }
 0x5de   : > { %v5426_v54 = vpop.f32.mrf.mxu0 }
 0x5e0   : > { %v5428_v29 = vpop.f32.mrf.mxu0 }
 0x5fc   : > { %v5430_v35 = vpop.f32.mrf.mxu0 }
 0x5fe   : > { %v5432_v59 = vpop.f32.mrf.mxu0 }
 0x600   : > { %v3977_v61 = vpop.f32.mrf.mxu0 }
 0x601   : > { %v1844_v28 = vadd.f32 %v3977_v61, %v6223_v1 }
 0x602   : > { %v1838_v21 = vpop.f32.mrf.mxu0 }
 0x603   : > { %v1839_v23 = vadd.f32 %v1838_v21, %v6224_v24  ;;  %1919 = vmax.xlane.f32.xlu0 %v1844_v28  ;;  %v6238_v21 = vld [vmem:[#allocation21_spill] sm:$0xff] }
 0x604   : > { %v3980_v3 = vpop.f32.mrf.mxu0 }
 0x605   : > { %1917 = vmax.xlane.f32.xlu1 %v1839_v23  ;;  %v1854_v47 = vadd.f32 %v3980_v3, %v6225_v44  ;;  %v6239_v3 = vld [vmem:[#allocation4_spill] sm:$0xff] }
 0x606   : > { %v1848_v57 = vpop.f32.mrf.mxu0 }
 0x607   : > { %v1849_v53 = vadd.f32 %v1848_v57, %v6226_v6  ;;  %v6240_v57 = vld [vmem:[#allocation3_spill] sm:$0xff] }
 0x608   : > { %v3983_v25 = vpop.f32.mrf.mxu0 }
 0x609   : > { %1923 = vmax.xlane.f32.xlu1 %v1854_v47  ;;  %1921 = vmax.xlane.f32.xlu0 %v1849_v53  ;;  %v1864_v51 = vadd.f32 %v3983_v25, %v6227_v5 }
 0x60a   : > { %v1858_v14 = vpop.f32.mrf.mxu0 }
 0x60b   : > { %v1859_v19 = vadd.f32 %v1858_v14, %v6228_v56 }
 0x60c   : > { %v3986_v30 = vpop.f32.mrf.mxu0 }
 0x60d   : > { %1927 = vmax.xlane.f32.xlu1 %v1864_v51  ;;  %1925 = vmax.xlane.f32.xlu0 %v1859_v19  ;;  %v1874_v38 = vadd.f32 %v3986_v30, %v6229_v33 }
 0x60e   : > { %v1868_v20 = vpop.f32.mrf.mxu0 }
 0x60f   : > { %v1869_v37 = vadd.f32 %v1868_v20, %v6230_v17 }
 0x611   : > { %v3989_v58 = vpop.f32.mrf.mxu0  ;;  %1931 = vmax.xlane.f32.xlu1 %v1874_v38  ;;  %1929 = vmax.xlane.f32.xlu0 %v1869_v37 }
 0x612   : > { %v5443_v32 = vadd.f32 %v3989_v58, %v6231_v34 }
 0x613   : > { %v1878_v39 = vpop.f32.mrf.mxu0 }
 0x614   : > { %v5446_v40 = vadd.f32 %v1878_v39, %v6232_v36 }
 0x615   : > { %1935 = vmax.xlane.f32.xlu1 %v5443_v32 }
 0x616   : > { %v3992_v55 = vpop.f32.mrf.mxu0  ;;  %1933 = vmax.xlane.f32.xlu0 %v5446_v40 }
 0x617   : > { %v5451_v43 = vadd.f32 %v3992_v55, %v6233_v0 }
 0x618   : > { %v1888_v15 = vpop.f32.mrf.mxu0 }
 0x619   : > { %v5454_v2 = vadd.f32 %v1888_v15, %v6234_v22  ;;  %1939 = vmax.xlane.f32.xlu1 %v5451_v43 }
 0x61b   : > { %v3995_v12 = vpop.f32.mrf.mxu0  ;;  %1937 = vmax.xlane.f32.xlu0 %v5454_v2 }
 0x61c   : > { %v5459_v26 = vadd.f32 %v3995_v12, %v6235_v16 }
 0x61d   : > { %v1898_v27 = vpop.f32.mrf.mxu0 }
 0x61e   : > { %v5462_v50 = vadd.f32 %v1898_v27, %v6236_v31  ;;  %1943 = vmax.xlane.f32.xlu1 %v5459_v26 }
 0x620   : > { %v3998_v52 = vpop.f32.mrf.mxu0  ;;  %1941 = vmax.xlane.f32.xlu0 %v5462_v50 }
 0x621   : > { %v5467_v61 = vadd.f32 %v3998_v52, %v6237_v7 }
 0x622   : > { %v1908_v1 = vpop.f32.mrf.mxu0 }
 0x623   : > { %v5470_v24 = vadd.f32 %v1908_v1, %v6238_v21  ;;  %1947 = vmax.xlane.f32.xlu1 %v5467_v61 }
 0x625   : > { %1945 = vmax.xlane.f32.xlu0 %v5470_v24 }
 0x634   : > { %2069 = vrot.lane.b32.xlu1 %v6239_v3, %s4473_s25 }
 0x638   : > { %2065 = vrot.lane.b32.xlu1 %v4879_v49, %s4473_s25 }
 0x63b   : > { %2071 = vrot.lane.b32.xlu0 %v6240_v57, %s4473_s25 }
 0x63c   : > { %2061 = vrot.lane.b32.xlu1 %v4816_v9, %s4473_s25 }
 0x63f   : > { %2067 = vrot.lane.b32.xlu0 %v4861_v42, %s4473_s25 }
 0x643   : > { %2063 = vrot.lane.b32.xlu0 %v4869_v46, %s4473_s25 }
 0x68c   : > { %v1920_v44 = vpop.xlane.xlu0 %1919 }
 0x68d   : > { %v1950_v6 = vsub.f32 %v1844_v28, %v1920_v44 }
 0x68e   : > { %v1918_v25 = vpop.xlane.xlu1 %1917 }
 0x68f   : > { %v1967_v14 = vmul.f32 1.442695, %v1950_v6  ;;  %v1949_v5 = vsub.f32 %v1839_v23, %v1918_v25 }
 0x691   : > { %4317 = vpow2.f32 %v1967_v14  ;;  %v1965_v56 = vmul.f32 1.442695, %v1949_v5 }
 0x692   : > { %v1924_v49 = vpop.xlane.xlu1 %1923  ;;  %v1922_v30 = vpop.xlane.xlu0 %1921 }
 0x693   : > { %4319 = vpow2.f32 %v1965_v56  ;;  %v1952_v20 = vsub.f32 %v1854_v47, %v1924_v49  ;;  %v1951_v33 = vsub.f32 %v1849_v53, %v1922_v30 }
 0x695   : > { %v1971_v17 = vmul.f32 1.442695, %v1952_v20  ;;  %v1969_v9 = vmul.f32 1.442695, %v1951_v33 }
 0x696   : > { %v1928_v58 = vpop.xlane.xlu1 %1927  ;;  %v1926_v34 = vpop.xlane.xlu0 %1925 }
 0x697   : > { %4321 = vpow2.f32 %v1971_v17  ;;  %v1954_v42 = vsub.f32 %v1864_v51, %v1928_v58  ;;  %v1953_v39 = vsub.f32 %v1859_v19, %v1926_v34 }
 0x698   : > { %4323 = vpow2.f32 %v1969_v9 }
 0x699   : > { %v1975_v46 = vmul.f32 1.442695, %v1954_v42  ;;  %v1973_v28 = vmul.f32 1.442695, %v1953_v39 }
 0x69a   : > { %v1932_v36 = vpop.xlane.xlu1 %1931  ;;  %v1930_v55 = vpop.xlane.xlu0 %1929 }
 0x69b   : > { %4325 = vpow2.f32 %v1975_v46  ;;  %v1956_v23 = vsub.f32 %v1874_v38, %v1932_v36  ;;  %v1955_v0 = vsub.f32 %v1869_v37, %v1930_v55 }
 0x69c   : > { %4327 = vpow2.f32 %v1973_v28 }
 0x69d   : > { %v1979_v15 = vmul.f32 1.442695, %v1956_v23  ;;  %v1977_v22 = vmul.f32 1.442695, %v1955_v0 }
 0x69e   : > { %v5486_v47 = vpop.eup %4317  ;;  %v1936_v53 = vpop.xlane.xlu1 %1935 }
 0x69f   : > { %4329 = vpow2.f32 %v1979_v15  ;;  %v1958_v12 = vsub.f32 %v5443_v32, %v1936_v53  ;;  %v1934_v16 = vpop.xlane.xlu0 %1933  ;;  %1999 = vadd.xlane.f32.xlu0 %v5486_v47 }
 0x6a0   : > { %v5490_v51 = vpop.eup %4319  ;;  %4331 = vpow2.f32 %v1977_v22  ;;  %v1957_v19 = vsub.f32 %v5446_v40, %v1934_v16 }
 0x6a1   : > { %v1983_v27 = vmul.f32 1.442695, %v1958_v12  ;;  %1997 = vadd.xlane.f32.xlu1 %v5490_v51 }
 0x6a2   : > { %v1981_v38 = vmul.f32 1.442695, %v1957_v19  ;;  %v1940_v37 = vpop.xlane.xlu1 %1939 }
 0x6a3   : > { %4333 = vpow2.f32 %v1983_v27  ;;  %v1960_v31 = vsub.f32 %v5451_v43, %v1940_v37 }
 0x6a4   : > { %v5495_v52 = vpop.eup %4321  ;;  %4335 = vpow2.f32 %v1981_v38  ;;  %v1938_v32 = vpop.xlane.xlu0 %1937 }
 0x6a5   : > { %v5497_v7 = vpop.eup %4323  ;;  %v1987_v1 = vmul.f32 1.442695, %v1960_v31  ;;  %v1959_v21 = vsub.f32 %v5454_v2, %v1938_v32  ;;  %2003 = vadd.xlane.f32.xlu0 %v5495_v52 }
 0x6a6   : > { %2001 = vadd.xlane.f32.xlu1 %v5497_v7 }
 0x6a7   : > { %v1985_v40 = vmul.f32 1.442695, %v1959_v21  ;;  %v1944_v3 = vpop.xlane.xlu1 %1943  ;;  %4337 = vpow2.f32 %v1987_v1 }
 0x6a8   : > { %v5502_v57 = vpop.eup %4325  ;;  %v1962_v43 = vsub.f32 %v5459_v26, %v1944_v3 }
 0x6a9   : > { %v5505_v44 = vpop.eup %4327  ;;  %4339 = vpow2.f32 %v1985_v40  ;;  %v1942_v6 = vpop.xlane.xlu0 %1941  ;;  %2007 = vadd.xlane.f32.xlu0 %v5502_v57 }
 0x6aa   : > { %v1991_v25 = vmul.f32 1.442695, %v1962_v43  ;;  %v1961_v2 = vsub.f32 %v5462_v50, %v1942_v6  ;;  %2005 = vadd.xlane.f32.xlu1 %v5505_v44 }
 0x6ac   : > { %v5510_v14 = vpop.eup %4329  ;;  %v1989_v5 = vmul.f32 1.442695, %v1961_v2  ;;  %v1948_v56 = vpop.xlane.xlu1 %1947  ;;  %4341 = vpow2.f32 %v1991_v25 }
 0x6ad   : > { %v5512_v49 = vpop.eup %4331  ;;  %v1964_v26 = vsub.f32 %v5467_v61, %v1948_v56  ;;  %2011 = vadd.xlane.f32.xlu0 %v5510_v14 }
 0x6ae   : > { %4343 = vpow2.f32 %v1989_v5  ;;  %v1946_v30 = vpop.xlane.xlu0 %1945  ;;  %2009 = vadd.xlane.f32.xlu1 %v5512_v49 }
 0x6af   : > { %v1995_v20 = vmul.f32 1.442695, %v1964_v26  ;;  %v1963_v50 = vsub.f32 %v5470_v24, %v1946_v30 }
 0x6b0   : > { %v5518_v33 = vpop.eup %4333  ;;  %v2070_v58 = vpop.permute.xlu1 %2069 }
 0x6b1   : > { %v5520_v17 = vpop.eup %4335  ;;  %v1993_v9 = vmul.f32 1.442695, %v1963_v50  ;;  %2015 = vadd.xlane.f32.xlu0 %v5518_v33  ;;  %4345 = vpow2.f32 %v1995_v20 }
 0x6b2   : > { %v2072_v34 = vpop.permute.xlu0 %2071  ;;  %2013 = vadd.xlane.f32.xlu1 %v5520_v17 }
 0x6b3   : > { %4347 = vpow2.f32 %v1993_v9  ;;  %4019 = vmatprep.subr.mxu0 %v2072_v34  ;;  %4185 = vmatprep.subr.mxu1 %v2072_v34 }
 0x6b4   : > { %4020 = vmatpush3.msra.mxu0 %v2072_v34  ;;  %4201 = vmatpush3.msra.mxu1 %v2072_v34  ;;  %v5524_v61 = vpop.eup %4337  ;;  %v2066_v39 = vpop.permute.xlu1 %2065 }
 0x6b5   : > { %4021 = vmatprep.subr.mxu0 %v2070_v58  ;;  %4186 = vmatprep.subr.mxu1 %v2070_v58 }
 0x6b6   : > { %v5526_v24 = vpop.eup %4339  ;;  %4022 = vmatpush3.msra.mxu0 %v2070_v58  ;;  %4202 = vmatpush3.msra.mxu1 %v2070_v58  ;;  %v2068_v42 = vpop.permute.xlu0 %2067 }
 0x6b7   : > { %4023 = vmatprep.subr.mxu0 %v2068_v42  ;;  %4187 = vmatprep.subr.mxu1 %v2068_v42 }
 0x6b8   : > { %4024 = vmatpush3.msra.mxu0 %v2068_v42  ;;  %4203 = vmatpush3.msra.mxu1 %v2068_v42  ;;  %v2062_v55 = vpop.permute.xlu1 %2061 }
 0x6b9   : > { %2019 = vadd.xlane.f32.xlu0 %v5524_v61  ;;  %2017 = vadd.xlane.f32.xlu1 %v5526_v24  ;;  %v5530_v46 = vpop.eup %4341 }
 0x6ba   : > { %4025 = vmatprep.subr.mxu0 %v2066_v39  ;;  %4188 = vmatprep.subr.mxu1 %v2066_v39  ;;  %v2064_v28 = vpop.permute.xlu0 %2063 }
 0x6bb   : > { %v5532_v36 = vpop.eup %4343  ;;  %4026 = vmatpush3.msra.mxu0 %v2066_v39  ;;  %4204 = vmatpush3.msra.mxu1 %v2066_v39 }
 0x6bc   : > { %4027 = vmatprep.subr.mxu0 %v2064_v28  ;;  %4189 = vmatprep.subr.mxu1 %v2064_v28 }
 0x6bd   : > { %4028 = vmatpush3.msra.mxu0 %v2064_v28  ;;  %4205 = vmatpush3.msra.mxu1 %v2064_v28 }
 0x6be   : > { %2023 = vadd.xlane.f32.xlu0 %v5530_v46  ;;  %2021 = vadd.xlane.f32.xlu1 %v5532_v36  ;;  %v5536_v23 = vpop.eup %4345 }
 0x6bf   : > { %4029 = vmatprep.subr.mxu0 %v2062_v55  ;;  %4190 = vmatprep.subr.mxu1 %v2062_v55 }
 0x6c0   : > { %v5538_v0 = vpop.eup %4347  ;;  %4030 = vmatpush3.msra.mxu0 %v2062_v55  ;;  %4206 = vmatpush3.msra.mxu1 %v2062_v55 }
 0x6c2   : > { %2027 = vadd.xlane.f32.xlu0 %v5536_v23  ;;  %2025 = vadd.xlane.f32.xlu1 %v5538_v0 }
 0x728   : > { %v2000_v15 = vpop.xlane.xlu0 %1999 }
 0x729   : > { %4349 = vrcp.f32 %v2000_v15 }
 0x72a   : > { %v1998_v22 = vpop.xlane.xlu1 %1997 }
 0x72b   : > { %4351 = vrcp.f32 %v1998_v22 }
 0x72e   : > { %v2004_v53 = vpop.xlane.xlu0 %2003 }
 0x72f   : > { %v2002_v12 = vpop.xlane.xlu1 %2001  ;;  %4353 = vrcp.f32 %v2004_v53 }
 0x730   : > { %4355 = vrcp.f32 %v2002_v12 }
 0x732   : > { %v2008_v16 = vpop.xlane.xlu0 %2007 }
 0x733   : > { %v2006_v19 = vpop.xlane.xlu1 %2005  ;;  %4357 = vrcp.f32 %v2008_v16 }
 0x734   : > { %4359 = vrcp.f32 %v2006_v19 }
 0x736   : > { %v2012_v27 = vpop.xlane.xlu0 %2011  ;;  %v4350_v38 = vpop.eup %4349 }
 0x737   : > { %v2010_v37 = vpop.xlane.xlu1 %2009  ;;  %4361 = vrcp.f32 %v2012_v27  ;;  %v2046_v21 = vmul.f32 %v4350_v38, %v5486_v47 }
 0x738   : > { %v4352_v31 = vpop.eup %4351  ;;  %4363 = vrcp.f32 %v2010_v37 }
 0x739   : > { %v2045_v32 = vmul.f32 %v4352_v31, %v5490_v51 }
 0x73a   : > { %v2016_v1 = vpop.xlane.xlu0 %2015 }
 0x73b   : > { %v2014_v40 = vpop.xlane.xlu1 %2013  ;;  %4365 = vrcp.f32 %v2016_v1  ;;  %4031 = vmatprep.mubr.f32.mxu0 %v2045_v32 }
 0x73c   : > { %v4354_v3 = vpop.eup %4353  ;;  %4367 = vrcp.f32 %v2014_v40  ;;  %4032 = vmatmul.mubr.f32.vlgmr.msra.gmra.mxu0 %v2046_v21 }
 0x73d   : > { %v4356_v43 = vpop.eup %4355  ;;  %v2048_v6 = vmul.f32 %v4354_v3, %v5495_v52 }
 0x73e   : > { %v2047_v25 = vmul.f32 %v4356_v43, %v5497_v7 }
 0x740   : > { %v4358_v2 = vpop.eup %4357  ;;  %4034 = vmatprep.mubr.f32.mxu0 %v2047_v25 }
 0x741   : > { %v4360_v5 = vpop.eup %4359  ;;  %4035 = vmatmul.mubr.f32.gmra.mxu0 %v2048_v6  ;;  %v2050_v51 = vmul.f32 %v4358_v2, %v5502_v57 }
 0x742   : > { %v2018_v56 = vpop.xlane.xlu1 %2017  ;;  %v2020_v26 = vpop.xlane.xlu0 %2019  ;;  %v2049_v47 = vmul.f32 %v4360_v5, %v5505_v44 }
 0x743   : > { %4369 = vrcp.f32 %v2018_v56 }
 0x744   : > { %v4362_v30 = vpop.eup %4361  ;;  %4371 = vrcp.f32 %v2020_v26  ;;  %4037 = vmatprep.mubr.f32.mxu0 %v2049_v47 }
 0x745   : > { %v4364_v20 = vpop.eup %4363  ;;  %4038 = vmatmul.mubr.f32.gmra.mxu0 %v2050_v51  ;;  %v2052_v52 = vmul.f32 %v4362_v30, %v5510_v14 }
 0x746   : > { %v2051_v7 = vmul.f32 %v4364_v20, %v5512_v49 }
 0x747   : > { %v2022_v50 = vpop.xlane.xlu1 %2021  ;;  %v2024_v9 = vpop.xlane.xlu0 %2023 }
 0x748   : > { %v4366_v58 = vpop.eup %4365  ;;  %4373 = vrcp.f32 %v2022_v50  ;;  %4040 = vmatprep.mubr.f32.mxu1 %v2051_v7 }
 0x749   : > { %v4368_v57 = vpop.eup %4367  ;;  %4375 = vrcp.f32 %v2024_v9  ;;  %4041 = vmatmul.mubr.f32.vlgmr.msra.gmra.mxu1 %v2052_v52  ;;  %v2054_v44 = vmul.f32 %v4366_v58, %v5518_v33 }
 0x74a   : > { %v2053_v34 = vmul.f32 %v4368_v57, %v5520_v17 }
 0x74b   : > { %v2026_v42 = vpop.xlane.xlu1 %2025  ;;  %v2028_v39 = vpop.xlane.xlu0 %2027 }
 0x74c   : > { %4377 = vrcp.f32 %v2026_v42  ;;  %4043 = vmatprep.mubr.f32.mxu1 %v2053_v34 }
 0x74d   : > { %4379 = vrcp.f32 %v2028_v39  ;;  %4044 = vmatmul.mubr.f32.gmra.mxu1 %v2054_v44 }
 0x750   : > { %v4370_v14 = vpop.eup %4369 }
 0x751   : > { %v4372_v49 = vpop.eup %4371  ;;  %v2055_v28 = vmul.f32 %v4370_v14, %v5526_v24  ;;  %v2336_v24 = vld [vmem:[%s6171_s8 + $0x10] sm:$0xff] }
 0x752   : > { %v2056_v55 = vmul.f32 %v4372_v49, %v5524_v61  ;;  %v2337_v61 = vld [vmem:[%s6171_s8 + $0x18] sm:$0xff] }
 0x753   : > { %4046 = vmatprep.mubr.f32.mxu1 %v2055_v28  ;;  %4055 = vmatprep.subr.mxu1 %v2337_v61 }
 0x754   : > { %4047 = vmatmul.mubr.f32.gmra.mxu1 %v2056_v55 }
 0x755   : > { %v4374_v15 = vpop.eup %4373  ;;  %4056 = vmatpush3.msra.mxu1 %v2337_v61 }
 0x756   : > { %v4376_v22 = vpop.eup %4375  ;;  %v2057_v33 = vmul.f32 %v4374_v15, %v5532_v36  ;;  %4057 = vmatprep.subr.mxu1 %v2336_v24  ;;  %v2334_v36 = vld [vmem:[%s6171_s8] sm:$0xff] }
 0x757   : > { %v2058_v17 = vmul.f32 %v4376_v22, %v5530_v46  ;;  %v2335_v46 = vld [vmem:[%s6171_s8 + $0x8] sm:$0xff]  ;;  %4058 = vmatpush3.msra.mxu1 %v2336_v24 }
 0x758   : > { %4049 = vmatprep.mubr.f32.mxu1 %v2057_v33  ;;  %4059 = vmatprep.subr.mxu1 %v2335_v46  ;;  %v4445_v33 = vld [vmem:[%s4566_s18 + $0x8] sm:$0xff] }
 0x759   : > { %v4378_v53 = vpop.eup %4377  ;;  %4050 = vmatmul.mubr.f32.gmra.mxu1 %v2058_v17  ;;  %v4446_v17 = vld [vmem:[%s4566_s18] sm:$0xff] }
 0x75a   : > { %v4380_v12 = vpop.eup %4379  ;;  %v2059_v16 = vmul.f32 %v4378_v53, %v5538_v0  ;;  %4060 = vmatpush3.msra.mxu1 %v2335_v46  ;;  %v4447_v46 = vld [vmem:[%s4566_s18 + $0x18] sm:$0xff] }
 0x75b   : > { %v2060_v19 = vmul.f32 %v4380_v12, %v5536_v23  ;;  %4061 = vmatprep.subr.mxu1 %v2334_v36 }
 0x75c   : > { %4052 = vmatprep.mubr.f32.mxu1 %v2059_v16  ;;  %4062 = vmatpush3.msra.mxu1 %v2334_v36 }
 0x75d   : > { %4053 = vmatmul.mubr.f32.gmra.mxu1 %v2060_v19 }
 0x7fc   : > { %v4033_v23 = vpop.f32.mrf.mxu0 }
 0x7fd   : > { %2272 = vrot.lane.b32.xlu1 %v4033_v23, %s4474_s22 }
 0x7fe   : > { %v2175_v0 = vpop.f32.mrf.mxu0 }
 0x7ff   : > { %2270 = vrot.lane.b32.xlu0 %v2175_v0, %s4474_s22 }
 0x801   : > { %v4036_v27 = vpop.f32.mrf.mxu0 }
 0x803   : > { %v2185_v38 = vpop.f32.mrf.mxu0  ;;  %2276 = vrot.lane.b32.xlu0 %v4036_v27, %s4474_s22  ;;  %v4448_v27 = vld [vmem:[%s4566_s18 + $0x10] sm:$0xff] }
 0x804   : > { %2274 = vrot.lane.b32.xlu1 %v2185_v38, %s4474_s22 }
 0x805   : > { %v4039_v37 = vpop.f32.mrf.mxu0 }
 0x807   : > { %v2195_v31 = vpop.f32.mrf.mxu0  ;;  %2280 = vrot.lane.b32.xlu0 %v4039_v37, %s4474_s22 }
 0x808   : > { %2278 = vrot.lane.b32.xlu1 %v2195_v31, %s4474_s22 }
 0x809   : > { %v4042_v32 = vpop.f32.mrf.mxu1 }
 0x80b   : > { %v2205_v1 = vpop.f32.mrf.mxu1  ;;  %2284 = vrot.lane.b32.xlu0 %v4042_v32, %s4474_s22 }
 0x80c   : > { %2282 = vrot.lane.b32.xlu1 %v2205_v1, %s4474_s22  ;;  %v4449_v1 = vld [vmem:[%s4566_s18 + $0x28] sm:$0xff] }
 0x80d   : > { %v4045_v21 = vpop.f32.mrf.mxu1 }
 0x80f   : > { %v2215_v40 = vpop.f32.mrf.mxu1  ;;  %2288 = vrot.lane.b32.xlu0 %v4045_v21, %s4474_s22 }
 0x810   : > { %2286 = vrot.lane.b32.xlu1 %v2215_v40, %s4474_s22 }
 0x814   : > { %v4048_v3 = vpop.f32.mrf.mxu1 }
 0x815   : > { %2292 = vrot.lane.b32.xlu0 %v4048_v3, %s4474_s22 }
 0x816   : > { %v2225_v43 = vpop.f32.mrf.mxu1 }
 0x817   : > { %2290 = vrot.lane.b32.xlu1 %v2225_v43, %s4474_s22 }
 0x819   : > { %v4051_v6 = vpop.f32.mrf.mxu1 }
 0x81a   : > { %2296 = vrot.lane.b32.xlu0 %v4051_v6, %s4474_s22  ;;  %v4450_v6 = vld [vmem:[%s4566_s18 + $0x20] sm:$0xff] }
 0x81b   : > { %v2235_v25 = vpop.f32.mrf.mxu1 }
 0x81c   : > { %2294 = vrot.lane.b32.xlu1 %v2235_v25, %s4474_s22 }
 0x81d   : > { %v4054_v2 = vpop.f32.mrf.mxu1 }
 0x81e   : > { %2300 = vrot.lane.b32.xlu0 %v4054_v2, %s4474_s22 }
 0x81f   : > { %v2245_v5 = vpop.f32.mrf.mxu1 }
 0x820   : > { %2298 = vrot.lane.b32.xlu1 %v2245_v5, %s4474_s22  ;;  %s518_s22 = scalar_lea.vmem %s6168_s5, %s6244_s30 }
 0x86f   : > { %v2273_v51 = vpop.permute.xlu1 %2272 }
 0x870   : > { %v2319_v47 = vsel %vm1081_vm1, %v5402_v18, %v2273_v51 }
 0x871   : > { %v2271_v56 = vpop.permute.xlu0 %2270 }
 0x872   : > { %v2318_v26 = vsel %vm1081_vm1, %v5404_v45, %v2271_v56  ;;  %v4451_v56 = vld [vmem:[%s4566_s18 + $0x38] sm:$0xff] }
 0x873   : > { %4063 = vmatprep.mubr.msk.f32.mxu1 %vm540_vm0, %v2318_v26 }
 0x874   : > { %4064 = vmatmul.mubr.msk.f32.vlgmr.msra.gmra.mxu1 %vm540_vm0, %v2319_v47 }
 0x875   : > { %v2277_v30 = vpop.permute.xlu0 %2276 }
 0x876   : > { %v2275_v20 = vpop.permute.xlu1 %2274  ;;  %v2321_v52 = vsel %vm1081_vm1, %v5406_v13, %v2277_v30 }
 0x877   : > { %v2320_v7 = vsel %vm1081_vm1, %v5408_v48, %v2275_v20 }
 0x878   : > { %4066 = vmatprep.mubr.msk.f32.mxu1 %vm540_vm0, %v2320_v7 }
 0x879   : > { %4067 = vmatmul.mubr.msk.f32.gmra.mxu1 %vm540_vm0, %v2321_v52  ;;  %v2281_v45 = vpop.permute.xlu0 %2280  ;;  %v4452_v52 = vld [vmem:[%s4566_s18 + $0x30] sm:$0xff] }
 0x87a   : > { %v2279_v50 = vpop.permute.xlu1 %2278  ;;  %v2323_v18 = vsel %vm1081_vm1, %v5410_v63, %v2281_v45 }
 0x87b   : > { %v2322_v9 = vsel %vm1081_vm1, %v5412_v41, %v2279_v50 }
 0x87c   : > { %4069 = vmatprep.mubr.msk.f32.mxu1 %vm540_vm0, %v2322_v9  ;;  %v4453_v9 = vld [vmem:[%s4566_s18 + $0x48] sm:$0xff] }
 0x87d   : > { %4070 = vmatmul.mubr.msk.f32.gmra.mxu1 %vm540_vm0, %v2323_v18  ;;  %v2285_v13 = vpop.permute.xlu0 %2284 }
 0x87e   : > { %v2283_v58 = vpop.permute.xlu1 %2282  ;;  %v2325_v48 = vsel %vm1081_vm1, %v5414_v10, %v2285_v13 }
 0x87f   : > { %v2324_v57 = vsel %vm1081_vm1, %v5416_v11, %v2283_v58 }
 0x880   : > { %4072 = vmatprep.mubr.msk.f32.mxu1 %vm540_vm0, %v2324_v57  ;;  %v4454_v57 = vld [vmem:[%s4566_s18 + $0x40] sm:$0xff] }
 0x881   : > { %4073 = vmatmul.mubr.msk.f32.gmra.mxu1 %vm540_vm0, %v2325_v48  ;;  %v2289_v63 = vpop.permute.xlu0 %2288 }
 0x882   : > { %v2287_v44 = vpop.permute.xlu1 %2286  ;;  %v2327_v41 = vsel %vm1081_vm1, %v5418_v8, %v2289_v63 }
 0x883   : > { %v2326_v34 = vsel %vm1081_vm1, %v5420_v60, %v2287_v44 }
 0x884   : > { %4075 = vmatprep.mubr.msk.f32.mxu1 %vm540_vm0, %v2326_v34 }
 0x885   : > { %4076 = vmatmul.mubr.msk.f32.gmra.mxu1 %vm540_vm0, %v2327_v41 }
 0x887   : > { %v2293_v10 = vpop.permute.xlu0 %2292 }
 0x888   : > { %v2329_v11 = vsel %vm1081_vm1, %v5422_v62, %v2293_v10 }
 0x889   : > { %v2291_v42 = vpop.permute.xlu1 %2290 }
 0x88a   : > { %v2328_v39 = vsel %vm1081_vm1, %v5424_v4, %v2291_v42 }
 0x88b   : > { %4078 = vmatprep.mubr.msk.f32.mxu1 %vm540_vm0, %v2328_v39 }
 0x88c   : > { %4079 = vmatmul.mubr.msk.f32.gmra.mxu1 %vm540_vm0, %v2329_v11  ;;  %v2297_v8 = vpop.permute.xlu0 %2296  ;;  %v4455_v11 = vld [vmem:[%s4566_s18 + $0x58] sm:$0xff] }
 0x88d   : > { %v2331_v60 = vsel %vm1081_vm1, %v5426_v54, %v2297_v8  ;;  %v5637_v54 = vld [vmem:[%s6172_s9] ss:$0 sm:$0xff] }
 0x88e   : > { %v2295_v14 = vpop.permute.xlu1 %2294 }
 0x88f   : > { %v2330_v49 = vsel %vm1081_vm1, %v5428_v29, %v2295_v14  ;;  %v4456_v14 = vld [vmem:[%s4566_s18 + $0x50] sm:$0xff] }
 0x890   : > { %4081 = vmatprep.mubr.msk.f32.mxu1 %vm540_vm0, %v2330_v49  ;;  %v2301_v62 = vpop.permute.xlu0 %2300 }
 0x891   : > { %4082 = vmatmul.mubr.msk.f32.gmra.mxu1 %vm540_vm0, %v2331_v60  ;;  %v2333_v28 = vsel %vm1081_vm1, %v5430_v35, %v2301_v62 }
 0x892   : > { %v2299_v4 = vpop.permute.xlu1 %2298 }
 0x893   : > { %v2332_v55 = vsel %vm1081_vm1, %v5432_v59, %v2299_v4 }
 0x894   : > { %4084 = vmatprep.mubr.msk.f32.mxu1 %vm540_vm0, %v2332_v55 }
 0x895   : > { %4085 = vmatmul.mubr.msk.f32.gmra.mxu1 %vm540_vm0, %v2333_v28 }
 0x934   : > { %v4065_v29 = vpop.f32.mrf.mxu1 }
 0x935   : > { %v2465_v15 = vadd.f32 %v4065_v29, %v5637_v54  ;;  %v4457_v29 = vld [vmem:[%s4566_s18 + $0x68] sm:$0xff] }
 0x936   : > { %v2459_v22 = vpop.f32.mrf.mxu1 }
 0x937   : > { %v5641_v35 = vadd.f32 %v4445_v33, %v2465_v15  ;;  %v2460_v59 = vadd.f32 %v5637_v54, %v2459_v22 }
 0x939   : > { %v5645_v53 = vadd.f32 %v4446_v17, %v2460_v59  ;;  %v4068_v12 = vpop.f32.mrf.mxu1  ;;  %v2557_v16 = vsel %vm540_vm0, %v5641_v35, 0.0  ;;  %v4458_v59 = vld [vmem:[%s4566_s18 + $0x60] sm:$0xff] }
 0x93a   : > { %v2475_v19 = vadd.f32 %v4068_v12, %v5637_v54  ;;  %2558 = vadd.xlane.f32.xlu0 %v2557_v16 }
 0x93b   : > { %v2469_v61 = vpop.f32.mrf.mxu1  ;;  %v2554_v24 = vsel %vm540_vm0, %v5645_v53, 0.0 }
 0x93c   : > { %v5653_v36 = vadd.f32 %v4447_v46, %v2475_v19  ;;  %v2470_v23 = vadd.f32 %v5637_v54, %v2469_v61  ;;  %2555 = vadd.xlane.f32.xlu1 %v2554_v24  ;;  %v4459_v61 = vld [vmem:[%s4566_s18 + $0x78] sm:$0xff] }
 0x93d   : > { %v4071_v0 = vpop.f32.mrf.mxu1 }
 0x93e   : > { %v5657_v38 = vadd.f32 %v4448_v27, %v2470_v23  ;;  %v2485_v37 = vadd.f32 %v4071_v0, %v5637_v54  ;;  %v2563_v32 = vsel %vm540_vm0, %v5653_v36, 0.0  ;;  %v4460_v0 = vld [vmem:[%s4566_s18 + $0x70] sm:$0xff]  ;;  %s515_s18 = scalar_lea.vmem %s6167_s4, %s6244_s30 }
 0x93f   : > { %v2479_v31 = vpop.f32.mrf.mxu1 }
 0x940   : > { %v5663_v21 = vadd.f32 %v4449_v1, %v2485_v37  ;;  %v2480_v40 = vadd.f32 %v5637_v54, %v2479_v31  ;;  %2564 = vadd.xlane.f32.xlu1 %v2563_v32  ;;  %v2560_v3 = vsel %vm540_vm0, %v5657_v38, 0.0 }
 0x941   : > { %2561 = vadd.xlane.f32.xlu0 %v2560_v3  ;;  %v4074_v43 = vpop.f32.mrf.mxu1 }
 0x942   : > { %v5669_v25 = vadd.f32 %v4450_v6, %v2480_v40  ;;  %v2495_v2 = vadd.f32 %v4074_v43, %v5637_v54  ;;  %v2569_v51 = vsel %vm540_vm0, %v5663_v21, 0.0 }
 0x943   : > { %v2489_v5 = vpop.f32.mrf.mxu1 }
 0x944   : > { %v5675_v26 = vadd.f32 %v4451_v56, %v2495_v2  ;;  %v2490_v47 = vadd.f32 %v5637_v54, %v2489_v5  ;;  %2570 = vadd.xlane.f32.xlu1 %v2569_v51  ;;  %v2566_v30 = vsel %vm540_vm0, %v5669_v25, 0.0 }
 0x945   : > { %2567 = vadd.xlane.f32.xlu0 %v2566_v30  ;;  %v4077_v20 = vpop.f32.mrf.mxu1 }
 0x946   : > { %v5681_v7 = vadd.f32 %v4452_v52, %v2490_v47  ;;  %v2505_v45 = vadd.f32 %v4077_v20, %v5637_v54  ;;  %v2575_v18 = vsel %vm540_vm0, %v5675_v26, 0.0 }
 0x947   : > { %v2499_v50 = vpop.f32.mrf.mxu1 }
 0x948   : > { %v5687_v13 = vadd.f32 %v4453_v9, %v2505_v45  ;;  %v2500_v58 = vadd.f32 %v5637_v54, %v2499_v50  ;;  %2576 = vadd.xlane.f32.xlu1 %v2575_v18  ;;  %v2572_v48 = vsel %vm540_vm0, %v5681_v7, 0.0 }
 0x949   : > { %2573 = vadd.xlane.f32.xlu0 %v2572_v48 }
 0x94a   : > { %v5693_v63 = vadd.f32 %v4454_v57, %v2500_v58  ;;  %v2581_v44 = vsel %vm540_vm0, %v5687_v13, 0.0 }
 0x94c   : > { %v4080_v41 = vpop.f32.mrf.mxu1  ;;  %2582 = vadd.xlane.f32.xlu1 %v2581_v44  ;;  %v2578_v34 = vsel %vm540_vm0, %v5693_v63, 0.0 }
 0x94d   : > { %v2515_v10 = vadd.f32 %v4080_v41, %v5637_v54  ;;  %2579 = vadd.xlane.f32.xlu0 %v2578_v34 }
 0x94e   : > { %v2509_v42 = vpop.f32.mrf.mxu1 }
 0x94f   : > { %v5701_v39 = vadd.f32 %v4455_v11, %v2515_v10  ;;  %v2510_v8 = vadd.f32 %v5637_v54, %v2509_v42 }
 0x951   : > { %v5705_v60 = vadd.f32 %v4456_v14, %v2510_v8  ;;  %v4083_v49 = vpop.f32.mrf.mxu1  ;;  %v2587_v62 = vsel %vm540_vm0, %v5701_v39, 0.0 }
 0x952   : > { %v2525_v4 = vadd.f32 %v4083_v49, %v5637_v54  ;;  %2588 = vadd.xlane.f32.xlu1 %v2587_v62 }
 0x953   : > { %v2519_v28 = vpop.f32.mrf.mxu1  ;;  %v2584_v55 = vsel %vm540_vm0, %v5705_v60, 0.0 }
 0x954   : > { %v5713_v15 = vadd.f32 %v4457_v29, %v2525_v4  ;;  %v2520_v22 = vadd.f32 %v5637_v54, %v2519_v28  ;;  %2585 = vadd.xlane.f32.xlu0 %v2584_v55 }
 0x955   : > { %v4086_v33 = vpop.f32.mrf.mxu1 }
 0x956   : > { %v5717_v17 = vadd.f32 %v4458_v59, %v2520_v22  ;;  %v2535_v12 = vadd.f32 %v4086_v33, %v5637_v54  ;;  %v2593_v16 = vsel %vm540_vm0, %v5713_v15, 0.0 }
 0x957   : > { %v2529_v19 = vpop.f32.mrf.mxu1  ;;  %2594 = vadd.xlane.f32.xlu1 %v2593_v16 }
 0x958   : > { %v5723_v24 = vadd.f32 %v4459_v61, %v2535_v12  ;;  %v2530_v46 = vadd.f32 %v5637_v54, %v2529_v19  ;;  %v2590_v23 = vsel %vm540_vm0, %v5717_v17, 0.0 }
 0x959   : > { %2591 = vadd.xlane.f32.xlu0 %v2590_v23 }
 0x95a   : > { %v5729_v27 = vadd.f32 %v4460_v0, %v2530_v46  ;;  %v2599_v37 = vsel %vm540_vm0, %v5723_v24, 0.0 }
 0x95b   : > { %2600 = vadd.xlane.f32.xlu1 %v2599_v37 }
 0x95c   : > { %v2596_v31 = vsel %vm540_vm0, %v5729_v27, 0.0 }
 0x95d   : > { %2597 = vadd.xlane.f32.xlu0 %v2596_v31 }
 0x9c3   : > { %v2559_v32 = vpop.xlane.xlu0 %2558 }
 0x9c4   : > { %v2603_v1 = vmul.f32 0.03125, %v2559_v32 }
 0x9c5   : > { %v2556_v40 = vpop.xlane.xlu1 %2555 }
 0x9c6   : > { %v5736_v54 = vsub.f32 %v5641_v35, %v2603_v1  ;;  %v2602_v3 = vmul.f32 0.03125, %v2556_v40 }
 0x9c8   : > { %v5739_v43 = vsub.f32 %v5645_v53, %v2602_v3  ;;  %v2635_v6 = vmul.f32 %v5736_v54, %v5736_v54 }
 0x9c9   : > { %v2565_v2 = vpop.xlane.xlu1 %2564 }
 0x9ca   : > { %v2605_v5 = vmul.f32 0.03125, %v2565_v2  ;;  %v2562_v51 = vpop.xlane.xlu0 %2561  ;;  %v2653_v56 = vsel %vm540_vm0, %v2635_v6, 0.0  ;;  %v2634_v47 = vmul.f32 %v5739_v43, %v5739_v43 }
 0x9cb   : > { %v2604_v30 = vmul.f32 0.03125, %v2562_v51  ;;  %2654 = vadd.xlane.f32.xlu1 %v2653_v56 }
 0x9cc   : > { %v5747_v20 = vsub.f32 %v5653_v36, %v2605_v5  ;;  %v2650_v52 = vsel %vm540_vm0, %v2634_v47, 0.0 }
 0x9cd   : > { %v5751_v45 = vsub.f32 %v5657_v38, %v2604_v30  ;;  %v2571_v50 = vpop.xlane.xlu1 %2570  ;;  %2651 = vadd.xlane.f32.xlu0 %v2650_v52 }
 0x9ce   : > { %v2607_v18 = vmul.f32 0.03125, %v2571_v50  ;;  %v2568_v9 = vpop.xlane.xlu0 %2567  ;;  %v2637_v58 = vmul.f32 %v5747_v20, %v5747_v20 }
 0x9cf   : > { %v2606_v48 = vmul.f32 0.03125, %v2568_v9  ;;  %v2636_v57 = vmul.f32 %v5751_v45, %v5751_v45 }
 0x9d0   : > { %v5758_v44 = vsub.f32 %v5663_v21, %v2607_v18  ;;  %v2659_v41 = vsel %vm540_vm0, %v2637_v58, 0.0 }
 0x9d1   : > { %v5762_v34 = vsub.f32 %v5669_v25, %v2606_v48  ;;  %v2577_v10 = vpop.xlane.xlu1 %2576  ;;  %2660 = vadd.xlane.f32.xlu1 %v2659_v41  ;;  %v2656_v42 = vsel %vm540_vm0, %v2636_v57, 0.0 }
 0x9d2   : > { %v2609_v11 = vmul.f32 0.03125, %v2577_v10  ;;  %2657 = vadd.xlane.f32.xlu0 %v2656_v42  ;;  %v2574_v8 = vpop.xlane.xlu0 %2573  ;;  %v2639_v14 = vmul.f32 %v5758_v44, %v5758_v44 }
 0x9d3   : > { %v2608_v49 = vmul.f32 0.03125, %v2574_v8  ;;  %v2638_v62 = vmul.f32 %v5762_v34, %v5762_v34 }
 0x9d4   : > { %v5770_v4 = vsub.f32 %v5675_v26, %v2609_v11  ;;  %v2665_v28 = vsel %vm540_vm0, %v2639_v14, 0.0 }
 0x9d5   : > { %v5774_v55 = vsub.f32 %v5681_v7, %v2608_v49  ;;  %v2583_v29 = vpop.xlane.xlu1 %2582  ;;  %2666 = vadd.xlane.f32.xlu1 %v2665_v28  ;;  %v2662_v22 = vsel %vm540_vm0, %v2638_v62, 0.0 }
 0x9d6   : > { %v2611_v33 = vmul.f32 0.03125, %v2583_v29  ;;  %2663 = vadd.xlane.f32.xlu0 %v2662_v22  ;;  %v2580_v59 = vpop.xlane.xlu0 %2579  ;;  %v2641_v12 = vmul.f32 %v5770_v4, %v5770_v4 }
 0x9d7   : > { %v2610_v16 = vmul.f32 0.03125, %v2580_v59  ;;  %v2640_v19 = vmul.f32 %v5774_v55, %v5774_v55  ;;  %v2811_v59 = vld [vmem:[%s6173_s10 + $0x10] sm:$0xff] }
 0x9d8   : > { %v5782_v61 = vsub.f32 %v5687_v13, %v2611_v33  ;;  %v2671_v46 = vsel %vm540_vm0, %v2641_v12, 0.0  ;;  %v2812_v33 = vld [vmem:[%s6173_s10 + $0x18] sm:$0xff] }
 0x9d9   : > { %v5786_v23 = vsub.f32 %v5693_v63, %v2610_v16  ;;  %2672 = vadd.xlane.f32.xlu1 %v2671_v46  ;;  %v2668_v0 = vsel %vm540_vm0, %v2640_v19, 0.0  ;;  %4087 = vmatprep.subr.mxu0 %v2812_v33  ;;  %v2810_v19 = vld [vmem:[%s6173_s10 + $0x8] sm:$0xff] }
 0x9da   : > { %2669 = vadd.xlane.f32.xlu0 %v2668_v0  ;;  %v2643_v37 = vmul.f32 %v5782_v61, %v5782_v61  ;;  %4088 = vmatpush3.msra.mxu0 %v2812_v33  ;;  %v2809_v0 = vld [vmem:[%s6173_s10] sm:$0xff] }
 0x9db   : > { %v2589_v31 = vpop.xlane.xlu1 %2588  ;;  %v2642_v32 = vmul.f32 %v5786_v23, %v5786_v23  ;;  %4089 = vmatprep.subr.mxu0 %v2811_v59 }
 0x9dc   : > { %v2613_v1 = vmul.f32 0.03125, %v2589_v31  ;;  %v2677_v40 = vsel %vm540_vm0, %v2643_v37, 0.0  ;;  %4090 = vmatpush3.msra.mxu0 %v2811_v59  ;;  %v6241_v59 = vld [vmem:[#allocation2_spill] sm:$0xff] }
 0x9dd   : > { %v2586_v3 = vpop.xlane.xlu0 %2585  ;;  %2678 = vadd.xlane.f32.xlu1 %v2677_v40  ;;  %v2674_v6 = vsel %vm540_vm0, %v2642_v32, 0.0  ;;  %4091 = vmatprep.subr.mxu0 %v2810_v19 }
 0x9de   : > { %v5796_v2 = vsub.f32 %v5701_v39, %v2613_v1  ;;  %v2612_v5 = vmul.f32 0.03125, %v2586_v3  ;;  %2675 = vadd.xlane.f32.xlu0 %v2674_v6  ;;  %4092 = vmatpush3.msra.mxu0 %v2810_v19 }
 0x9df   : > { %4093 = vmatprep.subr.mxu0 %v2809_v0 }
 0x9e0   : > { %v5799_v51 = vsub.f32 %v5705_v60, %v2612_v5  ;;  %v2595_v56 = vpop.xlane.xlu1 %2594  ;;  %v2645_v47 = vmul.f32 %v5796_v2, %v5796_v2  ;;  %4094 = vmatpush3.msra.mxu0 %v2809_v0 }
 0x9e1   : > { %v2615_v30 = vmul.f32 0.03125, %v2595_v56 }
 0x9e2   : > { %v2592_v52 = vpop.xlane.xlu0 %2591  ;;  %v2683_v50 = vsel %vm540_vm0, %v2645_v47, 0.0  ;;  %v2644_v18 = vmul.f32 %v5799_v51, %v5799_v51 }
 0x9e3   : > { %v5807_v9 = vsub.f32 %v5713_v15, %v2615_v30  ;;  %v2614_v58 = vmul.f32 0.03125, %v2592_v52  ;;  %2684 = vadd.xlane.f32.xlu1 %v2683_v50 }
 0x9e4   : > { %v2601_v48 = vpop.xlane.xlu1 %2600  ;;  %v2680_v57 = vsel %vm540_vm0, %v2644_v18, 0.0  ;;  %v2762_v18 = vld [vmem:[%s518_s22] sm:$0x1] }
 0x9e5   : > { %v5811_v41 = vsub.f32 %v5717_v17, %v2614_v58  ;;  %v2617_v10 = vmul.f32 0.03125, %v2601_v48  ;;  %2681 = vadd.xlane.f32.xlu0 %v2680_v57  ;;  %v2647_v42 = vmul.f32 %v5807_v9, %v5807_v9 }
 0x9e6   : > { %v2598_v11 = vpop.xlane.xlu0 %2597 }
 0x9e7   : > { %v5816_v8 = vsub.f32 %v5723_v24, %v2617_v10  ;;  %v2616_v14 = vmul.f32 0.03125, %v2598_v11  ;;  %v2689_v49 = vsel %vm540_vm0, %v2647_v42, 0.0  ;;  %v2646_v62 = vmul.f32 %v5811_v41, %v5811_v41 }
 0x9e8   : > { %2690 = vadd.xlane.f32.xlu1 %v2689_v49  ;;  %v2763_v42 = vadd.f32 1.0, %v2762_v18 }
 0x9e9   : > { %v5822_v28 = vsub.f32 %v5729_v27, %v2616_v14  ;;  %v2686_v29 = vsel %vm540_vm0, %v2646_v62, 0.0  ;;  %v2649_v22 = vmul.f32 %v5816_v8, %v5816_v8 }
 0x9ea   : > { %2687 = vadd.xlane.f32.xlu0 %v2686_v29 }
 0x9eb   : > { %v2695_v12 = vsel %vm540_vm0, %v2649_v22, 0.0  ;;  %v2648_v16 = vmul.f32 %v5822_v28, %v5822_v28 }
 0x9ec   : > { %2696 = vadd.xlane.f32.xlu1 %v2695_v12  ;;  %v6242_v12 = vsub.s32 0, %v6241_v59 }
 0x9ed   : > { %v2692_v46 = vsel %vm540_vm0, %v2648_v16, 0.0 }
 0x9ee   : > { %2693 = vadd.xlane.f32.xlu0 %v2692_v46  ;;  %v5849_v16 = vrot.slane %v2763_v42, %v6242_v12 }
 0xa54   : > { %v2655_v37 = vpop.xlane.xlu1 %2654 }
 0xa55   : > { %v2699_v31 = vmul.f32 0.03125, %v2655_v37 }
 0xa56   : > { %v2652_v32 = vpop.xlane.xlu0 %2651 }
 0xa57   : > { %v2715_v1 = vadd.f32 1e-05, %v2699_v31  ;;  %v2698_v40 = vmul.f32 0.03125, %v2652_v32 }
 0xa59   : > { %4381 = vrsqrt.f32 %v2715_v1  ;;  %v2714_v3 = vadd.f32 1e-05, %v2698_v40 }
 0xa5a   : > { %v2661_v6 = vpop.xlane.xlu1 %2660 }
 0xa5b   : > { %4383 = vrsqrt.f32 %v2714_v3  ;;  %v2701_v5 = vmul.f32 0.03125, %v2661_v6  ;;  %v2658_v56 = vpop.xlane.xlu0 %2657 }
 0xa5c   : > { %v2700_v47 = vmul.f32 0.03125, %v2658_v56 }
 0xa5d   : > { %v2717_v30 = vadd.f32 1e-05, %v2701_v5 }
 0xa5e   : > { %v2716_v52 = vadd.f32 1e-05, %v2700_v47  ;;  %v2667_v50 = vpop.xlane.xlu1 %2666 }
 0xa5f   : > { %4385 = vrsqrt.f32 %v2717_v30  ;;  %v2703_v58 = vmul.f32 0.03125, %v2667_v50  ;;  %v2664_v48 = vpop.xlane.xlu0 %2663 }
 0xa60   : > { %4387 = vrsqrt.f32 %v2716_v52  ;;  %v2702_v57 = vmul.f32 0.03125, %v2664_v48 }
 0xa61   : > { %v2719_v10 = vadd.f32 1e-05, %v2703_v58 }
 0xa62   : > { %v2718_v11 = vadd.f32 1e-05, %v2702_v57  ;;  %v2673_v14 = vpop.xlane.xlu1 %2672 }
 0xa63   : > { %4389 = vrsqrt.f32 %v2719_v10  ;;  %v2705_v49 = vmul.f32 0.03125, %v2673_v14  ;;  %v2670_v62 = vpop.xlane.xlu0 %2669 }
 0xa64   : > { %4391 = vrsqrt.f32 %v2718_v11  ;;  %v2704_v29 = vmul.f32 0.03125, %v2670_v62 }
 0xa65   : > { %v2721_v22 = vadd.f32 1e-05, %v2705_v49 }
 0xa66   : > { %v4382_v33 = vpop.eup %4381  ;;  %v2720_v19 = vadd.f32 1e-05, %v2704_v29  ;;  %v2679_v46 = vpop.xlane.xlu1 %2678 }
 0xa67   : > { %v2747_v0 = vmul.f32 %v4382_v33, %v5736_v54  ;;  %4393 = vrsqrt.f32 %v2721_v22  ;;  %v2707_v37 = vmul.f32 0.03125, %v2679_v46  ;;  %v2676_v31 = vpop.xlane.xlu0 %2675  ;;  %v5859_v54 = vld [vmem:[%s515_s18] ss:$0 sm:$0xff]  ;;  %s6110_s18 = scalar_lea.vmem %s6177_s14, %s3577_s15 }
 0xa68   : > { %v4384_v32 = vpop.eup %4383  ;;  %4395 = vrsqrt.f32 %v2720_v19  ;;  %v2706_v1 = vmul.f32 0.03125, %v2676_v31 }
 0xa69   : > { %v2723_v40 = vadd.f32 1e-05, %v2707_v37  ;;  %v2746_v3 = vmul.f32 %v4384_v32, %v5739_v43  ;;  %v2771_v6 = vmul.f32 %v5849_v16, %v2747_v0 }
 0xa6a   : > { %v2722_v5 = vadd.f32 1e-05, %v2706_v1 }
 0xa6b   : > { %4397 = vrsqrt.f32 %v2723_v40  ;;  %v2770_v56 = vmul.f32 %v5849_v16, %v2746_v3  ;;  %v2794_v43 = vadd.f32 %v5859_v54, %v2771_v6 }
 0xa6c   : > { %v4386_v47 = vpop.eup %4385  ;;  %4399 = vrsqrt.f32 %v2722_v5  ;;  %v2685_v30 = vpop.xlane.xlu1 %2684 }
 0xa6d   : > { %v4388_v52 = vpop.eup %4387  ;;  %v2709_v50 = vmul.f32 0.03125, %v2685_v30  ;;  %v2793_v18 = vadd.f32 %v5859_v54, %v2770_v56  ;;  %v2749_v58 = vmul.f32 %v4386_v47, %v5747_v20 }
 0xa6e   : > { %v2682_v48 = vpop.xlane.xlu0 %2681  ;;  %v2748_v57 = vmul.f32 %v4388_v52, %v5751_v45 }
 0xa6f   : > { %v2725_v10 = vadd.f32 1e-05, %v2709_v50  ;;  %v2708_v42 = vmul.f32 0.03125, %v2682_v48  ;;  %4095 = vmatprep.mubr.msk.f32.mxu0 %vm540_vm0, %v2793_v18  ;;  %v2773_v11 = vmul.f32 %v5849_v16, %v2749_v58 }
 0xa70   : > { %v4390_v14 = vpop.eup %4389  ;;  %4096 = vmatmul.mubr.msk.f32.vlgmr.msra.gmra.mxu0 %vm540_vm0, %v2794_v43  ;;  %v2772_v49 = vmul.f32 %v5849_v16, %v2748_v57 }
 0xa71   : > { %v4392_v62 = vpop.eup %4391  ;;  %4401 = vrsqrt.f32 %v2725_v10  ;;  %v2724_v29 = vadd.f32 1e-05, %v2708_v42  ;;  %v2691_v20 = vpop.xlane.xlu1 %2690  ;;  %v2796_v22 = vadd.f32 %v5859_v54, %v2773_v11  ;;  %v2751_v33 = vmul.f32 %v4390_v14, %v5758_v44 }
 0xa72   : > { %v2711_v45 = vmul.f32 0.03125, %v2691_v20  ;;  %v2795_v59 = vadd.f32 %v5859_v54, %v2772_v49  ;;  %v2750_v12 = vmul.f32 %v4392_v62, %v5762_v34 }
 0xa73   : > { %4403 = vrsqrt.f32 %v2724_v29  ;;  %v2688_v19 = vpop.xlane.xlu0 %2687  ;;  %v2775_v46 = vmul.f32 %v5849_v16, %v2751_v33 }
 0xa74   : > { %v4394_v0 = vpop.eup %4393  ;;  %v2727_v37 = vadd.f32 1e-05, %v2711_v45  ;;  %v2710_v31 = vmul.f32 0.03125, %v2688_v19  ;;  %4098 = vmatprep.mubr.msk.f32.mxu0 %vm540_vm0, %v2795_v59  ;;  %v2774_v32 = vmul.f32 %v5849_v16, %v2750_v12 }
 0xa75   : > { %v4396_v1 = vpop.eup %4395  ;;  %v2697_v40 = vpop.xlane.xlu1 %2696  ;;  %4099 = vmatmul.mubr.msk.f32.gmra.mxu0 %vm540_vm0, %v2796_v22  ;;  %v2798_v44 = vadd.f32 %v5859_v54, %v2775_v46  ;;  %v2753_v3 = vmul.f32 %v4394_v0, %v5770_v4 }
 0xa76   : > { %4405 = vrsqrt.f32 %v2727_v37  ;;  %v2726_v34 = vadd.f32 1e-05, %v2710_v31  ;;  %v2713_v6 = vmul.f32 0.03125, %v2697_v40  ;;  %v2797_v5 = vadd.f32 %v5859_v54, %v2774_v32 }
 0xa77   : > { %v2694_v56 = vpop.xlane.xlu0 %2693  ;;  %v2752_v47 = vmul.f32 %v4396_v1, %v5774_v55  ;;  %v2777_v30 = vmul.f32 %v5849_v16, %v2753_v3 }
 0xa78   : > { %v4398_v52 = vpop.eup %4397  ;;  %4407 = vrsqrt.f32 %v2726_v34  ;;  %v2729_v50 = vadd.f32 1e-05, %v2713_v6  ;;  %v2712_v18 = vmul.f32 0.03125, %v2694_v56  ;;  %4101 = vmatprep.mubr.msk.f32.mxu0 %vm540_vm0, %v2797_v5  ;;  %v3168_v34 = vld [vmem:[%s6175_s12 + $0x58] sm:$0xff]  ;;  %v3167_v6 = vld [vmem:[%s6175_s12 + $0x50] sm:$0xff]  ;;  %v3166_v5 = vld [vmem:[%s6175_s12 + $0x48] sm:$0xff] }
 0xa79   : > { %v4400_v58 = vpop.eup %4399  ;;  %4102 = vmatmul.mubr.msk.f32.gmra.mxu0 %vm540_vm0, %v2798_v44  ;;  %v2776_v4 = vmul.f32 %v5849_v16, %v2752_v47  ;;  %v2755_v48 = vmul.f32 %v4398_v52, %v5782_v61  ;;  %v2800_v57 = vadd.f32 %v5859_v54, %v2777_v30  ;;  %v3165_v56 = vld [vmem:[%s6175_s12 + $0x40] sm:$0xff]  ;;  %v3164_v47 = vld [vmem:[%s6175_s12 + $0x38] sm:$0xff]  ;;  %v3163_v30 = vld [vmem:[%s6175_s12 + $0x30] sm:$0xff] }
 0xa7a   : > { %4409 = vrsqrt.f32 %v2729_v50  ;;  %v2728_v43 = vadd.f32 1e-05, %v2712_v18  ;;  %v2754_v55 = vmul.f32 %v4400_v58, %v5786_v23  ;;  %v3162_v52 = vld [vmem:[%s6175_s12 + $0x28] sm:$0xff]  ;;  %v3161_v50 = vld [vmem:[%s6175_s12 + $0x20] sm:$0xff]  ;;  %v3160_v18 = vld [vmem:[%s6175_s12 + $0x18] sm:$0xff] }
 0xa7b   : > { %v2799_v10 = vadd.f32 %v5859_v54, %v2776_v4  ;;  %v2779_v42 = vmul.f32 %v5849_v16, %v2755_v48  ;;  %v3159_v58 = vld [vmem:[%s6175_s12 + $0x10] sm:$0xff]  ;;  %v3158_v4 = vld [vmem:[%s6175_s12 + $0x8] sm:$0xff]  ;;  %v3157_v48 = vld [vmem:[%s6175_s12] sm:$0xff] }
 0xa7c   : > { %4411 = vrsqrt.f32 %v2728_v43  ;;  %v2778_v11 = vmul.f32 %v5849_v16, %v2754_v55  ;;  %v5972_v43 = vld [vmem:[%s6174_s11] ss:$0 sm:$0xff] }
 0xa7d   : > { %4104 = vmatprep.mubr.msk.f32.mxu0 %vm540_vm0, %v2799_v10  ;;  %v2802_v49 = vadd.f32 %v5859_v54, %v2779_v42 }
 0xa7e   : > { %v4402_v14 = vpop.eup %4401  ;;  %4105 = vmatmul.mubr.msk.f32.gmra.mxu0 %vm540_vm0, %v2800_v57  ;;  %v2801_v61 = vadd.f32 %v5859_v54, %v2778_v11 }
 0xa7f   : > { %v2757_v62 = vmul.f32 %v4402_v14, %v5796_v2 }
 0xa80   : > { %v4404_v29 = vpop.eup %4403  ;;  %4107 = vmatprep.mubr.msk.f32.mxu0 %vm540_vm0, %v2801_v61 }
 0xa81   : > { %v2756_v23 = vmul.f32 %v4404_v29, %v5799_v51  ;;  %v2781_v20 = vmul.f32 %v5849_v16, %v2757_v62 }
 0xa82   : > { %4108 = vmatmul.mubr.msk.f32.gmra.mxu0 %vm540_vm0, %v2802_v49 }
 0xa83   : > { %v4406_v22 = vpop.eup %4405  ;;  %v2780_v33 = vmul.f32 %v5849_v16, %v2756_v23  ;;  %v2804_v45 = vadd.f32 %v5859_v54, %v2781_v20 }
 0xa84   : > { %v2759_v59 = vmul.f32 %v4406_v22, %v5807_v9 }
 0xa85   : > { %v4408_v12 = vpop.eup %4407  ;;  %v2803_v19 = vadd.f32 %v5859_v54, %v2780_v33 }
 0xa86   : > { %v2758_v2 = vmul.f32 %v4408_v12, %v5811_v41  ;;  %v2783_v46 = vmul.f32 %v5849_v16, %v2759_v59 }
 0xa87   : > { %v4410_v0 = vpop.eup %4409  ;;  %4110 = vmatprep.mubr.msk.f32.mxu0 %vm540_vm0, %v2803_v19 }
 0xa88   : > { %4111 = vmatmul.mubr.msk.f32.gmra.mxu0 %vm540_vm0, %v2804_v45  ;;  %v2782_v51 = vmul.f32 %v5849_v16, %v2758_v2  ;;  %v2761_v37 = vmul.f32 %v4410_v0, %v5816_v8  ;;  %v2806_v32 = vadd.f32 %v5859_v54, %v2783_v46  ;;  %v3172_v8 = vld [vmem:[%s6175_s12 + $0x78] sm:$0xff] }
 0xa89   : > { %v4412_v31 = vpop.eup %4411  ;;  %4119 = vmatprep.subr.mxu1 %v3172_v8 }
 0xa8a   : > { %v2805_v9 = vadd.f32 %v5859_v54, %v2782_v51  ;;  %v2760_v1 = vmul.f32 %v4412_v31, %v5822_v28  ;;  %v2785_v41 = vmul.f32 %v5849_v16, %v2761_v37  ;;  %4120 = vmatpush3.msra.mxu1 %v3172_v8  ;;  %v3171_v28 = vld [vmem:[%s6175_s12 + $0x70] sm:$0xff] }
 0xa8b   : > { %4121 = vmatprep.subr.mxu1 %v3171_v28 }
 0xa8c   : > { %4113 = vmatprep.mubr.msk.f32.mxu0 %vm540_vm0, %v2805_v9  ;;  %v2784_v40 = vmul.f32 %v5849_v16, %v2760_v1  ;;  %v2808_v44 = vadd.f32 %v5859_v54, %v2785_v41  ;;  %4122 = vmatpush3.msra.mxu1 %v3171_v28  ;;  %v3170_v16 = vld [vmem:[%s6175_s12 + $0x68] sm:$0xff] }
 0xa8d   : > { %4114 = vmatmul.mubr.msk.f32.gmra.mxu0 %vm540_vm0, %v2806_v32  ;;  %4123 = vmatprep.subr.mxu1 %v3170_v16 }
 0xa8e   : > { %v2807_v3 = vadd.f32 %v5859_v54, %v2784_v40  ;;  %4124 = vmatpush3.msra.mxu1 %v3170_v16  ;;  %v3169_v54 = vld [vmem:[%s6175_s12 + $0x60] sm:$0xff] }
 0xa8f   : > { %4125 = vmatprep.subr.mxu1 %v3169_v54 }
 0xa90   : > { %4116 = vmatprep.mubr.msk.f32.mxu0 %vm540_vm0, %v2807_v3  ;;  %4126 = vmatpush3.msra.mxu1 %v3169_v54 }
 0xa91   : > { %4117 = vmatmul.mubr.msk.f32.gmra.mxu0 %vm540_vm0, %v2808_v44  ;;  %4127 = vmatprep.subr.mxu1 %v3168_v34 }
 0xa92   : > { %4128 = vmatpush3.msra.mxu1 %v3168_v34 }
 0xa93   : > { %4129 = vmatprep.subr.mxu1 %v3167_v6 }
 0xa94   : > { %4130 = vmatpush3.msra.mxu1 %v3167_v6 }
 0xa95   : > { %4131 = vmatprep.subr.mxu1 %v3166_v5 }
 0xa96   : > { %4132 = vmatpush3.msra.mxu1 %v3166_v5 }
 0xa97   : > { %4133 = vmatprep.subr.mxu1 %v3165_v56 }
 0xa98   : > { %4134 = vmatpush3.msra.mxu1 %v3165_v56 }
 0xa99   : > { %4135 = vmatprep.subr.mxu1 %v3164_v47 }
 0xa9a   : > { %4136 = vmatpush3.msra.mxu1 %v3164_v47 }
 0xa9b   : > { %4137 = vmatprep.subr.mxu1 %v3163_v30 }
 0xa9c   : > { %4138 = vmatpush3.msra.mxu1 %v3163_v30 }
 0xa9d   : > { %4139 = vmatprep.subr.mxu1 %v3162_v52 }
 0xa9e   : > { %4140 = vmatpush3.msra.mxu1 %v3162_v52 }
 0xa9f   : > { %4141 = vmatprep.subr.mxu1 %v3161_v50 }
 0xaa0   : > { %4142 = vmatpush3.msra.mxu1 %v3161_v50 }
 0xaa1   : > { %4143 = vmatprep.subr.mxu1 %v3160_v18 }
 0xaa2   : > { %4144 = vmatpush3.msra.mxu1 %v3160_v18 }
 0xaa3   : > { %4145 = vmatprep.subr.mxu1 %v3159_v58 }
 0xaa4   : > { %4146 = vmatpush3.msra.mxu1 %v3159_v58 }
 0xaa5   : > { %4147 = vmatprep.subr.mxu1 %v3158_v4 }
 0xaa6   : > { %4148 = vmatpush3.msra.mxu1 %v3158_v4 }
 0xaa7   : > { %4149 = vmatprep.subr.mxu1 %v3157_v48 }
 0xaa8   : > { %4150 = vmatpush3.msra.mxu1 %v3157_v48 }
 0xb30   : > { %v4097_v57 = vpop.f32.mrf.mxu0 }
 0xb31   : > { %v5975_v55 = vadd.f32 %v4097_v57, %v5972_v43 }
 0xb32   : > { %v2934_v10 = vpop.f32.mrf.mxu0 }
 0xb33   : > { %v3014_v42 = vmul.f32 %v5975_v55, %v5975_v55  ;;  %v5980_v11 = vadd.f32 %v5972_v43, %v2934_v10 }
 0xb35   : > { %v3030_v14 = vmul.f32 %v3014_v42, %v5975_v55  ;;  %v3013_v61 = vmul.f32 %v5980_v11, %v5980_v11  ;;  %v4100_v49 = vpop.f32.mrf.mxu0 }
 0xb36   : > { %v5986_v62 = vadd.f32 %v4100_v49, %v5972_v43 }
 0xb37   : > { %v3046_v29 = vmul.f32 0.044715, %v3030_v14  ;;  %v3029_v23 = vmul.f32 %v3013_v61, %v5980_v11  ;;  %v2944_v20 = vpop.f32.mrf.mxu0 }
 0xb38   : > { %v3016_v22 = vmul.f32 %v5986_v62, %v5986_v62  ;;  %v5992_v33 = vadd.f32 %v5972_v43, %v2944_v20 }
 0xb39   : > { %v3062_v45 = vadd.f32 %v3046_v29, %v5975_v55  ;;  %v3045_v59 = vmul.f32 0.044715, %v3029_v23  ;;  %v4103_v12 = vpop.f32.mrf.mxu0 }
 0xb3a   : > { %v3032_v19 = vmul.f32 %v3016_v22, %v5986_v62  ;;  %v3015_v2 = vmul.f32 %v5992_v33, %v5992_v33  ;;  %v5999_v46 = vadd.f32 %v4103_v12, %v5972_v43 }
 0xb3b   : > { %v3078_v0 = vmul.f32 0.7978846, %v3062_v45  ;;  %v3061_v51 = vadd.f32 %v3045_v59, %v5980_v11  ;;  %v2954_v37 = vpop.f32.mrf.mxu0 }
 0xb3c   : > { %v3048_v31 = vmul.f32 0.044715, %v3032_v19  ;;  %v3031_v32 = vmul.f32 %v3015_v2, %v5992_v33  ;;  %v3018_v9 = vmul.f32 %v5999_v46, %v5999_v46  ;;  %v6006_v1 = vadd.f32 %v5972_v43, %v2954_v37 }
 0xb3d   : > { %4413 = vtanh.f32 %v3078_v0  ;;  %v3077_v41 = vmul.f32 0.7978846, %v3061_v51 }
 0xb3e   : > { %v3064_v40 = vadd.f32 %v3048_v31, %v5986_v62  ;;  %v3047_v44 = vmul.f32 0.044715, %v3031_v32  ;;  %v3034_v3 = vmul.f32 %v3018_v9, %v5999_v46  ;;  %v3017_v8 = vmul.f32 %v6006_v1, %v6006_v1  ;;  %v4106_v28 = vpop.f32.mrf.mxu0 }
 0xb3f   : > { %4415 = vtanh.f32 %v3077_v41  ;;  %v6013_v16 = vadd.f32 %v4106_v28, %v5972_v43 }
 0xb40   : > { %v3080_v54 = vmul.f32 0.7978846, %v3064_v40  ;;  %v3063_v34 = vadd.f32 %v3047_v44, %v5992_v33  ;;  %v3050_v6 = vmul.f32 0.044715, %v3034_v3  ;;  %v3033_v5 = vmul.f32 %v3017_v8, %v6006_v1  ;;  %v2964_v56 = vpop.f32.mrf.mxu0 }
 0xb41   : > { %v3020_v47 = vmul.f32 %v6013_v16, %v6013_v16  ;;  %v6020_v30 = vadd.f32 %v5972_v43, %v2964_v56 }
 0xb42   : > { %4417 = vtanh.f32 %v3080_v54  ;;  %v3079_v52 = vmul.f32 0.7978846, %v3063_v34  ;;  %v3066_v50 = vadd.f32 %v3050_v6, %v5999_v46  ;;  %v3049_v18 = vmul.f32 0.044715, %v3033_v5  ;;  %v4109_v58 = vpop.f32.mrf.mxu0 }
 0xb43   : > { %v3036_v4 = vmul.f32 %v3020_v47, %v6013_v16  ;;  %v3019_v48 = vmul.f32 %v6020_v30, %v6020_v30  ;;  %v6027_v57 = vadd.f32 %v4109_v58, %v5972_v43 }
 0xb44   : > { %4419 = vtanh.f32 %v3079_v52  ;;  %v3082_v10 = vmul.f32 0.7978846, %v3066_v50  ;;  %v3065_v42 = vadd.f32 %v3049_v18, %v6006_v1  ;;  %v2974_v14 = vpop.f32.mrf.mxu0 }
 0xb45   : > { %v3052_v61 = vmul.f32 0.044715, %v3036_v4  ;;  %v3035_v49 = vmul.f32 %v3019_v48, %v6020_v30  ;;  %v3022_v29 = vmul.f32 %v6027_v57, %v6027_v57  ;;  %v6034_v23 = vadd.f32 %v5972_v43, %v2974_v14 }
 0xb46   : > { %4421 = vtanh.f32 %v3082_v10  ;;  %v3081_v20 = vmul.f32 0.7978846, %v3065_v42 }
 0xb47   : > { %v3068_v22 = vadd.f32 %v3052_v61, %v6013_v16  ;;  %v3051_v45 = vmul.f32 0.044715, %v3035_v49  ;;  %v3038_v59 = vmul.f32 %v3022_v29, %v6027_v57  ;;  %v3021_v12 = vmul.f32 %v6034_v23, %v6034_v23 }
 0xb48   : > { %4423 = vtanh.f32 %v3081_v20  ;;  %v4112_v19 = vpop.f32.mrf.mxu0 }
 0xb49   : > { %v3084_v2 = vmul.f32 0.7978846, %v3068_v22  ;;  %v3067_v0 = vadd.f32 %v3051_v45, %v6020_v30  ;;  %v3054_v51 = vmul.f32 0.044715, %v3038_v59  ;;  %v3037_v37 = vmul.f32 %v3021_v12, %v6034_v23 }
 0xb4a   : > { %v4414_v31 = vpop.eup %4413  ;;  %v6043_v32 = vadd.f32 %v4112_v19, %v5972_v43  ;;  %v2984_v9 = vpop.f32.mrf.mxu0 }
 0xb4b   : > { %v3110_v41 = vadd.f32 1.0, %v4414_v31  ;;  %4425 = vtanh.f32 %v3084_v2  ;;  %v3083_v40 = vmul.f32 0.7978846, %v3067_v0  ;;  %v3070_v44 = vadd.f32 %v3054_v51, %v6027_v57 }
 0xb4c   : > { %v4416_v3 = vpop.eup %4415  ;;  %v3053_v8 = vmul.f32 0.044715, %v3037_v37  ;;  %v3024_v28 = vmul.f32 %v6043_v32, %v6043_v32  ;;  %v6049_v54 = vadd.f32 %v5972_v43, %v2984_v9 }
 0xb4d   : > { %v3126_v34 = vmul.f32 0.5, %v3110_v41  ;;  %4427 = vtanh.f32 %v3083_v40  ;;  %v3086_v6 = vmul.f32 0.7978846, %v3070_v44  ;;  %v4115_v5 = vpop.f32.mrf.mxu0  ;;  %v3109_v56 = vadd.f32 1.0, %v4416_v3 }
 0xb4e   : > { %v3069_v47 = vadd.f32 %v3053_v8, %v6034_v23  ;;  %v3040_v52 = vmul.f32 %v3024_v28, %v6043_v32  ;;  %v3023_v50 = vmul.f32 %v6049_v54, %v6049_v54  ;;  %v6056_v18 = vadd.f32 %v4115_v5, %v5972_v43 }
 0xb4f   : > { %v4418_v58 = vpop.eup %4417  ;;  %4429 = vtanh.f32 %v3086_v6  ;;  %v2994_v4 = vpop.f32.mrf.mxu0  ;;  %v3125_v48 = vmul.f32 0.5, %v3109_v56  ;;  %v3142_v29 = vmul.f32 %v3126_v34, %v5975_v55 }
 0xb50   : > { %v3085_v10 = vmul.f32 0.7978846, %v3069_v47  ;;  %v3056_v42 = vmul.f32 0.044715, %v3040_v52  ;;  %v3039_v14 = vmul.f32 %v3023_v50, %v6049_v54  ;;  %v3026_v61 = vmul.f32 %v6056_v18, %v6056_v18 }
 0xb51   : > { %v4420_v49 = vpop.eup %4419  ;;  %v6063_v20 = vadd.f32 %v5972_v43, %v2994_v4  ;;  %v4118_v22 = vpop.f32.mrf.mxu0  ;;  %v3141_v45 = vmul.f32 %v3125_v48, %v5980_v11  ;;  %v3112_v59 = vadd.f32 1.0, %v4418_v58 }
 0xb52   : > { %4431 = vtanh.f32 %v3085_v10  ;;  %v3072_v12 = vadd.f32 %v3056_v42, %v6043_v32  ;;  %v3055_v19 = vmul.f32 0.044715, %v3039_v14  ;;  %v3042_v2 = vmul.f32 %v3026_v61, %v6056_v18 }
 0xb53   : > { %v4422_v0 = vpop.eup %4421  ;;  %v3025_v51 = vmul.f32 %v6063_v20, %v6063_v20  ;;  %v6071_v37 = vadd.f32 %v4118_v22, %v5972_v43  ;;  %v3004_v55 = vpop.f32.mrf.mxu0  ;;  %4151 = vmatprep.mubr.f32.mxu1 %v3141_v45  ;;  %v3111_v31 = vadd.f32 1.0, %v4420_v49  ;;  %v3128_v9 = vmul.f32 0.5, %v3112_v59 }
 0xb54   : > { %v3088_v41 = vmul.f32 0.7978846, %v3072_v12  ;;  %v3071_v11 = vadd.f32 %v3055_v19, %v6049_v54  ;;  %v3058_v40 = vmul.f32 0.044715, %v3042_v2  ;;  %v6075_v44 = vadd.f32 %v5972_v43, %v3004_v55  ;;  %4152 = vmatmul.mubr.f32.vlgmr.msra.gmra.mxu1 %v3142_v29 }
 0xb55   : > { %v4424_v3 = vpop.eup %4423  ;;  %v3041_v8 = vmul.f32 %v3025_v51, %v6063_v20  ;;  %v3028_v28 = vmul.f32 %v6071_v37, %v6071_v37  ;;  %v3127_v34 = vmul.f32 0.5, %v3111_v31  ;;  %v3144_v6 = vmul.f32 %v3128_v9, %v5986_v62 }
 0xb56   : > { %4433 = vtanh.f32 %v3088_v41  ;;  %v3087_v5 = vmul.f32 0.7978846, %v3071_v11  ;;  %v3074_v56 = vadd.f32 %v3058_v40, %v6056_v18  ;;  %v3027_v47 = vmul.f32 %v6075_v44, %v6075_v44 }
 0xb57   : > { %v3057_v52 = vmul.f32 0.044715, %v3041_v8  ;;  %v3044_v43 = vmul.f32 %v3028_v28, %v6071_v37  ;;  %v3143_v50 = vmul.f32 %v3127_v34, %v5992_v33  ;;  %v3113_v58 = vadd.f32 1.0, %v4424_v3 }
 0xb58   : > { %v4426_v4 = vpop.eup %4425  ;;  %4435 = vtanh.f32 %v3087_v5  ;;  %v3090_v48 = vmul.f32 0.7978846, %v3074_v56  ;;  %v3043_v10 = vmul.f32 %v3027_v47, %v6075_v44  ;;  %v3114_v42 = vadd.f32 1.0, %v4422_v0 }
 0xb59   : > { %v3073_v62 = vadd.f32 %v3057_v52, %v6063_v20  ;;  %v3060_v14 = vmul.f32 0.044715, %v3044_v43  ;;  %4154 = vmatprep.mubr.f32.mxu1 %v3143_v50  ;;  %v3129_v61 = vmul.f32 0.5, %v3113_v58  ;;  %v3116_v49 = vadd.f32 1.0, %v4426_v4 }
 0xb5a   : > { %v4428_v29 = vpop.eup %4427  ;;  %4437 = vtanh.f32 %v3090_v48  ;;  %v3059_v22 = vmul.f32 0.044715, %v3043_v10  ;;  %4155 = vmatmul.mubr.f32.gmra.mxu1 %v3144_v6  ;;  %v3130_v45 = vmul.f32 0.5, %v3114_v42 }
 0xb5b   : > { %v3089_v59 = vmul.f32 0.7978846, %v3073_v62  ;;  %v3076_v33 = vadd.f32 %v3060_v14, %v6071_v37  ;;  %v3145_v12 = vmul.f32 %v3129_v61, %v6006_v1  ;;  %v3115_v19 = vadd.f32 1.0, %v4428_v29 }
 0xb5c   : > { %v4430_v2 = vpop.eup %4429  ;;  %v3075_v0 = vadd.f32 %v3059_v22, %v6075_v44  ;;  %v3146_v51 = vmul.f32 %v3130_v45, %v5999_v46  ;;  %v3132_v55 = vmul.f32 0.5, %v3116_v49 }
 0xb5d   : > { %4439 = vtanh.f32 %v3089_v59  ;;  %v3092_v31 = vmul.f32 0.7978846, %v3076_v33  ;;  %4157 = vmatprep.mubr.f32.mxu1 %v3145_v12  ;;  %v3131_v9 = vmul.f32 0.5, %v3115_v19  ;;  %v3118_v41 = vadd.f32 1.0, %v4430_v2  ;;  %v3574_v59 = vld [vmem:[%s6176_s13] ss:$0 sm:$0xff] }
 0xb5e   : > { %v3091_v11 = vmul.f32 0.7978846, %v3075_v0  ;;  %4158 = vmatmul.mubr.f32.gmra.mxu1 %v3146_v51  ;;  %v3148_v1 = vmul.f32 %v3132_v55, %v6013_v16 }
 0xb5f   : > { %v4432_v40 = vpop.eup %4431  ;;  %4441 = vtanh.f32 %v3092_v31  ;;  %v3147_v3 = vmul.f32 %v3131_v9, %v6020_v30  ;;  %v3134_v28 = vmul.f32 0.5, %v3118_v41 }
 0xb60   : > { %4443 = vtanh.f32 %v3091_v11  ;;  %v3117_v8 = vadd.f32 1.0, %v4432_v40 }
 0xb61   : > { %4160 = vmatprep.mubr.f32.mxu1 %v3147_v3  ;;  %v3150_v47 = vmul.f32 %v3134_v28, %v6027_v57 }
 0xb62   : > { %4161 = vmatmul.mubr.f32.gmra.mxu1 %v3148_v1  ;;  %v3133_v46 = vmul.f32 0.5, %v3117_v8 }
 0xb63   : > { %v4434_v34 = vpop.eup %4433 }
 0xb64   : > { %v3149_v6 = vmul.f32 %v3133_v46, %v6034_v23  ;;  %v3120_v5 = vadd.f32 1.0, %v4434_v34 }
 0xb65   : > { %v4436_v56 = vpop.eup %4435 }
 0xb66   : > { %4163 = vmatprep.mubr.f32.mxu1 %v3149_v6  ;;  %v3119_v52 = vadd.f32 1.0, %v4436_v56  ;;  %v3136_v30 = vmul.f32 0.5, %v3120_v5 }
 0xb67   : > { %v4438_v43 = vpop.eup %4437  ;;  %4164 = vmatmul.mubr.f32.gmra.mxu1 %v3150_v47 }
 0xb68   : > { %v3135_v50 = vmul.f32 0.5, %v3119_v52  ;;  %v3122_v58 = vadd.f32 1.0, %v4438_v43  ;;  %v3152_v48 = vmul.f32 %v3136_v30, %v6043_v32 }
 0xb6a   : > { %v4440_v16 = vpop.eup %4439  ;;  %v3151_v4 = vmul.f32 %v3135_v50, %v6049_v54  ;;  %v3138_v23 = vmul.f32 0.5, %v3122_v58 }
 0xb6b   : > { %v3121_v10 = vadd.f32 1.0, %v4440_v16 }
 0xb6c   : > { %v4442_v42 = vpop.eup %4441  ;;  %4166 = vmatprep.mubr.f32.mxu1 %v3151_v4  ;;  %v3154_v29 = vmul.f32 %v3138_v23, %v6056_v18 }
 0xb6d   : > { %v4444_v62 = vpop.eup %4443  ;;  %4167 = vmatmul.mubr.f32.gmra.mxu1 %v3152_v48  ;;  %v3137_v14 = vmul.f32 0.5, %v3121_v10  ;;  %v3124_v57 = vadd.f32 1.0, %v4442_v42 }
 0xb6e   : > { %v3123_v61 = vadd.f32 1.0, %v4444_v62 }
 0xb6f   : > { %v3153_v49 = vmul.f32 %v3137_v14, %v6063_v20  ;;  %v3140_v45 = vmul.f32 0.5, %v3124_v57 }
 0xb70   : > { %v3139_v22 = vmul.f32 0.5, %v3123_v61 }
 0xb71   : > { %4169 = vmatprep.mubr.f32.mxu1 %v3153_v49  ;;  %v3156_v54 = vmul.f32 %v3140_v45, %v6071_v37 }
 0xb72   : > { %4170 = vmatmul.mubr.f32.gmra.mxu1 %v3154_v29  ;;  %v3155_v32 = vmul.f32 %v3139_v22, %v6075_v44 }
 0xb74   : > { %4172 = vmatprep.mubr.f32.mxu1 %v3155_v32 }
 0xb76   : > { %4173 = vmatmul.mubr.f32.gmra.mxu1 %v3156_v54 }
 0xc14   : > { %v4153_v33 = vpop.f32.mrf.mxu1 }
 0xc15   : > { %v3252_v12 = vadd.f32 %v4153_v33, %v3574_v59 }
 0xc16   : > { %v3246_v18 = vpop.f32.mrf.mxu1 }
 0xc17   : > { %v3326_v20 = vadd.f32 %v3252_v12, %v5641_v35  ;;  %v3247_v37 = vadd.f32 %v3574_v59, %v3246_v18 }
 0xc19   : > { %3342 = vst.msk [vmem:[%s6110_s18 + $0x8] sm:$0xff] %vm540_vm0, %v3326_v20  ;;  %v3325_v44 = vadd.f32 %v3247_v37, %v5645_v53 }
 0xc1a   : > { %v4156_v19 = vpop.f32.mrf.mxu1 }
 0xc1b   : > { %3341 = vst.msk [vmem:[%s6110_s18] sm:$0xff] %vm540_vm0, %v3325_v44  ;;  %v3262_v2 = vadd.f32 %v4156_v19, %v3574_v59 }
 0xc1c   : > { %v3256_v0 = vpop.f32.mrf.mxu1 }
 0xc1d   : > { %v3328_v51 = vadd.f32 %v3262_v2, %v5653_v36  ;;  %v3257_v55 = vadd.f32 %v3574_v59, %v3256_v0 }
 0xc1e   : > { %v4159_v31 = vpop.f32.mrf.mxu1 }
 0xc1f   : > { %3344 = vst.msk [vmem:[%s6110_s18 + $0x18] sm:$0xff] %vm540_vm0, %v3328_v51  ;;  %v3327_v35 = vadd.f32 %v3257_v55, %v5657_v38  ;;  %v3272_v9 = vadd.f32 %v4159_v31, %v3574_v59 }
 0xc20   : > { %v3266_v41 = vpop.f32.mrf.mxu1 }
 0xc21   : > { %3343 = vst.msk [vmem:[%s6110_s18 + $0x10] sm:$0xff] %vm540_vm0, %v3327_v35  ;;  %v3330_v53 = vadd.f32 %v3272_v9, %v5663_v21  ;;  %v3267_v11 = vadd.f32 %v3574_v59, %v3266_v41 }
 0xc22   : > { %v4162_v40 = vpop.f32.mrf.mxu1 }
 0xc23   : > { %3346 = vst.msk [vmem:[%s6110_s18 + $0x28] sm:$0xff] %vm540_vm0, %v3330_v53  ;;  %v3329_v36 = vadd.f32 %v3267_v11, %v5669_v25  ;;  %v3282_v3 = vadd.f32 %v4162_v40, %v3574_v59 }
 0xc24   : > { %v3276_v1 = vpop.f32.mrf.mxu1 }
 0xc25   : > { %3345 = vst.msk [vmem:[%s6110_s18 + $0x20] sm:$0xff] %vm540_vm0, %v3329_v36  ;;  %v3332_v38 = vadd.f32 %v3282_v3, %v5675_v26  ;;  %v3277_v8 = vadd.f32 %v3574_v59, %v3276_v1 }
 0xc27   : > { %3348 = vst.msk [vmem:[%s6110_s18 + $0x38] sm:$0xff] %vm540_vm0, %v3332_v38  ;;  %v3331_v21 = vadd.f32 %v3277_v8, %v5681_v7  ;;  %v4165_v28 = vpop.f32.mrf.mxu1 }
 0xc28   : > { %v3292_v46 = vadd.f32 %v4165_v28, %v3574_v59 }
 0xc29   : > { %3347 = vst.msk [vmem:[%s6110_s18 + $0x30] sm:$0xff] %vm540_vm0, %v3331_v21  ;;  %v3286_v34 = vpop.f32.mrf.mxu1 }
 0xc2a   : > { %v3334_v25 = vadd.f32 %v3292_v46, %v5687_v13  ;;  %v3287_v6 = vadd.f32 %v3574_v59, %v3286_v34 }
 0xc2c   : > { %3350 = vst.msk [vmem:[%s6110_s18 + $0x48] sm:$0xff] %vm540_vm0, %v3334_v25  ;;  %v3333_v5 = vadd.f32 %v3287_v6, %v5693_v63 }
 0xc2d   : > { %v4168_v26 = vpop.f32.mrf.mxu1 }
 0xc2e   : > { %3349 = vst.msk [vmem:[%s6110_s18 + $0x40] sm:$0xff] %vm540_vm0, %v3333_v5  ;;  %v3302_v56 = vadd.f32 %v4168_v26, %v3574_v59 }
 0xc2f   : > { %v3296_v47 = vpop.f32.mrf.mxu1 }
 0xc30   : > { %v3336_v7 = vadd.f32 %v3302_v56, %v5701_v39  ;;  %v3297_v52 = vadd.f32 %v3574_v59, %v3296_v47 }
 0xc32   : > { %3352 = vst.msk [vmem:[%s6110_s18 + $0x58] sm:$0xff] %vm540_vm0, %v3336_v7  ;;  %v3335_v13 = vadd.f32 %v3297_v52, %v5705_v60  ;;  %v4171_v43 = vpop.f32.mrf.mxu1 }
 0xc33   : > { %v3312_v30 = vadd.f32 %v4171_v43, %v3574_v59 }
 0xc34   : > { %3351 = vst.msk [vmem:[%s6110_s18 + $0x50] sm:$0xff] %vm540_vm0, %v3335_v13  ;;  %v3306_v63 = vpop.f32.mrf.mxu1 }
 0xc35   : > { %v3338_v50 = vadd.f32 %v3312_v30, %v5713_v15  ;;  %v3307_v58 = vadd.f32 %v3574_v59, %v3306_v63 }
 0xc36   : > { %v4174_v16 = vpop.f32.mrf.mxu1 }
 0xc37   : > { %3354 = vst.msk [vmem:[%s6110_s18 + $0x68] sm:$0xff] %vm540_vm0, %v3338_v50  ;;  %v3337_v39 = vadd.f32 %v3307_v58, %v5717_v17  ;;  %v3322_v4 = vadd.f32 %v4174_v16, %v3574_v59 }
 0xc38   : > { %v3316_v48 = vpop.f32.mrf.mxu1 }
 0xc39   : > { %3353 = vst.msk [vmem:[%s6110_s18 + $0x60] sm:$0xff] %vm540_vm0, %v3337_v39  ;;  %v3340_v60 = vadd.f32 %v3322_v4, %v5723_v24  ;;  %v3317_v10 = vadd.f32 %v3574_v59, %v3316_v48 }
 0xc3b   : > { %3356 = vst.msk [vmem:[%s6110_s18 + $0x78] sm:$0xff] %vm540_vm0, %v3340_v60  ;;  %v3339_v42 = vadd.f32 %v3317_v10, %v5729_v27 }
 0xc3d   : > { %3355 = vst.msk [vmem:[%s6110_s18 + $0x70] sm:$0xff] %vm540_vm0, %v3339_v42 }
 0xc3e PF: > { %s24_s29 = sadd.s32 1, %s4467_s29  }
 0xc3f   : > { %p21_p4 = scmp.ge.s32.totalorder %s24_s29, 4  }
 0xc41   :  { %23 = sbr.rel (!%p21_p4) target bundleno = 1 (0x1), region = 118 }

// kernel: _lambda_.15
= control target key start
LH: loop header
LB: loop body
LE: loop exit
PB: predicated region body
PF: predicated region fallthrough
CT: control target
= control target key end

     0   :  { %s3030_s29 = smov 0   ;;  %s3837_s0 = inlined_call_operand.vmem [shape: f32[2,32,64], index: 0, kind: input, shape index: {}]   ;;  %s3838_s1 = inlined_call_operand.vmem [shape: f32[32,32], index: 1, kind: input, shape index: {}]   ;;  %s3839_s2 = inlined_call_operand.vmem [shape: f32[2,1,64], index: 2, kind: input, shape index: {}]   ;;  %s3840_s3 = inlined_call_operand.vmem [shape: f32[2,1,64], index: 3, kind: input, shape index: {}]   ;;  %s3841_s4 = inlined_call_operand.vmem [shape: f32[2,1,64], index: 4, kind: input, shape index: {}]   ;;  %s3842_s5 = inlined_call_operand.vmem [shape: f32[2,1,64], index: 5, kind: input, shape index: {}]   ;;  %s3843_s6 = inlined_call_operand.vmem [shape: f32[64,192], index: 6, kind: input, shape index: {}]   ;;  %s3844_s7 = inlined_call_operand.vmem [shape: f32[1,192], index: 7, kind: input, shape index: {}]   ;;  %s3845_s8 = inlined_call_operand.vmem [shape: f32[64,64], index: 8, kind: input, shape index: {}]   ;;  %s3846_s9 = inlined_call_operand.vmem [shape: f32[1,64], index: 9, kind: input, shape index: {}]   ;;  %s3847_s10 = inlined_call_operand.vmem [shape: f32[64,256], index: 10, kind: input, shape index: {}]   ;;  %s3848_s11 = inlined_call_operand.vmem [shape: f32[1,256], index: 11, kind: input, shape index: {}]   ;;  %s3849_s12 = inlined_call_operand.vmem [shape: f32[256,64], index: 12, kind: input, shape index: {}]   ;;  %s3850_s13 = inlined_call_operand.vmem [shape: f32[1,64], index: 13, kind: input, shape index: {}]   ;;  %s3851_s14 = inlined_call_operand.vmem [shape: f32[2,32,64], index: 14, kind: output, shape index: {}]  }
   0x1 LB: > { %s2492_s30 = sadd.s32 4294967295, %s2945_s29   ;;  %p2496_p0 = scmp.ge.s32.totalorder %s2945_s29, 1  ;;  %s2945_s29 = sphi %s3030_s29, %s24_s29  }
   0x2   : > { %p444_p1 = scmp.lt.s32.totalorder %s2945_s29, 3 }
   0x4   : > { %p445_p2 = pnand %p2496_p0, %p444_p1 }
   0x5   : > { %p502_p3 = scmp.lt.s32.totalorder (!%p445_p2), %s2492_s30, 1  ;;  %s2948_s23 = smov (!%p445_p2), 64  }
   0x6   : > { %448 = sbr.rel (%p445_p2) target bundleno = 3033 (0xbd9), region = 76  ;;  %s2949_s24 = smov (!%p445_p2), 48  }
   0x7   : > { %s2950_s25 = smov (!%p445_p2), 112   ;;  %s2951_s26 = smov (!%p445_p2), 32  }
   0x8   : > { %s2952_s27 = smov (!%p445_p2), 96  }
   0xb   : > { %s3853_s30 = smov (!%p502_p3, %s2492_s30), 1  ;;  %vm528_vm0 = vcmask 523264   ;;  %v620_v28 = vld [vmem:[%s3843_s6 + $0x78] sm:$0xff]  ;;  %v619_v29 = vld [vmem:[%s3843_s6 + $0x70] sm:$0xff]  ;;  %v618_v30 = vld [vmem:[%s3843_s6 + $0x68] sm:$0xff]  ;;  %v2947_v36 = vmov 0.0   ;;  %v585_v52 = vlaneseq }
   0xc   : > { %s2567_s15 = sshll.u32 %s3853_s30, 5  ;;  %661 = vmatprep.subr.mxu1 %v620_v28  ;;  %v617_v31 = vld [vmem:[%s3843_s6 + $0x60] sm:$0xff]  ;;  %v616_v32 = vld [vmem:[%s3843_s6 + $0x58] sm:$0xff]  ;;  %v615_v33 = vld [vmem:[%s3843_s6 + $0x50] sm:$0xff]  ;;  %709 = vmatprep.mubr.f32.mxu1 %v2947_v36  ;;  %s512_s16 = scalar_lea.vmem %s3840_s3, %s3853_s30  ;;  %vm754_vm1 = vcmask 130048   ;;  %vm860_vm2 = vcmask 261120  }
   0xd   : > { %s3046_s18 = scalar_lea.vmem %s3837_s0, %s2567_s15  ;;  %662 = vmatpush1.msra.mxu1 %v619_v29  ;;  %v614_v34 = vld [vmem:[%s3843_s6 + $0x48] sm:$0xff]  ;;  %v613_v35 = vld [vmem:[%s3843_s6 + $0x40] sm:$0xff]  ;;  %v612_v37 = vld [vmem:[%s3843_s6 + $0x38] sm:$0xff]  ;;  %v3129_v57 = vshrl.u32 %v585_v52, 7  ;;  %s509_s20 = scalar_lea.vmem %s3839_s2, %s3853_s30  ;;  %vm1872_vm3 = vcmask 392192  }
   0xe   : > { %v524_v0 = vld [vmem:[%s3046_s18] sm:$0xff]  ;;  %v526_v1 = vld [vmem:[%s3046_s18 + $0x10] sm:$0xff]  ;;  %v525_v2 = vld [vmem:[%s3046_s18 + $0x8] sm:$0xff]  ;;  %663 = vmatprep.subr.mxu1 %v618_v30  ;;  %s518_s19 = scalar_lea.vmem %s3842_s5, %s3853_s30 }
   0xf   : > { %v529_v3 = vsel %vm528_vm0, %v524_v0, 0.0  ;;  %v535_v4 = vsel %vm528_vm0, %v526_v1, 0.0  ;;  %v527_v5 = vld [vmem:[%s3046_s18 + $0x18] sm:$0xff]  ;;  %v532_v6 = vsel %vm528_vm0, %v525_v2, 0.0  ;;  %664 = vmatpush1.msra.mxu1 %v617_v31  ;;  %v611_v38 = vld [vmem:[%s3843_s6 + $0x30] sm:$0xff]  ;;  %v610_v39 = vld [vmem:[%s3843_s6 + $0x28] sm:$0xff] }
  0x10   : > { %530 = vadd.xlane.f32.xlu0 %v529_v3  ;;  %536 = vadd.xlane.f32.xlu1 %v535_v4  ;;  %v538_v7 = vsel %vm528_vm0, %v527_v5, 0.0  ;;  %v609_v40 = vld [vmem:[%s3843_s6 + $0x20] sm:$0xff]  ;;  %v608_v41 = vld [vmem:[%s3843_s6 + $0x18] sm:$0xff]  ;;  %v607_v42 = vld [vmem:[%s3843_s6 + $0x10] sm:$0xff]  ;;  %v3132_v61 = vsub.s32 0, %v3129_v57 }
  0x11   : > { %665 = vmatprep.subr.mxu1 %v616_v32  ;;  %v606_v43 = vld [vmem:[%s3843_s6 + $0x8] sm:$0xff]  ;;  %v605_v44 = vld [vmem:[%s3843_s6] sm:$0xff] }
  0x12   : > { %666 = vmatpush1.msra.mxu1 %v615_v33  ;;  %v582_v58 = vld [vmem:[%s512_s16] sm:$0x1]  ;;  %v629_v33 = vsub.s32 1, %v3129_v57 }
  0x13   : > { %667 = vmatprep.subr.mxu1 %v614_v34  ;;  %v583_v60 = vadd.f32 1.0, %v582_v58 }
  0x14   : > { %533 = vadd.xlane.f32.xlu0 %v532_v6  ;;  %539 = vadd.xlane.f32.xlu1 %v538_v7 }
  0x15   : > { %668 = vmatpush1.msra.mxu1 %v613_v35  ;;  %v588_v62 = vrot.slane %v583_v60, %v3132_v61 }
  0x16   : > { %669 = vmatprep.subr.mxu1 %v612_v37 }
  0x17   : > { %670 = vmatpush1.msra.mxu1 %v611_v38 }
  0x18   : > { %671 = vmatprep.subr.mxu1 %v610_v39 }
  0x19   : > { %672 = vmatpush1.msra.mxu1 %v609_v40 }
  0x1a   : > { %673 = vmatprep.subr.mxu1 %v608_v41 }
  0x1b   : > { %674 = vmatpush1.msra.mxu1 %v607_v42 }
  0x1c   : > { %675 = vmatprep.subr.mxu1 %v606_v43 }
  0x1d   : > { %676 = vmatpush1.msra.mxu1 %v605_v44 }
  0x99   : > { %v531_v8 = vpop.xlane.xlu0 %530  ;;  %v537_v9 = vpop.xlane.xlu1 %536 }
  0x9a   : > { %v542_v10 = vmul.f32 0.015625, %v531_v8  ;;  %v544_v11 = vmul.f32 0.015625, %v537_v9 }
  0x9c   : > { %v3056_v12 = vsub.f32 %v524_v0, %v542_v10  ;;  %v3058_v13 = vsub.f32 %v526_v1, %v544_v11  ;;  %v2501_v1 = vld [vmem:[%s509_s20] ss:$0 sm:$0xff] }
  0x9d   : > { %v534_v14 = vpop.xlane.xlu0 %533  ;;  %v540_v15 = vpop.xlane.xlu1 %539 }
  0x9e   : > { %v543_v16 = vmul.f32 0.015625, %v534_v14  ;;  %v545_v17 = vmul.f32 0.015625, %v540_v15  ;;  %v550_v18 = vmul.f32 %v3056_v12, %v3056_v12  ;;  %v552_v19 = vmul.f32 %v3058_v13, %v3058_v13 }
  0xa0   : > { %v3064_v20 = vsub.f32 %v525_v2, %v543_v16  ;;  %v3066_v21 = vsub.f32 %v527_v5, %v545_v17  ;;  %v554_v22 = vsel %vm528_vm0, %v550_v18, 0.0  ;;  %v560_v23 = vsel %vm528_vm0, %v552_v19, 0.0  ;;  %v621_v16 = vld [vmem:[%s3844_s7] sm:$0x3] }
  0xa1   : > { %555 = vadd.xlane.f32.xlu0 %v554_v22  ;;  %v626_v17 = vrot.slane %v621_v16, %v3132_v61  ;;  %v630_v34 = vrot.slane %v621_v16, %v629_v33 }
  0xa2   : > { %v551_v24 = vmul.f32 %v3064_v20, %v3064_v20  ;;  %v553_v25 = vmul.f32 %v3066_v21, %v3066_v21 }
  0xa4   : > { %v557_v26 = vsel %vm528_vm0, %v551_v24, 0.0  ;;  %v563_v27 = vsel %vm528_vm0, %v553_v25, 0.0 }
  0xa5   : > { %561 = vadd.xlane.f32.xlu0 %v560_v23  ;;  %558 = vadd.xlane.f32.xlu1 %v557_v26 }
  0xa9   : > { %564 = vadd.xlane.f32.xlu1 %v563_v27 }
 0x12a   : > { %v556_v45 = vpop.xlane.xlu0 %555 }
 0x12b   : > { %v566_v46 = vmul.f32 0.015625, %v556_v45 }
 0x12d   : > { %v570_v47 = vadd.f32 1e-05, %v566_v46 }
 0x12e   : > { %v559_v48 = vpop.xlane.xlu1 %558  ;;  %v562_v49 = vpop.xlane.xlu0 %561 }
 0x12f   : > { %2839 = vrsqrt.f32 %v570_v47  ;;  %v567_v50 = vmul.f32 0.015625, %v559_v48  ;;  %v568_v51 = vmul.f32 0.015625, %v562_v49 }
 0x131   : > { %v571_v53 = vadd.f32 1e-05, %v567_v50  ;;  %v572_v54 = vadd.f32 1e-05, %v568_v51 }
 0x132   : > { %v565_v55 = vpop.xlane.xlu1 %564 }
 0x133   : > { %2841 = vrsqrt.f32 %v571_v53  ;;  %v569_v56 = vmul.f32 0.015625, %v565_v55 }
 0x134   : > { %2843 = vrsqrt.f32 %v572_v54 }
 0x135   : > { %v573_v59 = vadd.f32 1e-05, %v569_v56 }
 0x137   : > { %2845 = vrsqrt.f32 %v573_v59 }
 0x13c   : > { %v2840_v63 = vpop.eup %2839 }
 0x13d   : > { %v578_v0 = vmul.f32 %v2840_v63, %v3056_v12 }
 0x13f   : > { %v590_v2 = vmul.f32 %v588_v62, %v578_v0 }
 0x140   : > { %v2842_v3 = vpop.eup %2841 }
 0x141   : > { %v2844_v4 = vpop.eup %2843  ;;  %v601_v5 = vadd.f32 %v2501_v1, %v590_v2  ;;  %v579_v6 = vmul.f32 %v2842_v3, %v3064_v20  ;;  %v3279_v2 = vld [vmem:[%s3838_s1 + $0x8] sm:$0xff] }
 0x142   : > { %v580_v7 = vmul.f32 %v2844_v4, %v3058_v13 }
 0x143   : > { %2502 = vmatmul.mubr.msk.f32.vlgmr.msra.gmra.mxu1 %vm528_vm0, %v601_v5  ;;  %v591_v8 = vmul.f32 %v588_v62, %v579_v6  ;;  %v3284_v5 = vld [vmem:[%s3838_s1] sm:$0xff] }
 0x144   : > { %v2846_v9 = vpop.eup %2845  ;;  %715 = vmatprep.mubr.f32.mxu1 %v2947_v36  ;;  %v592_v11 = vmul.f32 %v588_v62, %v580_v7 }
 0x145   : > { %v602_v10 = vadd.f32 %v2501_v1, %v591_v8  ;;  %v581_v14 = vmul.f32 %v2846_v9, %v3066_v21 }
 0x146   : > { %v603_v12 = vadd.f32 %v2501_v1, %v592_v11 }
 0x147   : > { %2503 = vmatmul.mubr.msk.f32.gmra.mxu1 %vm528_vm0, %v602_v10  ;;  %v593_v15 = vmul.f32 %v588_v62, %v581_v14 }
 0x148   : > { %721 = vmatprep.mubr.f32.mxu1 %v2947_v36 }
 0x149   : > { %v604_v13 = vadd.f32 %v2501_v1, %v593_v15  ;;  %v3295_v15 = vld [vmem:[%s3838_s1 + $0x18] sm:$0xff] }
 0x14b   : > { %2504 = vmatmul.mubr.msk.f32.gmra.mxu1 %vm528_vm0, %v603_v12 }
 0x14c   : > { %727 = vmatprep.mubr.f32.mxu1 %v2947_v36 }
 0x14f   : > { %2505 = vmatmul.mubr.msk.f32.gmra.mxu1 %vm528_vm0, %v604_v13 }
 0x203   : > { %v711_v18 = vpop.f32.mrf.mxu1 }
 0x204   : > { %v3154_v19 = vadd.f32 %v711_v18, %v626_v17 }
 0x205   : > { %v713_v20 = vpop.f32.mrf.mxu1 }
 0x206   : > { %v3157_v21 = vmul.f32 0.25, %v3154_v19  ;;  %v3217_v38 = vadd.f32 %v713_v20, %v630_v34 }
 0x207   : > { %v717_v22 = vpop.f32.mrf.mxu1 }
 0x208   : > { %2697 = vmatprep.mubr.msk.f32.mxu1 %vm754_vm1, %v3157_v21  ;;  %v3169_v29 = vadd.f32 %v717_v22, %v626_v17 }
 0x209   : > { %v719_v23 = vpop.f32.mrf.mxu1 }
 0x20a   : > { %v3181_v30 = vmul.f32 0.25, %v3169_v29  ;;  %v3214_v37 = vadd.f32 %v719_v23, %v630_v34  ;;  %v3303_v23 = vld [vmem:[%s3838_s1 + $0x10] sm:$0xff] }
 0x20b   : > { %v723_v24 = vpop.f32.mrf.mxu1 }
 0x20c   : > { %v3161_v25 = vadd.f32 %v723_v24, %v626_v17 }
 0x20d   : > { %v725_v26 = vpop.f32.mrf.mxu1 }
 0x20e   : > { %750 = vrot.lane.b32.xlu1 %v3161_v25, %s2948_s23  ;;  %v3194_v32 = vmul.f32 0.25, %v3161_v25  ;;  %v3209_v35 = vadd.f32 %v725_v26, %v630_v34 }
 0x20f   : > { %v729_v27 = vpop.f32.mrf.mxu1 }
 0x210   : > { %v3164_v28 = vadd.f32 %v729_v27, %v626_v17 }
 0x211   : > { %v731_v39 = vpop.f32.mrf.mxu1 }
 0x212   : > { %752 = vrot.lane.b32.xlu0 %v3164_v28, %s2948_s23  ;;  %1016 = vrot.lane.b32.xlu1 %v3164_v28, %s2949_s24  ;;  %v3191_v31 = vmul.f32 0.25, %v3164_v28  ;;  %v3220_v40 = vadd.f32 %v731_v39, %v630_v34 }
 0x216   : > { %748 = vrot.lane.b32.xlu0 %v3169_v29, %s2948_s23  ;;  %1014 = vrot.lane.b32.xlu1 %v3161_v25, %s2949_s24 }
 0x21a   : > { %746 = vrot.lane.b32.xlu0 %v3154_v19, %s2948_s23  ;;  %1012 = vrot.lane.b32.xlu1 %v3169_v29, %s2949_s24 }
 0x21e   : > { %1002 = vrot.lane.b32.xlu0 %v3157_v21, %s2950_s25  ;;  %1010 = vrot.lane.b32.xlu1 %v3154_v19, %s2949_s24 }
 0x222   : > { %1004 = vrot.lane.b32.xlu0 %v3181_v30, %s2950_s25  ;;  %1290 = vrot.lane.b32.xlu1 %v3164_v28, %s2951_s26 }
 0x226   : > { %1286 = vrot.lane.b32.xlu0 %v3169_v29, %s2951_s26  ;;  %1288 = vrot.lane.b32.xlu1 %v3161_v25, %s2951_s26 }
 0x22a   : > { %1008 = vrot.lane.b32.xlu0 %v3191_v31, %s2950_s25  ;;  %1006 = vrot.lane.b32.xlu1 %v3194_v32, %s2950_s25 }
 0x22e   : > { %1276 = vrot.lane.b32.xlu0 %v3157_v21, %s2952_s27  ;;  %1284 = vrot.lane.b32.xlu1 %v3154_v19, %s2951_s26 }
 0x232   : > { %1280 = vrot.lane.b32.xlu0 %v3194_v32, %s2952_s27  ;;  %1278 = vrot.lane.b32.xlu1 %v3181_v30, %s2952_s27 }
 0x236   : > { %1171 = vrot.lane.b32.xlu0 %v3209_v35, %s2950_s25  ;;  %1282 = vrot.lane.b32.xlu1 %v3191_v31, %s2952_s27 }
 0x23a   : > { %1169 = vrot.lane.b32.xlu1 %v3214_v37, %s2950_s25 }
 0x23e   : > { %1167 = vrot.lane.b32.xlu1 %v3217_v38, %s2950_s25 }
 0x242   : > { %1173 = vrot.lane.b32.xlu1 %v3220_v40, %s2950_s25  ;;  %s2953_s25 = smov 16  }
 0x280   : > { %v751_v41 = vpop.permute.xlu1 %750 }
 0x284   : > { %v753_v42 = vpop.permute.xlu0 %752  ;;  %v1017_v43 = vpop.permute.xlu1 %1016 }
 0x285   : > { %2689 = vmatprep.subr.msk.mxu1 %vm754_vm1, %v753_v42  ;;  %2717 = vmatprep.subr.msk.mxu0 %vm754_vm1, %v1017_v43 }
 0x286   : > { %2690 = vmatpush3.xpose.msk.msra.mxu1 %vm754_vm1, %v753_v42  ;;  %2718 = vmatpush3.xpose.msk.msra.mxu0 %vm754_vm1, %v1017_v43 }
 0x287   : > { %2691 = vmatprep.subr.msk.mxu1 %vm754_vm1, %v751_v41 }
 0x288   : > { %v749_v44 = vpop.permute.xlu0 %748  ;;  %v1015_v45 = vpop.permute.xlu1 %1014 }
 0x289   : > { %2719 = vmatprep.subr.msk.mxu0 %vm754_vm1, %v1015_v45 }
 0x28a   : > { %2692 = vmatpush3.xpose.msk.msra.mxu1 %vm754_vm1, %v751_v41  ;;  %2720 = vmatpush3.xpose.msk.msra.mxu0 %vm754_vm1, %v1015_v45 }
 0x28b   : > { %2693 = vmatprep.subr.msk.mxu1 %vm754_vm1, %v749_v44 }
 0x28c   : > { %v747_v46 = vpop.permute.xlu0 %746  ;;  %v1013_v47 = vpop.permute.xlu1 %1012 }
 0x28d   : > { %2721 = vmatprep.subr.msk.mxu0 %vm754_vm1, %v1013_v47 }
 0x28e   : > { %2694 = vmatpush3.xpose.msk.msra.mxu1 %vm754_vm1, %v749_v44  ;;  %2722 = vmatpush3.xpose.msk.msra.mxu0 %vm754_vm1, %v1013_v47 }
 0x28f   : > { %2695 = vmatprep.subr.msk.mxu1 %vm754_vm1, %v747_v46 }
 0x290   : > { %v1003_v48 = vpop.permute.xlu0 %1002  ;;  %v1011_v49 = vpop.permute.xlu1 %1010 }
 0x291   : > { %2723 = vmatprep.subr.msk.mxu0 %vm754_vm1, %v1011_v49  ;;  %2725 = vmatprep.mubr.msk.f32.mxu0 %vm754_vm1, %v1003_v48 }
 0x292   : > { %2696 = vmatpush3.xpose.msk.msra.mxu1 %vm754_vm1, %v747_v46  ;;  %2724 = vmatpush3.xpose.msk.msra.mxu0 %vm754_vm1, %v1011_v49 }
 0x293   : > { %2703 = vmatprep.subr.mxu1 %v3220_v40 }
 0x294   : > { %v1005_v50 = vpop.permute.xlu0 %1004  ;;  %v1291_v51 = vpop.permute.xlu1 %1290 }
 0x295   : > { %2698 = vmatmul.mubr.msk.f32.vlgmr.msra.gmra.mxu1 %vm754_vm1, %v3181_v30  ;;  %2726 = vmatmul.mubr.msk.f32.vlgmr.msra.gmra.mxu0 %vm754_vm1, %v1005_v50 }
 0x296   : > { %2745 = vmatprep.subr.msk.mxu0 %vm754_vm1, %v1291_v51  ;;  %2700 = vmatprep.mubr.msk.f32.mxu1 %vm754_vm1, %v3194_v32 }
 0x297   : > { %2704 = vmatpush3.msra.mxu1 %v3220_v40  ;;  %2746 = vmatpush3.xpose.msk.msra.mxu0 %vm754_vm1, %v1291_v51 }
 0x298   : > { %2705 = vmatprep.subr.mxu1 %v3209_v35  ;;  %v1287_v52 = vpop.permute.xlu0 %1286  ;;  %v1289_v53 = vpop.permute.xlu1 %1288 }
 0x299   : > { %2706 = vmatpush3.msra.mxu1 %v3209_v35  ;;  %2747 = vmatprep.subr.msk.mxu0 %vm754_vm1, %v1289_v53 }
 0x29a   : > { %2701 = vmatmul.mubr.msk.f32.gmra.mxu1 %vm754_vm1, %v3191_v31  ;;  %2707 = vmatprep.subr.mxu1 %v3214_v37 }
 0x29b   : > { %2708 = vmatpush3.msra.mxu1 %v3214_v37  ;;  %2748 = vmatpush3.xpose.msk.msra.mxu0 %vm754_vm1, %v1289_v53 }
 0x29c   : > { %2709 = vmatprep.subr.mxu1 %v3217_v38  ;;  %2749 = vmatprep.subr.msk.mxu0 %vm754_vm1, %v1287_v52  ;;  %v1009_v54 = vpop.permute.xlu0 %1008  ;;  %v1007_v55 = vpop.permute.xlu1 %1006 }
 0x29d   : > { %2710 = vmatpush3.msra.mxu1 %v3217_v38  ;;  %2728 = vmatprep.mubr.msk.f32.mxu0 %vm754_vm1, %v1007_v55 }
 0x29e   : > { %2729 = vmatmul.mubr.msk.f32.gmra.mxu0 %vm754_vm1, %v1009_v54 }
 0x29f   : > { %2750 = vmatpush3.xpose.msk.msra.mxu0 %vm754_vm1, %v1287_v52 }
 0x2a0   : > { %v1277_v56 = vpop.permute.xlu0 %1276  ;;  %v1285_v58 = vpop.permute.xlu1 %1284 }
 0x2a1   : > { %2751 = vmatprep.subr.msk.mxu0 %vm754_vm1, %v1285_v58  ;;  %2753 = vmatprep.mubr.msk.f32.mxu0 %vm754_vm1, %v1277_v56 }
 0x2a3   : > { %2752 = vmatpush3.xpose.msk.msra.mxu0 %vm754_vm1, %v1285_v58 }
 0x2a4   : > { %v1281_v59 = vpop.permute.xlu0 %1280  ;;  %v1279_v60 = vpop.permute.xlu1 %1278 }
 0x2a6   : > { %2754 = vmatmul.mubr.msk.f32.vlgmr.msra.gmra.mxu0 %vm754_vm1, %v1279_v60 }
 0x2a7   : > { %2756 = vmatprep.mubr.msk.f32.mxu0 %vm754_vm1, %v1281_v59 }
 0x2a8   : > { %v1283_v62 = vpop.permute.xlu1 %1282  ;;  %v3340_v56 = vpop.permute.xlu0 %1171 }
 0x2aa   : > { %2757 = vmatmul.mubr.msk.f32.gmra.mxu0 %vm754_vm1, %v1283_v62 }
 0x2ac   : > { %v3269_v63 = vpop.permute.xlu1 %1169 }
 0x2b0   : > { %v3271_v0 = vpop.permute.xlu1 %1167 }
 0x2b4   : > { %v3273_v1 = vpop.permute.xlu1 %1173 }
 0x2b5   : > { %2731 = vmatprep.subr.mxu1 %v3273_v1 }
 0x355   : > { %v2699_v3 = vpop.f32.mrf.mxu1  ;;  %v2727_v4 = vpop.f32.mrf.mxu0 }
 0x356   : > { %v847_v6 = vadd.f32 %v2699_v3, %v3279_v2  ;;  %v1106_v9 = vadd.f32 %v2727_v4, %v3279_v2 }
 0x357   : > { %v841_v7 = vpop.f32.mrf.mxu1  ;;  %v1100_v8 = vpop.f32.mrf.mxu0 }
 0x358   : > { %v842_v10 = vadd.f32 %v841_v7, %v3284_v5  ;;  %v864_v11 = vsel %vm860_vm2, %v847_v6, -inf  ;;  %v1101_v14 = vadd.f32 %v1100_v8, %v3284_v5  ;;  %v1122_v16 = vsel %vm860_vm2, %v1106_v9, -inf }
 0x359   : > { %865 = vmax.xlane.f32.xlu1 %v864_v11 }
 0x35a   : > { %v861_v12 = vsel %vm860_vm2, %v842_v10, -inf  ;;  %v2702_v13 = vpop.f32.mrf.mxu1  ;;  %v1119_v20 = vsel %vm860_vm2, %v1101_v14, -inf }
 0x35b   : > { %862 = vmax.xlane.f32.xlu0 %v861_v12  ;;  %v857_v17 = vadd.f32 %v2702_v13, %v3295_v15 }
 0x35c   : > { %v851_v22 = vpop.f32.mrf.mxu1 }
 0x35d   : > { %1123 = vmax.xlane.f32.xlu1 %v1122_v16  ;;  %v852_v27 = vadd.f32 %v851_v22, %v3303_v23  ;;  %v870_v34 = vsel %vm860_vm2, %v857_v17, -inf }
 0x35e   : > { %v2730_v18 = vpop.f32.mrf.mxu0 }
 0x35f   : > { %v1116_v24 = vadd.f32 %v2730_v18, %v3295_v15  ;;  %1120 = vmax.xlane.f32.xlu0 %v1119_v20  ;;  %v867_v43 = vsel %vm860_vm2, %v852_v27, -inf }
 0x360   : > { %v1110_v39 = vpop.f32.mrf.mxu0 }
 0x361   : > { %v1128_v26 = vsel %vm860_vm2, %v1116_v24, -inf  ;;  %v3310_v41 = vadd.f32 %v1110_v39, %v3303_v23 }
 0x362   : > { %1129 = vmax.xlane.f32.xlu1 %v1128_v26 }
 0x363   : > { %871 = vmax.xlane.f32.xlu0 %v870_v34  ;;  %v1125_v49 = vsel %vm860_vm2, %v3310_v41, -inf }
 0x366   : > { %v2755_v42 = vpop.f32.mrf.mxu0 }
 0x367   : > { %v1380_v44 = vadd.f32 %v2755_v42, %v3279_v2  ;;  %868 = vmax.xlane.f32.xlu0 %v867_v43 }
 0x368   : > { %v1374_v45 = vpop.f32.mrf.mxu0 }
 0x369   : > { %v1396_v46 = vsel %vm860_vm2, %v1380_v44, -inf  ;;  %v3316_v47 = vadd.f32 %v1374_v45, %v3284_v5 }
 0x36a   : > { %1397 = vmax.xlane.f32.xlu1 %v1396_v46  ;;  %v2758_v48 = vpop.f32.mrf.mxu0 }
 0x36b   : > { %1126 = vmax.xlane.f32.xlu0 %v1125_v49  ;;  %v1393_v52 = vsel %vm860_vm2, %v3316_v47, -inf  ;;  %v3332_v54 = vadd.f32 %v2758_v48, %v3295_v15 }
 0x36c   : > { %v1384_v50 = vpop.f32.mrf.mxu0 }
 0x36d   : > { %v3321_v51 = vadd.f32 %v1384_v50, %v3303_v23  ;;  %v1402_v55 = vsel %vm860_vm2, %v3332_v54, -inf }
 0x36f   : > { %1394 = vmax.xlane.f32.xlu0 %v1393_v52  ;;  %v1399_v53 = vsel %vm860_vm2, %v3321_v51, -inf }
 0x373   : > { %1400 = vmax.xlane.f32.xlu0 %v1399_v53 }
 0x37b   : > { %1443 = vrot.lane.b32.xlu1 %v3220_v40, %s2952_s27 }
 0x389   : > { %1439 = vrot.lane.b32.xlu0 %v3214_v37, %s2952_s27 }
 0x39f   : > { %1403 = vmax.xlane.f32.xlu1 %v1402_v55 }
 0x3b0   : > { %1441 = vrot.lane.b32.xlu1 %v3209_v35, %s2952_s27 }
 0x3b4   : > { %1437 = vrot.lane.b32.xlu1 %v3217_v38, %s2952_s27  ;;  %s2954_s27 = smov 80  }
 0x3e2   : > { %v866_v58 = vpop.xlane.xlu1 %865 }
 0x3e3   : > { %v874_v59 = vsub.f32 %v847_v6, %v866_v58 }
 0x3e4   : > { %v863_v60 = vpop.xlane.xlu0 %862 }
 0x3e5   : > { %v879_v62 = vmul.f32 1.442695, %v874_v59  ;;  %v873_v3 = vsub.f32 %v842_v10, %v863_v60 }
 0x3e6   : > { %v1124_v4 = vpop.xlane.xlu1 %1123 }
 0x3e7   : > { %2847 = vpow2.f32 %v879_v62  ;;  %v877_v7 = vmul.f32 1.442695, %v873_v3  ;;  %v1132_v8 = vsub.f32 %v1106_v9, %v1124_v4 }
 0x3e8   : > { %v1121_v11 = vpop.xlane.xlu0 %1120 }
 0x3e9   : > { %2849 = vpow2.f32 %v877_v7  ;;  %v1137_v12 = vmul.f32 1.442695, %v1132_v8  ;;  %v1131_v13 = vsub.f32 %v1101_v14, %v1121_v11 }
 0x3eb   : > { %2851 = vpow2.f32 %v1137_v12  ;;  %v1135_v16 = vmul.f32 1.442695, %v1131_v13  ;;  %v1130_v18 = vpop.xlane.xlu1 %1129 }
 0x3ec   : > { %v1134_v20 = vsub.f32 %v1116_v24, %v1130_v18  ;;  %v872_v22 = vpop.xlane.xlu0 %871 }
 0x3ed   : > { %2853 = vpow2.f32 %v1135_v16  ;;  %v876_v26 = vsub.f32 %v857_v17, %v872_v22 }
 0x3ee   : > { %v1141_v34 = vmul.f32 1.442695, %v1134_v20 }
 0x3ef   : > { %v883_v6 = vmul.f32 1.442695, %v876_v26 }
 0x3f0   : > { %v869_v39 = vpop.xlane.xlu0 %868 }
 0x3f1   : > { %2855 = vpow2.f32 %v883_v6  ;;  %v875_v10 = vsub.f32 %v852_v27, %v869_v39 }
 0x3f2   : > { %2857 = vpow2.f32 %v1141_v34 }
 0x3f3   : > { %v881_v42 = vmul.f32 1.442695, %v875_v10  ;;  %v1398_v43 = vpop.xlane.xlu1 %1397 }
 0x3f4   : > { %v3342_v9 = vpop.eup %2847  ;;  %v1406_v45 = vsub.f32 %v1380_v44, %v1398_v43  ;;  %v1127_v3 = vpop.xlane.xlu0 %1126 }
 0x3f5   : > { %2859 = vpow2.f32 %v881_v42  ;;  %v888_v14 = vsel %vm860_vm2, %v3342_v9, 0.0  ;;  %v1133_v4 = vsub.f32 %v3310_v41, %v1127_v3 }
 0x3f6   : > { %v3346_v46 = vpop.eup %2849  ;;  %v1411_v24 = vmul.f32 1.442695, %v1406_v45  ;;  %889 = vadd.xlane.f32.xlu1 %v888_v14 }
 0x3f7   : > { %v885_v17 = vsel %vm860_vm2, %v3346_v46, 0.0  ;;  %v1139_v8 = vmul.f32 1.442695, %v1133_v4  ;;  %v3383_v11 = vpop.permute.xlu1 %1443 }
 0x3f8   : > { %v3350_v48 = vpop.eup %2851  ;;  %2861 = vpow2.f32 %v1411_v24  ;;  %886 = vadd.xlane.f32.xlu0 %v885_v17  ;;  %v1395_v7 = vpop.xlane.xlu0 %1394 }
 0x3f9   : > { %v1146_v27 = vsel %vm860_vm2, %v3350_v48, 0.0  ;;  %v1405_v12 = vsub.f32 %v3316_v47, %v1395_v7  ;;  %2863 = vpow2.f32 %v1139_v8 }
 0x3fa   : > { %v3354_v49 = vpop.eup %2853  ;;  %1147 = vadd.xlane.f32.xlu1 %v1146_v27 }
 0x3fb   : > { %v1143_v44 = vsel %vm860_vm2, %v3354_v49, 0.0 }
 0x3fc   : > { %1144 = vadd.xlane.f32.xlu0 %v1143_v44  ;;  %v1401_v13 = vpop.xlane.xlu0 %1400 }
 0x3fd   : > { %v1407_v41 = vsub.f32 %v3321_v51, %v1401_v13 }
 0x3fe   : > { %v3358_v50 = vpop.eup %2855 }
 0x3ff   : > { %v894_v52 = vsel %vm860_vm2, %v3358_v50, 0.0  ;;  %v3362_v53 = vpop.eup %2857  ;;  %v1413_v18 = vmul.f32 1.442695, %v1407_v41 }
 0x400   : > { %895 = vadd.xlane.f32.xlu1 %v894_v52  ;;  %v1152_v58 = vsel %vm860_vm2, %v3362_v53, 0.0  ;;  %v1440_v39 = vpop.permute.xlu0 %1439 }
 0x402   : > { %v3364_v55 = vpop.eup %2859 }
 0x403   : > { %v891_v59 = vsel %vm860_vm2, %v3364_v55, 0.0 }
 0x404   : > { %1153 = vadd.xlane.f32.xlu1 %v1152_v58  ;;  %892 = vadd.xlane.f32.xlu0 %v891_v59 }
 0x405   : > { %v3370_v60 = vpop.eup %2861 }
 0x406   : > { %v1420_v62 = vsel %vm860_vm2, %v3370_v60, 0.0 }
 0x408   : > { %1421 = vadd.xlane.f32.xlu1 %v1420_v62 }
 0x419   : > { %1558 = vrot.lane.b32.xlu1 %v3161_v25, %s2953_s25  ;;  %v1409_v25 = vmul.f32 1.442695, %v1405_v12 }
 0x41a   : > { %1560 = vrot.lane.b32.xlu0 %v3164_v28, %s2953_s25 }
 0x41b   : > { %2865 = vpow2.f32 %v1409_v25 }
 0x41d   : > { %1554 = vrot.lane.b32.xlu1 %v3154_v19, %s2953_s25 }
 0x421   : > { %1548 = vrot.lane.b32.xlu1 %v3181_v30, %s2954_s27  ;;  %v3390_v30 = vpop.eup %2863 }
 0x422   : > { %v1149_v47 = vsel %vm860_vm2, %v3390_v30, 0.0 }
 0x425   : > { %1552 = vrot.lane.b32.xlu1 %v3191_v31, %s2954_s27 }
 0x428   : > { %v1404_v28 = vpop.xlane.xlu1 %1403  ;;  %v3394_v20 = vpop.eup %2865 }
 0x429   : > { %v1408_v19 = vsub.f32 %v3332_v54, %v1404_v28  ;;  %v1417_v31 = vsel %vm860_vm2, %v3394_v20, 0.0 }
 0x42b   : > { %v1415_v16 = vmul.f32 1.442695, %v1408_v19 }
 0x42c   : > { %v1442_v34 = vpop.permute.xlu1 %1441 }
 0x42d   : > { %2867 = vpow2.f32 %v1415_v16 }
 0x42e   : > { %2869 = vpow2.f32 %v1413_v18 }
 0x430   : > { %v1438_v6 = vpop.permute.xlu1 %1437 }
 0x439   : > { %1150 = vadd.xlane.f32.xlu0 %v1149_v47 }
 0x43a   : > { %v3398_v22 = vpop.eup %2867 }
 0x43b   : > { %v1426_v51 = vsel %vm860_vm2, %v3398_v22, 0.0  ;;  %v3402_v54 = vpop.eup %2869 }
 0x43c   : > { %v1423_v26 = vsel %vm860_vm2, %v3402_v54, 0.0 }
 0x43d   : > { %1418 = vadd.xlane.f32.xlu0 %v1417_v31 }
 0x441   : > { %1427 = vadd.xlane.f32.xlu0 %v1426_v51 }
 0x445   : > { %1424 = vadd.xlane.f32.xlu0 %v1423_v26 }
 0x45b   : > { %1556 = vrot.lane.b32.xlu0 %v3169_v29, %s2953_s25 }
 0x45f   : > { %1546 = vrot.lane.b32.xlu0 %v3157_v21, %s2954_s27 }
 0x463   : > { %1550 = vrot.lane.b32.xlu0 %v3194_v32, %s2954_s27 }
 0x47f   : > { %v890_v10 = vpop.xlane.xlu1 %889 }
 0x480   : > { %2871 = vrcp.f32 %v890_v10 }
 0x481   : > { %v887_v42 = vpop.xlane.xlu0 %886 }
 0x482   : > { %2873 = vrcp.f32 %v887_v42 }
 0x483   : > { %v1148_v43 = vpop.xlane.xlu1 %1147 }
 0x485   : > { %v1145_v45 = vpop.xlane.xlu0 %1144 }
 0x486   : > { %2875 = vrcp.f32 %v1145_v45 }
 0x489   : > { %v896_v14 = vpop.xlane.xlu1 %895 }
 0x48a   : > { %2877 = vrcp.f32 %v896_v14 }
 0x48d   : > { %v893_v24 = vpop.xlane.xlu0 %892  ;;  %v2872_v17 = vpop.eup %2871 }
 0x48e   : > { %2879 = vrcp.f32 %v893_v24  ;;  %v902_v32 = vmul.f32 %v2872_v17, %v3342_v9 }
 0x48f   : > { %v2874_v29 = vpop.eup %2873  ;;  %2881 = vrcp.f32 %v1148_v43 }
 0x490   : > { %v901_v21 = vmul.f32 %v2874_v29, %v3346_v46 }
 0x492   : > { %2711 = vmatprep.mubr.msk.f32.mxu1 %vm860_vm2, %v901_v21 }
 0x493   : > { %2712 = vmatmul.mubr.msk.f32.vlgmr.msra.gmra.mxu1 %vm860_vm2, %v902_v32  ;;  %v2876_v46 = vpop.eup %2875 }
 0x494   : > { %2732 = vmatpush3.msra.mxu1 %v3273_v1 }
 0x495   : > { %2733 = vmatprep.subr.mxu1 %v3340_v56 }
 0x496   : > { %2734 = vmatpush3.msra.mxu1 %v3340_v56  ;;  %v1159_v56 = vmul.f32 %v2876_v46, %v3354_v49  ;;  %v1154_v49 = vpop.xlane.xlu1 %1153 }
 0x497   : > { %2735 = vmatprep.subr.mxu1 %v3269_v63  ;;  %v2878_v9 = vpop.eup %2877  ;;  %2883 = vrcp.f32 %v1154_v49 }
 0x498   : > { %2736 = vmatpush3.msra.mxu1 %v3269_v63  ;;  %v904_v1 = vmul.f32 %v2878_v9, %v3358_v50 }
 0x499   : > { %2737 = vmatprep.subr.mxu1 %v3271_v0 }
 0x49a   : > { %2738 = vmatpush3.msra.mxu1 %v3271_v0  ;;  %v1561_v0 = vpop.permute.xlu0 %1560 }
 0x49b   : > { %2759 = vmatprep.subr.mxu1 %v3383_v11  ;;  %v2880_v27 = vpop.eup %2879 }
 0x49c   : > { %v903_v44 = vmul.f32 %v2880_v27, %v3364_v55  ;;  %v2882_v52 = vpop.eup %2881  ;;  %v1422_v55 = vpop.xlane.xlu1 %1421 }
 0x49d   : > { %v1160_v63 = vmul.f32 %v2882_v52, %v3350_v48 }
 0x49e   : > { %2714 = vmatprep.mubr.msk.f32.mxu1 %vm860_vm2, %v903_v44 }
 0x49f   : > { %2715 = vmatmul.mubr.msk.f32.gmra.mxu1 %vm860_vm2, %v904_v1 }
 0x4a0   : > { %2739 = vmatprep.mubr.msk.f32.mxu1 %vm860_vm2, %v1159_v56  ;;  %v1559_v28 = vpop.permute.xlu1 %1558 }
 0x4a3   : > { %2740 = vmatmul.mubr.msk.f32.vlgmr.msra.gmra.mxu1 %vm860_vm2, %v1160_v63 }
 0x4a4   : > { %2760 = vmatpush3.msra.mxu1 %v3383_v11  ;;  %v2884_v62 = vpop.eup %2883  ;;  %v1555_v16 = vpop.permute.xlu1 %1554 }
 0x4a5   : > { %2761 = vmatprep.subr.mxu1 %v1442_v34  ;;  %v1162_v7 = vmul.f32 %v2884_v62, %v3362_v53 }
 0x4a6   : > { %2762 = vmatpush3.msra.mxu1 %v1442_v34 }
 0x4a7   : > { %2763 = vmatprep.subr.mxu1 %v1440_v39 }
 0x4a8   : > { %2764 = vmatpush3.msra.mxu1 %v1440_v39 }
 0x4a9   : > { %2765 = vmatprep.subr.mxu1 %v1438_v6 }
 0x4aa   : > { %2766 = vmatpush3.msra.mxu1 %v1438_v6 }
 0x4ab   : > { %2773 = vmatprep.subr.msk.mxu1 %vm754_vm1, %v1561_v0 }
 0x4c2   : > { %v1151_v50 = vpop.xlane.xlu0 %1150 }
 0x4c3   : > { %2885 = vrcp.f32 %v1151_v50 }
 0x4c4   : > { %2887 = vrcp.f32 %v1422_v55 }
 0x4c6   : > { %v1419_v48 = vpop.xlane.xlu0 %1418 }
 0x4c7   : > { %2889 = vrcp.f32 %v1419_v48 }
 0x4ca   : > { %v1428_v58 = vpop.xlane.xlu0 %1427 }
 0x4cb   : > { %2891 = vrcp.f32 %v1428_v58 }
 0x4ce   : > { %v1425_v59 = vpop.xlane.xlu0 %1424 }
 0x4cf   : > { %2893 = vrcp.f32 %v1425_v59 }
 0x4d0   : > { %v2886_v3 = vpop.eup %2885 }
 0x4d1   : > { %v1161_v4 = vmul.f32 %v2886_v3, %v3390_v30  ;;  %v2888_v8 = vpop.eup %2887  ;;  %v1549_v30 = vpop.permute.xlu1 %1548 }
 0x4d2   : > { %v1434_v25 = vmul.f32 %v2888_v8, %v3370_v60  ;;  %v1557_v13 = vpop.permute.xlu0 %1556 }
 0x4d3   : > { %2742 = vmatprep.mubr.msk.f32.mxu1 %vm860_vm2, %v1161_v4 }
 0x4d4   : > { %v2890_v11 = vpop.eup %2889  ;;  %2743 = vmatmul.mubr.msk.f32.gmra.mxu1 %vm860_vm2, %v1162_v7 }
 0x4d5   : > { %v1433_v12 = vmul.f32 %v2890_v11, %v3394_v20  ;;  %v1553_v20 = vpop.permute.xlu1 %1552 }
 0x4d6   : > { %v1547_v18 = vpop.permute.xlu0 %1546 }
 0x4d7   : > { %2767 = vmatprep.mubr.msk.f32.mxu1 %vm860_vm2, %v1433_v12 }
 0x4d8   : > { %2768 = vmatmul.mubr.msk.f32.vlgmr.msra.gmra.mxu1 %vm860_vm2, %v1434_v25  ;;  %v2892_v53 = vpop.eup %2891 }
 0x4d9   : > { %2774 = vmatpush3.xpose.msk.msra.mxu1 %vm754_vm1, %v1561_v0  ;;  %v1436_v60 = vmul.f32 %v2892_v53, %v3398_v22 }
 0x4da   : > { %2775 = vmatprep.subr.msk.mxu1 %vm754_vm1, %v1559_v28  ;;  %v1551_v47 = vpop.permute.xlu0 %1550 }
 0x4dc   : > { %v2894_v19 = vpop.eup %2893 }
 0x4dd   : > { %2776 = vmatpush3.xpose.msk.msra.mxu1 %vm754_vm1, %v1559_v28  ;;  %v1435_v41 = vmul.f32 %v2894_v19, %v3402_v54 }
 0x4de   : > { %2777 = vmatprep.subr.msk.mxu1 %vm754_vm1, %v1557_v13 }
 0x4df   : > { %2770 = vmatprep.mubr.msk.f32.mxu1 %vm860_vm2, %v1435_v41 }
 0x4e0   : > { %2771 = vmatmul.mubr.msk.f32.gmra.mxu1 %vm860_vm2, %v1436_v60 }
 0x4e1   : > { %2778 = vmatpush3.xpose.msk.msra.mxu1 %vm754_vm1, %v1557_v13  ;;  %2781 = vmatprep.mubr.msk.f32.mxu1 %vm754_vm1, %v1547_v18 }
 0x4e2   : > { %2779 = vmatprep.subr.msk.mxu1 %vm754_vm1, %v1555_v16 }
 0x4e5   : > { %2780 = vmatpush3.xpose.msk.msra.mxu1 %vm754_vm1, %v1555_v16 }
 0x4e8   : > { %2782 = vmatmul.mubr.msk.f32.vlgmr.msra.gmra.mxu1 %vm754_vm1, %v1549_v30 }
 0x4e9   : > { %2784 = vmatprep.mubr.msk.f32.mxu1 %vm754_vm1, %v1551_v47 }
 0x4ec   : > { %2785 = vmatmul.mubr.msk.f32.gmra.mxu1 %vm754_vm1, %v1553_v20 }
 0x4ed   : > { %2172 = vmatprep.mubr.f32.mxu1 %v2947_v36 }
 0x553   : > { %v3458_v31 = vpop.f32.mrf.mxu1 }
 0x555   : > { %v3460_v22 = vpop.f32.mrf.mxu1 }
 0x55f   : > { %v3462_v51 = vpop.f32.mrf.mxu1 }
 0x561   : > { %v3464_v54 = vpop.f32.mrf.mxu1 }
 0x563   : > { %v2741_v26 = vpop.f32.mrf.mxu1 }
 0x565   : > { %v1257_v34 = vpop.f32.mrf.mxu1 }
 0x594   : > { %v2744_v6 = vpop.f32.mrf.mxu1 }
 0x596   : > { %v1267_v39 = vpop.f32.mrf.mxu1 }
 0x598   : > { %v2769_v10 = vpop.f32.mrf.mxu1 }
 0x59a   : > { %v1527_v42 = vpop.f32.mrf.mxu1 }
 0x5a0   : > { %v3466_v43 = vpop.f32.mrf.mxu1 }
 0x5a2   : > { %v3468_v45 = vpop.f32.mrf.mxu1 }
 0x5a8   : > { %v2783_v14 = vpop.f32.mrf.mxu1 }
 0x5a9   : > { %v1650_v24 = vadd.f32 %v2783_v14, %v3279_v2  ;;  %v1878_v14 = vld [vmem:[%s3845_s8 + $0x8] sm:$0xff] }
 0x5aa   : > { %v1644_v17 = vpop.f32.mrf.mxu1 }
 0x5ab   : > { %v1645_v29 = vadd.f32 %v1644_v17, %v3284_v5  ;;  %v1666_v21 = vsel %vm860_vm2, %v1650_v24, -inf }
 0x5ac   : > { %1667 = vmax.xlane.f32.xlu1 %v1666_v21  ;;  %v2786_v32 = vpop.f32.mrf.mxu1 }
 0x5ad   : > { %v1663_v46 = vsel %vm860_vm2, %v1645_v29, -inf  ;;  %v1660_v44 = vadd.f32 %v2786_v32, %v3295_v15 }
 0x5ae   : > { %1664 = vmax.xlane.f32.xlu0 %v1663_v46  ;;  %v1654_v9 = vpop.f32.mrf.mxu1 }
 0x5af   : > { %v1655_v27 = vadd.f32 %v1654_v9, %v3303_v23  ;;  %v1672_v2 = vsel %vm860_vm2, %v1660_v44, -inf }
 0x5b1   : > { %v1669_v1 = vsel %vm860_vm2, %v1655_v27, -inf }
 0x5b2   : > { %1670 = vmax.xlane.f32.xlu0 %v1669_v1 }
 0x5b6   : > { %1673 = vmax.xlane.f32.xlu0 %v1672_v2 }
 0x635   : > { %v1668_v52 = vpop.xlane.xlu1 %1667 }
 0x636   : > { %v1676_v5 = vsub.f32 %v1650_v24, %v1668_v52  ;;  %v1877_v24 = vld [vmem:[%s3845_s8] sm:$0xff] }
 0x637   : > { %v1665_v56 = vpop.xlane.xlu0 %1664 }
 0x638   : > { %v1681_v63 = vmul.f32 1.442695, %v1676_v5  ;;  %v1675_v0 = vsub.f32 %v1645_v29, %v1665_v56 }
 0x63a   : > { %2895 = vpow2.f32 %v1681_v63  ;;  %v1679_v49 = vmul.f32 1.442695, %v1675_v0 }
 0x63b   : > { %v1671_v50 = vpop.xlane.xlu0 %1670 }
 0x63c   : > { %2897 = vpow2.f32 %v1679_v49  ;;  %v1677_v55 = vsub.f32 %v1655_v27, %v1671_v50 }
 0x63e   : > { %v1683_v48 = vmul.f32 1.442695, %v1677_v55 }
 0x63f   : > { %v1674_v23 = vpop.xlane.xlu0 %1673 }
 0x640   : > { %2899 = vpow2.f32 %v1683_v48  ;;  %v1678_v15 = vsub.f32 %v1660_v44, %v1674_v23 }
 0x642   : > { %v1685_v58 = vmul.f32 1.442695, %v1678_v15 }
 0x644   : > { %2901 = vpow2.f32 %v1685_v58 }
 0x647   : > { %v2896_v59 = vpop.eup %2895 }
 0x648   : > { %v1690_v62 = vsel %vm860_vm2, %v2896_v59, 0.0 }
 0x649   : > { %v2898_v3 = vpop.eup %2897  ;;  %1691 = vadd.xlane.f32.xlu1 %v1690_v62 }
 0x64a   : > { %v1687_v4 = vsel %vm860_vm2, %v2898_v3, 0.0 }
 0x64b   : > { %1688 = vadd.xlane.f32.xlu0 %v1687_v4 }
 0x64d   : > { %v2900_v7 = vpop.eup %2899 }
 0x64e   : > { %v1693_v8 = vsel %vm860_vm2, %v2900_v7, 0.0 }
 0x64f   : > { %1694 = vadd.xlane.f32.xlu0 %v1693_v8 }
 0x651   : > { %v2902_v11 = vpop.eup %2901 }
 0x652   : > { %v1696_v12 = vsel %vm860_vm2, %v2902_v11, 0.0 }
 0x653   : > { %1697 = vadd.xlane.f32.xlu1 %v1696_v12  ;;  %v2936_v12 = vld [vmem:[%s3046_s18] sm:$0xff] }
 0x664   : > { %1711 = vrot.lane.b32.xlu1 %v3209_v35, %s2954_s27 }
 0x665   : > { %1713 = vrot.lane.b32.xlu0 %v3220_v40, %s2954_s27 }
 0x668   : > { %1709 = vrot.lane.b32.xlu1 %v3214_v37, %s2954_s27 }
 0x669   : > { %1820 = vrot.lane.b32.xlu0 %v1257_v34, %s2953_s25  ;;  %v1883_v34 = vld [vmem:[%s3845_s8 + $0x30] sm:$0xff] }
 0x66c   : > { %1707 = vrot.lane.b32.xlu1 %v3217_v38, %s2954_s27  ;;  %s523_s27 = scalar_lea.vmem %s3851_s14, %s2567_s15 }
 0x66d   : > { %1836 = vrot.lane.b32.xlu0 %v1527_v42, %s2951_s26  ;;  %v1879_v42 = vld [vmem:[%s3845_s8 + $0x10] sm:$0xff] }
 0x670   : > { %1822 = vrot.lane.b32.xlu1 %v2741_v26, %s2953_s25  ;;  %v1884_v26 = vld [vmem:[%s3845_s8 + $0x38] sm:$0xff] }
 0x671   : > { %1824 = vrot.lane.b32.xlu0 %v1267_v39, %s2953_s25  ;;  %v1881_v39 = vld [vmem:[%s3845_s8 + $0x20] sm:$0xff] }
 0x674   : > { %1838 = vrot.lane.b32.xlu1 %v2769_v10, %s2951_s26  ;;  %v1880_v10 = vld [vmem:[%s3845_s8 + $0x18] sm:$0xff] }
 0x678   : > { %1826 = vrot.lane.b32.xlu1 %v2744_v6, %s2953_s25  ;;  %v1882_v6 = vld [vmem:[%s3845_s8 + $0x28] sm:$0xff] }
 0x6d2   : > { %v1692_v40 = vpop.xlane.xlu1 %1691 }
 0x6d4   : > { %v1689_v35 = vpop.xlane.xlu0 %1688 }
 0x6d5   : > { %2903 = vrcp.f32 %v1689_v35 }
 0x6d6   : > { %2905 = vrcp.f32 %v1692_v40 }
 0x6d8   : > { %v1695_v25 = vpop.xlane.xlu0 %1694 }
 0x6d9   : > { %2907 = vrcp.f32 %v1695_v25 }
 0x6dc   : > { %v1698_v37 = vpop.xlane.xlu1 %1697  ;;  %v1714_v28 = vpop.permute.xlu0 %1713 }
 0x6dd   : > { %2909 = vrcp.f32 %v1698_v37  ;;  %2787 = vmatprep.subr.mxu0 %v1714_v28 }
 0x6de   : > { %2788 = vmatpush3.msra.mxu0 %v1714_v28 }
 0x6e0   : > { %v1712_v38 = vpop.permute.xlu1 %1711  ;;  %v1821_v9 = vpop.permute.xlu0 %1820 }
 0x6e1   : > { %2789 = vmatprep.subr.mxu0 %v1712_v38  ;;  %v1864_v5 = vsel %vm754_vm1, %v3460_v22, %v1821_v9 }
 0x6e2   : > { %v2904_v13 = vpop.eup %2903  ;;  %2790 = vmatpush3.msra.mxu0 %v1712_v38 }
 0x6e3   : > { %v1703_v53 = vmul.f32 %v2904_v13, %v2898_v3  ;;  %v2906_v41 = vpop.eup %2905 }
 0x6e4   : > { %v1710_v19 = vpop.permute.xlu1 %1709  ;;  %v1704_v18 = vmul.f32 %v2906_v41, %v2896_v59  ;;  %v1837_v44 = vpop.permute.xlu0 %1836  ;;  %v2938_v41 = vld [vmem:[%s3046_s18 + $0x18] sm:$0xff] }
 0x6e5   : > { %2791 = vmatprep.subr.mxu0 %v1710_v19  ;;  %2795 = vmatprep.mubr.msk.f32.mxu0 %vm860_vm2, %v1703_v53  ;;  %v2937_v53 = vld [vmem:[%s3046_s18 + $0x10] sm:$0xff] }
 0x6e6   : > { %2792 = vmatpush3.msra.mxu0 %v1710_v19  ;;  %v2908_v60 = vpop.eup %2907 }
 0x6e7   : > { %v1705_v47 = vmul.f32 %v2908_v60, %v2900_v7  ;;  %v2935_v7 = vld [vmem:[%s3046_s18 + $0x8] sm:$0xff] }
 0x6e8   : > { %v1708_v16 = vpop.permute.xlu1 %1707  ;;  %v1825_v2 = vpop.permute.xlu0 %1824 }
 0x6e9   : > { %2793 = vmatprep.subr.mxu0 %v1708_v16  ;;  %v1866_v55 = vsel %vm754_vm1, %v3464_v54, %v1825_v2  ;;  %v2554_v54 = vld [vmem:[%s3846_s9] ss:$0 sm:$0xff]  ;;  %v2083_v2 = vld [vmem:[%s3847_s10 + $0x78] sm:$0xff] }
 0x6ea   : > { %v2910_v30 = vpop.eup %2909  ;;  %2794 = vmatpush3.msra.mxu0 %v1708_v16  ;;  %2124 = vmatprep.subr.mxu1 %v2083_v2  ;;  %v2280_v2 = vld [vmem:[%s3849_s12 + $0x58] sm:$0xff] }
 0x6eb   : > { %2796 = vmatmul.mubr.msk.f32.vlgmr.msra.gmra.mxu0 %vm860_vm2, %v1704_v18  ;;  %v1706_v20 = vmul.f32 %v2910_v30, %v2902_v11  ;;  %2801 = vmatprep.subr.mxu0 %v1884_v26 }
 0x6ec   : > { %2798 = vmatprep.mubr.msk.f32.mxu0 %vm860_vm2, %v1705_v47  ;;  %2802 = vmatpush3.msra.mxu0 %v1884_v26  ;;  %v1823_v46 = vpop.permute.xlu1 %1822 }
 0x6ed   : > { %2803 = vmatprep.subr.mxu0 %v1883_v34 }
 0x6ee   : > { %2804 = vmatpush3.msra.mxu0 %v1883_v34 }
 0x6ef   : > { %2799 = vmatmul.mubr.msk.f32.gmra.mxu0 %vm860_vm2, %v1706_v20  ;;  %2805 = vmatprep.subr.mxu0 %v1882_v6 }
 0x6f0   : > { %2806 = vmatpush3.msra.mxu0 %v1882_v6  ;;  %v1839_v27 = vpop.permute.xlu1 %1838 }
 0x6f1   : > { %2807 = vmatprep.subr.mxu0 %v1881_v39 }
 0x6f2   : > { %2808 = vmatpush3.msra.mxu0 %v1881_v39 }
 0x6f3   : > { %2809 = vmatprep.subr.mxu0 %v1880_v10 }
 0x6f4   : > { %2810 = vmatpush3.msra.mxu0 %v1880_v10  ;;  %v1827_v1 = vpop.permute.xlu1 %1826 }
 0x6f5   : > { %2811 = vmatprep.subr.mxu0 %v1879_v42 }
 0x6f6   : > { %2812 = vmatpush3.msra.mxu0 %v1879_v42 }
 0x6f7   : > { %2813 = vmatprep.subr.mxu0 %v1878_v14 }
 0x6f8   : > { %2814 = vmatpush3.msra.mxu0 %v1878_v14 }
 0x6f9   : > { %2815 = vmatprep.subr.mxu0 %v1877_v24 }
 0x6fa   : > { %2816 = vmatpush3.msra.mxu0 %v1877_v24 }
 0x7ab   : > { %v2797_v17 = vpop.f32.mrf.mxu0 }
 0x7ac   : > { %1854 = vrot.lane.b32.xlu1 %v2797_v17, %s2949_s24 }
 0x7ad   : > { %v1797_v29 = vpop.f32.mrf.mxu0 }
 0x7ae   : > { %1852 = vrot.lane.b32.xlu0 %v1797_v29, %s2949_s24 }
 0x7af   : > { %v2800_v21 = vpop.f32.mrf.mxu0 }
 0x7b0   : > { %1842 = vrot.lane.b32.xlu1 %v3466_v43, %s2951_s26  ;;  %v1868_v43 = vsel %vm860_vm2, %v1864_v5, %v1837_v44  ;;  %v2081_v5 = vld [vmem:[%s3847_s10 + $0x68] sm:$0xff] }
 0x7b1   : > { %v1807_v32 = vpop.f32.mrf.mxu0 }
 0x7b2   : > { %1840 = vrot.lane.b32.xlu0 %v3468_v45, %s2951_s26  ;;  %v1865_v45 = vsel %vm754_vm1, %v3458_v31, %v1823_v46  ;;  %v1867_v31 = vsel %vm754_vm1, %v3462_v51, %v1827_v1 }
 0x7b3   : > { %v1869_v63 = vsel %vm860_vm2, %v1865_v45, %v1839_v27  ;;  %v2079_v45 = vld [vmem:[%s3847_s10 + $0x58] sm:$0xff] }
 0x7b4   : > { %1858 = vrot.lane.b32.xlu1 %v2800_v21, %s2949_s24 }
 0x7b6   : > { %1856 = vrot.lane.b32.xlu0 %v1807_v32, %s2949_s24  ;;  %s515_s24 = scalar_lea.vmem %s3841_s4, %s3853_s30 }
 0x81e   : > { %v1855_v52 = vpop.permute.xlu1 %1854 }
 0x81f   : > { %v1874_v49 = vsel %vm1872_vm3, %v1869_v63, %v1855_v52  ;;  %v2082_v52 = vld [vmem:[%s3847_s10 + $0x70] sm:$0xff]  ;;  %v2077_v63 = vld [vmem:[%s3847_s10 + $0x48] sm:$0xff] }
 0x820   : > { %v1853_v56 = vpop.permute.xlu0 %1852  ;;  %2125 = vmatpush1.msra.mxu1 %v2082_v52  ;;  %v2295_v52 = vld [vmem:[%s3849_s12 + $0xd0] sm:$0xff] }
 0x821   : > { %v1873_v0 = vsel %vm1872_vm3, %v1868_v43, %v1853_v56  ;;  %2126 = vmatprep.subr.mxu1 %v2081_v5  ;;  %v2080_v43 = vld [vmem:[%s3847_s10 + $0x60] sm:$0xff]  ;;  %v2078_v56 = vld [vmem:[%s3847_s10 + $0x50] sm:$0xff] }
 0x822   : > { %v1843_v50 = vpop.permute.xlu1 %1842  ;;  %2817 = vmatprep.mubr.msk.f32.mxu0 %vm528_vm0, %v1873_v0  ;;  %2127 = vmatpush1.msra.mxu1 %v2080_v43  ;;  %v2076_v0 = vld [vmem:[%s3847_s10 + $0x40] sm:$0xff]  ;;  %v2279_v5 = vld [vmem:[%s3849_s12 + $0x50] sm:$0xff]  ;;  %v2294_v43 = vld [vmem:[%s3849_s12 + $0xc8] sm:$0xff] }
 0x823   : > { %2818 = vmatmul.mubr.msk.f32.vlgmr.msra.gmra.mxu0 %vm528_vm0, %v1874_v49  ;;  %v1871_v58 = vsel %vm860_vm2, %v1867_v31, %v1843_v50  ;;  %2128 = vmatprep.subr.mxu1 %v2079_v45  ;;  %v2075_v49 = vld [vmem:[%s3847_s10 + $0x38] sm:$0xff]  ;;  %v2074_v50 = vld [vmem:[%s3847_s10 + $0x30] sm:$0xff]  ;;  %v2278_v45 = vld [vmem:[%s3849_s12 + $0x48] sm:$0xff] }
 0x824   : > { %v1841_v22 = vpop.permute.xlu0 %1840  ;;  %2129 = vmatpush1.msra.mxu1 %v2078_v56  ;;  %v2070_v31 = vld [vmem:[%s3847_s10 + $0x10] sm:$0xff]  ;;  %v2293_v56 = vld [vmem:[%s3849_s12 + $0xc0] sm:$0xff] }
 0x825   : > { %v1870_v23 = vsel %vm860_vm2, %v1866_v55, %v1841_v22  ;;  %2130 = vmatprep.subr.mxu1 %v2077_v63  ;;  %v2073_v22 = vld [vmem:[%s3847_s10 + $0x28] sm:$0xff]  ;;  %v2072_v55 = vld [vmem:[%s3847_s10 + $0x20] sm:$0xff] }
 0x826   : > { %v1859_v48 = vpop.permute.xlu1 %1858  ;;  %2131 = vmatpush1.msra.mxu1 %v2076_v0  ;;  %v2277_v63 = vld [vmem:[%s3849_s12 + $0x40] sm:$0xff]  ;;  %v2292_v0 = vld [vmem:[%s3849_s12 + $0xb8] sm:$0xff] }
 0x827   : > { %v1876_v62 = vsel %vm1872_vm3, %v1871_v58, %v1859_v48  ;;  %2132 = vmatprep.subr.mxu1 %v2075_v49  ;;  %v2071_v48 = vld [vmem:[%s3847_s10 + $0x18] sm:$0xff] }
 0x828   : > { %v1857_v15 = vpop.permute.xlu0 %1856  ;;  %2133 = vmatpush1.msra.mxu1 %v2074_v50  ;;  %v2276_v49 = vld [vmem:[%s3849_s12 + $0x38] sm:$0xff]  ;;  %v2291_v50 = vld [vmem:[%s3849_s12 + $0xb0] sm:$0xff] }
 0x829   : > { %v1875_v59 = vsel %vm1872_vm3, %v1870_v23, %v1857_v15  ;;  %2134 = vmatprep.subr.mxu1 %v2073_v22  ;;  %v2069_v23 = vld [vmem:[%s3847_s10 + $0x8] sm:$0xff]  ;;  %v2068_v15 = vld [vmem:[%s3847_s10] sm:$0xff]  ;;  %v2275_v22 = vld [vmem:[%s3849_s12 + $0x30] sm:$0xff] }
 0x82a   : > { %2820 = vmatprep.mubr.msk.f32.mxu0 %vm528_vm0, %v1875_v59  ;;  %2135 = vmatpush1.msra.mxu1 %v2072_v55  ;;  %v2290_v55 = vld [vmem:[%s3849_s12 + $0xa8] sm:$0xff] }
 0x82b   : > { %2821 = vmatmul.mubr.msk.f32.gmra.mxu0 %vm528_vm0, %v1876_v62  ;;  %2136 = vmatprep.subr.mxu1 %v2071_v48  ;;  %v2274_v48 = vld [vmem:[%s3849_s12 + $0x28] sm:$0xff] }
 0x82c   : > { %2137 = vmatpush1.msra.mxu1 %v2070_v31  ;;  %v2289_v31 = vld [vmem:[%s3849_s12 + $0xa0] sm:$0xff] }
 0x82d   : > { %2138 = vmatprep.subr.mxu1 %v2069_v23  ;;  %v2273_v23 = vld [vmem:[%s3849_s12 + $0x20] sm:$0xff] }
 0x82e   : > { %2139 = vmatpush1.msra.mxu1 %v2068_v15  ;;  %v2288_v15 = vld [vmem:[%s3849_s12 + $0x98] sm:$0xff] }
 0x8e3   : > { %v2819_v3 = vpop.f32.mrf.mxu0 }
 0x8e4   : > { %v1976_v51 = vadd.f32 %v2819_v3, %v2554_v54 }
 0x8e5   : > { %v1970_v4 = vpop.f32.mrf.mxu0 }
 0x8e6   : > { %v3556_v8 = vadd.f32 %v2935_v7, %v1976_v51  ;;  %v1971_v11 = vadd.f32 %v2554_v54, %v1970_v4 }
 0x8e8   : > { %v3559_v35 = vadd.f32 %v2936_v12, %v1971_v11  ;;  %v1996_v40 = vsel %vm528_vm0, %v3556_v8, 0.0  ;;  %v2045_v12 = vld [vmem:[%s518_s19] sm:$0x1] }
 0x8e9   : > { %1997 = vadd.xlane.f32.xlu1 %v1996_v40 }
 0x8ea   : > { %v1993_v25 = vsel %vm528_vm0, %v3559_v35, 0.0 }
 0x8eb   : > { %1994 = vadd.xlane.f32.xlu0 %v1993_v25  ;;  %v2822_v37 = vpop.f32.mrf.mxu0 }
 0x8ec   : > { %v1986_v38 = vadd.f32 %v2822_v37, %v2554_v54  ;;  %v2046_v37 = vadd.f32 1.0, %v2045_v12 }
 0x8ed   : > { %v1980_v28 = vpop.f32.mrf.mxu0 }
 0x8ee   : > { %v1981_v13 = vadd.f32 %v2554_v54, %v1980_v28  ;;  %v3569_v60 = vadd.f32 %v2938_v41, %v1986_v38 }
 0x8f0   : > { %v3566_v19 = vadd.f32 %v2937_v53, %v1981_v13  ;;  %v2002_v18 = vsel %vm528_vm0, %v3569_v60, 0.0  ;;  %v2051_v53 = vrot.slane %v2046_v37, %v3132_v61 }
 0x8f2   : > { %v1999_v16 = vsel %vm528_vm0, %v3566_v19, 0.0 }
 0x8f3   : > { %2000 = vadd.xlane.f32.xlu0 %v1999_v16 }
 0x8f7   : > { %2003 = vadd.xlane.f32.xlu0 %v2002_v18 }
 0x972   : > { %v1998_v30 = vpop.xlane.xlu1 %1997 }
 0x973   : > { %v2006_v47 = vmul.f32 0.015625, %v1998_v30  ;;  %v2559_v30 = vld [vmem:[%s515_s24] ss:$0 sm:$0xff] }
 0x974   : > { %v1995_v20 = vpop.xlane.xlu0 %1994 }
 0x975   : > { %v3576_v26 = vsub.f32 %v3556_v8, %v2006_v47  ;;  %v2005_v34 = vmul.f32 0.015625, %v1995_v20 }
 0x977   : > { %v3579_v6 = vsub.f32 %v3559_v35, %v2005_v34  ;;  %v2014_v39 = vmul.f32 %v3576_v26, %v3576_v26 }
 0x979   : > { %v2020_v10 = vsel %vm528_vm0, %v2014_v39, 0.0  ;;  %v2013_v42 = vmul.f32 %v3579_v6, %v3579_v6 }
 0x97a   : > { %2021 = vadd.xlane.f32.xlu1 %v2020_v10 }
 0x97b   : > { %v2017_v14 = vsel %vm528_vm0, %v2013_v42, 0.0 }
 0x97c   : > { %2018 = vadd.xlane.f32.xlu0 %v2017_v14  ;;  %v2001_v24 = vpop.xlane.xlu0 %2000 }
 0x97d   : > { %v2007_v17 = vmul.f32 0.015625, %v2001_v24 }
 0x97f   : > { %v3588_v29 = vsub.f32 %v3566_v19, %v2007_v17 }
 0x980   : > { %v2004_v21 = vpop.xlane.xlu0 %2003 }
 0x981   : > { %v2008_v32 = vmul.f32 0.015625, %v2004_v21  ;;  %v2015_v46 = vmul.f32 %v3588_v29, %v3588_v29  ;;  %v2284_v21 = vld [vmem:[%s3849_s12 + $0x78] sm:$0xff] }
 0x983   : > { %v3593_v9 = vsub.f32 %v3569_v60, %v2008_v32  ;;  %v2023_v27 = vsel %vm528_vm0, %v2015_v46, 0.0  ;;  %v2299_v32 = vld [vmem:[%s3849_s12 + $0xf0] sm:$0xff]  ;;  %v2298_v46 = vld [vmem:[%s3849_s12 + $0xe8] sm:$0xff] }
 0x984   : > { %2024 = vadd.xlane.f32.xlu0 %v2023_v27  ;;  %v2297_v27 = vld [vmem:[%s3849_s12 + $0xe0] sm:$0xff] }
 0x985   : > { %v2016_v44 = vmul.f32 %v3593_v9, %v3593_v9 }
 0x987   : > { %v2026_v1 = vsel %vm528_vm0, %v2016_v44, 0.0  ;;  %v2281_v44 = vld [vmem:[%s3849_s12 + $0x60] sm:$0xff] }
 0x988   : > { %2027 = vadd.xlane.f32.xlu1 %v2026_v1  ;;  %v2296_v1 = vld [vmem:[%s3849_s12 + $0xd8] sm:$0xff] }
 0xa03   : > { %v2022_v58 = vpop.xlane.xlu1 %2021 }
 0xa04   : > { %v2030_v59 = vmul.f32 0.015625, %v2022_v58  ;;  %v2272_v58 = vld [vmem:[%s3849_s12 + $0x18] sm:$0xff] }
 0xa05   : > { %v2019_v62 = vpop.xlane.xlu0 %2018 }
 0xa06   : > { %v2034_v54 = vadd.f32 1e-05, %v2030_v59  ;;  %v2029_v3 = vmul.f32 0.015625, %v2019_v62  ;;  %v2287_v59 = vld [vmem:[%s3849_s12 + $0x90] sm:$0xff] }
 0xa07   : > { %v2271_v62 = vld [vmem:[%s3849_s12 + $0x10] sm:$0xff] }
 0xa08   : > { %2911 = vrsqrt.f32 %v2034_v54  ;;  %v2033_v51 = vadd.f32 1e-05, %v2029_v3  ;;  %v2286_v54 = vld [vmem:[%s3849_s12 + $0x88] sm:$0xff] }
 0xa09   : > { %v2270_v3 = vld [vmem:[%s3849_s12 + $0x8] sm:$0xff] }
 0xa0a   : > { %2913 = vrsqrt.f32 %v2033_v51  ;;  %v2285_v51 = vld [vmem:[%s3849_s12 + $0x80] sm:$0xff] }
 0xa0d   : > { %v2025_v4 = vpop.xlane.xlu0 %2024 }
 0xa0e   : > { %v2031_v7 = vmul.f32 0.015625, %v2025_v4  ;;  %v2269_v4 = vld [vmem:[%s3849_s12] sm:$0xff] }
 0xa10   : > { %v2035_v11 = vadd.f32 1e-05, %v2031_v7  ;;  %v2084_v7 = vld [vmem:[%s3848_s11] sm:$0x3] }
 0xa11   : > { %v2028_v40 = vpop.xlane.xlu1 %2027  ;;  %v2093_v12 = vrot.slane %v2084_v7, %v629_v33 }
 0xa12   : > { %2915 = vrsqrt.f32 %v2035_v11  ;;  %v2032_v25 = vmul.f32 0.015625, %v2028_v40  ;;  %v2089_v11 = vrot.slane %v2084_v7, %v3132_v61 }
 0xa14   : > { %v2036_v28 = vadd.f32 1e-05, %v2032_v25 }
 0xa15   : > { %v2912_v38 = vpop.eup %2911 }
 0xa16   : > { %2917 = vrsqrt.f32 %v2036_v28  ;;  %v2042_v16 = vmul.f32 %v2912_v38, %v3576_v26 }
 0xa17   : > { %v2914_v13 = vpop.eup %2913 }
 0xa18   : > { %v2041_v41 = vmul.f32 %v2914_v13, %v3579_v6  ;;  %v2054_v20 = vmul.f32 %v2051_v53, %v2042_v16 }
 0xa1a   : > { %v2053_v18 = vmul.f32 %v2051_v53, %v2041_v41  ;;  %v2065_v39 = vadd.f32 %v2559_v30, %v2054_v20 }
 0xa1c   : > { %v2064_v47 = vadd.f32 %v2559_v30, %v2053_v18 }
 0xa1e   : > { %2560 = vmatmul.mubr.msk.f32.vlgmr.msra.gmra.mxu1 %vm528_vm0, %v2064_v47 }
 0xa1f   : > { %v2916_v34 = vpop.eup %2915  ;;  %2178 = vmatprep.mubr.f32.mxu1 %v2947_v36 }
 0xa20   : > { %v2043_v10 = vmul.f32 %v2916_v34, %v3588_v29  ;;  %v2300_v29 = vld [vmem:[%s3849_s12 + $0xf8] sm:$0xff] }
 0xa21   : > { %2645 = vmatprep.subr.mxu0 %v2300_v29 }
 0xa22   : > { %2561 = vmatmul.mubr.msk.f32.gmra.mxu1 %vm528_vm0, %v2065_v39  ;;  %v2055_v6 = vmul.f32 %v2051_v53, %v2043_v10  ;;  %2646 = vmatpush3.msra.mxu0 %v2284_v21 }
 0xa23   : > { %v2918_v42 = vpop.eup %2917  ;;  %2184 = vmatprep.mubr.f32.mxu1 %v2947_v36  ;;  %2647 = vmatprep.subr.mxu0 %v2299_v32 }
 0xa24   : > { %v2066_v14 = vadd.f32 %v2559_v30, %v2055_v6  ;;  %v2044_v26 = vmul.f32 %v2918_v42, %v3593_v9  ;;  %v2282_v9 = vld [vmem:[%s3849_s12 + $0x68] sm:$0xff] }
 0xa26   : > { %2562 = vmatmul.mubr.msk.f32.gmra.mxu1 %vm528_vm0, %v2066_v14  ;;  %v2056_v24 = vmul.f32 %v2051_v53, %v2044_v26 }
 0xa27   : > { %2190 = vmatprep.mubr.f32.mxu1 %v2947_v36  ;;  %v2283_v36 = vld [vmem:[%s3849_s12 + $0x70] sm:$0xff] }
 0xa28   : > { %v2067_v17 = vadd.f32 %v2559_v30, %v2056_v24  ;;  %2648 = vmatpush3.msra.mxu0 %v2283_v36 }
 0xa29   : > { %2649 = vmatprep.subr.mxu0 %v2298_v46 }
 0xa2a   : > { %2563 = vmatmul.mubr.msk.f32.gmra.mxu1 %vm528_vm0, %v2067_v17  ;;  %2650 = vmatpush3.msra.mxu0 %v2282_v9 }
 0xa2b   : > { %2651 = vmatprep.subr.mxu0 %v2297_v27 }
 0xa2c   : > { %2652 = vmatpush3.msra.mxu0 %v2281_v44 }
 0xa2d   : > { %2653 = vmatprep.subr.mxu0 %v2296_v1 }
 0xa2e   : > { %2654 = vmatpush3.msra.mxu0 %v2280_v2 }
 0xa2f   : > { %2655 = vmatprep.subr.mxu0 %v2295_v52 }
 0xa30   : > { %2656 = vmatpush3.msra.mxu0 %v2279_v5 }
 0xa31   : > { %2657 = vmatprep.subr.mxu0 %v2294_v43 }
 0xa32   : > { %2658 = vmatpush3.msra.mxu0 %v2278_v45 }
 0xa33   : > { %2659 = vmatprep.subr.mxu0 %v2293_v56 }
 0xa34   : > { %2660 = vmatpush3.msra.mxu0 %v2277_v63 }
 0xa35   : > { %2661 = vmatprep.subr.mxu0 %v2292_v0 }
 0xa36   : > { %2662 = vmatpush3.msra.mxu0 %v2276_v49 }
 0xa37   : > { %2663 = vmatprep.subr.mxu0 %v2291_v50 }
 0xa38   : > { %2664 = vmatpush3.msra.mxu0 %v2275_v22 }
 0xa39   : > { %2665 = vmatprep.subr.mxu0 %v2290_v55 }
 0xa3a   : > { %2666 = vmatpush3.msra.mxu0 %v2274_v48 }
 0xa3b   : > { %2667 = vmatprep.subr.mxu0 %v2289_v31 }
 0xa3c   : > { %2668 = vmatpush3.msra.mxu0 %v2273_v23 }
 0xa3d   : > { %2669 = vmatprep.subr.mxu0 %v2288_v15 }
 0xa3e   : > { %2670 = vmatpush3.msra.mxu0 %v2272_v58 }
 0xa3f   : > { %2671 = vmatprep.subr.mxu0 %v2287_v59 }
 0xa40   : > { %2672 = vmatpush3.msra.mxu0 %v2271_v62 }
 0xa41   : > { %2673 = vmatprep.subr.mxu0 %v2286_v54 }
 0xa42   : > { %2674 = vmatpush3.msra.mxu0 %v2270_v3 }
 0xa43   : > { %2675 = vmatprep.subr.mxu0 %v2285_v51 }
 0xa44   : > { %2676 = vmatpush3.msra.mxu0 %v2269_v4 }
 0xade   : > { %v2174_v40 = vpop.f32.mrf.mxu1 }
 0xadf   : > { %v3769_v25 = vadd.f32 %v2174_v40, %v2089_v11 }
 0xae0   : > { %v2176_v37 = vpop.f32.mrf.mxu1 }
 0xae1   : > { %v2197_v28 = vmul.f32 %v3769_v25, %v3769_v25  ;;  %v3773_v38 = vadd.f32 %v2176_v37, %v2093_v12 }
 0xae2   : > { %v2180_v13 = vpop.f32.mrf.mxu1 }
 0xae3   : > { %v2205_v53 = vmul.f32 %v2197_v28, %v3769_v25  ;;  %v2198_v41 = vmul.f32 %v3773_v38, %v3773_v38  ;;  %v3778_v16 = vadd.f32 %v2180_v13, %v2089_v11 }
 0xae4   : > { %v2182_v61 = vpop.f32.mrf.mxu1 }
 0xae5   : > { %v2213_v57 = vmul.f32 0.044715, %v2205_v53  ;;  %v2206_v33 = vmul.f32 %v2198_v41, %v3773_v38  ;;  %v2199_v18 = vmul.f32 %v3778_v16, %v3778_v16  ;;  %v3783_v30 = vadd.f32 %v2182_v61, %v2093_v12 }
 0xae6   : > { %v2186_v47 = vpop.f32.mrf.mxu1 }
 0xae7   : > { %v2221_v20 = vadd.f32 %v2213_v57, %v3769_v25  ;;  %v2214_v34 = vmul.f32 0.044715, %v2206_v33  ;;  %v2207_v39 = vmul.f32 %v2199_v18, %v3778_v16  ;;  %v2200_v10 = vmul.f32 %v3783_v30, %v3783_v30 }
 0xae8   : > { %v3789_v6 = vadd.f32 %v2186_v47, %v2089_v11  ;;  %v2188_v42 = vpop.f32.mrf.mxu1 }
 0xae9   : > { %v2229_v14 = vmul.f32 0.7978846, %v2221_v20  ;;  %v2222_v26 = vadd.f32 %v2214_v34, %v3773_v38  ;;  %v2215_v24 = vmul.f32 0.044715, %v2207_v39  ;;  %v2208_v17 = vmul.f32 %v2200_v10, %v3783_v30 }
 0xaea   : > { %v2201_v29 = vmul.f32 %v3789_v6, %v3789_v6  ;;  %v3795_v21 = vadd.f32 %v2188_v42, %v2093_v12  ;;  %v2192_v32 = vpop.f32.mrf.mxu1 }
 0xaeb   : > { %2919 = vtanh.f32 %v2229_v14  ;;  %v2230_v36 = vmul.f32 0.7978846, %v2222_v26  ;;  %v2223_v46 = vadd.f32 %v2215_v24, %v3778_v16  ;;  %v2216_v9 = vmul.f32 0.044715, %v2208_v17 }
 0xaec   : > { %v2209_v27 = vmul.f32 %v2201_v29, %v3789_v6  ;;  %v2202_v44 = vmul.f32 %v3795_v21, %v3795_v21  ;;  %v3801_v1 = vadd.f32 %v2192_v32, %v2089_v11  ;;  %v2194_v2 = vpop.f32.mrf.mxu1 }
 0xaed   : > { %2921 = vtanh.f32 %v2230_v36  ;;  %v2231_v52 = vmul.f32 0.7978846, %v2223_v46  ;;  %v2224_v5 = vadd.f32 %v2216_v9, %v3783_v30  ;;  %v2195_v43 = vadd.f32 %v2194_v2, %v2093_v12 }
 0xaee   : > { %v2217_v45 = vmul.f32 0.044715, %v2209_v27  ;;  %v2210_v56 = vmul.f32 %v2202_v44, %v3795_v21  ;;  %v2203_v63 = vmul.f32 %v3801_v1, %v3801_v1  ;;  %v2564_v27 = vld [vmem:[%s3850_s13] ss:$0 sm:$0xff] }
 0xaef   : > { %2923 = vtanh.f32 %v2231_v52  ;;  %v2232_v0 = vmul.f32 0.7978846, %v2224_v5  ;;  %v2204_v49 = vmul.f32 %v2195_v43, %v2195_v43 }
 0xaf0   : > { %v2225_v50 = vadd.f32 %v2217_v45, %v3789_v6  ;;  %v2218_v22 = vmul.f32 0.044715, %v2210_v56  ;;  %v2211_v55 = vmul.f32 %v2203_v63, %v3801_v1 }
 0xaf1   : > { %2925 = vtanh.f32 %v2232_v0  ;;  %v2212_v48 = vmul.f32 %v2204_v49, %v2195_v43 }
 0xaf2   : > { %v2233_v31 = vmul.f32 0.7978846, %v2225_v50  ;;  %v2226_v23 = vadd.f32 %v2218_v22, %v3795_v21  ;;  %v2219_v15 = vmul.f32 0.044715, %v2211_v55 }
 0xaf3   : > { %v2220_v58 = vmul.f32 0.044715, %v2212_v48 }
 0xaf4   : > { %2927 = vtanh.f32 %v2233_v31  ;;  %v2234_v59 = vmul.f32 0.7978846, %v2226_v23  ;;  %v2227_v62 = vadd.f32 %v2219_v15, %v3801_v1 }
 0xaf5   : > { %v2228_v54 = vadd.f32 %v2220_v58, %v2195_v43 }
 0xaf6   : > { %2929 = vtanh.f32 %v2234_v59  ;;  %v2235_v3 = vmul.f32 0.7978846, %v2227_v62 }
 0xaf7   : > { %v2236_v51 = vmul.f32 0.7978846, %v2228_v54 }
 0xaf8   : > { %v2920_v4 = vpop.eup %2919  ;;  %2931 = vtanh.f32 %v2235_v3 }
 0xaf9   : > { %v2245_v7 = vadd.f32 1.0, %v2920_v4  ;;  %2933 = vtanh.f32 %v2236_v51 }
 0xafa   : > { %v2922_v11 = vpop.eup %2921 }
 0xafb   : > { %v2246_v12 = vadd.f32 1.0, %v2922_v11  ;;  %v2253_v37 = vmul.f32 0.5, %v2245_v7 }
 0xafc   : > { %v2924_v40 = vpop.eup %2923 }
 0xafd   : > { %v2254_v28 = vmul.f32 0.5, %v2246_v12  ;;  %v2247_v13 = vadd.f32 1.0, %v2924_v40  ;;  %v2261_v57 = vmul.f32 %v2253_v37, %v3769_v25 }
 0xafe   : > { %v2926_v53 = vpop.eup %2925 }
 0xaff   : > { %v2262_v41 = vmul.f32 %v2254_v28, %v3773_v38  ;;  %v2248_v61 = vadd.f32 1.0, %v2926_v53  ;;  %v2255_v33 = vmul.f32 0.5, %v2247_v13 }
 0xb01   : > { %v2928_v18 = vpop.eup %2927  ;;  %2372 = vmatprep.mubr.f32.mxu0 %v2262_v41  ;;  %v2256_v47 = vmul.f32 0.5, %v2248_v61  ;;  %v2263_v10 = vmul.f32 %v2255_v33, %v3778_v16 }
 0xb02   : > { %2373 = vmatmul.mubr.f32.vlgmr.msra.gmra.mxu0 %v2261_v57  ;;  %v2249_v20 = vadd.f32 1.0, %v2928_v18 }
 0xb03   : > { %v2930_v34 = vpop.eup %2929  ;;  %v2264_v39 = vmul.f32 %v2256_v47, %v3783_v30 }
 0xb04   : > { %v2250_v42 = vadd.f32 1.0, %v2930_v34  ;;  %v2257_v26 = vmul.f32 0.5, %v2249_v20 }
 0xb05   : > { %v2932_v14 = vpop.eup %2931  ;;  %2377 = vmatprep.mubr.f32.mxu0 %v2264_v39 }
 0xb06   : > { %v2934_v24 = vpop.eup %2933  ;;  %2378 = vmatmul.mubr.f32.gmra.mxu0 %v2263_v10  ;;  %v2258_v38 = vmul.f32 0.5, %v2250_v42  ;;  %v2251_v17 = vadd.f32 1.0, %v2932_v14  ;;  %v2265_v32 = vmul.f32 %v2257_v26, %v3789_v6 }
 0xb07   : > { %v2252_v25 = vadd.f32 1.0, %v2934_v24 }
 0xb08   : > { %v2266_v29 = vmul.f32 %v2258_v38, %v3795_v21  ;;  %v2259_v46 = vmul.f32 0.5, %v2251_v17 }
 0xb09   : > { %v2260_v36 = vmul.f32 0.5, %v2252_v25 }
 0xb0a   : > { %2382 = vmatprep.mubr.f32.mxu0 %v2266_v29  ;;  %v2267_v16 = vmul.f32 %v2259_v46, %v3801_v1 }
 0xb0b   : > { %2383 = vmatmul.mubr.f32.gmra.mxu0 %v2265_v32  ;;  %v2268_v30 = vmul.f32 %v2260_v36, %v2195_v43 }
 0xb0d   : > { %2387 = vmatprep.mubr.f32.mxu0 %v2268_v30 }
 0xb0f   : > { %2388 = vmatmul.mubr.f32.gmra.mxu0 %v2267_v16 }
 0xbc2   : > { %v2677_v9 = vpop.f32.mrf.mxu0 }
 0xbc4   : > { %v2678_v44 = vpop.f32.mrf.mxu0 }
 0xbc5   : > { %v2679_v2 = vadd.f32 %v2678_v44, %v2677_v9 }
 0xbc6   : > { %v2680_v21 = vpop.f32.mrf.mxu0 }
 0xbc7   : > { %v2375_v52 = vadd.f32 %v2679_v2, %v2564_v27 }
 0xbc8   : > { %v2681_v6 = vpop.f32.mrf.mxu0 }
 0xbc9   : > { %v2393_v5 = vadd.f32 %v2375_v52, %v3559_v35  ;;  %v2682_v43 = vadd.f32 %v2681_v6, %v2680_v21 }
 0xbcb   : > { %2397 = vst.msk [vmem:[%s523_s27] sm:$0xff] %vm528_vm0, %v2393_v5  ;;  %v2380_v1 = vadd.f32 %v2682_v43, %v2564_v27  ;;  %v2683_v45 = vpop.f32.mrf.mxu0 }
 0xbcd   : > { %v2394_v56 = vadd.f32 %v2380_v1, %v3556_v8  ;;  %v2684_v63 = vpop.f32.mrf.mxu0 }
 0xbce   : > { %v2685_v0 = vadd.f32 %v2684_v63, %v2683_v45 }
 0xbcf   : > { %2398 = vst.msk [vmem:[%s523_s27 + $0x8] sm:$0xff] %vm528_vm0, %v2394_v56  ;;  %v2686_v49 = vpop.f32.mrf.mxu0 }
 0xbd0   : > { %v2385_v50 = vadd.f32 %v2685_v0, %v2564_v27 }
 0xbd1   : > { %v2687_v22 = vpop.f32.mrf.mxu0 }
 0xbd2   : > { %v2395_v55 = vadd.f32 %v2385_v50, %v3566_v19  ;;  %v2688_v48 = vadd.f32 %v2687_v22, %v2686_v49 }
 0xbd4   : > { %2399 = vst.msk [vmem:[%s523_s27 + $0x10] sm:$0xff] %vm528_vm0, %v2395_v55  ;;  %v2390_v35 = vadd.f32 %v2688_v48, %v2564_v27 }
 0xbd6   : > { %v2396_v31 = vadd.f32 %v2390_v35, %v3569_v60 }
 0xbd8   : > { %2400 = vst.msk [vmem:[%s523_s27 + $0x18] sm:$0xff] %vm528_vm0, %v2396_v31 }
 0xbd9 PF: > { %s24_s29 = sadd.s32 1, %s2945_s29  }
 0xbda   : > { %p21_p4 = scmp.ge.s32.totalorder %s24_s29, 4  }
 0xbdc   :  { %23 = sbr.rel (!%p21_p4) target bundleno = 1 (0x1), region = 118 }

// kernel: _lambda_.18
= control target key start
LH: loop header
LB: loop body
LE: loop exit
PB: predicated region body
PF: predicated region fallthrough
CT: control target
= control target key end

     0   :  { %s1045_s18 = smov 0   ;;  %s1047_s19 = smov 0   ;;  %s1362_s0 = inlined_call_operand.vmem [shape: f32[2,128,32], index: 0, kind: input, shape index: {}]   ;;  %s1363_s1 = inlined_call_operand.vmem [shape: f32[1,1,32], index: 1, kind: input, shape index: {}]   ;;  %s1364_s2 = inlined_call_operand.vmem [shape: f32[1,1,32], index: 2, kind: input, shape index: {}]   ;;  %s1365_s3 = inlined_call_operand.vmem [shape: f32[32,32], index: 3, kind: input, shape index: {}]   ;;  %s1366_s4 = inlined_call_operand.vmem [shape: f32[1,32], index: 4, kind: input, shape index: {}]   ;;  %s1367_s5 = inlined_call_operand.vmem [shape: f32[2,128,32], index: 5, kind: output, shape index: {}]  }
   0x1   :  { %s1049_s20 = smov 0  }
   0x2 LB: > { %s27_s21 = sadd.s32 1, %s1009_s19  ;;  %p847_p0 = scmp.ge.s32.totalorder %s1013_s20, 1  ;;  %s1013_s20 = sphi %s1049_s20, %s15_s20   ;;  %s1009_s19 = sphi %s1047_s19, %s1369_s19   ;;  %s1005_s18 = sphi %s1045_s18, %s1368_s18  }
   0x3   : > { %p29_p1 = scmp.ge.s32.totalorder %s27_s21, 2  ;;  %p208_p2 = scmp.lt.s32.totalorder %s1013_s20, 3 }
   0x5   : > { %s1371_s21 = smov (%p29_p1, %s27_s21), 0  ;;  %p209_p3 = pnand %p847_p0, %p208_p2 }
   0x6   : > { %p245_p4 = scmp.lt.s32.totalorder (!%p209_p3), %s1005_s18, 1 }
   0x7   : > { %212 = sbr.rel (%p209_p3) target bundleno = 554 (0x22a), region = 40 }
   0xc   : > { %s1373_s18 = smov (!%p245_p4, %s1005_s18), 1  ;;  %vm280_vm0 = vcmask 261120  }
   0xd   : > { %s873_s22 = sshll.u32 %s1373_s18, 7 }
   0xe   : > { %s1071_s25 = scalar_lea.vmem %s1362_s0, %s873_s22  ;;  %s1319_s17 = scalar_lea.vmem %s1367_s5, %s873_s22 }
   0xf   : > { %v264_v0 = vld [vmem:[%s1071_s25] sm:$0xff]  ;;  %v265_v1 = vld [vmem:[%s1071_s25 + $0x8] sm:$0xff]  ;;  %v266_v8 = vld [vmem:[%s1071_s25 + $0x10] sm:$0xff] }
  0x10   : > { %v272_v2 = vld [vmem:[%s1071_s25 + $0x40] sm:$0xff]  ;;  %v281_v3 = vsel %vm280_vm0, %v264_v0, 0.0  ;;  %v284_v4 = vsel %vm280_vm0, %v265_v1, 0.0  ;;  %v273_v5 = vld [vmem:[%s1071_s25 + $0x48] sm:$0xff]  ;;  %v274_v9 = vld [vmem:[%s1071_s25 + $0x50] sm:$0xff]  ;;  %v287_v10 = vsel %vm280_vm0, %v266_v8, 0.0 }
  0x11   : > { %282 = vadd.xlane.f32.xlu0 %v281_v3  ;;  %285 = vadd.xlane.f32.xlu1 %v284_v4  ;;  %v305_v6 = vsel %vm280_vm0, %v272_v2, 0.0  ;;  %v308_v7 = vsel %vm280_vm0, %v273_v5, 0.0  ;;  %v311_v11 = vsel %vm280_vm0, %v274_v9, 0.0  ;;  %v1086_v12 = vld [vmem:[%s1071_s25 + $0x18] sm:$0xff]  ;;  %v1096_v16 = vld [vmem:[%s1071_s25 + $0x20] sm:$0xff]  ;;  %v1106_v20 = vld [vmem:[%s1071_s25 + $0x28] sm:$0xff] }
  0x12   : > { %v1089_v13 = vld [vmem:[%s1071_s25 + $0x58] sm:$0xff]  ;;  %v290_v14 = vsel %vm280_vm0, %v1086_v12, 0.0  ;;  %v1099_v17 = vld [vmem:[%s1071_s25 + $0x60] sm:$0xff]  ;;  %v293_v18 = vsel %vm280_vm0, %v1096_v16, 0.0  ;;  %v1109_v21 = vld [vmem:[%s1071_s25 + $0x68] sm:$0xff]  ;;  %v296_v22 = vsel %vm280_vm0, %v1106_v20, 0.0 }
  0x13   : > { %v314_v15 = vsel %vm280_vm0, %v1089_v13, 0.0  ;;  %v317_v19 = vsel %vm280_vm0, %v1099_v17, 0.0  ;;  %v320_v23 = vsel %vm280_vm0, %v1109_v21, 0.0  ;;  %v1116_v24 = vld [vmem:[%s1071_s25 + $0x30] sm:$0xff]  ;;  %v1126_v28 = vld [vmem:[%s1071_s25 + $0x38] sm:$0xff] }
  0x14   : > { %v1119_v25 = vld [vmem:[%s1071_s25 + $0x70] sm:$0xff]  ;;  %v299_v26 = vsel %vm280_vm0, %v1116_v24, 0.0  ;;  %v1129_v29 = vld [vmem:[%s1071_s25 + $0x78] sm:$0xff]  ;;  %v302_v30 = vsel %vm280_vm0, %v1126_v28, 0.0 }
  0x15   : > { %306 = vadd.xlane.f32.xlu0 %v305_v6  ;;  %309 = vadd.xlane.f32.xlu1 %v308_v7  ;;  %v323_v27 = vsel %vm280_vm0, %v1119_v25, 0.0  ;;  %v326_v31 = vsel %vm280_vm0, %v1129_v29, 0.0 }
  0x19   : > { %288 = vadd.xlane.f32.xlu0 %v287_v10  ;;  %312 = vadd.xlane.f32.xlu1 %v311_v11 }
  0x1d   : > { %291 = vadd.xlane.f32.xlu0 %v290_v14  ;;  %315 = vadd.xlane.f32.xlu1 %v314_v15 }
  0x21   : > { %294 = vadd.xlane.f32.xlu0 %v293_v18  ;;  %318 = vadd.xlane.f32.xlu1 %v317_v19 }
  0x25   : > { %297 = vadd.xlane.f32.xlu0 %v296_v22  ;;  %321 = vadd.xlane.f32.xlu1 %v320_v23 }
  0x29   : > { %300 = vadd.xlane.f32.xlu0 %v299_v26  ;;  %324 = vadd.xlane.f32.xlu1 %v323_v27 }
  0x2d   : > { %303 = vadd.xlane.f32.xlu0 %v302_v30  ;;  %327 = vadd.xlane.f32.xlu1 %v326_v31 }
  0x9a   : > { %v283_v32 = vpop.xlane.xlu0 %282  ;;  %v286_v33 = vpop.xlane.xlu1 %285 }
  0x9b   : > { %v330_v34 = vmul.f32 0.03125, %v283_v32  ;;  %v331_v35 = vmul.f32 0.03125, %v286_v33 }
  0x9d   : > { %v1135_v36 = vsub.f32 %v264_v0, %v330_v34  ;;  %v1137_v37 = vsub.f32 %v265_v1, %v331_v35 }
  0x9e   : > { %v307_v38 = vpop.xlane.xlu0 %306  ;;  %v310_v39 = vpop.xlane.xlu1 %309 }
  0x9f   : > { %v338_v40 = vmul.f32 0.03125, %v307_v38  ;;  %v339_v41 = vmul.f32 0.03125, %v310_v39  ;;  %v362_v42 = vmul.f32 %v1135_v36, %v1135_v36  ;;  %v363_v43 = vmul.f32 %v1137_v37, %v1137_v37 }
  0xa1   : > { %v1143_v44 = vsub.f32 %v272_v2, %v338_v40  ;;  %v1145_v45 = vsub.f32 %v273_v5, %v339_v41  ;;  %v378_v46 = vsel %vm280_vm0, %v362_v42, 0.0  ;;  %v381_v49 = vsel %vm280_vm0, %v363_v43, 0.0 }
  0xa2   : > { %379 = vadd.xlane.f32.xlu0 %v378_v46  ;;  %v289_v47 = vpop.xlane.xlu0 %288  ;;  %v313_v48 = vpop.xlane.xlu1 %312 }
  0xa3   : > { %v332_v50 = vmul.f32 0.03125, %v289_v47  ;;  %v340_v51 = vmul.f32 0.03125, %v313_v48  ;;  %v370_v52 = vmul.f32 %v1143_v44, %v1143_v44  ;;  %v371_v53 = vmul.f32 %v1145_v45, %v1145_v45 }
  0xa5   : > { %v1153_v54 = vsub.f32 %v266_v8, %v332_v50  ;;  %v1155_v55 = vsub.f32 %v274_v9, %v340_v51  ;;  %v402_v56 = vsel %vm280_vm0, %v370_v52, 0.0  ;;  %v405_v59 = vsel %vm280_vm0, %v371_v53, 0.0  ;;  %v538_v53 = vld [vmem:[%s1365_s3 + $0x10] sm:$0xff] }
  0xa6   : > { %382 = vadd.xlane.f32.xlu0 %v381_v49  ;;  %403 = vadd.xlane.f32.xlu1 %v402_v56  ;;  %v292_v57 = vpop.xlane.xlu0 %291  ;;  %v316_v58 = vpop.xlane.xlu1 %315  ;;  %v537_v56 = vld [vmem:[%s1365_s3 + $0x8] sm:$0xff] }
  0xa7   : > { %v333_v60 = vmul.f32 0.03125, %v292_v57  ;;  %v341_v61 = vmul.f32 0.03125, %v316_v58  ;;  %v364_v62 = vmul.f32 %v1153_v54, %v1153_v54  ;;  %v372_v63 = vmul.f32 %v1155_v55, %v1155_v55  ;;  %v536_v57 = vld [vmem:[%s1365_s3] sm:$0xff] }
  0xa9   : > { %v1164_v0 = vsub.f32 %v1086_v12, %v333_v60  ;;  %v1167_v1 = vsub.f32 %v1089_v13, %v341_v61  ;;  %v384_v2 = vsel %vm280_vm0, %v364_v62, 0.0  ;;  %v408_v5 = vsel %vm280_vm0, %v372_v63, 0.0 }
  0xaa   : > { %406 = vadd.xlane.f32.xlu1 %v405_v59  ;;  %385 = vadd.xlane.f32.xlu0 %v384_v2  ;;  %v295_v3 = vpop.xlane.xlu0 %294  ;;  %v319_v4 = vpop.xlane.xlu1 %318 }
  0xab   : > { %v334_v6 = vmul.f32 0.03125, %v295_v3  ;;  %v342_v7 = vmul.f32 0.03125, %v319_v4  ;;  %v365_v8 = vmul.f32 %v1164_v0, %v1164_v0  ;;  %v373_v9 = vmul.f32 %v1167_v1, %v1167_v1 }
  0xad   : > { %v1176_v10 = vsub.f32 %v1096_v16, %v334_v6  ;;  %v1179_v11 = vsub.f32 %v1099_v17, %v342_v7  ;;  %v387_v12 = vsel %vm280_vm0, %v365_v8, 0.0  ;;  %v411_v15 = vsel %vm280_vm0, %v373_v9, 0.0 }
  0xae   : > { %409 = vadd.xlane.f32.xlu1 %v408_v5  ;;  %388 = vadd.xlane.f32.xlu0 %v387_v12  ;;  %v298_v13 = vpop.xlane.xlu0 %297  ;;  %v322_v14 = vpop.xlane.xlu1 %321 }
  0xaf   : > { %v335_v18 = vmul.f32 0.03125, %v298_v13  ;;  %v343_v19 = vmul.f32 0.03125, %v322_v14  ;;  %v366_v22 = vmul.f32 %v1176_v10, %v1176_v10  ;;  %v374_v16 = vmul.f32 %v1179_v11, %v1179_v11 }
  0xb1   : > { %v1188_v23 = vsub.f32 %v1106_v20, %v335_v18  ;;  %v1191_v17 = vsub.f32 %v1109_v21, %v343_v19  ;;  %v390_v26 = vsel %vm280_vm0, %v366_v22, 0.0  ;;  %v414_v31 = vsel %vm280_vm0, %v374_v16, 0.0 }
  0xb2   : > { %412 = vadd.xlane.f32.xlu1 %v411_v15  ;;  %391 = vadd.xlane.f32.xlu0 %v390_v26  ;;  %v301_v27 = vpop.xlane.xlu0 %300  ;;  %v325_v30 = vpop.xlane.xlu1 %324 }
  0xb3   : > { %v336_v32 = vmul.f32 0.03125, %v301_v27  ;;  %v344_v33 = vmul.f32 0.03125, %v325_v30  ;;  %v367_v34 = vmul.f32 %v1188_v23, %v1188_v23  ;;  %v375_v20 = vmul.f32 %v1191_v17, %v1191_v17 }
  0xb5   : > { %v1200_v35 = vsub.f32 %v1116_v24, %v336_v32  ;;  %v1203_v21 = vsub.f32 %v1119_v25, %v344_v33  ;;  %v393_v38 = vsel %vm280_vm0, %v367_v34, 0.0  ;;  %v417_v41 = vsel %vm280_vm0, %v375_v20, 0.0  ;;  %v1240_v32 = vld [vmem:[%s1363_s1] ss:$0 sm:$0xff] }
  0xb6   : > { %415 = vadd.xlane.f32.xlu1 %v414_v31  ;;  %394 = vadd.xlane.f32.xlu0 %v393_v38  ;;  %v304_v39 = vpop.xlane.xlu0 %303  ;;  %v328_v40 = vpop.xlane.xlu1 %327 }
  0xb7   : > { %v337_v42 = vmul.f32 0.03125, %v304_v39  ;;  %v345_v43 = vmul.f32 0.03125, %v328_v40  ;;  %v368_v46 = vmul.f32 %v1200_v35, %v1200_v35  ;;  %v376_v24 = vmul.f32 %v1203_v21, %v1203_v21  ;;  %v1246_v40 = vld [vmem:[%s1364_s2] ss:$0 sm:$0xff] }
  0xb9   : > { %v1212_v47 = vsub.f32 %v1126_v28, %v337_v42  ;;  %v1215_v25 = vsub.f32 %v1129_v29, %v345_v43  ;;  %v396_v48 = vsel %vm280_vm0, %v368_v46, 0.0  ;;  %v420_v49 = vsel %vm280_vm0, %v376_v24, 0.0  ;;  %v539_v29 = vld [vmem:[%s1365_s3 + $0x18] sm:$0xff] }
  0xba   : > { %418 = vadd.xlane.f32.xlu1 %v417_v41  ;;  %397 = vadd.xlane.f32.xlu0 %v396_v48 }
  0xbb   : > { %v369_v50 = vmul.f32 %v1212_v47, %v1212_v47  ;;  %v377_v51 = vmul.f32 %v1215_v25, %v1215_v25  ;;  %895 = vmatprep.subr.mxu0 %v539_v29  ;;  %927 = vmatprep.subr.mxu1 %v539_v29 }
  0xbc   : > { %896 = vmatpush3.msra.mxu0 %v539_v29  ;;  %931 = vmatpush3.msra.mxu1 %v539_v29 }
  0xbd   : > { %v399_v52 = vsel %vm280_vm0, %v369_v50, 0.0  ;;  %v423_v28 = vsel %vm280_vm0, %v377_v51, 0.0  ;;  %897 = vmatprep.subr.mxu0 %v538_v53  ;;  %928 = vmatprep.subr.mxu1 %v538_v53 }
  0xbe   : > { %421 = vadd.xlane.f32.xlu1 %v420_v49  ;;  %400 = vadd.xlane.f32.xlu0 %v399_v52 }
  0xbf   : > { %898 = vmatpush3.msra.mxu0 %v538_v53  ;;  %932 = vmatpush3.msra.mxu1 %v538_v53 }
  0xc0   : > { %899 = vmatprep.subr.mxu0 %v537_v56  ;;  %929 = vmatprep.subr.mxu1 %v537_v56 }
  0xc1   : > { %900 = vmatpush3.msra.mxu0 %v537_v56  ;;  %933 = vmatpush3.msra.mxu1 %v537_v56 }
  0xc2   : > { %424 = vadd.xlane.f32.xlu1 %v423_v28  ;;  %901 = vmatprep.subr.mxu0 %v536_v57 }
  0xc3   : > { %902 = vmatpush3.msra.mxu0 %v536_v57  ;;  %930 = vmatprep.subr.mxu1 %v536_v57 }
  0xc4   : > { %934 = vmatpush3.msra.mxu1 %v536_v57 }
 0x12b   : > { %v380_v58 = vpop.xlane.xlu0 %379 }
 0x12c   : > { %v426_v59 = vmul.f32 0.03125, %v380_v58 }
 0x12e   : > { %v442_v60 = vadd.f32 1e-05, %v426_v59 }
 0x12f   : > { %v404_v61 = vpop.xlane.xlu1 %403  ;;  %v383_v62 = vpop.xlane.xlu0 %382 }
 0x130   : > { %959 = vrsqrt.f32 %v442_v60  ;;  %v434_v63 = vmul.f32 0.03125, %v404_v61  ;;  %v427_v2 = vmul.f32 0.03125, %v383_v62 }
 0x132   : > { %v450_v3 = vadd.f32 1e-05, %v434_v63  ;;  %v443_v4 = vadd.f32 1e-05, %v427_v2 }
 0x133   : > { %v407_v5 = vpop.xlane.xlu1 %406  ;;  %v386_v6 = vpop.xlane.xlu0 %385 }
 0x134   : > { %961 = vrsqrt.f32 %v450_v3  ;;  %v435_v7 = vmul.f32 0.03125, %v407_v5  ;;  %v428_v8 = vmul.f32 0.03125, %v386_v6 }
 0x135   : > { %963 = vrsqrt.f32 %v443_v4 }
 0x136   : > { %v451_v9 = vadd.f32 1e-05, %v435_v7  ;;  %v444_v12 = vadd.f32 1e-05, %v428_v8 }
 0x137   : > { %v410_v13 = vpop.xlane.xlu1 %409  ;;  %v389_v14 = vpop.xlane.xlu0 %388 }
 0x138   : > { %965 = vrsqrt.f32 %v451_v9  ;;  %v436_v15 = vmul.f32 0.03125, %v410_v13  ;;  %v429_v18 = vmul.f32 0.03125, %v389_v14 }
 0x139   : > { %967 = vrsqrt.f32 %v444_v12 }
 0x13a   : > { %v452_v19 = vadd.f32 1e-05, %v436_v15  ;;  %v445_v22 = vadd.f32 1e-05, %v429_v18 }
 0x13b   : > { %v413_v16 = vpop.xlane.xlu1 %412  ;;  %v392_v26 = vpop.xlane.xlu0 %391 }
 0x13c   : > { %969 = vrsqrt.f32 %v452_v19  ;;  %v437_v27 = vmul.f32 0.03125, %v413_v16  ;;  %v430_v30 = vmul.f32 0.03125, %v392_v26 }
 0x13d   : > { %v960_v31 = vpop.eup %959  ;;  %971 = vrsqrt.f32 %v445_v22 }
 0x13e   : > { %v453_v33 = vadd.f32 1e-05, %v437_v27  ;;  %v446_v34 = vadd.f32 1e-05, %v430_v30  ;;  %v474_v20 = vmul.f32 %v960_v31, %v1135_v36 }
 0x13f   : > { %v416_v38 = vpop.xlane.xlu1 %415  ;;  %v395_v39 = vpop.xlane.xlu0 %394 }
 0x140   : > { %973 = vrsqrt.f32 %v453_v33  ;;  %v438_v41 = vmul.f32 0.03125, %v416_v38  ;;  %v431_v42 = vmul.f32 0.03125, %v395_v39  ;;  %v497_v43 = vmul.f32 %v1240_v32, %v474_v20 }
 0x141   : > { %v962_v46 = vpop.eup %961  ;;  %975 = vrsqrt.f32 %v446_v34 }
 0x142   : > { %v964_v24 = vpop.eup %963  ;;  %v454_v48 = vadd.f32 1e-05, %v438_v41  ;;  %v447_v49 = vadd.f32 1e-05, %v431_v42  ;;  %v520_v50 = vadd.f32 %v1246_v40, %v497_v43  ;;  %v482_v36 = vmul.f32 %v962_v46, %v1143_v44 }
 0x143   : > { %v419_v51 = vpop.xlane.xlu1 %418  ;;  %v398_v52 = vpop.xlane.xlu0 %397  ;;  %v475_v28 = vmul.f32 %v964_v24, %v1137_v37 }
 0x144   : > { %977 = vrsqrt.f32 %v454_v48  ;;  %v439_v29 = vmul.f32 0.03125, %v419_v51  ;;  %v432_v53 = vmul.f32 0.03125, %v398_v52  ;;  %903 = vmatprep.mubr.msk.f32.mxu0 %vm280_vm0, %v520_v50  ;;  %v505_v56 = vmul.f32 %v1240_v32, %v482_v36 }
 0x145   : > { %v966_v57 = vpop.eup %965  ;;  %979 = vrsqrt.f32 %v447_v49  ;;  %v498_v58 = vmul.f32 %v1240_v32, %v475_v28 }
 0x146   : > { %v968_v59 = vpop.eup %967  ;;  %v455_v60 = vadd.f32 1e-05, %v439_v29  ;;  %v448_v61 = vadd.f32 1e-05, %v432_v53  ;;  %v528_v44 = vadd.f32 %v1246_v40, %v505_v56  ;;  %v483_v62 = vmul.f32 %v966_v57, %v1145_v45 }
 0x147   : > { %v422_v63 = vpop.xlane.xlu1 %421  ;;  %v401_v37 = vpop.xlane.xlu0 %400  ;;  %v521_v2 = vadd.f32 %v1246_v40, %v498_v58  ;;  %v476_v3 = vmul.f32 %v968_v59, %v1153_v54 }
 0x148   : > { %981 = vrsqrt.f32 %v455_v60  ;;  %v440_v4 = vmul.f32 0.03125, %v422_v63  ;;  %v433_v5 = vmul.f32 0.03125, %v401_v37  ;;  %915 = vmatprep.mubr.msk.f32.mxu1 %vm280_vm0, %v528_v44  ;;  %v506_v6 = vmul.f32 %v1240_v32, %v483_v62  ;;  %v854_v44 = vld [vmem:[%s1366_s4] ss:$0 sm:$0xff] }
 0x149   : > { %v970_v7 = vpop.eup %969  ;;  %983 = vrsqrt.f32 %v448_v61  ;;  %904 = vmatmul.mubr.msk.f32.vlgmr.msra.gmra.mxu0 %vm280_vm0, %v521_v2  ;;  %v499_v8 = vmul.f32 %v1240_v32, %v476_v3 }
 0x14a   : > { %v972_v45 = vpop.eup %971  ;;  %v456_v9 = vadd.f32 1e-05, %v440_v4  ;;  %v449_v12 = vadd.f32 1e-05, %v433_v5  ;;  %v529_v13 = vadd.f32 %v1246_v40, %v506_v6  ;;  %v484_v54 = vmul.f32 %v970_v7, %v1155_v55 }
 0x14b   : > { %v425_v14 = vpop.xlane.xlu1 %424  ;;  %v522_v15 = vadd.f32 %v1246_v40, %v499_v8  ;;  %v477_v18 = vmul.f32 %v972_v45, %v1164_v0 }
 0x14c   : > { %985 = vrsqrt.f32 %v456_v9  ;;  %v441_v19 = vmul.f32 0.03125, %v425_v14  ;;  %916 = vmatmul.mubr.msk.f32.vlgmr.msra.gmra.mxu1 %vm280_vm0, %v529_v13  ;;  %v507_v22 = vmul.f32 %v1240_v32, %v484_v54 }
 0x14d   : > { %v974_v16 = vpop.eup %973  ;;  %987 = vrsqrt.f32 %v449_v12  ;;  %906 = vmatprep.mubr.msk.f32.mxu0 %vm280_vm0, %v522_v15  ;;  %v500_v26 = vmul.f32 %v1240_v32, %v477_v18 }
 0x14e   : > { %v976_v27 = vpop.eup %975  ;;  %v457_v30 = vadd.f32 1e-05, %v441_v19  ;;  %v530_v55 = vadd.f32 %v1246_v40, %v507_v22  ;;  %v485_v31 = vmul.f32 %v974_v16, %v1167_v1 }
 0x14f   : > { %v523_v0 = vadd.f32 %v1246_v40, %v500_v26  ;;  %v478_v33 = vmul.f32 %v976_v27, %v1176_v10 }
 0x150   : > { %989 = vrsqrt.f32 %v457_v30  ;;  %918 = vmatprep.mubr.msk.f32.mxu1 %vm280_vm0, %v530_v55  ;;  %v508_v34 = vmul.f32 %v1240_v32, %v485_v31 }
 0x151   : > { %v978_v20 = vpop.eup %977  ;;  %907 = vmatmul.mubr.msk.f32.gmra.mxu0 %vm280_vm0, %v523_v0  ;;  %v501_v38 = vmul.f32 %v1240_v32, %v478_v33 }
 0x152   : > { %v980_v39 = vpop.eup %979  ;;  %v531_v41 = vadd.f32 %v1246_v40, %v508_v34  ;;  %v486_v42 = vmul.f32 %v978_v20, %v1179_v11 }
 0x153   : > { %v524_v1 = vadd.f32 %v1246_v40, %v501_v38  ;;  %v479_v43 = vmul.f32 %v980_v39, %v1188_v23 }
 0x154   : > { %919 = vmatmul.mubr.msk.f32.gmra.mxu1 %vm280_vm0, %v531_v41  ;;  %v509_v10 = vmul.f32 %v1240_v32, %v486_v42 }
 0x155   : > { %v982_v46 = vpop.eup %981  ;;  %909 = vmatprep.mubr.msk.f32.mxu0 %vm280_vm0, %v524_v1  ;;  %v502_v24 = vmul.f32 %v1240_v32, %v479_v43 }
 0x156   : > { %v984_v48 = vpop.eup %983  ;;  %v532_v49 = vadd.f32 %v1246_v40, %v509_v10  ;;  %v487_v50 = vmul.f32 %v982_v46, %v1191_v17 }
 0x157   : > { %v525_v11 = vadd.f32 %v1246_v40, %v502_v24  ;;  %v480_v36 = vmul.f32 %v984_v48, %v1200_v35 }
 0x158   : > { %921 = vmatprep.mubr.msk.f32.mxu1 %vm280_vm0, %v532_v49  ;;  %v510_v23 = vmul.f32 %v1240_v32, %v487_v50 }
 0x159   : > { %v986_v51 = vpop.eup %985  ;;  %910 = vmatmul.mubr.msk.f32.gmra.mxu0 %vm280_vm0, %v525_v11  ;;  %v503_v52 = vmul.f32 %v1240_v32, %v480_v36 }
 0x15a   : > { %v988_v28 = vpop.eup %987  ;;  %v533_v29 = vadd.f32 %v1246_v40, %v510_v23  ;;  %v488_v53 = vmul.f32 %v986_v51, %v1203_v21 }
 0x15b   : > { %v526_v17 = vadd.f32 %v1246_v40, %v503_v52  ;;  %v481_v56 = vmul.f32 %v988_v28, %v1212_v47 }
 0x15c   : > { %922 = vmatmul.mubr.msk.f32.gmra.mxu1 %vm280_vm0, %v533_v29  ;;  %v511_v35 = vmul.f32 %v1240_v32, %v488_v53 }
 0x15d   : > { %v990_v57 = vpop.eup %989  ;;  %912 = vmatprep.mubr.msk.f32.mxu0 %vm280_vm0, %v526_v17  ;;  %v504_v58 = vmul.f32 %v1240_v32, %v481_v56 }
 0x15e   : > { %v534_v59 = vadd.f32 %v1246_v40, %v511_v35  ;;  %v489_v60 = vmul.f32 %v990_v57, %v1215_v25 }
 0x15f   : > { %v527_v21 = vadd.f32 %v1246_v40, %v504_v58 }
 0x160   : > { %924 = vmatprep.mubr.msk.f32.mxu1 %vm280_vm0, %v534_v59  ;;  %v512_v61 = vmul.f32 %v1240_v32, %v489_v60 }
 0x161   : > { %913 = vmatmul.mubr.msk.f32.gmra.mxu0 %vm280_vm0, %v527_v21 }
 0x162   : > { %v535_v47 = vadd.f32 %v1246_v40, %v512_v61 }
 0x164   : > { %925 = vmatmul.mubr.msk.f32.gmra.mxu1 %vm280_vm0, %v535_v47 }
 0x209   : > { %v905_v25 = vpop.f32.mrf.mxu0 }
 0x20a   : > { %v667_v32 = vadd.f32 %v905_v25, %v854_v44 }
 0x20b   : > { %v661_v40 = vpop.f32.mrf.mxu0 }
 0x20c   : > { %741 = vst.msk [vmem:[%s1319_s17 + $0x8] sm:$0xff] %vm280_vm0, %v667_v32  ;;  %v662_v62 = vadd.f32 %v854_v44, %v661_v40  ;;  %v917_v63 = vpop.f32.mrf.mxu1 }
 0x20d   : > { %v707_v37 = vadd.f32 %v917_v63, %v854_v44 }
 0x20e   : > { %740 = vst.msk [vmem:[%s1319_s17] sm:$0xff] %vm280_vm0, %v662_v62  ;;  %v701_v2 = vpop.f32.mrf.mxu1 }
 0x20f   : > { %749 = vst.msk [vmem:[%s1319_s17 + $0x48] sm:$0xff] %vm280_vm0, %v707_v37  ;;  %v702_v3 = vadd.f32 %v854_v44, %v701_v2 }
 0x211   : > { %748 = vst.msk [vmem:[%s1319_s17 + $0x40] sm:$0xff] %vm280_vm0, %v702_v3  ;;  %v908_v4 = vpop.f32.mrf.mxu0 }
 0x212   : > { %v677_v5 = vadd.f32 %v908_v4, %v854_v44 }
 0x213   : > { %v671_v6 = vpop.f32.mrf.mxu0 }
 0x214   : > { %743 = vst.msk [vmem:[%s1319_s17 + $0x18] sm:$0xff] %vm280_vm0, %v677_v5  ;;  %v672_v7 = vadd.f32 %v854_v44, %v671_v6  ;;  %v920_v8 = vpop.f32.mrf.mxu1 }
 0x215   : > { %v717_v45 = vadd.f32 %v920_v8, %v854_v44 }
 0x216   : > { %742 = vst.msk [vmem:[%s1319_s17 + $0x10] sm:$0xff] %vm280_vm0, %v672_v7  ;;  %v711_v9 = vpop.f32.mrf.mxu1 }
 0x217   : > { %751 = vst.msk [vmem:[%s1319_s17 + $0x58] sm:$0xff] %vm280_vm0, %v717_v45  ;;  %v712_v12 = vadd.f32 %v854_v44, %v711_v9 }
 0x219   : > { %750 = vst.msk [vmem:[%s1319_s17 + $0x50] sm:$0xff] %vm280_vm0, %v712_v12  ;;  %v911_v13 = vpop.f32.mrf.mxu0 }
 0x21a   : > { %v687_v54 = vadd.f32 %v911_v13, %v854_v44 }
 0x21b   : > { %v681_v14 = vpop.f32.mrf.mxu0 }
 0x21c   : > { %745 = vst.msk [vmem:[%s1319_s17 + $0x28] sm:$0xff] %vm280_vm0, %v687_v54  ;;  %v682_v15 = vadd.f32 %v854_v44, %v681_v14  ;;  %v923_v18 = vpop.f32.mrf.mxu1 }
 0x21d   : > { %v727_v19 = vadd.f32 %v923_v18, %v854_v44 }
 0x21e   : > { %744 = vst.msk [vmem:[%s1319_s17 + $0x20] sm:$0xff] %vm280_vm0, %v682_v15  ;;  %v721_v22 = vpop.f32.mrf.mxu1 }
 0x21f   : > { %753 = vst.msk [vmem:[%s1319_s17 + $0x68] sm:$0xff] %vm280_vm0, %v727_v19  ;;  %v722_v16 = vadd.f32 %v854_v44, %v721_v22 }
 0x221   : > { %752 = vst.msk [vmem:[%s1319_s17 + $0x60] sm:$0xff] %vm280_vm0, %v722_v16  ;;  %v914_v26 = vpop.f32.mrf.mxu0 }
 0x222   : > { %v697_v27 = vadd.f32 %v914_v26, %v854_v44 }
 0x223   : > { %v691_v30 = vpop.f32.mrf.mxu0 }
 0x224   : > { %747 = vst.msk [vmem:[%s1319_s17 + $0x38] sm:$0xff] %vm280_vm0, %v697_v27  ;;  %v692_v55 = vadd.f32 %v854_v44, %v691_v30  ;;  %v926_v31 = vpop.f32.mrf.mxu1 }
 0x225   : > { %v737_v0 = vadd.f32 %v926_v31, %v854_v44 }
 0x226   : > { %746 = vst.msk [vmem:[%s1319_s17 + $0x30] sm:$0xff] %vm280_vm0, %v692_v55  ;;  %v731_v33 = vpop.f32.mrf.mxu1 }
 0x227   : > { %755 = vst.msk [vmem:[%s1319_s17 + $0x78] sm:$0xff] %vm280_vm0, %v737_v0  ;;  %v732_v34 = vadd.f32 %v854_v44, %v731_v33 }
 0x229   : > { %754 = vst.msk [vmem:[%s1319_s17 + $0x70] sm:$0xff] %vm280_vm0, %v732_v34 }
 0x22a PF: > { %s15_s20 = sadd.s32 1, %s1013_s20   ;;  %s1368_s18 = smov %s1009_s19 }
 0x22b   : > { %p12_p5 = scmp.ge.s32.totalorder %s15_s20, 4   ;;  %s1369_s19 = smov %s1371_s21 }
 0x22d   :  { %14 = sbr.rel (!%p12_p5) target bundleno = 2 (0x2), region = 70 }

// kernel: _lambda_.21
= control target key start
LH: loop header
LB: loop body
LE: loop exit
PB: predicated region body
PF: predicated region fallthrough
CT: control target
= control target key end

     0   :  { %s717_s12 = smov 0   ;;  %s719_s13 = smov 0   ;;  %s852_s0 = inlined_call_operand.vmem [shape: f32[2,128,64], index: 0, kind: input, shape index: {}]   ;;  %s853_s1 = inlined_call_operand.vmem [shape: f32[64,32], index: 1, kind: input, shape index: {}]   ;;  %s854_s2 = inlined_call_operand.vmem [shape: f32[1,32], index: 2, kind: input, shape index: {}]   ;;  %s855_s3 = inlined_call_operand.vmem [shape: f32[2,128,32], index: 3, kind: output, shape index: {}]  }
   0x1   :  { %s721_s14 = smov 0  }
   0x2 LB: > { %s25_s15 = sadd.s32 1, %s691_s13  ;;  %p543_p0 = scmp.ge.s32.totalorder %s695_s14, 1  ;;  %s695_s14 = sphi %s721_s14, %s13_s14   ;;  %s691_s13 = sphi %s719_s13, %s857_s13   ;;  %s687_s12 = sphi %s717_s12, %s856_s12  }
   0x3   : > { %p27_p1 = scmp.ge.s32.totalorder %s25_s15, 2  ;;  %p158_p2 = scmp.lt.s32.totalorder %s695_s14, 3 }
   0x5   : > { %s859_s15 = smov (%p27_p1, %s25_s15), 0  ;;  %p159_p3 = pnand %p543_p0, %p158_p2 }
   0x6   : > { %p191_p4 = scmp.lt.s32.totalorder (!%p159_p3), %s687_s12, 1 }
   0x7   : > { %162 = sbr.rel (%p159_p3) target bundleno = 240 (0xf0), region = 32 }
   0xc   : > { %v233_v0 = vld [vmem:[%s853_s1 + $0x38] sm:$0xff]  ;;  %v232_v1 = vld [vmem:[%s853_s1 + $0x30] sm:$0xff]  ;;  %v231_v2 = vld [vmem:[%s853_s1 + $0x28] sm:$0xff]  ;;  %s861_s12 = smov (!%p191_p4, %s687_s12), 1  ;;  %vm241_vm0 = vcmask 523264   ;;  %vm435_vm1 = vcmask 261120  }
   0xd   : > { %593 = vmatprep.subr.mxu0 %v233_v0  ;;  %633 = vmatprep.subr.mxu1 %v233_v0  ;;  %v230_v3 = vld [vmem:[%s853_s1 + $0x20] sm:$0xff]  ;;  %v229_v4 = vld [vmem:[%s853_s1 + $0x18] sm:$0xff]  ;;  %v228_v5 = vld [vmem:[%s853_s1 + $0x10] sm:$0xff]  ;;  %s567_s28 = sshll.u32 %s861_s12, 7 }
   0xe   : > { %594 = vmatpush3.msra.mxu0 %v233_v0  ;;  %641 = vmatpush3.msra.mxu1 %v233_v0  ;;  %v227_v6 = vld [vmem:[%s853_s1 + $0x8] sm:$0xff]  ;;  %s764_s6 = scalar_lea.vmem %s852_s0, %s567_s28  ;;  %v226_v7 = vld [vmem:[%s853_s1] sm:$0xff]  ;;  %s809_s17 = scalar_lea.vmem %s855_s3, %s567_s28 }
   0xf   : > { %595 = vmatprep.subr.mxu0 %v232_v1  ;;  %634 = vmatprep.subr.mxu1 %v232_v1  ;;  %v210_v8 = vld [vmem:[%s764_s6] sm:$0xff]  ;;  %v211_v10 = vld [vmem:[%s764_s6 + $0x8] sm:$0xff]  ;;  %v212_v12 = vld [vmem:[%s764_s6 + $0x10] sm:$0xff] }
  0x10   : > { %596 = vmatpush3.msra.mxu0 %v232_v1  ;;  %642 = vmatpush3.msra.mxu1 %v232_v1  ;;  %v218_v9 = vld [vmem:[%s764_s6 + $0x40] sm:$0xff]  ;;  %v219_v11 = vld [vmem:[%s764_s6 + $0x48] sm:$0xff]  ;;  %v220_v13 = vld [vmem:[%s764_s6 + $0x50] sm:$0xff] }
  0x11   : > { %597 = vmatprep.subr.mxu0 %v231_v2  ;;  %635 = vmatprep.subr.mxu1 %v231_v2  ;;  %v213_v14 = vld [vmem:[%s764_s6 + $0x18] sm:$0xff]  ;;  %v214_v16 = vld [vmem:[%s764_s6 + $0x20] sm:$0xff]  ;;  %v215_v18 = vld [vmem:[%s764_s6 + $0x28] sm:$0xff] }
  0x12   : > { %598 = vmatpush3.msra.mxu0 %v231_v2  ;;  %643 = vmatpush3.msra.mxu1 %v231_v2  ;;  %v221_v15 = vld [vmem:[%s764_s6 + $0x58] sm:$0xff]  ;;  %v222_v17 = vld [vmem:[%s764_s6 + $0x60] sm:$0xff]  ;;  %v223_v19 = vld [vmem:[%s764_s6 + $0x68] sm:$0xff] }
  0x13   : > { %599 = vmatprep.subr.mxu0 %v230_v3  ;;  %636 = vmatprep.subr.mxu1 %v230_v3  ;;  %v216_v20 = vld [vmem:[%s764_s6 + $0x30] sm:$0xff]  ;;  %v217_v22 = vld [vmem:[%s764_s6 + $0x38] sm:$0xff]  ;;  %v548_v24 = vld [vmem:[%s854_s2] ss:$0 sm:$0xff] }
  0x14   : > { %600 = vmatpush3.msra.mxu0 %v230_v3  ;;  %644 = vmatpush3.msra.mxu1 %v230_v3  ;;  %v224_v21 = vld [vmem:[%s764_s6 + $0x70] sm:$0xff]  ;;  %v225_v23 = vld [vmem:[%s764_s6 + $0x78] sm:$0xff] }
  0x15   : > { %601 = vmatprep.subr.mxu0 %v229_v4  ;;  %637 = vmatprep.subr.mxu1 %v229_v4 }
  0x16   : > { %602 = vmatpush3.msra.mxu0 %v229_v4  ;;  %645 = vmatpush3.msra.mxu1 %v229_v4 }
  0x17   : > { %603 = vmatprep.subr.mxu0 %v228_v5  ;;  %638 = vmatprep.subr.mxu1 %v228_v5 }
  0x18   : > { %604 = vmatpush3.msra.mxu0 %v228_v5  ;;  %646 = vmatpush3.msra.mxu1 %v228_v5 }
  0x19   : > { %605 = vmatprep.subr.mxu0 %v227_v6  ;;  %639 = vmatprep.subr.mxu1 %v227_v6 }
  0x1a   : > { %606 = vmatpush3.msra.mxu0 %v227_v6  ;;  %647 = vmatpush3.msra.mxu1 %v227_v6 }
  0x1b   : > { %607 = vmatprep.subr.mxu0 %v226_v7  ;;  %640 = vmatprep.subr.mxu1 %v226_v7 }
  0x1c   : > { %608 = vmatpush3.msra.mxu0 %v226_v7  ;;  %648 = vmatpush3.msra.mxu1 %v226_v7 }
  0x1d   : > { %609 = vmatprep.mubr.msk.f32.mxu0 %vm241_vm0, %v210_v8  ;;  %621 = vmatprep.mubr.msk.f32.mxu1 %vm241_vm0, %v218_v9 }
  0x1e   : > { %610 = vmatmul.mubr.msk.f32.vlgmr.msra.gmra.mxu0 %vm241_vm0, %v211_v10  ;;  %622 = vmatmul.mubr.msk.f32.vlgmr.msra.gmra.mxu1 %vm241_vm0, %v219_v11 }
  0x1f   : > { %612 = vmatprep.mubr.msk.f32.mxu0 %vm241_vm0, %v212_v12  ;;  %624 = vmatprep.mubr.msk.f32.mxu1 %vm241_vm0, %v220_v13 }
  0x22   : > { %613 = vmatmul.mubr.msk.f32.gmra.mxu0 %vm241_vm0, %v213_v14  ;;  %625 = vmatmul.mubr.msk.f32.gmra.mxu1 %vm241_vm0, %v221_v15 }
  0x23   : > { %615 = vmatprep.mubr.msk.f32.mxu0 %vm241_vm0, %v214_v16  ;;  %627 = vmatprep.mubr.msk.f32.mxu1 %vm241_vm0, %v222_v17 }
  0x26   : > { %616 = vmatmul.mubr.msk.f32.gmra.mxu0 %vm241_vm0, %v215_v18  ;;  %628 = vmatmul.mubr.msk.f32.gmra.mxu1 %vm241_vm0, %v223_v19 }
  0x27   : > { %618 = vmatprep.mubr.msk.f32.mxu0 %vm241_vm0, %v216_v20  ;;  %630 = vmatprep.mubr.msk.f32.mxu1 %vm241_vm0, %v224_v21 }
  0x2a   : > { %619 = vmatmul.mubr.msk.f32.gmra.mxu0 %vm241_vm0, %v217_v22  ;;  %631 = vmatmul.mubr.msk.f32.gmra.mxu1 %vm241_vm0, %v225_v23 }
  0xde   : > { %v611_v25 = vpop.f32.mrf.mxu0  ;;  %v623_v26 = vpop.f32.mrf.mxu1 }
  0xdf   : > { %v362_v27 = vadd.f32 %v611_v25, %v548_v24  ;;  %v402_v28 = vadd.f32 %v623_v26, %v548_v24 }
  0xe0   : > { %v356_v29 = vpop.f32.mrf.mxu0  ;;  %v396_v30 = vpop.f32.mrf.mxu1 }
  0xe1   : > { %437 = vst.msk [vmem:[%s809_s17 + $0x8] sm:$0xff] %vm435_vm1, %v362_v27  ;;  %445 = vst.msk [vmem:[%s809_s17 + $0x48] sm:$0xff] %vm435_vm1, %v402_v28  ;;  %v357_v31 = vadd.f32 %v548_v24, %v356_v29  ;;  %v397_v32 = vadd.f32 %v548_v24, %v396_v30 }
  0xe2   : > { %v614_v33 = vpop.f32.mrf.mxu0  ;;  %v626_v34 = vpop.f32.mrf.mxu1 }
  0xe3   : > { %436 = vst.msk [vmem:[%s809_s17] sm:$0xff] %vm435_vm1, %v357_v31  ;;  %444 = vst.msk [vmem:[%s809_s17 + $0x40] sm:$0xff] %vm435_vm1, %v397_v32  ;;  %v372_v35 = vadd.f32 %v614_v33, %v548_v24  ;;  %v412_v36 = vadd.f32 %v626_v34, %v548_v24 }
  0xe4   : > { %v366_v37 = vpop.f32.mrf.mxu0  ;;  %v406_v38 = vpop.f32.mrf.mxu1 }
  0xe5   : > { %439 = vst.msk [vmem:[%s809_s17 + $0x18] sm:$0xff] %vm435_vm1, %v372_v35  ;;  %447 = vst.msk [vmem:[%s809_s17 + $0x58] sm:$0xff] %vm435_vm1, %v412_v36  ;;  %v367_v39 = vadd.f32 %v548_v24, %v366_v37  ;;  %v407_v40 = vadd.f32 %v548_v24, %v406_v38 }
  0xe6   : > { %v617_v41 = vpop.f32.mrf.mxu0  ;;  %v629_v42 = vpop.f32.mrf.mxu1 }
  0xe7   : > { %438 = vst.msk [vmem:[%s809_s17 + $0x10] sm:$0xff] %vm435_vm1, %v367_v39  ;;  %446 = vst.msk [vmem:[%s809_s17 + $0x50] sm:$0xff] %vm435_vm1, %v407_v40  ;;  %v382_v43 = vadd.f32 %v617_v41, %v548_v24  ;;  %v422_v44 = vadd.f32 %v629_v42, %v548_v24 }
  0xe8   : > { %v376_v45 = vpop.f32.mrf.mxu0  ;;  %v416_v46 = vpop.f32.mrf.mxu1 }
  0xe9   : > { %441 = vst.msk [vmem:[%s809_s17 + $0x28] sm:$0xff] %vm435_vm1, %v382_v43  ;;  %449 = vst.msk [vmem:[%s809_s17 + $0x68] sm:$0xff] %vm435_vm1, %v422_v44  ;;  %v377_v47 = vadd.f32 %v548_v24, %v376_v45  ;;  %v417_v48 = vadd.f32 %v548_v24, %v416_v46 }
  0xea   : > { %v620_v49 = vpop.f32.mrf.mxu0  ;;  %v632_v50 = vpop.f32.mrf.mxu1 }
  0xeb   : > { %440 = vst.msk [vmem:[%s809_s17 + $0x20] sm:$0xff] %vm435_vm1, %v377_v47  ;;  %448 = vst.msk [vmem:[%s809_s17 + $0x60] sm:$0xff] %vm435_vm1, %v417_v48  ;;  %v392_v51 = vadd.f32 %v620_v49, %v548_v24  ;;  %v432_v52 = vadd.f32 %v632_v50, %v548_v24 }
  0xec   : > { %v386_v53 = vpop.f32.mrf.mxu0  ;;  %v426_v54 = vpop.f32.mrf.mxu1 }
  0xed   : > { %443 = vst.msk [vmem:[%s809_s17 + $0x38] sm:$0xff] %vm435_vm1, %v392_v51  ;;  %451 = vst.msk [vmem:[%s809_s17 + $0x78] sm:$0xff] %vm435_vm1, %v432_v52  ;;  %v387_v55 = vadd.f32 %v548_v24, %v386_v53  ;;  %v427_v56 = vadd.f32 %v548_v24, %v426_v54 }
  0xef   : > { %442 = vst.msk [vmem:[%s809_s17 + $0x30] sm:$0xff] %vm435_vm1, %v387_v55  ;;  %450 = vst.msk [vmem:[%s809_s17 + $0x70] sm:$0xff] %vm435_vm1, %v427_v56 }
  0xf0 PF: > { %s13_s14 = sadd.s32 1, %s695_s14   ;;  %s856_s12 = smov %s691_s13 }
  0xf1   : > { %p10_p5 = scmp.ge.s32.totalorder %s13_s14, 4   ;;  %s857_s13 = smov %s859_s15 }
  0xf3   :  { %12 = sbr.rel (!%p10_p5) target bundleno = 2 (0x2), region = 62 }

</bundles_post_ra>
